<compile_context>
chip_gen: v7x
topology: tpu7x:2x2x1
jax: 0.10.0
libtpu: 0.0.40
codegen_flags: <defaults>
</compile_context>

<pallas_src>
import functools

import numpy as np

import jax
import jax.numpy as jnp
from jax.experimental import pallas as pl
from jax.experimental.pallas import tpu as pltpu


# --------------------------------------------------------------------------
# Fully fused ICM forward kernel
# --------------------------------------------------------------------------
def _icm_kernel(obs_ref, new_obs_ref, act_ref,
                k1_ref, b1_ref, wbig_ref, bbig_ref,
                wis_ref, win_ref, bi_ref, wp_ref, bp_ref,
                wd_ref, wda_ref, bd_ref, wn_ref, bn_ref,
                out_main_ref, pi_ref,
                x_scr,
                *, B):
    f32 = jnp.float32
    bf16 = jnp.bfloat16

    def elu(v):
        # F.elu(alpha=1): x if x > 0 else exp(x) - 1.
        # exp(min(v, 0)) keeps the unselected branch finite; exp lowers to the EUP.
        return jnp.where(v > 0.0, v, jnp.exp(jnp.minimum(v, 0.0)) - 1.0)

    # ---- encoder: obs and new_obs batched through two fused dense matmuls ----
    x_scr[0:B, :] = obs_ref[...]
    x_scr[B:2 * B, :] = new_obs_ref[...]
    x = x_scr[...].astype(bf16)                                    # (2B, C*H*W)

    # conv1 (stride2/pad1 im2col folded into a dense matrix) + bias, then ELU.
    z1 = jnp.dot(x, k1_ref[...], preferred_element_type=f32) + b1_ref[...]
    a1 = elu(z1).astype(bf16)                                      # (2B, 32*P1)

    # conv2 + NCHW flatten + fc1 folded into a single dense matrix (all linear).
    feats = jnp.dot(a1, wbig_ref[...], preferred_element_type=f32) + bbig_ref[...]

    state = feats[0:B, :]                                          # obs features
    new_state = feats[B:2 * B, :]                                  # new_obs features
    sb = state.astype(bf16)
    nb = new_state.astype(bf16)

    # ---- inverse head + pi logits (concat replaced by split weights) --------
    inv = (jnp.dot(sb, wis_ref[...], preferred_element_type=f32)
           + jnp.dot(nb, win_ref[...], preferred_element_type=f32)
           + bi_ref[...])
    inv = elu(inv)
    pi = (jnp.dot(inv.astype(bf16), wp_ref[...], preferred_element_type=f32)
          + bp_ref[...])
    pi_ref[...] = pi.astype(pi_ref.dtype)

    # ---- forward model: dense1 + new_state prediction ------------------------
    dense = (jnp.dot(sb, wd_ref[...], preferred_element_type=f32)
             + act_ref[...] * wda_ref[...]        # (B,1) * (1,256) action column
             + bd_ref[...])
    dense = elu(dense)
    pred = (jnp.dot(dense.astype(bf16), wn_ref[...], preferred_element_type=f32)
            + bn_ref[...])

    # ---- packed writeback: rows [0:B] = new_state, rows [B:2B] = prediction --
    out_main_ref[0:B, :] = new_state.astype(out_main_ref.dtype)
    out_main_ref[B:2 * B, :] = pred.astype(out_main_ref.dtype)


# --------------------------------------------------------------------------
# Init-time weight folding (host-side numpy, runs once)
# --------------------------------------------------------------------------
def _conv_as_dense(w, Hin, Win, stride=2, pad=1):
    """Fold an OIHW conv (3x3, stride 2, pad 1) into a dense matrix.

    Maps input flattened as (ci, h, w) [NCHW row-major] to output flattened as
    (co, oh, ow).  Returns (K, Hout, Wout) with K shape (Cin*Hin*Win, Cout*Hout*Wout).
    """
    w = np.asarray(w, np.float32)
    Cout, Cin, KH, KW = w.shape
    Hout = (Hin + 2 * pad - KH) // stride + 1
    Wout = (Win + 2 * pad - KW) // stride + 1
    K = np.zeros((Cin * Hin * Win, Cout * Hout * Wout), np.float32)
    wt = np.transpose(w, (1, 0, 2, 3))                   # (Cin, Cout, KH, KW)
    ci = np.arange(Cin)[:, None]
    co = np.arange(Cout)[None, :]
    for oh in range(Hout):
        for ow in range(Wout):
            p = oh * Wout + ow
            for kh in range(KH):
                h = stride * oh + kh - pad
                if not (0 <= h < Hin):
                    continue
                for kw in range(KW):
                    wc = stride * ow + kw - pad
                    if not (0 <= wc < Win):
                        continue
                    src = h * Win + wc
                    K[ci * (Hin * Win) + src, co * (Hout * Wout) + p] = wt[:, :, kh, kw]
    return K, Hout, Wout


def prepare_icm_params(params, input_dims):
    """One-time preprocessing of PyTorch-layout weights into kernel-ready matrices."""
    C, H, W = input_dims
    K1, H1, W1 = _conv_as_dense(params["conv1_w"], H, W)          # (C*H*W, 32*P1)
    K2, H2, W2 = _conv_as_dense(params["conv2_w"], H1, W1)        # (32*P1, 32*P2)
    P1, P2 = H1 * W1, H2 * W2

    fc1_w = np.asarray(params["fc1_w"], np.float32)               # (32*P2, F), NCHW-flatten rows
    fc1_b = np.asarray(params["fc1_b"], np.float32)
    F = fc1_w.shape[1]

    wbig = K2 @ fc1_w                                             # conv2 + flatten + fc1 fused
    bbig = fc1_b + np.repeat(np.asarray(params["conv2_b"], np.float32), P2) @ fc1_w
    b1row = np.repeat(np.asarray(params["conv1_b"], np.float32), P1)

    inverse_w = np.asarray(params["inverse_w"], np.float32)       # (2F, 256)
    dense1_w = np.asarray(params["dense1_w"], np.float32)         # (F+1, 256)

    def row(b):
        return jnp.asarray(np.asarray(b, np.float32).reshape(1, -1), jnp.float32)

    return {
        "k1": jnp.asarray(K1, jnp.bfloat16),
        "b1": row(b1row),
        "wbig": jnp.asarray(wbig, jnp.bfloat16),
        "bbig": row(bbig),
        "wi_s": jnp.asarray(inverse_w[:F], jnp.bfloat16),
        "wi_n": jnp.asarray(inverse_w[F:], jnp.bfloat16),
        "bi": row(params["inverse_b"]),
        "wp": jnp.asarray(params["pi_w"], jnp.bfloat16),
        "bp": row(params["pi_b"]),
        "wd": jnp.asarray(dense1_w[:F], jnp.bfloat16),
        "wda": row(dense1_w[F:F + 1]),                            # action column, f32
        "bd": row(params["dense1_b"]),
        "wn": jnp.asarray(params["new_state_w"], jnp.bfloat16),
        "bn": row(params["new_state_b"]),
    }


# --------------------------------------------------------------------------
# pallas_call glue
# --------------------------------------------------------------------------
def _icm_pallas(kp, obs_flat, new_obs_flat, action_col, *, B):
    CHW = obs_flat.shape[1]
    K1N = kp["k1"].shape[1]
    F = kp["wbig"].shape[1]
    Hd = kp["bi"].shape[1]
    A = kp["wp"].shape[1]

    inputs = (obs_flat, new_obs_flat, action_col,
              kp["k1"], kp["b1"], kp["wbig"], kp["bbig"],
              kp["wi_s"], kp["wi_n"], kp["bi"], kp["wp"], kp["bp"],
              kp["wd"], kp["wda"], kp["bd"], kp["wn"], kp["bn"])

    out_shape = (jax.ShapeDtypeStruct((2 * B, F), jnp.float32),   # [new_state ; pred]
                 jax.ShapeDtypeStruct((B, A), jnp.float32))       # pi logits

    in_specs = [pl.BlockSpec(tuple(a.shape), lambda i: (0, 0)) for a in inputs]
    out_specs = (pl.BlockSpec((2 * B, F), lambda i: (0, 0)),
                 pl.BlockSpec((B, A), lambda i: (0, 0)))

    flops = 2 * (2 * B * CHW * K1N + 2 * B * K1N * F
                 + 2 * B * F * Hd + B * Hd * A + B * F * Hd + B * Hd * F)
    transcendentals = 2 * B * K1N + 2 * B * Hd
    bytes_accessed = int(sum(int(a.size) * a.dtype.itemsize for a in inputs)
                         + (2 * B * F + B * A) * 4)

    kernel = functools.partial(_icm_kernel, B=B)
    return pl.pallas_call(
        kernel,
        out_shape=out_shape,
        grid=(1,),
        in_specs=in_specs,
        out_specs=out_specs,
        scratch_shapes=[pltpu.VMEM((2 * B, CHW), jnp.float32)],
        compiler_params=pltpu.CompilerParams(
            dimension_semantics=("arbitrary",),
            vmem_limit_bytes=32 * 1024 * 1024),
        cost_estimate=pl.CostEstimate(flops=flops,
                                      transcendentals=transcendentals,
                                      bytes_accessed=bytes_accessed),
    )(*inputs)


@jax.jit
def icm_forward(kp, obs, new_obs, action):
    """ICM forward: returns (new_state, pi_logits, predicted_new_state)."""
    B = obs.shape[0]
    obs_flat = obs.reshape(B, -1).astype(jnp.float32)          # free reshape (NCHW row-major)
    new_obs_flat = new_obs.reshape(B, -1).astype(jnp.float32)
    action_col = action.reshape(B, 1).astype(jnp.float32)
    out_main, pi_logits = _icm_pallas(kp, obs_flat, new_obs_flat, action_col, B=B)
    return out_main[:B], pi_logits, out_main[B:]


# --------------------------------------------------------------------------
# Deterministic parameter init (PyTorch-like uniform(-1/sqrt(fan_in), ...))
# --------------------------------------------------------------------------
def _linear_init(key, fan_in, fan_out):
    kw, kb = jax.random.split(key)
    bound = 1.0 / float(fan_in) ** 0.5
    w = jax.random.uniform(kw, (fan_in, fan_out), jnp.float32, -bound, bound)
    b = jax.random.uniform(kb, (fan_out,), jnp.float32, -bound, bound)
    return w, b


def _conv_init(key, cin, cout, k):
    kw, kb = jax.random.split(key)
    fan_in = cin * k * k
    bound = 1.0 / float(fan_in) ** 0.5
    w = jax.random.uniform(kw, (cout, cin, k, k), jnp.float32, -bound, bound)
    b = jax.random.uniform(kb, (cout,), jnp.float32, -bound, bound)
    return w, b


def init_params(key, input_dims=(4, 16, 16), n_actions=4, feature_dim=288):
    C, H, W = input_dims
    h1 = (H + 2 - 3) // 2 + 1
    w1 = (W + 2 - 3) // 2 + 1
    h2 = (h1 + 2 - 3) // 2 + 1
    w2 = (w1 + 2 - 3) // 2 + 1
    flat = 32 * h2 * w2                               # Encoder.conv_output()

    ks = jax.random.split(key, 7)
    p = {}
    p["conv1_w"], p["conv1_b"] = _conv_init(ks[0], C, 32, 3)
    p["conv2_w"], p["conv2_b"] = _conv_init(ks[1], 32, 32, 3)
    p["fc1_w"], p["fc1_b"] = _linear_init(ks[2], flat, feature_dim)
    p["inverse_w"], p["inverse_b"] = _linear_init(ks[3], feature_dim * 2, 256)
    p["pi_w"], p["pi_b"] = _linear_init(ks[4], 256, n_actions)
    p["dense1_w"], p["dense1_b"] = _linear_init(ks[5], feature_dim + 1, 256)
    p["new_state_w"], p["new_state_b"] = _linear_init(ks[6], 256, feature_dim)
    return p


# --------------------------------------------------------------------------
# Pure-JAX reference (for correctness verification only)
# --------------------------------------------------------------------------
def _ref_forward(params, obs, new_obs, action):
    def elu(x):
        return jnp.where(x > 0, x, jnp.expm1(x))

    def enc(img):
        x = jax.lax.conv_general_dilated(img, params["conv1_w"], (2, 2),
                                         [(1, 1), (1, 1)],
                                         dimension_numbers=("NCHW", "OIHW", "NCHW"))
        x = elu(x + params["conv1_b"].reshape(1, -1, 1, 1))
        x = jax.lax.conv_general_dilated(x, params["conv2_w"], (2, 2),
                                         [(1, 1), (1, 1)],
                                         dimension_numbers=("NCHW", "OIHW", "NCHW"))
        x = x + params["conv2_b"].reshape(1, -1, 1, 1)
        flat = x.reshape(x.shape[0], -1)
        return flat @ params["fc1_w"] + params["fc1_b"]

    state = enc(obs)
    new_state = enc(new_obs)
    inv = elu(jnp.concatenate([state, new_state], axis=1) @ params["inverse_w"]
              + params["inverse_b"])
    pi = inv @ params["pi_w"] + params["pi_b"]
    a = action.reshape(-1, 1).astype(jnp.float32)
    d = elu(jnp.concatenate([state, a], axis=1) @ params["dense1_w"] + params["dense1_b"])
    pred = d @ params["new_state_w"] + params["new_state_b"]
    return new_state, pi, pred


if __name__ == "__main__":
    key = jax.random.PRNGKey(0)
    k_param, k_obs, k_new_obs, k_act = jax.random.split(key, 4)

    B = 2
    input_dims = (4, 16, 16)
    n_actions = 4
    feature_dim = 288

    params = init_params(k_param, input_dims, n_actions, feature_dim)
    kparams = prepare_icm_params(params, input_dims)   # one-time weight folding

    obs = jax.random.normal(k_obs, (B,) + input_dims, jnp.float32)
    new_obs = jax.random.normal(k_new_obs, (B,) + input_dims, jnp.float32)
    action = jax.random.randint(k_act, (B,), 0, n_actions).astype(jnp.float32)

    new_state, pi_logits, state_ = icm_forward(kparams, obs, new_obs, action)
    jax.block_until_ready((new_state, pi_logits, state_))

    assert new_state.shape == (B, feature_dim)
    assert pi_logits.shape == (B, n_actions)
    assert state_.shape == (B, feature_dim)

    # Sanity-check against a pure-JAX reference (loose tolerance: kernel uses
    # bf16 weights + MXU f32 accumulation; reference uses default-precision f32).
    ref = _ref_forward(params, obs, new_obs, action)
    for got, want in zip((new_state, pi_logits, state_), ref):
        np.testing.assert_allclose(np.asarray(got), np.asarray(want),
                                   rtol=5e-2, atol=5e-2)

    print("KERNEL_OK")
</pallas_src>

<mosaic_0001>
module attributes {stable_mosaic.version = 11 : i64} {
  func.func @_icm_kernel(%arg0: i32, %arg1: memref<2x1024xf32, #tpu.memory_space<vmem>>, %arg2: memref<2x1024xf32, #tpu.memory_space<vmem>>, %arg3: memref<2x1xf32, #tpu.memory_space<vmem>>, %arg4: memref<1024x2048xbf16, #tpu.memory_space<vmem>>, %arg5: memref<1x2048xf32, #tpu.memory_space<vmem>>, %arg6: memref<2048x288xbf16, #tpu.memory_space<vmem>>, %arg7: memref<1x288xf32, #tpu.memory_space<vmem>>, %arg8: memref<288x256xbf16, #tpu.memory_space<vmem>>, %arg9: memref<288x256xbf16, #tpu.memory_space<vmem>>, %arg10: memref<1x256xf32, #tpu.memory_space<vmem>>, %arg11: memref<256x4xbf16, #tpu.memory_space<vmem>>, %arg12: memref<1x4xf32, #tpu.memory_space<vmem>>, %arg13: memref<288x256xbf16, #tpu.memory_space<vmem>>, %arg14: memref<1x256xf32, #tpu.memory_space<vmem>>, %arg15: memref<1x256xf32, #tpu.memory_space<vmem>>, %arg16: memref<256x288xbf16, #tpu.memory_space<vmem>>, %arg17: memref<1x288xf32, #tpu.memory_space<vmem>>, %arg18: memref<4x288xf32, #tpu.memory_space<vmem>>, %arg19: memref<2x4xf32, #tpu.memory_space<vmem>>, %arg20: memref<4x1024xf32, #tpu.memory_space<vmem>>) attributes {dimension_semantics = [#tpu.dimension_semantics<arbitrary>], iteration_bounds = array<i64: 1>, scalar_prefetch = 0 : i64, scratch_operands = 1 : i64, tpu.core_type = #tpu.core_type<tc>, window_params = [{pipeline_mode = #tpu.pipeline_mode<synchronous>, transform_indices = @transform_0, window_bounds = array<i64: 2, 1024>}, {pipeline_mode = #tpu.pipeline_mode<synchronous>, transform_indices = @transform_1, window_bounds = array<i64: 2, 1024>}, {pipeline_mode = #tpu.pipeline_mode<synchronous>, transform_indices = @transform_2, window_bounds = array<i64: 2, 1>}, {pipeline_mode = #tpu.pipeline_mode<synchronous>, transform_indices = @transform_3, window_bounds = array<i64: 1024, 2048>}, {pipeline_mode = #tpu.pipeline_mode<synchronous>, transform_indices = @transform_4, window_bounds = array<i64: 1, 2048>}, {pipeline_mode = #tpu.pipeline_mode<synchronous>, transform_indices = @transform_5, window_bounds = array<i64: 2048, 288>}, {pipeline_mode = #tpu.pipeline_mode<synchronous>, transform_indices = @transform_6, window_bounds = array<i64: 1, 288>}, {pipeline_mode = #tpu.pipeline_mode<synchronous>, transform_indices = @transform_7, window_bounds = array<i64: 288, 256>}, {pipeline_mode = #tpu.pipeline_mode<synchronous>, transform_indices = @transform_8, window_bounds = array<i64: 288, 256>}, {pipeline_mode = #tpu.pipeline_mode<synchronous>, transform_indices = @transform_9, window_bounds = array<i64: 1, 256>}, {pipeline_mode = #tpu.pipeline_mode<synchronous>, transform_indices = @transform_10, window_bounds = array<i64: 256, 4>}, {pipeline_mode = #tpu.pipeline_mode<synchronous>, transform_indices = @transform_11, window_bounds = array<i64: 1, 4>}, {pipeline_mode = #tpu.pipeline_mode<synchronous>, transform_indices = @transform_12, window_bounds = array<i64: 288, 256>}, {pipeline_mode = #tpu.pipeline_mode<synchronous>, transform_indices = @transform_13, window_bounds = array<i64: 1, 256>}, {pipeline_mode = #tpu.pipeline_mode<synchronous>, transform_indices = @transform_14, window_bounds = array<i64: 1, 256>}, {pipeline_mode = #tpu.pipeline_mode<synchronous>, transform_indices = @transform_15, window_bounds = array<i64: 256, 288>}, {pipeline_mode = #tpu.pipeline_mode<synchronous>, transform_indices = @transform_16, window_bounds = array<i64: 1, 288>}, {pipeline_mode = #tpu.pipeline_mode<synchronous>, transform_indices = @transform_17, window_bounds = array<i64: 4, 288>}, {pipeline_mode = #tpu.pipeline_mode<synchronous>, transform_indices = @transform_18, window_bounds = array<i64: 2, 4>}]} {
    %c0 = arith.constant 0 : index
    %c0_0 = arith.constant 0 : index
    %0 = vector.load %arg1[%c0, %c0_0] : memref<2x1024xf32, #tpu.memory_space<vmem>>, vector<2x1024xf32>
    %c0_1 = arith.constant 0 : index
    %c0_2 = arith.constant 0 : index
    %1 = vector.load %arg20[%c0_1, %c0_2] : memref<4x1024xf32, #tpu.memory_space<vmem>>, vector<2x1024xf32>
    tpu.vector_store %arg20[%c0_1, %c0_2], %0 {strides = array<i32>} : memref<4x1024xf32, #tpu.memory_space<vmem>>, vector<2x1024xf32>,
    %c0_3 = arith.constant 0 : index
    %c0_4 = arith.constant 0 : index
    %2 = vector.load %arg2[%c0_3, %c0_4] : memref<2x1024xf32, #tpu.memory_space<vmem>>, vector<2x1024xf32>
    %c2 = arith.constant 2 : index
    %c0_5 = arith.constant 0 : index
    %3 = vector.load %arg20[%c2, %c0_5] : memref<4x1024xf32, #tpu.memory_space<vmem>>, vector<2x1024xf32>
    tpu.vector_store %arg20[%c2, %c0_5], %2 {strides = array<i32>} : memref<4x1024xf32, #tpu.memory_space<vmem>>, vector<2x1024xf32>,
    %c0_6 = arith.constant 0 : index
    %c0_7 = arith.constant 0 : index
    %4 = vector.load %arg20[%c0_6, %c0_7] : memref<4x1024xf32, #tpu.memory_space<vmem>>, vector<4x1024xf32>
    %5 = arith.truncf %4 : vector<4x1024xf32> to vector<4x1024xbf16>
    %c0_8 = arith.constant 0 : index
    %c0_9 = arith.constant 0 : index
    %6 = vector.load %arg4[%c0_8, %c0_9] : memref<1024x2048xbf16, #tpu.memory_space<vmem>>, vector<1024x2048xbf16>
    %cst = arith.constant dense<0.000000e+00> : vector<4x2048xf32>
    %7 = tpu.matmul %5, %6, %cst {dimension_numbers = #tpu.dot_dimension_numbers<[1], [0], [0], [1], [0, 0, 1, 1], [], []>} : vector<4x1024xbf16>, vector<1024x2048xbf16>, vector<4x2048xf32> -> vector<4x2048xf32>
    %c0_10 = arith.constant 0 : index
    %c0_11 = arith.constant 0 : index
    %8 = vector.load %arg5[%c0_10, %c0_11] : memref<1x2048xf32, #tpu.memory_space<vmem>>, vector<1x2048xf32>
    %9 = vector.broadcast %8 : vector<1x2048xf32> to vector<4x2048xf32>
    %10 = arith.addf %7, %9 : vector<4x2048xf32>
    %cst_12 = arith.constant 0.000000e+00 : f32
    %11 = vector.broadcast %cst_12 : f32 to vector<4x2048xf32>
    %12 = arith.cmpf ogt, %10, %11 : vector<4x2048xf32>
    %cst_13 = arith.constant 0.000000e+00 : f32
    %13 = vector.broadcast %cst_13 : f32 to vector<4x2048xf32>
    %14 = arith.minimumf %10, %13 : vector<4x2048xf32>
    %15 = math.exp %14 : vector<4x2048xf32>
    %cst_14 = arith.constant 1.000000e+00 : f32
    %16 = vector.broadcast %cst_14 : f32 to vector<4x2048xf32>
    %17 = arith.subf %15, %16 : vector<4x2048xf32>
    %18 = arith.select %12, %10, %17 : vector<4x2048xi1>, vector<4x2048xf32>
    %19 = arith.truncf %18 : vector<4x2048xf32> to vector<4x2048xbf16>
    %c0_15 = arith.constant 0 : index
    %c0_16 = arith.constant 0 : index
    %20 = vector.load %arg6[%c0_15, %c0_16] : memref<2048x288xbf16, #tpu.memory_space<vmem>>, vector<2048x288xbf16>
    %cst_17 = arith.constant dense<0.000000e+00> : vector<4x288xf32>
    %21 = tpu.matmul %19, %20, %cst_17 {dimension_numbers = #tpu.dot_dimension_numbers<[1], [0], [0], [1], [0, 0, 1, 1], [], []>} : vector<4x2048xbf16>, vector<2048x288xbf16>, vector<4x288xf32> -> vector<4x288xf32>
    %c0_18 = arith.constant 0 : index
    %c0_19 = arith.constant 0 : index
    %22 = vector.load %arg7[%c0_18, %c0_19] : memref<1x288xf32, #tpu.memory_space<vmem>>, vector<1x288xf32>
    %23 = vector.broadcast %22 : vector<1x288xf32> to vector<4x288xf32>
    %24 = arith.addf %21, %23 : vector<4x288xf32>
    %25 = vector.extract_strided_slice %24 {offsets = [0, 0], sizes = [2, 288], strides = [1, 1]} : vector<4x288xf32> to vector<2x288xf32>
    %26 = vector.extract_strided_slice %24 {offsets = [2, 0], sizes = [2, 288], strides = [1, 1]} : vector<4x288xf32> to vector<2x288xf32>
    %27 = arith.truncf %25 : vector<2x288xf32> to vector<2x288xbf16>
    %28 = arith.truncf %26 : vector<2x288xf32> to vector<2x288xbf16>
    %c0_20 = arith.constant 0 : index
    %c0_21 = arith.constant 0 : index
    %29 = vector.load %arg8[%c0_20, %c0_21] : memref<288x256xbf16, #tpu.memory_space<vmem>>, vector<288x256xbf16>
    %cst_22 = arith.constant dense<0.000000e+00> : vector<2x256xf32>
    %30 = tpu.matmul %27, %29, %cst_22 {dimension_numbers = #tpu.dot_dimension_numbers<[1], [0], [0], [1], [0, 0, 1, 1], [], []>} : vector<2x288xbf16>, vector<288x256xbf16>, vector<2x256xf32> -> vector<2x256xf32>
    %c0_23 = arith.constant 0 : index
    %c0_24 = arith.constant 0 : index
    %31 = vector.load %arg9[%c0_23, %c0_24] : memref<288x256xbf16, #tpu.memory_space<vmem>>, vector<288x256xbf16>
    %cst_25 = arith.constant dense<0.000000e+00> : vector<2x256xf32>
    %32 = tpu.matmul %28, %31, %cst_25 {dimension_numbers = #tpu.dot_dimension_numbers<[1], [0], [0], [1], [0, 0, 1, 1], [], []>} : vector<2x288xbf16>, vector<288x256xbf16>, vector<2x256xf32> -> vector<2x256xf32>
    %33 = arith.addf %30, %32 : vector<2x256xf32>
    %c0_26 = arith.constant 0 : index
    %c0_27 = arith.constant 0 : index
    %34 = vector.load %arg10[%c0_26, %c0_27] : memref<1x256xf32, #tpu.memory_space<vmem>>, vector<1x256xf32>
    %35 = vector.broadcast %34 : vector<1x256xf32> to vector<2x256xf32>
    %36 = arith.addf %33, %35 : vector<2x256xf32>
    %cst_28 = arith.constant 0.000000e+00 : f32
    %37 = vector.broadcast %cst_28 : f32 to vector<2x256xf32>
    %38 = arith.cmpf ogt, %36, %37 : vector<2x256xf32>
    %cst_29 = arith.constant 0.000000e+00 : f32
    %39 = vector.broadcast %cst_29 : f32 to vector<2x256xf32>
    %40 = arith.minimumf %36, %39 : vector<2x256xf32>
    %41 = math.exp %40 : vector<2x256xf32>
    %cst_30 = arith.constant 1.000000e+00 : f32
    %42 = vector.broadcast %cst_30 : f32 to vector<2x256xf32>
    %43 = arith.subf %41, %42 : vector<2x256xf32>
    %44 = arith.select %38, %36, %43 : vector<2x256xi1>, vector<2x256xf32>
    %45 = arith.truncf %44 : vector<2x256xf32> to vector<2x256xbf16>
    %c0_31 = arith.constant 0 : index
    %c0_32 = arith.constant 0 : index
    %46 = vector.load %arg11[%c0_31, %c0_32] : memref<256x4xbf16, #tpu.memory_space<vmem>>, vector<256x4xbf16>
    %cst_33 = arith.constant dense<0.000000e+00> : vector<2x4xf32>
    %47 = tpu.matmul %45, %46, %cst_33 {dimension_numbers = #tpu.dot_dimension_numbers<[1], [0], [0], [1], [0, 0, 1, 1], [], []>} : vector<2x256xbf16>, vector<256x4xbf16>, vector<2x4xf32> -> vector<2x4xf32>
    %c0_34 = arith.constant 0 : index
    %c0_35 = arith.constant 0 : index
    %48 = vector.load %arg12[%c0_34, %c0_35] : memref<1x4xf32, #tpu.memory_space<vmem>>, vector<1x4xf32>
    %49 = vector.broadcast %48 : vector<1x4xf32> to vector<2x4xf32>
    %50 = arith.addf %47, %49 : vector<2x4xf32>
    %c0_36 = arith.constant 0 : index
    %c0_37 = arith.constant 0 : index
    %51 = vector.load %arg19[%c0_36, %c0_37] : memref<2x4xf32, #tpu.memory_space<vmem>>, vector<2x4xf32>
    tpu.vector_store %arg19[%c0_36, %c0_37], %50 {strides = array<i32>} : memref<2x4xf32, #tpu.memory_space<vmem>>, vector<2x4xf32>,
    %c0_38 = arith.constant 0 : index
    %c0_39 = arith.constant 0 : index
    %52 = vector.load %arg13[%c0_38, %c0_39] : memref<288x256xbf16, #tpu.memory_space<vmem>>, vector<288x256xbf16>
    %cst_40 = arith.constant dense<0.000000e+00> : vector<2x256xf32>
    %53 = tpu.matmul %27, %52, %cst_40 {dimension_numbers = #tpu.dot_dimension_numbers<[1], [0], [0], [1], [0, 0, 1, 1], [], []>} : vector<2x288xbf16>, vector<288x256xbf16>, vector<2x256xf32> -> vector<2x256xf32>
    %c0_41 = arith.constant 0 : index
    %c0_42 = arith.constant 0 : index
    %54 = vector.load %arg3[%c0_41, %c0_42] : memref<2x1xf32, #tpu.memory_space<vmem>>, vector<2x1xf32>
    %c0_43 = arith.constant 0 : index
    %c0_44 = arith.constant 0 : index
    %55 = vector.load %arg14[%c0_43, %c0_44] : memref<1x256xf32, #tpu.memory_space<vmem>>, vector<1x256xf32>
    %56 = vector.broadcast %54 : vector<2x1xf32> to vector<2x256xf32>
    %57 = vector.broadcast %55 : vector<1x256xf32> to vector<2x256xf32>
    %58 = arith.mulf %56, %57 : vector<2x256xf32>
    %59 = arith.addf %53, %58 : vector<2x256xf32>
    %c0_45 = arith.constant 0 : index
    %c0_46 = arith.constant 0 : index
    %60 = vector.load %arg15[%c0_45, %c0_46] : memref<1x256xf32, #tpu.memory_space<vmem>>, vector<1x256xf32>
    %61 = vector.broadcast %60 : vector<1x256xf32> to vector<2x256xf32>
    %62 = arith.addf %59, %61 : vector<2x256xf32>
    %cst_47 = arith.constant 0.000000e+00 : f32
    %63 = vector.broadcast %cst_47 : f32 to vector<2x256xf32>
    %64 = arith.cmpf ogt, %62, %63 : vector<2x256xf32>
    %cst_48 = arith.constant 0.000000e+00 : f32
    %65 = vector.broadcast %cst_48 : f32 to vector<2x256xf32>
    %66 = arith.minimumf %62, %65 : vector<2x256xf32>
    %67 = math.exp %66 : vector<2x256xf32>
    %cst_49 = arith.constant 1.000000e+00 : f32
    %68 = vector.broadcast %cst_49 : f32 to vector<2x256xf32>
    %69 = arith.subf %67, %68 : vector<2x256xf32>
    %70 = arith.select %64, %62, %69 : vector<2x256xi1>, vector<2x256xf32>
    %71 = arith.truncf %70 : vector<2x256xf32> to vector<2x256xbf16>
    %c0_50 = arith.constant 0 : index
    %c0_51 = arith.constant 0 : index
    %72 = vector.load %arg16[%c0_50, %c0_51] : memref<256x288xbf16, #tpu.memory_space<vmem>>, vector<256x288xbf16>
    %cst_52 = arith.constant dense<0.000000e+00> : vector<2x288xf32>
    %73 = tpu.matmul %71, %72, %cst_52 {dimension_numbers = #tpu.dot_dimension_numbers<[1], [0], [0], [1], [0, 0, 1, 1], [], []>} : vector<2x256xbf16>, vector<256x288xbf16>, vector<2x288xf32> -> vector<2x288xf32>
    %c0_53 = arith.constant 0 : index
    %c0_54 = arith.constant 0 : index
    %74 = vector.load %arg17[%c0_53, %c0_54] : memref<1x288xf32, #tpu.memory_space<vmem>>, vector<1x288xf32>
    %75 = vector.broadcast %74 : vector<1x288xf32> to vector<2x288xf32>
    %76 = arith.addf %73, %75 : vector<2x288xf32>
    %c0_55 = arith.constant 0 : index
    %c0_56 = arith.constant 0 : index
    %77 = vector.load %arg18[%c0_55, %c0_56] : memref<4x288xf32, #tpu.memory_space<vmem>>, vector<2x288xf32>
    tpu.vector_store %arg18[%c0_55, %c0_56], %26 {strides = array<i32>} : memref<4x288xf32, #tpu.memory_space<vmem>>, vector<2x288xf32>,
    %c2_57 = arith.constant 2 : index
    %c0_58 = arith.constant 0 : index
    %78 = vector.load %arg18[%c2_57, %c0_58] : memref<4x288xf32, #tpu.memory_space<vmem>>, vector<2x288xf32>
    tpu.vector_store %arg18[%c2_57, %c0_58], %76 {strides = array<i32>} : memref<4x288xf32, #tpu.memory_space<vmem>>, vector<2x288xf32>,
    return
  }
  func.func @transform_0(%arg0: i32) -> (i32, i32) {
    %c0_i32 = arith.constant 0 : i32
    %c0_i32_0 = arith.constant 0 : i32
    %c0_i32_1 = arith.constant 0 : i32
    return %c0_i32, %c0_i32_0 : i32, i32
  }
  func.func @transform_1(%arg0: i32) -> (i32, i32) {
    %c0_i32 = arith.constant 0 : i32
    %c0_i32_0 = arith.constant 0 : i32
    %c0_i32_1 = arith.constant 0 : i32
    return %c0_i32, %c0_i32_0 : i32, i32
  }
  func.func @transform_2(%arg0: i32) -> (i32, i32) {
    %c0_i32 = arith.constant 0 : i32
    %c0_i32_0 = arith.constant 0 : i32
    %c0_i32_1 = arith.constant 0 : i32
    return %c0_i32, %c0_i32_0 : i32, i32
  }
  func.func @transform_3(%arg0: i32) -> (i32, i32) {
    %c0_i32 = arith.constant 0 : i32
    %c0_i32_0 = arith.constant 0 : i32
    %c0_i32_1 = arith.constant 0 : i32
    return %c0_i32, %c0_i32_0 : i32, i32
  }
  func.func @transform_4(%arg0: i32) -> (i32, i32) {
    %c0_i32 = arith.constant 0 : i32
    %c0_i32_0 = arith.constant 0 : i32
    %c0_i32_1 = arith.constant 0 : i32
    return %c0_i32, %c0_i32_0 : i32, i32
  }
  func.func @transform_5(%arg0: i32) -> (i32, i32) {
    %c0_i32 = arith.constant 0 : i32
    %c0_i32_0 = arith.constant 0 : i32
    %c0_i32_1 = arith.constant 0 : i32
    return %c0_i32, %c0_i32_0 : i32, i32
  }
  func.func @transform_6(%arg0: i32) -> (i32, i32) {
    %c0_i32 = arith.constant 0 : i32
    %c0_i32_0 = arith.constant 0 : i32
    %c0_i32_1 = arith.constant 0 : i32
    return %c0_i32, %c0_i32_0 : i32, i32
  }
  func.func @transform_7(%arg0: i32) -> (i32, i32) {
    %c0_i32 = arith.constant 0 : i32
    %c0_i32_0 = arith.constant 0 : i32
    %c0_i32_1 = arith.constant 0 : i32
    return %c0_i32, %c0_i32_0 : i32, i32
  }
  func.func @transform_8(%arg0: i32) -> (i32, i32) {
    %c0_i32 = arith.constant 0 : i32
    %c0_i32_0 = arith.constant 0 : i32
    %c0_i32_1 = arith.constant 0 : i32
    return %c0_i32, %c0_i32_0 : i32, i32
  }
  func.func @transform_9(%arg0: i32) -> (i32, i32) {
    %c0_i32 = arith.constant 0 : i32
    %c0_i32_0 = arith.constant 0 : i32
    %c0_i32_1 = arith.constant 0 : i32
    return %c0_i32, %c0_i32_0 : i32, i32
  }
  func.func @transform_10(%arg0: i32) -> (i32, i32) {
    %c0_i32 = arith.constant 0 : i32
    %c0_i32_0 = arith.constant 0 : i32
    %c0_i32_1 = arith.constant 0 : i32
    return %c0_i32, %c0_i32_0 : i32, i32
  }
  func.func @transform_11(%arg0: i32) -> (i32, i32) {
    %c0_i32 = arith.constant 0 : i32
    %c0_i32_0 = arith.constant 0 : i32
    %c0_i32_1 = arith.constant 0 : i32
    return %c0_i32, %c0_i32_0 : i32, i32
  }
  func.func @transform_12(%arg0: i32) -> (i32, i32) {
    %c0_i32 = arith.constant 0 : i32
    %c0_i32_0 = arith.constant 0 : i32
    %c0_i32_1 = arith.constant 0 : i32
    return %c0_i32, %c0_i32_0 : i32, i32
  }
  func.func @transform_13(%arg0: i32) -> (i32, i32) {
    %c0_i32 = arith.constant 0 : i32
    %c0_i32_0 = arith.constant 0 : i32
    %c0_i32_1 = arith.constant 0 : i32
    return %c0_i32, %c0_i32_0 : i32, i32
  }
  func.func @transform_14(%arg0: i32) -> (i32, i32) {
    %c0_i32 = arith.constant 0 : i32
    %c0_i32_0 = arith.constant 0 : i32
    %c0_i32_1 = arith.constant 0 : i32
    return %c0_i32, %c0_i32_0 : i32, i32
  }
  func.func @transform_15(%arg0: i32) -> (i32, i32) {
    %c0_i32 = arith.constant 0 : i32
    %c0_i32_0 = arith.constant 0 : i32
    %c0_i32_1 = arith.constant 0 : i32
    return %c0_i32, %c0_i32_0 : i32, i32
  }
  func.func @transform_16(%arg0: i32) -> (i32, i32) {
    %c0_i32 = arith.constant 0 : i32
    %c0_i32_0 = arith.constant 0 : i32
    %c0_i32_1 = arith.constant 0 : i32
    return %c0_i32, %c0_i32_0 : i32, i32
  }
  func.func @transform_17(%arg0: i32) -> (i32, i32) {
    %c0_i32 = arith.constant 0 : i32
    %c0_i32_0 = arith.constant 0 : i32
    %c0_i32_1 = arith.constant 0 : i32
    return %c0_i32, %c0_i32_0 : i32, i32
  }
  func.func @transform_18(%arg0: i32) -> (i32, i32) {
    %c0_i32 = arith.constant 0 : i32
    %c0_i32_0 = arith.constant 0 : i32
    %c0_i32_1 = arith.constant 0 : i32
    return %c0_i32, %c0_i32_0 : i32, i32
  }
}

</mosaic_0001>

<bundles_post_ra>
// kernel: icm_forward.1
= control target key start
LH: loop header
LB: loop body
LE: loop exit
PB: predicated region body
PF: predicated region fallthrough
CT: control target
= control target key end

     0   :  { %s17741_s0 = inlined_call_operand.vmem [shape: f32[2,1024], index: 0, kind: input, shape index: {}]   ;;  %s17742_s1 = inlined_call_operand.vmem [shape: f32[2,1024], index: 1, kind: input, shape index: {}]   ;;  %s17743_s2 = inlined_call_operand.vmem [shape: f32[2,1], index: 2, kind: input, shape index: {}]   ;;  %s17744_s3 = inlined_call_operand.hbm [shape: bf16[1024,2048], index: 3, kind: input, shape index: {}]   ;;  %s17745_s4 = inlined_call_operand.vmem [shape: f32[1,2048], index: 4, kind: input, shape index: {}]   ;;  %s17746_s5 = inlined_call_operand.vmem [shape: bf16[2048,288], index: 5, kind: input, shape index: {}]   ;;  %s17747_s6 = inlined_call_operand.vmem [shape: f32[1,288], index: 6, kind: input, shape index: {}]   ;;  %s17748_s7 = inlined_call_operand.vmem [shape: bf16[288,256], index: 7, kind: input, shape index: {}]   ;;  %s17749_s8 = inlined_call_operand.vmem [shape: bf16[288,256], index: 8, kind: input, shape index: {}]   ;;  %s17750_s9 = inlined_call_operand.vmem [shape: f32[1,256], index: 9, kind: input, shape index: {}]   ;;  %s17751_s10 = inlined_call_operand.vmem [shape: bf16[256,4], index: 10, kind: input, shape index: {}]   ;;  %s17752_s11 = inlined_call_operand.vmem [shape: f32[1,4], index: 11, kind: input, shape index: {}]   ;;  %s17753_s12 = inlined_call_operand.vmem [shape: bf16[288,256], index: 12, kind: input, shape index: {}]   ;;  %s17754_s13 = inlined_call_operand.vmem [shape: f32[1,256], index: 13, kind: input, shape index: {}]   ;;  %s17755_s14 = inlined_call_operand.vmem [shape: f32[1,256], index: 14, kind: input, shape index: {}]   ;;  %s17756_s15 = inlined_call_operand.vmem [shape: bf16[256,288], index: 15, kind: input, shape index: {}]   ;;  %s17757_s16 = inlined_call_operand.vmem [shape: f32[1,288], index: 16, kind: input, shape index: {}]   ;;  %s17758_s17 = inlined_call_operand.vmem [shape: f32[4,288], index: 17, kind: output, shape index: {0}]   ;;  %s17759_s18 = inlined_call_operand.hbm [shape: f32[2,4], index: 18, kind: output, shape index: {1}]  }
   0x1   :  { %17762 = sst [smem:[#allocation9_spill]] %s17741_s0 }
   0x2   :  { %17763 = sst [smem:[#allocation10_spill]] %s17742_s1 }
   0x3   :  { %17764 = sst [smem:[#allocation11_spill]] %s17743_s2 }
   0x4   :  { %24 = vsyncpa [#allocation4], 0 }
   0x5   :  { %25 = vsyncpa [#allocation5], 0  ;;  %s15515_s27 = smov [#allocation3]   ;;  %s15467_s0 = scalar_lea.hbm %s17744_s3, 131072 }
   0x6   :  { %s37_s28 = sshll.u32 %s15515_s27, 4  ;;  %p15468_p0 = scmp.ne.s32.totalorder %s17744_s3, %s15467_s0  ;;  %s38_s28 = int_to_ptr.vmem [resolvable:$true] %s37_s28 }
   0x7   :  { %p15471_p1 = scmp.lt.u32.totalorder %s15467_s0, %s17744_s3 }
   0x9   :  { %p15473_p2 = pnand %p15471_p1, %p15468_p0 }
   0xb   :  { %15476 = shalt.err (!%p15473_p2)
}
   0xc   :  { %s15477_s22 = scalar_lea.vmem %s38_s28, 131072  ;;  %p15482_p4 = scmp.lt.s32.totalorder %s38_s28, %s38_s28 }
   0xd   :  { %p15478_p3 = scmp.ne.s32.totalorder %s38_s28, %s15477_s22  ;;  %p15483_p5 = scmp.lt.s32.totalorder %s15477_s22, %s15477_s22 }
   0xf   :  { %p15484_p6 = por %p15483_p5, %p15482_p4 }
  0x11   :  { %p15485_p7 = pnand %p15484_p6, %p15478_p3 }
  0x13   :  { %15488 = shalt.err (!%p15485_p7)
}
  0x14   :  { %s15516_s2 = smov 1024   ;;  %s15517_s23 = smov 64  }
  0x15   :  { %43 = dma.hbm_to_vmem [thread:$0]  %s17744_s3, 131072, %s38_s28, [#allocation4], %s15516_s2, %s15516_s2, %s15517_s23  }
  0x16   :  { %15511 = dma.done.wait [#allocation4], 131072  }
  0x17   :  { %15512 = vsyncadd [#allocation4], 4294836224  ;;  %v182_v0 = vld [vmem:[#allocation3] sm:$0xff]  ;;  %v183_v2 = vld [vmem:[#allocation3 + $0x8] sm:$0xff]  ;;  %s17765_s27 = sld [smem:[#allocation9_spill]]  ;;  %s17766_s30 = sld [smem:[#allocation10_spill]] }
  0x18   :  { %v190_v1 = vld [vmem:[#allocation3 + $0x40] sm:$0xff]  ;;  %v191_v4 = vld [vmem:[#allocation3 + $0x48] sm:$0xff]  ;;  %s17767_s1 = sld [smem:[#allocation11_spill]] }
  0x19   :  { %v12694_v3 = vcombine.high %v182_v0, %v190_v1  ;;  %v12693_v5 = vcombine.low %v182_v0, %v190_v1  ;;  %v198_v6 = vld [vmem:[#allocation3 + $0x80] sm:$0xff]  ;;  %v12696_v8 = vcombine.high %v183_v2, %v191_v4  ;;  %v12695_v9 = vcombine.low %v183_v2, %v191_v4  ;;  %v199_v11 = vld [vmem:[#allocation3 + $0x88] sm:$0xff] }
  0x1a   :  { %v206_v7 = vld [vmem:[#allocation3 + $0xc0] sm:$0xff]  ;;  %v207_v12 = vld [vmem:[#allocation3 + $0xc8] sm:$0xff] }
  0x1b   :  { %v12710_v10 = vcombine.high %v198_v6, %v206_v7  ;;  %v214_v13 = vld [vmem:[#allocation3 + $0x100] sm:$0xff]  ;;  %6410 = vmatprep.subr.bf16.mxu0 %v12694_v3  ;;  %v12712_v14 = vcombine.high %v199_v11, %v207_v12  ;;  %v215_v16 = vld [vmem:[#allocation3 + $0x108] sm:$0xff]  ;;  %6574 = vmatprep.subr.bf16.mxu1 %v12696_v8  ;;  %v12709_v18 = vcombine.low %v198_v6, %v206_v7 }
  0x1c   :  { %v222_v15 = vld [vmem:[#allocation3 + $0x140] sm:$0xff]  ;;  %v223_v17 = vld [vmem:[#allocation3 + $0x148] sm:$0xff]  ;;  %6411 = vmatpush1.bf16.msra.mxu0 %v12693_v5  ;;  %6575 = vmatpush1.bf16.msra.mxu1 %v12695_v9  ;;  %v12711_v19 = vcombine.low %v199_v11, %v207_v12 }
  0x1d   :  { %6412 = vmatprep.subr.bf16.mxu0 %v12710_v10  ;;  %v12726_v20 = vcombine.high %v214_v13, %v222_v15  ;;  %6576 = vmatprep.subr.bf16.mxu1 %v12712_v14  ;;  %v12728_v21 = vcombine.high %v215_v16, %v223_v17  ;;  %v230_v22 = vld [vmem:[#allocation3 + $0x180] sm:$0xff]  ;;  %v231_v24 = vld [vmem:[#allocation3 + $0x188] sm:$0xff]  ;;  %v12725_v26 = vcombine.low %v214_v13, %v222_v15 }
  0x1e   :  { %v238_v23 = vld [vmem:[#allocation3 + $0x1c0] sm:$0xff]  ;;  %v239_v25 = vld [vmem:[#allocation3 + $0x1c8] sm:$0xff]  ;;  %v12727_v27 = vcombine.low %v215_v16, %v223_v17 }
  0x1f   :  { %v12742_v28 = vcombine.high %v230_v22, %v238_v23  ;;  %v12744_v29 = vcombine.high %v231_v24, %v239_v25  ;;  %v246_v30 = vld [vmem:[#allocation3 + $0x200] sm:$0xff]  ;;  %v247_v32 = vld [vmem:[#allocation3 + $0x208] sm:$0xff]  ;;  %v12741_v34 = vcombine.low %v230_v22, %v238_v23  ;;  %v12743_v35 = vcombine.low %v231_v24, %v239_v25 }
  0x20   :  { %6413 = vmatpush1.bf16.msra.mxu0 %v12709_v18  ;;  %6577 = vmatpush1.bf16.msra.mxu1 %v12711_v19  ;;  %v254_v31 = vld [vmem:[#allocation3 + $0x240] sm:$0xff]  ;;  %v255_v33 = vld [vmem:[#allocation3 + $0x248] sm:$0xff] }
  0x21   :  { %6414 = vmatprep.subr.bf16.mxu0 %v12726_v20  ;;  %6578 = vmatprep.subr.bf16.mxu1 %v12728_v21  ;;  %v12758_v36 = vcombine.high %v246_v30, %v254_v31  ;;  %v12760_v37 = vcombine.high %v247_v32, %v255_v33  ;;  %v262_v38 = vld [vmem:[#allocation3 + $0x280] sm:$0xff]  ;;  %v263_v40 = vld [vmem:[#allocation3 + $0x288] sm:$0xff]  ;;  %v12757_v42 = vcombine.low %v246_v30, %v254_v31 }
  0x22   :  { %v270_v39 = vld [vmem:[#allocation3 + $0x2c0] sm:$0xff]  ;;  %v271_v41 = vld [vmem:[#allocation3 + $0x2c8] sm:$0xff]  ;;  %v12759_v43 = vcombine.low %v247_v32, %v255_v33 }
  0x23   :  { %v12774_v44 = vcombine.high %v262_v38, %v270_v39  ;;  %v12776_v45 = vcombine.high %v263_v40, %v271_v41  ;;  %v278_v46 = vld [vmem:[#allocation3 + $0x300] sm:$0xff]  ;;  %v279_v48 = vld [vmem:[#allocation3 + $0x308] sm:$0xff]  ;;  %v12773_v50 = vcombine.low %v262_v38, %v270_v39  ;;  %v12775_v51 = vcombine.low %v263_v40, %v271_v41 }
  0x24   :  { %6415 = vmatpush1.bf16.msra.mxu0 %v12725_v26  ;;  %6579 = vmatpush1.bf16.msra.mxu1 %v12727_v27  ;;  %v286_v47 = vld [vmem:[#allocation3 + $0x340] sm:$0xff]  ;;  %v287_v49 = vld [vmem:[#allocation3 + $0x348] sm:$0xff] }
  0x25   :  { %6416 = vmatprep.subr.bf16.mxu0 %v12742_v28  ;;  %6580 = vmatprep.subr.bf16.mxu1 %v12744_v29  ;;  %v12790_v52 = vcombine.high %v278_v46, %v286_v47  ;;  %v74_v53 = vld [vmem:[%s17765_s27] sm:$0xff]  ;;  %v12792_v55 = vcombine.high %v279_v48, %v287_v49  ;;  %v295_v60 = vld [vmem:[#allocation3 + $0x388] sm:$0xff]  ;;  %v12789_v62 = vcombine.low %v278_v46, %v286_v47 }
  0x26   :  { %v116_v54 = vld [vmem:[%s17766_s30] sm:$0xff]  ;;  %12685 = vst.sshfl [vmem:[#allocation2] sm:$0xf pattern:$0x76325410] %v74_v53  ;;  %v78_v59 = vcombine.high %v74_v53, %v74_v53  ;;  %v303_v61 = vld [vmem:[#allocation3 + $0x3c8] sm:$0xff]  ;;  %v12791_v63 = vcombine.low %v279_v48, %v287_v49 }
  0x27   :  { %v294_v56 = vld [vmem:[#allocation3 + $0x380] sm:$0xff]  ;;  %v120_v58 = vcombine.low %v116_v54, %v116_v54  ;;  %12690 = vst.sshfl [vmem:[#allocation2 + $0x8] sm:$0xf0 pattern:$0x76325410] %v116_v54  ;;  %v12808_v1 = vcombine.high %v295_v60, %v303_v61  ;;  %v311_v4 = vld [vmem:[#allocation3 + $0x408] sm:$0xff]  ;;  %v12807_v7 = vcombine.low %v295_v60, %v303_v61 }
  0x28   :  { %6417 = vmatpush1.bf16.msra.mxu0 %v12741_v34  ;;  %6581 = vmatpush1.bf16.msra.mxu1 %v12743_v35  ;;  %v302_v57 = vld [vmem:[#allocation3 + $0x3c0] sm:$0xff]  ;;  %12686 = vst.sshfl [vmem:[#allocation2 + $0x8] sm:$0xf pattern:$0x76325410] %v78_v59  ;;  %v319_v5 = vld [vmem:[#allocation3 + $0x448] sm:$0xff] }
  0x29   :  { %6418 = vmatprep.subr.bf16.mxu0 %v12758_v36  ;;  %6582 = vmatprep.subr.bf16.mxu1 %v12760_v37  ;;  %12689 = vst.sshfl [vmem:[#allocation2] sm:$0xf0 pattern:$0x76325410] %v120_v58  ;;  %v12806_v0 = vcombine.high %v294_v56, %v302_v57  ;;  %v310_v2 = vld [vmem:[#allocation3 + $0x400] sm:$0xff]  ;;  %v12805_v6 = vcombine.low %v294_v56, %v302_v57  ;;  %v327_v12 = vld [vmem:[#allocation3 + $0x488] sm:$0xff] }
  0x2a   :  { %v318_v3 = vld [vmem:[#allocation3 + $0x440] sm:$0xff]  ;;  %v12824_v9 = vcombine.high %v311_v4, %v319_v5  ;;  %v335_v13 = vld [vmem:[#allocation3 + $0x4c8] sm:$0xff]  ;;  %v12823_v17 = vcombine.low %v311_v4, %v319_v5 }
  0x2b   :  { %v12822_v8 = vcombine.high %v310_v2, %v318_v3  ;;  %v326_v10 = vld [vmem:[#allocation3 + $0x480] sm:$0xff]  ;;  %v12821_v15 = vcombine.low %v310_v2, %v318_v3  ;;  %v12840_v19 = vcombine.high %v327_v12, %v335_v13  ;;  %v343_v23 = vld [vmem:[#allocation3 + $0x508] sm:$0xff]  ;;  %v12839_v26 = vcombine.low %v327_v12, %v335_v13 }
  0x2c   :  { %6419 = vmatpush1.bf16.msra.mxu0 %v12757_v42  ;;  %6583 = vmatpush1.bf16.msra.mxu1 %v12759_v43  ;;  %v334_v11 = vld [vmem:[#allocation3 + $0x4c0] sm:$0xff]  ;;  %v351_v24 = vld [vmem:[#allocation3 + $0x548] sm:$0xff] }
  0x2d   :  { %6420 = vmatprep.subr.bf16.mxu0 %v12774_v44  ;;  %6584 = vmatprep.subr.bf16.mxu1 %v12776_v45  ;;  %v12838_v18 = vcombine.high %v326_v10, %v334_v11  ;;  %v342_v20 = vld [vmem:[#allocation3 + $0x500] sm:$0xff]  ;;  %v12837_v25 = vcombine.low %v326_v10, %v334_v11  ;;  %v12856_v28 = vcombine.high %v343_v23, %v351_v24  ;;  %v359_v31 = vld [vmem:[#allocation3 + $0x588] sm:$0xff] }
  0x2e   :  { %v350_v21 = vld [vmem:[#allocation3 + $0x540] sm:$0xff]  ;;  %v367_v32 = vld [vmem:[#allocation3 + $0x5c8] sm:$0xff]  ;;  %v12855_v34 = vcombine.low %v343_v23, %v351_v24 }
  0x2f   :  { %v12854_v27 = vcombine.high %v342_v20, %v350_v21  ;;  %v358_v29 = vld [vmem:[#allocation3 + $0x580] sm:$0xff]  ;;  %v12853_v33 = vcombine.low %v342_v20, %v350_v21  ;;  %v12872_v36 = vcombine.high %v359_v31, %v367_v32  ;;  %v375_v39 = vld [vmem:[#allocation3 + $0x608] sm:$0xff]  ;;  %v12871_v42 = vcombine.low %v359_v31, %v367_v32 }
  0x30   :  { %6421 = vmatpush1.bf16.msra.mxu0 %v12773_v50  ;;  %6585 = vmatpush1.bf16.msra.mxu1 %v12775_v51  ;;  %v15633_v14 = vld [vmem:[#allocation2] sm:$0xff]  ;;  %v383_v40 = vld [vmem:[#allocation3 + $0x648] sm:$0xff] }
  0x31   :  { %6422 = vmatprep.subr.bf16.mxu0 %v12790_v52  ;;  %6586 = vmatprep.subr.bf16.mxu1 %v12792_v55  ;;  %v166_v16 = vcombine.high %v15633_v14, %v15633_v14  ;;  %v366_v30 = vld [vmem:[#allocation3 + $0x5c0] sm:$0xff]  ;;  %v12888_v44 = vcombine.high %v375_v39, %v383_v40  ;;  %v391_v47 = vld [vmem:[#allocation3 + $0x688] sm:$0xff]  ;;  %v12887_v50 = vcombine.low %v375_v39, %v383_v40 }
  0x32   :  { %v12870_v35 = vcombine.high %v358_v29, %v366_v30  ;;  %v374_v37 = vld [vmem:[#allocation3 + $0x600] sm:$0xff]  ;;  %v12869_v41 = vcombine.low %v358_v29, %v366_v30  ;;  %v399_v48 = vld [vmem:[#allocation3 + $0x6c8] sm:$0xff] }
  0x33   :  { %v15637_v22 = vpack.c.bf16 %v166_v16, %v166_v16  ;;  %v382_v38 = vld [vmem:[#allocation3 + $0x640] sm:$0xff]  ;;  %v12904_v52 = vcombine.high %v391_v47, %v399_v48  ;;  %v407_v55 = vld [vmem:[#allocation3 + $0x708] sm:$0xff]  ;;  %v12903_v58 = vcombine.low %v391_v47, %v399_v48 }
  0x34   :  { %6423 = vmatpush1.bf16.msra.mxu0 %v12789_v62  ;;  %6587 = vmatpush1.bf16.msra.mxu1 %v12791_v63  ;;  %v12886_v43 = vcombine.high %v374_v37, %v382_v38  ;;  %v390_v45 = vld [vmem:[#allocation3 + $0x680] sm:$0xff]  ;;  %v12885_v49 = vcombine.low %v374_v37, %v382_v38  ;;  %v415_v56 = vld [vmem:[#allocation3 + $0x748] sm:$0xff] }
  0x35   :  { %6424 = vmatprep.subr.bf16.mxu0 %v12806_v0  ;;  %6588 = vmatprep.subr.bf16.mxu1 %v12808_v1  ;;  %v398_v46 = vld [vmem:[#allocation3 + $0x6c0] sm:$0xff]  ;;  %v12920_v60 = vcombine.high %v407_v55, %v415_v56  ;;  %v423_v63 = vld [vmem:[#allocation3 + $0x788] sm:$0xff]  ;;  %v12919_v2 = vcombine.low %v407_v55, %v415_v56 }
  0x36   :  { %6442 = vmatprep.mubr.bf16.mxu0 %v15637_v22  ;;  %6606 = vmatprep.mubr.bf16.mxu1 %v15637_v22  ;;  %v12902_v51 = vcombine.high %v390_v45, %v398_v46  ;;  %v406_v53 = vld [vmem:[#allocation3 + $0x700] sm:$0xff]  ;;  %v12901_v57 = vcombine.low %v390_v45, %v398_v46  ;;  %v431_v0 = vld [vmem:[#allocation3 + $0x7c8] sm:$0xff] }
  0x37   :  { %v414_v54 = vld [vmem:[#allocation3 + $0x740] sm:$0xff]  ;;  %v12936_v4 = vcombine.high %v423_v63, %v431_v0  ;;  %v12935_v11 = vcombine.low %v423_v63, %v431_v0  ;;  %v463_v20 = vld [vmem:[#allocation3 + $0x8c8] sm:$0xff] }
  0x38   :  { %6425 = vmatpush1.bf16.msra.mxu0 %v12805_v6  ;;  %6589 = vmatpush1.bf16.msra.mxu1 %v12807_v7  ;;  %v12918_v59 = vcombine.high %v406_v53, %v414_v54  ;;  %v422_v61 = vld [vmem:[#allocation3 + $0x780] sm:$0xff]  ;;  %v12917_v1 = vcombine.low %v406_v53, %v414_v54  ;;  %v439_v7 = vld [vmem:[#allocation3 + $0x808] sm:$0xff] }
  0x39   :  { %6426 = vmatprep.subr.bf16.mxu0 %v12822_v8  ;;  %6590 = vmatprep.subr.bf16.mxu1 %v12824_v9  ;;  %v430_v62 = vld [vmem:[#allocation3 + $0x7c0] sm:$0xff]  ;;  %v447_v8 = vld [vmem:[#allocation3 + $0x848] sm:$0xff] }
  0x3a   :  { %v12934_v3 = vcombine.high %v422_v61, %v430_v62  ;;  %v438_v5 = vld [vmem:[#allocation3 + $0x800] sm:$0xff]  ;;  %v15641_v9 = vld [vmem:[#allocation2 + $0x8] sm:$0xff]  ;;  %v12933_v10 = vcombine.low %v422_v61, %v430_v62  ;;  %v12952_v13 = vcombine.high %v439_v7, %v447_v8  ;;  %v12951_v23 = vcombine.low %v439_v7, %v447_v8 }
  0x3b   :  { %v446_v6 = vld [vmem:[#allocation3 + $0x840] sm:$0xff]  ;;  %v471_v29 = vld [vmem:[#allocation3 + $0x908] sm:$0xff] }
  0x3c   :  { %6427 = vmatpush1.bf16.msra.mxu0 %v12821_v15  ;;  %6591 = vmatpush1.bf16.msra.mxu1 %v12823_v17  ;;  %v12950_v12 = vcombine.high %v438_v5, %v446_v6  ;;  %v454_v15 = vld [vmem:[#allocation3 + $0x880] sm:$0xff]  ;;  %v167_v17 = vcombine.high %v15641_v9, %v15641_v9  ;;  %v12949_v21 = vcombine.low %v438_v5, %v446_v6  ;;  %v479_v32 = vld [vmem:[#allocation3 + $0x948] sm:$0xff] }
  0x3d   :  { %6428 = vmatprep.subr.bf16.mxu0 %v12838_v18  ;;  %6592 = vmatprep.subr.bf16.mxu1 %v12840_v19  ;;  %v462_v16 = vld [vmem:[#allocation3 + $0x8c0] sm:$0xff]  ;;  %v15647_v18 = vpack.c.bf16 %v15633_v14, %v15633_v14  ;;  %v455_v19 = vld [vmem:[#allocation3 + $0x888] sm:$0xff]  ;;  %v12984_v39 = vcombine.high %v471_v29, %v479_v32 }
  0x3e   :  { %v12966_v24 = vcombine.high %v454_v15, %v462_v16  ;;  %v12968_v14 = vcombine.high %v455_v19, %v463_v20  ;;  %v15657_v30 = vpack.c.bf16 %v167_v17, %v167_v17  ;;  %v494_v37 = vld [vmem:[#allocation3 + $0x9c0] sm:$0xff]  ;;  %v487_v38 = vld [vmem:[#allocation3 + $0x988] sm:$0xff] }
  0x3f   :  { %v495_v40 = vld [vmem:[#allocation3 + $0x9c8] sm:$0xff]  ;;  %v510_v45 = vld [vmem:[#allocation3 + $0xa40] sm:$0xff] }
  0x40   :  { %6429 = vmatpush1.bf16.msra.mxu0 %v12837_v25  ;;  %6593 = vmatpush1.bf16.msra.mxu1 %v12839_v26  ;;  %v15652_v25 = vld [vmem:[%s17765_s27 + $0x8] sm:$0xff]  ;;  %v13000_v46 = vcombine.high %v487_v38, %v495_v40  ;;  %v526_v53 = vld [vmem:[#allocation3 + $0xac0] sm:$0xff] }
  0x41   :  { %6430 = vmatprep.subr.bf16.mxu0 %v12854_v27  ;;  %6594 = vmatprep.subr.bf16.mxu1 %v12856_v28  ;;  %v117_v26 = vld [vmem:[%s17766_s30 + $0x8] sm:$0xff]  ;;  %v470_v27 = vld [vmem:[#allocation3 + $0x900] sm:$0xff]  ;;  %12687 = vst.sshfl [vmem:[#allocation2 + $0x10] sm:$0xf pattern:$0x76325410] %v15652_v25 }
  0x42   :  { %v478_v28 = vld [vmem:[#allocation3 + $0x940] sm:$0xff]  ;;  %v135_v31 = vcombine.low %v117_v26, %v117_v26  ;;  %12692 = vst.sshfl [vmem:[#allocation2 + $0x18] sm:$0xf0 pattern:$0x76325410] %v117_v26  ;;  %v503_v47 = vld [vmem:[#allocation3 + $0xa08] sm:$0xff] }
  0x43   :  { %v511_v48 = vld [vmem:[#allocation3 + $0xa48] sm:$0xff]  ;;  %v542_v61 = vld [vmem:[#allocation3 + $0xb40] sm:$0xff] }
  0x44   :  { %6431 = vmatpush1.bf16.msra.mxu0 %v12853_v33  ;;  %6595 = vmatpush1.bf16.msra.mxu1 %v12855_v34  ;;  %v12965_v33 = vcombine.low %v454_v15, %v462_v16  ;;  %12691 = vst.sshfl [vmem:[#allocation2 + $0x10] sm:$0xf0 pattern:$0x76325410] %v135_v31  ;;  %v12967_v34 = vcombine.low %v455_v19, %v463_v20  ;;  %v519_v54 = vld [vmem:[#allocation3 + $0xa88] sm:$0xff]  ;;  %v558_v5 = vld [vmem:[#allocation3 + $0xbc0] sm:$0xff] }
  0x45   :  { %6432 = vmatprep.subr.bf16.mxu0 %v12870_v35  ;;  %6596 = vmatprep.subr.bf16.mxu1 %v12872_v36  ;;  %v12982_v35 = vcombine.high %v470_v27, %v478_v28  ;;  %v486_v36 = vld [vmem:[#allocation3 + $0x980] sm:$0xff]  ;;  %v13016_v55 = vcombine.high %v503_v47, %v511_v48  ;;  %v527_v56 = vld [vmem:[#allocation3 + $0xac8] sm:$0xff] }
  0x46   :  { %v535_v62 = vld [vmem:[#allocation3 + $0xb08] sm:$0xff]  ;;  %v13032_v63 = vcombine.high %v519_v54, %v527_v56  ;;  %v574_v15 = vld [vmem:[#allocation3 + $0xc40] sm:$0xff] }
  0x47   :  { %v543_v0 = vld [vmem:[#allocation3 + $0xb48] sm:$0xff]  ;;  %v590_v26 = vld [vmem:[#allocation3 + $0xcc0] sm:$0xff] }
  0x48   :  { %6433 = vmatpush1.bf16.msra.mxu0 %v12869_v41  ;;  %6597 = vmatpush1.bf16.msra.mxu1 %v12871_v42  ;;  %v12981_v41 = vcombine.low %v470_v27, %v478_v28  ;;  %v12983_v42 = vcombine.low %v471_v29, %v479_v32  ;;  %v551_v6 = vld [vmem:[#allocation3 + $0xb88] sm:$0xff]  ;;  %v13048_v7 = vcombine.high %v535_v62, %v543_v0 }
  0x49   :  { %6434 = vmatprep.subr.bf16.mxu0 %v12886_v43  ;;  %6598 = vmatprep.subr.bf16.mxu1 %v12888_v44  ;;  %v12998_v43 = vcombine.high %v486_v36, %v494_v37  ;;  %v502_v44 = vld [vmem:[#allocation3 + $0xa00] sm:$0xff]  ;;  %v559_v8 = vld [vmem:[#allocation3 + $0xbc8] sm:$0xff] }
  0x4a   :  { %v567_v16 = vld [vmem:[#allocation3 + $0xc08] sm:$0xff]  ;;  %v13064_v17 = vcombine.high %v551_v6, %v559_v8 }
  0x4b   :  { %v575_v19 = vld [vmem:[#allocation3 + $0xc48] sm:$0xff] }
  0x4c   :  { %6435 = vmatpush1.bf16.msra.mxu0 %v12885_v49  ;;  %6599 = vmatpush1.bf16.msra.mxu1 %v12887_v50  ;;  %v12997_v49 = vcombine.low %v486_v36, %v494_v37  ;;  %v12999_v50 = vcombine.low %v487_v38, %v495_v40  ;;  %v13080_v27 = vcombine.high %v567_v16, %v575_v19  ;;  %v591_v28 = vld [vmem:[#allocation3 + $0xcc8] sm:$0xff] }
  0x4d   :  { %6436 = vmatprep.subr.bf16.mxu0 %v12902_v51  ;;  %6600 = vmatprep.subr.bf16.mxu1 %v12904_v52  ;;  %v13014_v51 = vcombine.high %v502_v44, %v510_v45  ;;  %v518_v52 = vld [vmem:[#allocation3 + $0xa80] sm:$0xff]  ;;  %v13079_v31 = vcombine.low %v567_v16, %v575_v19  ;;  %v607_v37 = vld [vmem:[#allocation3 + $0xd48] sm:$0xff] }
  0x4e   :  { %v687_v16 = vld [vmem:[#allocation3 + $0xfc8] sm:$0xff]  ;;  %v694_v19 = vld [vmem:[#allocation3 + $0x1000] sm:$0xff] }
  0x50   :  { %6437 = vmatpush1.bf16.msra.mxu0 %v12901_v57  ;;  %6601 = vmatpush1.bf16.msra.mxu1 %v12903_v58  ;;  %v13013_v57 = vcombine.low %v502_v44, %v510_v45  ;;  %v13015_v58 = vcombine.low %v503_v47, %v511_v48  ;;  %v623_v45 = vld [vmem:[#allocation3 + $0xdc8] sm:$0xff] }
  0x51   :  { %6438 = vmatprep.subr.bf16.mxu0 %v12918_v59  ;;  %6602 = vmatprep.subr.bf16.mxu1 %v12920_v60  ;;  %v13030_v59 = vcombine.high %v518_v52, %v526_v53  ;;  %v534_v60 = vld [vmem:[#allocation3 + $0xb00] sm:$0xff] }
  0x54   :  { %6439 = vmatpush1.bf16.msra.mxu0 %v12917_v1  ;;  %6603 = vmatpush1.bf16.msra.mxu1 %v12919_v2  ;;  %v13029_v1 = vcombine.low %v518_v52, %v526_v53  ;;  %v13031_v2 = vcombine.low %v519_v54, %v527_v56  ;;  %v639_v53 = vld [vmem:[#allocation3 + $0xe48] sm:$0xff] }
  0x55   :  { %6440 = vmatprep.subr.bf16.mxu0 %v12934_v3  ;;  %6604 = vmatprep.subr.bf16.mxu1 %v12936_v4  ;;  %v13046_v3 = vcombine.high %v534_v60, %v542_v61  ;;  %v550_v4 = vld [vmem:[#allocation3 + $0xb80] sm:$0xff] }
  0x56   :  { %v13061_v20 = vcombine.low %v550_v4, %v558_v5 }
  0x58   :  { %6441 = vmatpush1.bf16.msra.mxu0 %v12933_v10  ;;  %6605 = vmatpush1.bf16.msra.mxu1 %v12935_v11  ;;  %v13045_v10 = vcombine.low %v534_v60, %v542_v61  ;;  %v13047_v11 = vcombine.low %v535_v62, %v543_v0  ;;  %v655_v61 = vld [vmem:[#allocation3 + $0xec8] sm:$0xff] }
  0x59   :  { %6451 = vmatprep.subr.bf16.mxu0 %v12950_v12  ;;  %6615 = vmatprep.subr.bf16.mxu1 %v12952_v13  ;;  %v13062_v12 = vcombine.high %v550_v4, %v558_v5  ;;  %v566_v13 = vld [vmem:[#allocation3 + $0xc00] sm:$0xff]  ;;  %v671_v5 = vld [vmem:[#allocation3 + $0xf48] sm:$0xff] }
  0x5a   :  { %v13077_v29 = vcombine.low %v566_v13, %v574_v15 }
  0x5b   :  { %6443 = vmatmul.mubr.bf16.vlgmr.msra.gmra.mrb[0].mxu0 %v15647_v18  ;;  %6607 = vmatmul.mubr.bf16.vlgmr.msra.gmra.mrb[0].mxu1 %v15647_v18 }
  0x5c   :  { %6452 = vmatpush1.bf16.msra.mxu0 %v12949_v21  ;;  %6616 = vmatpush1.bf16.msra.mxu1 %v12951_v23  ;;  %v13063_v21 = vcombine.low %v551_v6, %v559_v8  ;;  %v13078_v23 = vcombine.high %v566_v13, %v574_v15  ;;  %v93_v13 = vcombine.high %v15652_v25, %v15652_v25 }
  0x5d   :  { %6453 = vmatprep.subr.bf16.mxu0 %v12966_v24  ;;  %6617 = vmatprep.subr.bf16.mxu1 %v12968_v14  ;;  %v582_v24 = vld [vmem:[#allocation3 + $0xc80] sm:$0xff]  ;;  %v583_v14 = vld [vmem:[#allocation3 + $0xc88] sm:$0xff] }
  0x5e   :  { %6483 = vmatprep.mubr.bf16.mxu0 %v15657_v30  ;;  %6647 = vmatprep.mubr.bf16.mxu1 %v15657_v30  ;;  %v13094_v32 = vcombine.high %v582_v24, %v590_v26  ;;  %v13096_v36 = vcombine.high %v583_v14, %v591_v28  ;;  %v13093_v38 = vcombine.low %v582_v24, %v590_v26  ;;  %v695_v24 = vld [vmem:[#allocation3 + $0x1008] sm:$0xff] }
  0x5f   :  { %12688 = vst.sshfl [vmem:[#allocation2 + $0x18] sm:$0xf pattern:$0x76325410] %v93_v13  ;;  %v703_v26 = vld [vmem:[#allocation3 + $0x1048] sm:$0xff] }
  0x60   :  { %6454 = vmatpush1.bf16.msra.mxu0 %v12965_v33  ;;  %6618 = vmatpush1.bf16.msra.mxu1 %v12967_v34  ;;  %v598_v33 = vld [vmem:[#allocation3 + $0xd00] sm:$0xff] }
  0x61   :  { %6455 = vmatprep.subr.bf16.mxu0 %v12982_v35  ;;  %6619 = vmatprep.subr.bf16.mxu1 %v12984_v39  ;;  %v606_v34 = vld [vmem:[#allocation3 + $0xd40] sm:$0xff]  ;;  %v599_v35 = vld [vmem:[#allocation3 + $0xd08] sm:$0xff]  ;;  %v13095_v39 = vcombine.low %v583_v14, %v591_v28 }
  0x62   :  { %v13110_v40 = vcombine.high %v598_v33, %v606_v34  ;;  %v13112_v44 = vcombine.high %v599_v35, %v607_v37  ;;  %v13111_v47 = vcombine.low %v599_v35, %v607_v37  ;;  %v719_v35 = vld [vmem:[#allocation3 + $0x10c8] sm:$0xff]  ;;  %v15672_v37 = vpack.c.bf16 %v15641_v9, %v15641_v9 }
  0x64   :  { %6456 = vmatpush1.bf16.msra.mxu0 %v12981_v41  ;;  %6620 = vmatpush1.bf16.msra.mxu1 %v12983_v42  ;;  %v614_v41 = vld [vmem:[#allocation3 + $0xd80] sm:$0xff] }
  0x65   :  { %6457 = vmatprep.subr.bf16.mxu0 %v12998_v43  ;;  %6621 = vmatprep.subr.bf16.mxu1 %v13000_v46  ;;  %v622_v42 = vld [vmem:[#allocation3 + $0xdc0] sm:$0xff]  ;;  %v615_v43 = vld [vmem:[#allocation3 + $0xd88] sm:$0xff]  ;;  %v13109_v46 = vcombine.low %v598_v33, %v606_v34  ;;  %v13208_v33 = vcombine.high %v695_v24, %v703_v26 }
  0x66   :  { %v13126_v48 = vcombine.high %v614_v41, %v622_v42  ;;  %v13128_v52 = vcombine.high %v615_v43, %v623_v45  ;;  %v13125_v54 = vcombine.low %v614_v41, %v622_v42  ;;  %v711_v34 = vld [vmem:[#allocation3 + $0x1088] sm:$0xff]  ;;  %v726_v41 = vld [vmem:[#allocation3 + $0x1100] sm:$0xff] }
  0x67   :  { %v734_v42 = vld [vmem:[#allocation3 + $0x1140] sm:$0xff] }
  0x68   :  { %6458 = vmatpush1.bf16.msra.mxu0 %v12997_v49  ;;  %6622 = vmatpush1.bf16.msra.mxu1 %v12999_v50  ;;  %v630_v49 = vld [vmem:[#allocation3 + $0xe00] sm:$0xff] }
  0x69   :  { %6459 = vmatprep.subr.bf16.mxu0 %v13014_v51  ;;  %6623 = vmatprep.subr.bf16.mxu1 %v13016_v55  ;;  %v638_v50 = vld [vmem:[#allocation3 + $0xe40] sm:$0xff]  ;;  %v631_v51 = vld [vmem:[#allocation3 + $0xe08] sm:$0xff]  ;;  %v13127_v55 = vcombine.low %v615_v43, %v623_v45 }
  0x6a   :  { %v13142_v56 = vcombine.high %v630_v49, %v638_v50  ;;  %v13144_v60 = vcombine.high %v631_v51, %v639_v53  ;;  %v13141_v62 = vcombine.low %v630_v49, %v638_v50  ;;  %v727_v43 = vld [vmem:[#allocation3 + $0x1108] sm:$0xff]  ;;  %v742_v49 = vld [vmem:[#allocation3 + $0x1180] sm:$0xff] }
  0x6b   :  { %v735_v45 = vld [vmem:[#allocation3 + $0x1148] sm:$0xff]  ;;  %v750_v50 = vld [vmem:[#allocation3 + $0x11c0] sm:$0xff] }
  0x6c   :  { %6460 = vmatpush1.bf16.msra.mxu0 %v13013_v57  ;;  %6624 = vmatpush1.bf16.msra.mxu1 %v13015_v58  ;;  %v646_v57 = vld [vmem:[#allocation3 + $0xe80] sm:$0xff] }
  0x6d   :  { %6461 = vmatprep.subr.bf16.mxu0 %v13030_v59  ;;  %6625 = vmatprep.subr.bf16.mxu1 %v13032_v63  ;;  %v654_v58 = vld [vmem:[#allocation3 + $0xec0] sm:$0xff]  ;;  %v647_v59 = vld [vmem:[#allocation3 + $0xe88] sm:$0xff]  ;;  %v13143_v63 = vcombine.low %v631_v51, %v639_v53 }
  0x6e   :  { %v13158_v0 = vcombine.high %v646_v57, %v654_v58  ;;  %v13160_v4 = vcombine.high %v647_v59, %v655_v61  ;;  %v13157_v6 = vcombine.low %v646_v57, %v654_v58  ;;  %v743_v51 = vld [vmem:[#allocation3 + $0x1188] sm:$0xff]  ;;  %v758_v57 = vld [vmem:[#allocation3 + $0x1200] sm:$0xff] }
  0x6f   :  { %v751_v53 = vld [vmem:[#allocation3 + $0x11c8] sm:$0xff]  ;;  %v766_v58 = vld [vmem:[#allocation3 + $0x1240] sm:$0xff] }
  0x70   :  { %6462 = vmatpush1.bf16.msra.mxu0 %v13029_v1  ;;  %6626 = vmatpush1.bf16.msra.mxu1 %v13031_v2  ;;  %v662_v1 = vld [vmem:[#allocation3 + $0xf00] sm:$0xff] }
  0x71   :  { %6463 = vmatprep.subr.bf16.mxu0 %v13046_v3  ;;  %6627 = vmatprep.subr.bf16.mxu1 %v13048_v7  ;;  %v670_v2 = vld [vmem:[#allocation3 + $0xf40] sm:$0xff]  ;;  %v663_v3 = vld [vmem:[#allocation3 + $0xf08] sm:$0xff]  ;;  %v13159_v7 = vcombine.low %v647_v59, %v655_v61 }
  0x72   :  { %v13174_v8 = vcombine.high %v662_v1, %v670_v2  ;;  %v13176_v15 = vcombine.high %v663_v3, %v671_v5  ;;  %v759_v59 = vld [vmem:[#allocation3 + $0x1208] sm:$0xff] }
  0x73   :  { %v767_v61 = vld [vmem:[#allocation3 + $0x1248] sm:$0xff] }
  0x74   :  { %6464 = vmatpush1.bf16.msra.mxu0 %v13045_v10  ;;  %6628 = vmatpush1.bf16.msra.mxu1 %v13047_v11  ;;  %v678_v10 = vld [vmem:[#allocation3 + $0xf80] sm:$0xff] }
  0x75   :  { %6465 = vmatprep.subr.bf16.mxu0 %v13062_v12  ;;  %6629 = vmatprep.subr.bf16.mxu1 %v13064_v17  ;;  %v686_v11 = vld [vmem:[#allocation3 + $0xfc0] sm:$0xff]  ;;  %v679_v12 = vld [vmem:[#allocation3 + $0xf88] sm:$0xff]  ;;  %v13173_v17 = vcombine.low %v662_v1, %v670_v2 }
  0x76   :  { %v13192_v14 = vcombine.high %v679_v12, %v687_v16  ;;  %v13189_v25 = vcombine.low %v678_v10, %v686_v11  ;;  %v13191_v28 = vcombine.low %v679_v12, %v687_v16  ;;  %v774_v1 = vld [vmem:[#allocation3 + $0x1280] sm:$0xff]  ;;  %v791_v12 = vld [vmem:[#allocation3 + $0x1308] sm:$0xff] }
  0x77   :  { %v782_v2 = vld [vmem:[#allocation3 + $0x12c0] sm:$0xff] }
  0x78   :  { %6466 = vmatpush1.bf16.msra.mxu0 %v13061_v20  ;;  %6630 = vmatpush1.bf16.msra.mxu1 %v13063_v21  ;;  %v13175_v20 = vcombine.low %v663_v3, %v671_v5  ;;  %v13190_v21 = vcombine.high %v678_v10, %v686_v11  ;;  %v775_v3 = vld [vmem:[#allocation3 + $0x1288] sm:$0xff]  ;;  %v790_v10 = vld [vmem:[#allocation3 + $0x1300] sm:$0xff]  ;;  %v13285_v16 = vcombine.low %v774_v1, %v782_v2 }
  0x79   :  { %6467 = vmatprep.subr.bf16.mxu0 %v13078_v23  ;;  %6631 = vmatprep.subr.bf16.mxu1 %v13080_v27  ;;  %v702_v23 = vld [vmem:[#allocation3 + $0x1040] sm:$0xff]  ;;  %v15666_v27 = vld [vmem:[#allocation2 + $0x10] sm:$0xff]  ;;  %v783_v5 = vld [vmem:[#allocation3 + $0x12c8] sm:$0xff] }
  0x7a   :  { %v798_v11 = vld [vmem:[#allocation3 + $0x1340] sm:$0xff]  ;;  %v13288_v13 = vcombine.high %v775_v3, %v783_v5 }
  0x7c   :  { %6468 = vmatpush1.bf16.msra.mxu0 %v13077_v29  ;;  %6632 = vmatpush1.bf16.msra.mxu1 %v13079_v31  ;;  %v13206_v29 = vcombine.high %v694_v19, %v702_v23  ;;  %v710_v31 = vld [vmem:[#allocation3 + $0x1080] sm:$0xff] }
  0x7d   :  { %6469 = vmatprep.subr.bf16.mxu0 %v13094_v32  ;;  %6633 = vmatprep.subr.bf16.mxu1 %v13096_v36  ;;  %v718_v32 = vld [vmem:[#allocation3 + $0x10c0] sm:$0xff]  ;;  %v168_v36 = vcombine.high %v15666_v27, %v15666_v27 }
  0x7e   :  { %v13221_v9 = vcombine.low %v710_v31, %v718_v32 }
  0x80   :  { %6470 = vmatpush1.bf16.msra.mxu0 %v13093_v38  ;;  %6634 = vmatpush1.bf16.msra.mxu1 %v13095_v39  ;;  %v13205_v38 = vcombine.low %v694_v19, %v702_v23  ;;  %v13207_v39 = vcombine.low %v695_v24, %v703_v26  ;;  %v13302_v19 = vcombine.high %v790_v10, %v798_v11  ;;  %v807_v23 = vld [vmem:[#allocation3 + $0x1388] sm:$0xff] }
  0x81   :  { %6471 = vmatprep.subr.bf16.mxu0 %v13110_v40  ;;  %6635 = vmatprep.subr.bf16.mxu1 %v13112_v44  ;;  %v13222_v40 = vcombine.high %v710_v31, %v718_v32  ;;  %v13224_v44 = vcombine.high %v711_v34, %v719_v35  ;;  %v815_v26 = vld [vmem:[#allocation3 + $0x13c8] sm:$0xff]  ;;  %v830_v31 = vld [vmem:[#allocation3 + $0x1440] sm:$0xff] }
  0x82   :  { %v823_v32 = vld [vmem:[#allocation3 + $0x1408] sm:$0xff] }
  0x84   :  { %6472 = vmatpush1.bf16.msra.mxu0 %v13109_v46  ;;  %6636 = vmatpush1.bf16.msra.mxu1 %v13111_v47  ;;  %v15674_v46 = vpack.c.bf16 %v168_v36, %v168_v36  ;;  %v13223_v47 = vcombine.low %v711_v34, %v719_v35  ;;  %v831_v34 = vld [vmem:[#allocation3 + $0x1448] sm:$0xff]  ;;  %v13319_v36 = vcombine.low %v807_v23, %v815_v26 }
  0x85   :  { %6473 = vmatprep.subr.bf16.mxu0 %v13126_v48  ;;  %6637 = vmatprep.subr.bf16.mxu1 %v13128_v52  ;;  %v13238_v48 = vcombine.high %v726_v41, %v734_v42  ;;  %v13240_v52 = vcombine.high %v727_v43, %v735_v45 }
  0x88   :  { %6474 = vmatpush1.bf16.msra.mxu0 %v13125_v54  ;;  %6638 = vmatpush1.bf16.msra.mxu1 %v13127_v55  ;;  %v13237_v54 = vcombine.low %v726_v41, %v734_v42  ;;  %v13239_v55 = vcombine.low %v727_v43, %v735_v45  ;;  %v839_v41 = vld [vmem:[#allocation3 + $0x1488] sm:$0xff]  ;;  %v13336_v42 = vcombine.high %v823_v32, %v831_v34 }
  0x89   :  { %6475 = vmatprep.subr.bf16.mxu0 %v13142_v56  ;;  %6639 = vmatprep.subr.bf16.mxu1 %v13144_v60  ;;  %v13254_v56 = vcombine.high %v742_v49, %v750_v50  ;;  %v13256_v60 = vcombine.high %v743_v51, %v751_v53  ;;  %v847_v43 = vld [vmem:[#allocation3 + $0x14c8] sm:$0xff]  ;;  %v13335_v45 = vcombine.low %v823_v32, %v831_v34  ;;  %v950_v34 = vld [vmem:[#allocation3 + $0x1800] sm:$0xff] }
  0x8a   :  { %v943_v32 = vld [vmem:[#allocation3 + $0x17c8] sm:$0xff] }
  0x8c   :  { %6476 = vmatpush1.bf16.msra.mxu0 %v13141_v62  ;;  %6640 = vmatpush1.bf16.msra.mxu1 %v13143_v63  ;;  %v13253_v62 = vcombine.low %v742_v49, %v750_v50  ;;  %v13255_v63 = vcombine.low %v743_v51, %v751_v53  ;;  %v855_v49 = vld [vmem:[#allocation3 + $0x1508] sm:$0xff]  ;;  %v13352_v50 = vcombine.high %v839_v41, %v847_v43 }
  0x8d   :  { %6477 = vmatprep.subr.bf16.mxu0 %v13158_v0  ;;  %6641 = vmatprep.subr.bf16.mxu1 %v13160_v4  ;;  %v13270_v0 = vcombine.high %v758_v57, %v766_v58  ;;  %v13272_v4 = vcombine.high %v759_v59, %v767_v61  ;;  %v863_v51 = vld [vmem:[#allocation3 + $0x1548] sm:$0xff]  ;;  %v13351_v53 = vcombine.low %v839_v41, %v847_v43 }
  0x90   :  { %6478 = vmatpush1.bf16.msra.mxu0 %v13157_v6  ;;  %6642 = vmatpush1.bf16.msra.mxu1 %v13159_v7  ;;  %v13269_v6 = vcombine.low %v758_v57, %v766_v58  ;;  %v13271_v7 = vcombine.low %v759_v59, %v767_v61  ;;  %v871_v57 = vld [vmem:[#allocation3 + $0x1588] sm:$0xff]  ;;  %v13368_v58 = vcombine.high %v855_v49, %v863_v51 }
  0x91   :  { %6479 = vmatprep.subr.bf16.mxu0 %v13174_v8  ;;  %6643 = vmatprep.subr.bf16.mxu1 %v13176_v15  ;;  %v13286_v8 = vcombine.high %v774_v1, %v782_v2  ;;  %v799_v15 = vld [vmem:[#allocation3 + $0x1348] sm:$0xff]  ;;  %v13367_v61 = vcombine.low %v855_v49, %v863_v51 }
  0x92   :  { %v13304_v24 = vcombine.high %v791_v12, %v799_v15  ;;  %v879_v59 = vld [vmem:[#allocation3 + $0x15c8] sm:$0xff] }
  0x93   :  { %v887_v1 = vld [vmem:[#allocation3 + $0x1608] sm:$0xff]  ;;  %v13384_v2 = vcombine.high %v871_v57, %v879_v59 }
  0x94   :  { %6480 = vmatpush1.bf16.msra.mxu0 %v13173_v17  ;;  %6644 = vmatpush1.bf16.msra.mxu1 %v13175_v20  ;;  %v13287_v17 = vcombine.low %v775_v3, %v783_v5  ;;  %v806_v20 = vld [vmem:[#allocation3 + $0x1380] sm:$0xff]  ;;  %v895_v3 = vld [vmem:[#allocation3 + $0x1648] sm:$0xff]  ;;  %v13383_v5 = vcombine.low %v871_v57, %v879_v59 }
  0x95   :  { %6481 = vmatprep.subr.bf16.mxu0 %v13190_v21  ;;  %6645 = vmatprep.subr.bf16.mxu1 %v13192_v14  ;;  %v814_v21 = vld [vmem:[#allocation3 + $0x13c0] sm:$0xff]  ;;  %v13301_v14 = vcombine.low %v790_v10, %v798_v11  ;;  %v903_v10 = vld [vmem:[#allocation3 + $0x1688] sm:$0xff]  ;;  %v13400_v11 = vcombine.high %v887_v1, %v895_v3 }
  0x96   :  { %v13317_v35 = vcombine.low %v806_v20, %v814_v21  ;;  %v990_v57 = vld [vmem:[#allocation3 + $0x1940] sm:$0xff] }
  0x98   :  { %6482 = vmatpush1.bf16.msra.mxu0 %v13189_v25  ;;  %6646 = vmatpush1.bf16.msra.mxu1 %v13191_v28  ;;  %v13303_v25 = vcombine.low %v791_v12, %v799_v15  ;;  %v13318_v28 = vcombine.high %v806_v20, %v814_v21  ;;  %v911_v12 = vld [vmem:[#allocation3 + $0x16c8] sm:$0xff]  ;;  %v13399_v15 = vcombine.low %v887_v1, %v895_v3  ;;  %v1006_v1 = vld [vmem:[#allocation3 + $0x19c0] sm:$0xff] }
  0x99   :  { %6492 = vmatprep.subr.bf16.mxu0 %v13206_v29  ;;  %6656 = vmatprep.subr.bf16.mxu1 %v13208_v33  ;;  %v822_v29 = vld [vmem:[#allocation3 + $0x1400] sm:$0xff]  ;;  %v13320_v33 = vcombine.high %v807_v23, %v815_v26  ;;  %v919_v20 = vld [vmem:[#allocation3 + $0x1708] sm:$0xff]  ;;  %v13416_v21 = vcombine.high %v903_v10, %v911_v12  ;;  %v13415_v26 = vcombine.low %v903_v10, %v911_v12 }
  0x9a   :  { %v927_v23 = vld [vmem:[#allocation3 + $0x1748] sm:$0xff]  ;;  %v1022_v10 = vld [vmem:[#allocation3 + $0x1a40] sm:$0xff] }
  0x9b   :  { %6484 = vmatmul.mubr.bf16.vlgmr.msra.gmra.mrb[0].mxu0 %v15672_v37  ;;  %6648 = vmatmul.mubr.bf16.vlgmr.msra.gmra.mrb[0].mxu1 %v15672_v37 }
  0x9c   :  { %6493 = vmatpush1.bf16.msra.mxu0 %v13205_v38  ;;  %6657 = vmatpush1.bf16.msra.mxu1 %v13207_v39  ;;  %v13334_v38 = vcombine.high %v822_v29, %v830_v31  ;;  %v838_v39 = vld [vmem:[#allocation3 + $0x1480] sm:$0xff] }
  0x9d   :  { %6494 = vmatprep.subr.bf16.mxu0 %v13222_v40  ;;  %6658 = vmatprep.subr.bf16.mxu1 %v13224_v44  ;;  %v846_v40 = vld [vmem:[#allocation3 + $0x14c0] sm:$0xff]  ;;  %v13333_v44 = vcombine.low %v822_v29, %v830_v31  ;;  %v935_v29 = vld [vmem:[#allocation3 + $0x1788] sm:$0xff]  ;;  %v13432_v31 = vcombine.high %v919_v20, %v927_v23 }
  0x9e   :  { %6524 = vmatprep.mubr.bf16.mxu0 %v15674_v46  ;;  %6688 = vmatprep.mubr.bf16.mxu1 %v15674_v46  ;;  %v13448_v41 = vcombine.high %v935_v29, %v943_v32 }
  0xa0   :  { %6495 = vmatpush1.bf16.msra.mxu0 %v13221_v9  ;;  %6659 = vmatpush1.bf16.msra.mxu1 %v13223_v47  ;;  %v13350_v9 = vcombine.high %v838_v39, %v846_v40  ;;  %v854_v47 = vld [vmem:[#allocation3 + $0x1500] sm:$0xff] }
  0xa1   :  { %6496 = vmatprep.subr.bf16.mxu0 %v13238_v48  ;;  %6660 = vmatprep.subr.bf16.mxu1 %v13240_v52  ;;  %v862_v48 = vld [vmem:[#allocation3 + $0x1540] sm:$0xff]  ;;  %v13349_v52 = vcombine.low %v838_v39, %v846_v40  ;;  %v951_v39 = vld [vmem:[#allocation3 + $0x1808] sm:$0xff] }
  0xa2   :  { %v959_v40 = vld [vmem:[#allocation3 + $0x1848] sm:$0xff] }
  0xa3   :  { %v13464_v49 = vcombine.high %v951_v39, %v959_v40 }
  0xa4   :  { %6497 = vmatpush1.bf16.msra.mxu0 %v13237_v54  ;;  %6661 = vmatpush1.bf16.msra.mxu1 %v13239_v55  ;;  %v13366_v54 = vcombine.high %v854_v47, %v862_v48  ;;  %v870_v55 = vld [vmem:[#allocation3 + $0x1580] sm:$0xff] }
  0xa5   :  { %6498 = vmatprep.subr.bf16.mxu0 %v13254_v56  ;;  %6662 = vmatprep.subr.bf16.mxu1 %v13256_v60  ;;  %v878_v56 = vld [vmem:[#allocation3 + $0x15c0] sm:$0xff]  ;;  %v13365_v60 = vcombine.low %v854_v47, %v862_v48  ;;  %v967_v48 = vld [vmem:[#allocation3 + $0x1888] sm:$0xff] }
  0xa6   :  { %v974_v47 = vld [vmem:[#allocation3 + $0x18c0] sm:$0xff] }
  0xa8   :  { %6499 = vmatpush1.bf16.msra.mxu0 %v13253_v62  ;;  %6663 = vmatpush1.bf16.msra.mxu1 %v13255_v63  ;;  %v13382_v62 = vcombine.high %v870_v55, %v878_v56  ;;  %v886_v63 = vld [vmem:[#allocation3 + $0x1600] sm:$0xff] }
  0xa9   :  { %6500 = vmatprep.subr.bf16.mxu0 %v13270_v0  ;;  %6664 = vmatprep.subr.bf16.mxu1 %v13272_v4  ;;  %v894_v0 = vld [vmem:[#allocation3 + $0x1640] sm:$0xff]  ;;  %v13381_v4 = vcombine.low %v870_v55, %v878_v56 }
  0xaa   :  { %v982_v56 = vld [vmem:[#allocation3 + $0x1900] sm:$0xff] }
  0xac   :  { %6501 = vmatpush1.bf16.msra.mxu0 %v13269_v6  ;;  %6665 = vmatpush1.bf16.msra.mxu1 %v13271_v7  ;;  %v13398_v6 = vcombine.high %v886_v63, %v894_v0  ;;  %v902_v7 = vld [vmem:[#allocation3 + $0x1680] sm:$0xff] }
  0xad   :  { %6502 = vmatprep.subr.bf16.mxu0 %v13286_v8  ;;  %6666 = vmatprep.subr.bf16.mxu1 %v13288_v13  ;;  %v910_v8 = vld [vmem:[#allocation3 + $0x16c0] sm:$0xff]  ;;  %v13397_v13 = vcombine.low %v886_v63, %v894_v0  ;;  %v13494_v63 = vcombine.high %v982_v56, %v990_v57 }
  0xae   :  { %v998_v0 = vld [vmem:[#allocation3 + $0x1980] sm:$0xff] }
  0xb0   :  { %6503 = vmatpush1.bf16.msra.mxu0 %v13285_v16  ;;  %6667 = vmatpush1.bf16.msra.mxu1 %v13287_v17  ;;  %v13414_v16 = vcombine.high %v902_v7, %v910_v8  ;;  %v918_v17 = vld [vmem:[#allocation3 + $0x1700] sm:$0xff] }
  0xb1   :  { %6504 = vmatprep.subr.bf16.mxu0 %v13302_v19  ;;  %6668 = vmatprep.subr.bf16.mxu1 %v13304_v24  ;;  %v926_v19 = vld [vmem:[#allocation3 + $0x1740] sm:$0xff]  ;;  %v13413_v24 = vcombine.low %v902_v7, %v910_v8  ;;  %v13510_v7 = vcombine.high %v998_v0, %v1006_v1 }
  0xb2   :  { %v1014_v8 = vld [vmem:[#allocation3 + $0x1a00] sm:$0xff] }
  0xb4   :  { %6505 = vmatpush1.bf16.msra.mxu0 %v13301_v14  ;;  %6669 = vmatpush1.bf16.msra.mxu1 %v13303_v25  ;;  %v13430_v14 = vcombine.high %v918_v17, %v926_v19  ;;  %v934_v25 = vld [vmem:[#allocation3 + $0x1780] sm:$0xff] }
  0xb5   :  { %6506 = vmatprep.subr.bf16.mxu0 %v13318_v28  ;;  %6670 = vmatprep.subr.bf16.mxu1 %v13320_v33  ;;  %v942_v28 = vld [vmem:[#allocation3 + $0x17c0] sm:$0xff]  ;;  %v13429_v33 = vcombine.low %v918_v17, %v926_v19  ;;  %v13526_v17 = vcombine.high %v1014_v8, %v1022_v10 }
  0xb6   :  { %v13445_v43 = vcombine.low %v934_v25, %v942_v28  ;;  %v1030_v19 = vld [vmem:[#allocation3 + $0x1a80] sm:$0xff] }
  0xb8   :  { %6507 = vmatpush1.bf16.msra.mxu0 %v13317_v35  ;;  %6671 = vmatpush1.bf16.msra.mxu1 %v13319_v36  ;;  %v13431_v35 = vcombine.low %v919_v20, %v927_v23  ;;  %v13446_v36 = vcombine.high %v934_v25, %v942_v28  ;;  %v1038_v20 = vld [vmem:[#allocation3 + $0x1ac0] sm:$0xff] }
  0xb9   :  { %6508 = vmatprep.subr.bf16.mxu0 %v13334_v38  ;;  %6672 = vmatprep.subr.bf16.mxu1 %v13336_v42  ;;  %v958_v38 = vld [vmem:[#allocation3 + $0x1840] sm:$0xff]  ;;  %v15680_v42 = vld [vmem:[#allocation2 + $0x18] sm:$0xff]  ;;  %v13542_v25 = vcombine.high %v1030_v19, %v1038_v20 }
  0xba   :  { %v169_v51 = vcombine.high %v15680_v42, %v15680_v42  ;;  %v1046_v28 = vld [vmem:[#allocation3 + $0x1b00] sm:$0xff] }
  0xbc   :  { %6509 = vmatpush1.bf16.msra.mxu0 %v13333_v44  ;;  %6673 = vmatpush1.bf16.msra.mxu1 %v13335_v45  ;;  %v13447_v44 = vcombine.low %v935_v29, %v943_v32  ;;  %v13462_v45 = vcombine.high %v950_v34, %v958_v38  ;;  %v1054_v29 = vld [vmem:[#allocation3 + $0x1b40] sm:$0xff] }
  0xbd   :  { %6510 = vmatprep.subr.bf16.mxu0 %v13350_v9  ;;  %6674 = vmatprep.subr.bf16.mxu1 %v13352_v50  ;;  %v966_v9 = vld [vmem:[#allocation3 + $0x1880] sm:$0xff]  ;;  %v975_v50 = vld [vmem:[#allocation3 + $0x18c8] sm:$0xff] }
  0xbe   :  { %v13478_v55 = vcombine.high %v966_v9, %v974_v47  ;;  %v13480_v59 = vcombine.high %v967_v48, %v975_v50 }
  0xc0   :  { %6511 = vmatpush1.bf16.msra.mxu0 %v13349_v52  ;;  %6675 = vmatpush1.bf16.msra.mxu1 %v13351_v53  ;;  %v15686_v52 = vpack.c.bf16 %v15666_v27, %v15666_v27  ;;  %v13461_v53 = vcombine.low %v950_v34, %v958_v38  ;;  %v13477_v27 = vcombine.low %v966_v9, %v974_v47  ;;  %v1062_v38 = vld [vmem:[#allocation3 + $0x1b80] sm:$0xff] }
  0xc1   :  { %6512 = vmatprep.subr.bf16.mxu0 %v13366_v54  ;;  %6676 = vmatprep.subr.bf16.mxu1 %v13368_v58  ;;  %v13463_v54 = vcombine.low %v951_v39, %v959_v40  ;;  %v983_v58 = vld [vmem:[#allocation3 + $0x1908] sm:$0xff]  ;;  %v13541_v34 = vcombine.low %v1030_v19, %v1038_v20  ;;  %v1070_v39 = vld [vmem:[#allocation3 + $0x1bc0] sm:$0xff] }
  0xc2   :  { %v1063_v40 = vld [vmem:[#allocation3 + $0x1b88] sm:$0xff]  ;;  %v13574_v9 = vcombine.high %v1062_v38, %v1070_v39  ;;  %v1078_v47 = vld [vmem:[#allocation3 + $0x1c00] sm:$0xff] }
  0xc3   :  { %v1142_v19 = vld [vmem:[#allocation3 + $0x1e00] sm:$0xff] }
  0xc4   :  { %6513 = vmatpush1.bf16.msra.mxu0 %v13365_v60  ;;  %6677 = vmatpush1.bf16.msra.mxu1 %v13367_v61  ;;  %v991_v60 = vld [vmem:[#allocation3 + $0x1948] sm:$0xff]  ;;  %v15688_v61 = vpack.c.bf16 %v169_v51, %v169_v51  ;;  %v1150_v20 = vld [vmem:[#allocation3 + $0x1e40] sm:$0xff] }
  0xc5   :  { %6514 = vmatprep.subr.bf16.mxu0 %v13382_v62  ;;  %6678 = vmatprep.subr.bf16.mxu1 %v13384_v2  ;;  %v13479_v62 = vcombine.low %v967_v48, %v975_v50  ;;  %v999_v2 = vld [vmem:[#allocation3 + $0x1988] sm:$0xff]  ;;  %v13496_v3 = vcombine.high %v983_v58, %v991_v60  ;;  %v1086_v48 = vld [vmem:[#allocation3 + $0x1c40] sm:$0xff] }
  0xc6   :  { %v1087_v51 = vld [vmem:[#allocation3 + $0x1c48] sm:$0xff] }
  0xc8   :  { %6515 = vmatpush1.bf16.msra.mxu0 %v13381_v4  ;;  %6679 = vmatpush1.bf16.msra.mxu1 %v13383_v5  ;;  %v1007_v4 = vld [vmem:[#allocation3 + $0x19c8] sm:$0xff]  ;;  %v13493_v5 = vcombine.low %v982_v56, %v990_v57  ;;  %v1094_v56 = vld [vmem:[#allocation3 + $0x1c80] sm:$0xff] }
  0xc9   :  { %6516 = vmatprep.subr.bf16.mxu0 %v13398_v6  ;;  %6680 = vmatprep.subr.bf16.mxu1 %v13400_v11  ;;  %v13495_v6 = vcombine.low %v983_v58, %v991_v60  ;;  %v1015_v11 = vld [vmem:[#allocation3 + $0x1a08] sm:$0xff]  ;;  %v13512_v12 = vcombine.high %v999_v2, %v1007_v4  ;;  %v1102_v57 = vld [vmem:[#allocation3 + $0x1cc0] sm:$0xff] }
  0xca   :  { %v1095_v58 = vld [vmem:[#allocation3 + $0x1c88] sm:$0xff] }
  0xcb   :  { %v1103_v60 = vld [vmem:[#allocation3 + $0x1cc8] sm:$0xff] }
  0xcc   :  { %6517 = vmatpush1.bf16.msra.mxu0 %v13397_v13  ;;  %6681 = vmatpush1.bf16.msra.mxu1 %v13399_v15  ;;  %v1023_v13 = vld [vmem:[#allocation3 + $0x1a48] sm:$0xff]  ;;  %v13509_v15 = vcombine.low %v998_v0, %v1006_v1  ;;  %v1110_v0 = vld [vmem:[#allocation3 + $0x1d00] sm:$0xff] }
  0xcd   :  { %6518 = vmatprep.subr.bf16.mxu0 %v13414_v16  ;;  %6682 = vmatprep.subr.bf16.mxu1 %v13416_v21  ;;  %v13511_v16 = vcombine.low %v999_v2, %v1007_v4  ;;  %v1031_v21 = vld [vmem:[#allocation3 + $0x1a88] sm:$0xff]  ;;  %v13528_v23 = vcombine.high %v1015_v11, %v1023_v13  ;;  %v1118_v1 = vld [vmem:[#allocation3 + $0x1d40] sm:$0xff] }
  0xce   :  { %v1111_v2 = vld [vmem:[#allocation3 + $0x1d08] sm:$0xff] }
  0xcf   :  { %v1119_v4 = vld [vmem:[#allocation3 + $0x1d48] sm:$0xff] }
  0xd0   :  { %6519 = vmatpush1.bf16.msra.mxu0 %v13413_v24  ;;  %6683 = vmatpush1.bf16.msra.mxu1 %v13415_v26  ;;  %v1039_v24 = vld [vmem:[#allocation3 + $0x1ac8] sm:$0xff]  ;;  %v13525_v26 = vcombine.low %v1014_v8, %v1022_v10  ;;  %v1126_v8 = vld [vmem:[#allocation3 + $0x1d80] sm:$0xff] }
  0xd1   :  { %6520 = vmatprep.subr.bf16.mxu0 %v13430_v14  ;;  %6684 = vmatprep.subr.bf16.mxu1 %v13432_v31  ;;  %v13527_v14 = vcombine.low %v1015_v11, %v1023_v13  ;;  %v1047_v31 = vld [vmem:[#allocation3 + $0x1b08] sm:$0xff]  ;;  %v13544_v32 = vcombine.high %v1031_v21, %v1039_v24  ;;  %v1134_v10 = vld [vmem:[#allocation3 + $0x1dc0] sm:$0xff] }
  0xd2   :  { %v1127_v11 = vld [vmem:[#allocation3 + $0x1d88] sm:$0xff] }
  0xd3   :  { %v1135_v13 = vld [vmem:[#allocation3 + $0x1dc8] sm:$0xff] }
  0xd4   :  { %6521 = vmatpush1.bf16.msra.mxu0 %v13429_v33  ;;  %6685 = vmatpush1.bf16.msra.mxu1 %v13431_v35  ;;  %v1055_v33 = vld [vmem:[#allocation3 + $0x1b48] sm:$0xff]  ;;  %v13543_v35 = vcombine.low %v1031_v21, %v1039_v24 }
  0xd5   :  { %6522 = vmatprep.subr.bf16.mxu0 %v13446_v36  ;;  %6686 = vmatprep.subr.bf16.mxu1 %v13448_v41  ;;  %v13558_v36 = vcombine.high %v1046_v28, %v1054_v29  ;;  %v13560_v41 = vcombine.high %v1047_v31, %v1055_v33  ;;  %v1143_v21 = vld [vmem:[#allocation3 + $0x1e08] sm:$0xff] }
  0xd6   :  { %v1151_v24 = vld [vmem:[#allocation3 + $0x1e48] sm:$0xff] }
  0xd8   :  { %6523 = vmatpush1.bf16.msra.mxu0 %v13445_v43  ;;  %6687 = vmatpush1.bf16.msra.mxu1 %v13447_v44  ;;  %v1071_v43 = vld [vmem:[#allocation3 + $0x1bc8] sm:$0xff]  ;;  %v13557_v44 = vcombine.low %v1046_v28, %v1054_v29  ;;  %v1158_v28 = vld [vmem:[#allocation3 + $0x1e80] sm:$0xff] }
  0xd9   :  { %6533 = vmatprep.subr.bf16.mxu0 %v13462_v45  ;;  %6697 = vmatprep.subr.bf16.mxu1 %v13464_v49  ;;  %v13559_v45 = vcombine.low %v1047_v31, %v1055_v33  ;;  %v1079_v49 = vld [vmem:[#allocation3 + $0x1c08] sm:$0xff]  ;;  %v13576_v50 = vcombine.high %v1063_v40, %v1071_v43  ;;  %v1166_v29 = vld [vmem:[#allocation3 + $0x1ec0] sm:$0xff] }
  0xda   :  { %v1159_v31 = vld [vmem:[#allocation3 + $0x1e88] sm:$0xff] }
  0xdb   :  { %6525 = vmatmul.mubr.bf16.vlgmr.msra.gmra.mrb[0].mxu0 %v15686_v52  ;;  %6689 = vmatmul.mubr.bf16.vlgmr.msra.gmra.mrb[0].mxu1 %v15686_v52  ;;  %v1167_v33 = vld [vmem:[#allocation3 + $0x1ec8] sm:$0xff] }
  0xdc   :  { %6534 = vmatpush1.bf16.msra.mxu0 %v13461_v53  ;;  %6698 = vmatpush1.bf16.msra.mxu1 %v13463_v54  ;;  %v13573_v53 = vcombine.low %v1062_v38, %v1070_v39  ;;  %v13575_v54 = vcombine.low %v1063_v40, %v1071_v43  ;;  %v1174_v38 = vld [vmem:[#allocation3 + $0x1f00] sm:$0xff]  ;;  %v1175_v40 = vld [vmem:[#allocation3 + $0x1f08] sm:$0xff] }
  0xdd   :  { %6535 = vmatprep.subr.bf16.mxu0 %v13478_v55  ;;  %6699 = vmatprep.subr.bf16.mxu1 %v13480_v59  ;;  %v13590_v55 = vcombine.high %v1078_v47, %v1086_v48  ;;  %v13592_v59 = vcombine.high %v1079_v49, %v1087_v51  ;;  %v1182_v39 = vld [vmem:[#allocation3 + $0x1f40] sm:$0xff]  ;;  %v1183_v43 = vld [vmem:[#allocation3 + $0x1f48] sm:$0xff] }
  0xde   :  { %6565 = vmatprep.mubr.bf16.mxu0 %v15688_v61  ;;  %6729 = vmatprep.mubr.bf16.mxu1 %v15688_v61 }
  0xe0   :  { %6536 = vmatpush1.bf16.msra.mxu0 %v13477_v27  ;;  %6700 = vmatpush1.bf16.msra.mxu1 %v13479_v62  ;;  %v13589_v27 = vcombine.low %v1078_v47, %v1086_v48  ;;  %v13591_v62 = vcombine.low %v1079_v49, %v1087_v51  ;;  %v1190_v47 = vld [vmem:[#allocation3 + $0x1f80] sm:$0xff]  ;;  %v1191_v49 = vld [vmem:[#allocation3 + $0x1f88] sm:$0xff] }
  0xe1   :  { %6537 = vmatprep.subr.bf16.mxu0 %v13494_v63  ;;  %6701 = vmatprep.subr.bf16.mxu1 %v13496_v3  ;;  %v13606_v63 = vcombine.high %v1094_v56, %v1102_v57  ;;  %v13608_v3 = vcombine.high %v1095_v58, %v1103_v60  ;;  %v1198_v48 = vld [vmem:[#allocation3 + $0x1fc0] sm:$0xff]  ;;  %v1199_v51 = vld [vmem:[#allocation3 + $0x1fc8] sm:$0xff] }
  0xe4   :  { %6538 = vmatpush1.bf16.msra.mxu0 %v13493_v5  ;;  %6702 = vmatpush1.bf16.msra.mxu1 %v13495_v6  ;;  %v13605_v5 = vcombine.low %v1094_v56, %v1102_v57  ;;  %v13607_v6 = vcombine.low %v1095_v58, %v1103_v60  ;;  %v184_v56 = vld [vmem:[#allocation3 + $0x10] sm:$0xff]  ;;  %v185_v58 = vld [vmem:[#allocation3 + $0x18] sm:$0xff] }
  0xe5   :  { %6539 = vmatprep.subr.bf16.mxu0 %v13510_v7  ;;  %6703 = vmatprep.subr.bf16.mxu1 %v13512_v12  ;;  %v13622_v7 = vcombine.high %v1110_v0, %v1118_v1  ;;  %v13624_v12 = vcombine.high %v1111_v2, %v1119_v4  ;;  %v192_v57 = vld [vmem:[#allocation3 + $0x50] sm:$0xff]  ;;  %v193_v60 = vld [vmem:[#allocation3 + $0x58] sm:$0xff] }
  0xe8   :  { %6540 = vmatpush1.bf16.msra.mxu0 %v13509_v15  ;;  %6704 = vmatpush1.bf16.msra.mxu1 %v13511_v16  ;;  %v13621_v15 = vcombine.low %v1110_v0, %v1118_v1  ;;  %v13623_v16 = vcombine.low %v1111_v2, %v1119_v4  ;;  %v200_v0 = vld [vmem:[#allocation3 + $0x90] sm:$0xff]  ;;  %v201_v2 = vld [vmem:[#allocation3 + $0x98] sm:$0xff] }
  0xe9   :  { %6541 = vmatprep.subr.bf16.mxu0 %v13526_v17  ;;  %6705 = vmatprep.subr.bf16.mxu1 %v13528_v23  ;;  %v13638_v17 = vcombine.high %v1126_v8, %v1134_v10  ;;  %v13640_v23 = vcombine.high %v1127_v11, %v1135_v13  ;;  %v208_v1 = vld [vmem:[#allocation3 + $0xd0] sm:$0xff]  ;;  %v209_v4 = vld [vmem:[#allocation3 + $0xd8] sm:$0xff] }
  0xec   :  { %6542 = vmatpush1.bf16.msra.mxu0 %v13525_v26  ;;  %6706 = vmatpush1.bf16.msra.mxu1 %v13527_v14  ;;  %v13637_v26 = vcombine.low %v1126_v8, %v1134_v10  ;;  %v13639_v14 = vcombine.low %v1127_v11, %v1135_v13  ;;  %v12714_v8 = vcombine.high %v200_v0, %v208_v1  ;;  %v216_v10 = vld [vmem:[#allocation3 + $0x110] sm:$0xff] }
  0xed   :  { %6543 = vmatprep.subr.bf16.mxu0 %v13542_v25  ;;  %6707 = vmatprep.subr.bf16.mxu1 %v13544_v32  ;;  %v13654_v25 = vcombine.high %v1142_v19, %v1150_v20  ;;  %v13656_v32 = vcombine.high %v1143_v21, %v1151_v24  ;;  %v224_v11 = vld [vmem:[#allocation3 + $0x150] sm:$0xff]  ;;  %v12716_v13 = vcombine.high %v201_v2, %v209_v4 }
  0xf0   :  { %6544 = vmatpush1.bf16.msra.mxu0 %v13541_v34  ;;  %6708 = vmatpush1.bf16.msra.mxu1 %v13543_v35  ;;  %v13653_v34 = vcombine.low %v1142_v19, %v1150_v20  ;;  %v13655_v35 = vcombine.low %v1143_v21, %v1151_v24  ;;  %v232_v19 = vld [vmem:[#allocation3 + $0x190] sm:$0xff]  ;;  %v233_v21 = vld [vmem:[#allocation3 + $0x198] sm:$0xff] }
  0xf1   :  { %6545 = vmatprep.subr.bf16.mxu0 %v13558_v36  ;;  %6709 = vmatprep.subr.bf16.mxu1 %v13560_v41  ;;  %v13670_v36 = vcombine.high %v1158_v28, %v1166_v29  ;;  %v13672_v41 = vcombine.high %v1159_v31, %v1167_v33  ;;  %v240_v20 = vld [vmem:[#allocation3 + $0x1d0] sm:$0xff]  ;;  %v241_v24 = vld [vmem:[#allocation3 + $0x1d8] sm:$0xff] }
  0xf4   :  { %6546 = vmatpush1.bf16.msra.mxu0 %v13557_v44  ;;  %6710 = vmatpush1.bf16.msra.mxu1 %v13559_v45  ;;  %v13669_v44 = vcombine.low %v1158_v28, %v1166_v29  ;;  %v13671_v45 = vcombine.low %v1159_v31, %v1167_v33  ;;  %v248_v28 = vld [vmem:[#allocation3 + $0x210] sm:$0xff]  ;;  %v249_v31 = vld [vmem:[#allocation3 + $0x218] sm:$0xff] }
  0xf5   :  { %6547 = vmatprep.subr.bf16.mxu0 %v13574_v9  ;;  %6711 = vmatprep.subr.bf16.mxu1 %v13576_v50  ;;  %v13686_v9 = vcombine.high %v1174_v38, %v1182_v39  ;;  %v13688_v50 = vcombine.high %v1175_v40, %v1183_v43  ;;  %v256_v29 = vld [vmem:[#allocation3 + $0x250] sm:$0xff]  ;;  %v257_v33 = vld [vmem:[#allocation3 + $0x258] sm:$0xff] }
  0xf8   :  { %6548 = vmatpush1.bf16.msra.mxu0 %v13573_v53  ;;  %6712 = vmatpush1.bf16.msra.mxu1 %v13575_v54  ;;  %v13685_v53 = vcombine.low %v1174_v38, %v1182_v39  ;;  %v13687_v54 = vcombine.low %v1175_v40, %v1183_v43  ;;  %v264_v38 = vld [vmem:[#allocation3 + $0x290] sm:$0xff]  ;;  %v265_v40 = vld [vmem:[#allocation3 + $0x298] sm:$0xff] }
  0xf9   :  { %6549 = vmatprep.subr.bf16.mxu0 %v13590_v55  ;;  %6713 = vmatprep.subr.bf16.mxu1 %v13592_v59  ;;  %v13702_v55 = vcombine.high %v1190_v47, %v1198_v48  ;;  %v13704_v59 = vcombine.high %v1191_v49, %v1199_v51  ;;  %v272_v39 = vld [vmem:[#allocation3 + $0x2d0] sm:$0xff]  ;;  %v273_v43 = vld [vmem:[#allocation3 + $0x2d8] sm:$0xff] }
  0xfc   :  { %6550 = vmatpush1.bf16.msra.mxu0 %v13589_v27  ;;  %6714 = vmatpush1.bf16.msra.mxu1 %v13591_v62  ;;  %v13701_v27 = vcombine.low %v1190_v47, %v1198_v48  ;;  %v13703_v62 = vcombine.low %v1191_v49, %v1199_v51  ;;  %v280_v47 = vld [vmem:[#allocation3 + $0x310] sm:$0xff]  ;;  %v281_v49 = vld [vmem:[#allocation3 + $0x318] sm:$0xff] }
  0xfd   :  { %6551 = vmatprep.subr.bf16.mxu0 %v13606_v63  ;;  %6715 = vmatprep.subr.bf16.mxu1 %v13608_v3  ;;  %v12698_v63 = vcombine.high %v184_v56, %v192_v57  ;;  %v12700_v3 = vcombine.high %v185_v58, %v193_v60  ;;  %v288_v48 = vld [vmem:[#allocation3 + $0x350] sm:$0xff]  ;;  %v289_v51 = vld [vmem:[#allocation3 + $0x358] sm:$0xff] }
 0x100   :  { %6552 = vmatpush1.bf16.msra.mxu0 %v13605_v5  ;;  %6716 = vmatpush1.bf16.msra.mxu1 %v13607_v6  ;;  %v15696_v5 = vpack.c.bf16 %v15680_v42, %v15680_v42  ;;  %v12697_v6 = vcombine.low %v184_v56, %v192_v57  ;;  %v12715_v42 = vcombine.low %v201_v2, %v209_v4  ;;  %v296_v56 = vld [vmem:[#allocation3 + $0x390] sm:$0xff]  ;;  %v313_v2 = vld [vmem:[#allocation3 + $0x418] sm:$0xff] }
 0x101   :  { %6553 = vmatprep.subr.bf16.mxu0 %v13622_v7  ;;  %6717 = vmatprep.subr.bf16.mxu1 %v13624_v12  ;;  %v12699_v7 = vcombine.low %v185_v58, %v193_v60  ;;  %v217_v12 = vld [vmem:[#allocation3 + $0x118] sm:$0xff]  ;;  %v304_v57 = vld [vmem:[#allocation3 + $0x3d0] sm:$0xff] }
 0x102   :  { %v297_v58 = vld [vmem:[#allocation3 + $0x398] sm:$0xff] }
 0x103   :  { %v305_v60 = vld [vmem:[#allocation3 + $0x3d8] sm:$0xff] }
 0x104   :  { %6554 = vmatpush1.bf16.msra.mxu0 %v13621_v15  ;;  %6718 = vmatpush1.bf16.msra.mxu1 %v13623_v16  ;;  %v225_v15 = vld [vmem:[#allocation3 + $0x158] sm:$0xff]  ;;  %v12713_v16 = vcombine.low %v200_v0, %v208_v1  ;;  %v312_v0 = vld [vmem:[#allocation3 + $0x410] sm:$0xff] }
 0x105   :  { %6555 = vmatprep.subr.bf16.mxu0 %v13638_v17  ;;  %6719 = vmatprep.subr.bf16.mxu1 %v13640_v23  ;;  %v12730_v17 = vcombine.high %v216_v10, %v224_v11  ;;  %v12732_v23 = vcombine.high %v217_v12, %v225_v15  ;;  %v320_v1 = vld [vmem:[#allocation3 + $0x450] sm:$0xff]  ;;  %v321_v4 = vld [vmem:[#allocation3 + $0x458] sm:$0xff] }
 0x108   :  { %6556 = vmatpush1.bf16.msra.mxu0 %v13637_v26  ;;  %6720 = vmatpush1.bf16.msra.mxu1 %v13639_v14  ;;  %v12729_v26 = vcombine.low %v216_v10, %v224_v11  ;;  %v12731_v14 = vcombine.low %v217_v12, %v225_v15  ;;  %v328_v10 = vld [vmem:[#allocation3 + $0x490] sm:$0xff]  ;;  %v329_v12 = vld [vmem:[#allocation3 + $0x498] sm:$0xff] }
 0x109   :  { %6557 = vmatprep.subr.bf16.mxu0 %v13654_v25  ;;  %6721 = vmatprep.subr.bf16.mxu1 %v13656_v32  ;;  %v12746_v25 = vcombine.high %v232_v19, %v240_v20  ;;  %v12748_v32 = vcombine.high %v233_v21, %v241_v24  ;;  %v336_v11 = vld [vmem:[#allocation3 + $0x4d0] sm:$0xff]  ;;  %v337_v15 = vld [vmem:[#allocation3 + $0x4d8] sm:$0xff] }
 0x10c   :  { %6558 = vmatpush1.bf16.msra.mxu0 %v13653_v34  ;;  %6722 = vmatpush1.bf16.msra.mxu1 %v13655_v35  ;;  %v12745_v34 = vcombine.low %v232_v19, %v240_v20  ;;  %v12747_v35 = vcombine.low %v233_v21, %v241_v24  ;;  %v344_v19 = vld [vmem:[#allocation3 + $0x510] sm:$0xff]  ;;  %v345_v21 = vld [vmem:[#allocation3 + $0x518] sm:$0xff] }
 0x10d   :  { %6559 = vmatprep.subr.bf16.mxu0 %v13670_v36  ;;  %6723 = vmatprep.subr.bf16.mxu1 %v13672_v41  ;;  %v12762_v36 = vcombine.high %v248_v28, %v256_v29  ;;  %v12764_v41 = vcombine.high %v249_v31, %v257_v33  ;;  %v352_v20 = vld [vmem:[#allocation3 + $0x550] sm:$0xff]  ;;  %v353_v24 = vld [vmem:[#allocation3 + $0x558] sm:$0xff] }
 0x110   :  { %6560 = vmatpush1.bf16.msra.mxu0 %v13669_v44  ;;  %6724 = vmatpush1.bf16.msra.mxu1 %v13671_v45  ;;  %v12761_v44 = vcombine.low %v248_v28, %v256_v29  ;;  %v12763_v45 = vcombine.low %v249_v31, %v257_v33  ;;  %v360_v28 = vld [vmem:[#allocation3 + $0x590] sm:$0xff]  ;;  %v361_v31 = vld [vmem:[#allocation3 + $0x598] sm:$0xff] }
 0x111   :  { %6561 = vmatprep.subr.bf16.mxu0 %v13686_v9  ;;  %6725 = vmatprep.subr.bf16.mxu1 %v13688_v50  ;;  %v12778_v9 = vcombine.high %v264_v38, %v272_v39  ;;  %v12780_v50 = vcombine.high %v265_v40, %v273_v43  ;;  %v368_v29 = vld [vmem:[#allocation3 + $0x5d0] sm:$0xff]  ;;  %v369_v33 = vld [vmem:[#allocation3 + $0x5d8] sm:$0xff] }
 0x114   :  { %6562 = vmatpush1.bf16.msra.mxu0 %v13685_v53  ;;  %6726 = vmatpush1.bf16.msra.mxu1 %v13687_v54  ;;  %v12777_v53 = vcombine.low %v264_v38, %v272_v39  ;;  %v12779_v54 = vcombine.low %v265_v40, %v273_v43  ;;  %v376_v38 = vld [vmem:[#allocation3 + $0x610] sm:$0xff]  ;;  %v377_v40 = vld [vmem:[#allocation3 + $0x618] sm:$0xff] }
 0x115   :  { %6563 = vmatprep.subr.bf16.mxu0 %v13702_v55  ;;  %6727 = vmatprep.subr.bf16.mxu1 %v13704_v59  ;;  %v12794_v55 = vcombine.high %v280_v47, %v288_v48  ;;  %v12796_v59 = vcombine.high %v281_v49, %v289_v51  ;;  %v384_v39 = vld [vmem:[#allocation3 + $0x650] sm:$0xff]  ;;  %v385_v43 = vld [vmem:[#allocation3 + $0x658] sm:$0xff] }
 0x118   :  { %6564 = vmatpush1.bf16.msra.mxu0 %v13701_v27  ;;  %6728 = vmatpush1.bf16.msra.mxu1 %v13703_v62  ;;  %v12793_v27 = vcombine.low %v280_v47, %v288_v48  ;;  %v12795_v62 = vcombine.low %v281_v49, %v289_v51  ;;  %v392_v47 = vld [vmem:[#allocation3 + $0x690] sm:$0xff]  ;;  %v393_v49 = vld [vmem:[#allocation3 + $0x698] sm:$0xff] }
 0x119   :  { %6738 = vmatprep.subr.bf16.mxu0 %v12698_v63  ;;  %6902 = vmatprep.subr.bf16.mxu1 %v12700_v3  ;;  %v12810_v63 = vcombine.high %v296_v56, %v304_v57  ;;  %v12812_v3 = vcombine.high %v297_v58, %v305_v60  ;;  %v400_v48 = vld [vmem:[#allocation3 + $0x6d0] sm:$0xff]  ;;  %v401_v51 = vld [vmem:[#allocation3 + $0x6d8] sm:$0xff] }
 0x11b   :  { %6566 = vmatmul.mubr.bf16.vlgmr.msra.gmra.mrb[0].mxu0 %v15696_v5  ;;  %6730 = vmatmul.mubr.bf16.vlgmr.msra.gmra.mrb[0].mxu1 %v15696_v5 }
 0x11c   :  { %6739 = vmatpush1.bf16.msra.mxu0 %v12697_v6  ;;  %6903 = vmatpush1.bf16.msra.mxu1 %v12699_v7  ;;  %v12809_v6 = vcombine.low %v296_v56, %v304_v57  ;;  %v12811_v7 = vcombine.low %v297_v58, %v305_v60  ;;  %v408_v56 = vld [vmem:[#allocation3 + $0x710] sm:$0xff]  ;;  %v409_v58 = vld [vmem:[#allocation3 + $0x718] sm:$0xff] }
 0x11d   :  { %6740 = vmatprep.subr.bf16.mxu0 %v12714_v8  ;;  %6904 = vmatprep.subr.bf16.mxu1 %v12716_v13  ;;  %v12826_v8 = vcombine.high %v312_v0, %v320_v1  ;;  %v12828_v13 = vcombine.high %v313_v2, %v321_v4  ;;  %v416_v57 = vld [vmem:[#allocation3 + $0x750] sm:$0xff]  ;;  %v417_v60 = vld [vmem:[#allocation3 + $0x758] sm:$0xff] }
 0x11e   :  { %6770 = vmatprep.mubr.bf16.mxu0 %v15637_v22  ;;  %6934 = vmatprep.mubr.bf16.mxu1 %v15637_v22 }
 0x120   :  { %6741 = vmatpush1.bf16.msra.mxu0 %v12713_v16  ;;  %6905 = vmatpush1.bf16.msra.mxu1 %v12715_v42  ;;  %v12825_v16 = vcombine.low %v312_v0, %v320_v1  ;;  %v12827_v42 = vcombine.low %v313_v2, %v321_v4  ;;  %v424_v0 = vld [vmem:[#allocation3 + $0x790] sm:$0xff]  ;;  %v425_v2 = vld [vmem:[#allocation3 + $0x798] sm:$0xff] }
 0x121   :  { %6742 = vmatprep.subr.bf16.mxu0 %v12730_v17  ;;  %6906 = vmatprep.subr.bf16.mxu1 %v12732_v23  ;;  %v12842_v17 = vcombine.high %v328_v10, %v336_v11  ;;  %v12844_v23 = vcombine.high %v329_v12, %v337_v15  ;;  %v432_v1 = vld [vmem:[#allocation3 + $0x7d0] sm:$0xff]  ;;  %v433_v4 = vld [vmem:[#allocation3 + $0x7d8] sm:$0xff] }
 0x124   :  { %6743 = vmatpush1.bf16.msra.mxu0 %v12729_v26  ;;  %6907 = vmatpush1.bf16.msra.mxu1 %v12731_v14  ;;  %v12841_v26 = vcombine.low %v328_v10, %v336_v11  ;;  %v12843_v14 = vcombine.low %v329_v12, %v337_v15  ;;  %v440_v10 = vld [vmem:[#allocation3 + $0x810] sm:$0xff]  ;;  %v441_v12 = vld [vmem:[#allocation3 + $0x818] sm:$0xff] }
 0x125   :  { %6744 = vmatprep.subr.bf16.mxu0 %v12746_v25  ;;  %6908 = vmatprep.subr.bf16.mxu1 %v12748_v32  ;;  %v12858_v25 = vcombine.high %v344_v19, %v352_v20  ;;  %v12860_v32 = vcombine.high %v345_v21, %v353_v24  ;;  %v448_v11 = vld [vmem:[#allocation3 + $0x850] sm:$0xff]  ;;  %v449_v15 = vld [vmem:[#allocation3 + $0x858] sm:$0xff] }
 0x128   :  { %6745 = vmatpush1.bf16.msra.mxu0 %v12745_v34  ;;  %6909 = vmatpush1.bf16.msra.mxu1 %v12747_v35  ;;  %v12857_v34 = vcombine.low %v344_v19, %v352_v20  ;;  %v12859_v35 = vcombine.low %v345_v21, %v353_v24  ;;  %v456_v19 = vld [vmem:[#allocation3 + $0x890] sm:$0xff]  ;;  %v457_v21 = vld [vmem:[#allocation3 + $0x898] sm:$0xff] }
 0x129   :  { %6746 = vmatprep.subr.bf16.mxu0 %v12762_v36  ;;  %6910 = vmatprep.subr.bf16.mxu1 %v12764_v41  ;;  %v12874_v36 = vcombine.high %v360_v28, %v368_v29  ;;  %v12876_v41 = vcombine.high %v361_v31, %v369_v33  ;;  %v464_v20 = vld [vmem:[#allocation3 + $0x8d0] sm:$0xff]  ;;  %v465_v24 = vld [vmem:[#allocation3 + $0x8d8] sm:$0xff] }
 0x12c   :  { %6747 = vmatpush1.bf16.msra.mxu0 %v12761_v44  ;;  %6911 = vmatpush1.bf16.msra.mxu1 %v12763_v45  ;;  %v12873_v44 = vcombine.low %v360_v28, %v368_v29  ;;  %v12875_v45 = vcombine.low %v361_v31, %v369_v33  ;;  %v472_v28 = vld [vmem:[#allocation3 + $0x910] sm:$0xff]  ;;  %v473_v31 = vld [vmem:[#allocation3 + $0x918] sm:$0xff] }
 0x12d   :  { %6748 = vmatprep.subr.bf16.mxu0 %v12778_v9  ;;  %6912 = vmatprep.subr.bf16.mxu1 %v12780_v50  ;;  %v12890_v9 = vcombine.high %v376_v38, %v384_v39  ;;  %v12892_v50 = vcombine.high %v377_v40, %v385_v43  ;;  %v480_v29 = vld [vmem:[#allocation3 + $0x950] sm:$0xff]  ;;  %v481_v33 = vld [vmem:[#allocation3 + $0x958] sm:$0xff] }
 0x130   :  { %6749 = vmatpush1.bf16.msra.mxu0 %v12777_v53  ;;  %6913 = vmatpush1.bf16.msra.mxu1 %v12779_v54  ;;  %v12889_v53 = vcombine.low %v376_v38, %v384_v39  ;;  %v12891_v54 = vcombine.low %v377_v40, %v385_v43  ;;  %v488_v38 = vld [vmem:[#allocation3 + $0x990] sm:$0xff]  ;;  %v489_v40 = vld [vmem:[#allocation3 + $0x998] sm:$0xff] }
 0x131   :  { %6750 = vmatprep.subr.bf16.mxu0 %v12794_v55  ;;  %6914 = vmatprep.subr.bf16.mxu1 %v12796_v59  ;;  %v12906_v55 = vcombine.high %v392_v47, %v400_v48  ;;  %v12908_v59 = vcombine.high %v393_v49, %v401_v51  ;;  %v496_v39 = vld [vmem:[#allocation3 + $0x9d0] sm:$0xff]  ;;  %v497_v43 = vld [vmem:[#allocation3 + $0x9d8] sm:$0xff] }
 0x134   :  { %6751 = vmatpush1.bf16.msra.mxu0 %v12793_v27  ;;  %6915 = vmatpush1.bf16.msra.mxu1 %v12795_v62  ;;  %v12905_v27 = vcombine.low %v392_v47, %v400_v48  ;;  %v12907_v62 = vcombine.low %v393_v49, %v401_v51  ;;  %v504_v47 = vld [vmem:[#allocation3 + $0xa10] sm:$0xff]  ;;  %v505_v49 = vld [vmem:[#allocation3 + $0xa18] sm:$0xff] }
 0x135   :  { %6752 = vmatprep.subr.bf16.mxu0 %v12810_v63  ;;  %6916 = vmatprep.subr.bf16.mxu1 %v12812_v3  ;;  %v12922_v63 = vcombine.high %v408_v56, %v416_v57  ;;  %v12924_v3 = vcombine.high %v409_v58, %v417_v60  ;;  %v512_v48 = vld [vmem:[#allocation3 + $0xa50] sm:$0xff]  ;;  %v513_v51 = vld [vmem:[#allocation3 + $0xa58] sm:$0xff] }
 0x138   :  { %6753 = vmatpush1.bf16.msra.mxu0 %v12809_v6  ;;  %6917 = vmatpush1.bf16.msra.mxu1 %v12811_v7  ;;  %v12921_v6 = vcombine.low %v408_v56, %v416_v57  ;;  %v12923_v7 = vcombine.low %v409_v58, %v417_v60  ;;  %v520_v56 = vld [vmem:[#allocation3 + $0xa90] sm:$0xff]  ;;  %v521_v58 = vld [vmem:[#allocation3 + $0xa98] sm:$0xff] }
 0x139   :  { %6754 = vmatprep.subr.bf16.mxu0 %v12826_v8  ;;  %6918 = vmatprep.subr.bf16.mxu1 %v12828_v13  ;;  %v12938_v8 = vcombine.high %v424_v0, %v432_v1  ;;  %v12940_v13 = vcombine.high %v425_v2, %v433_v4  ;;  %v528_v57 = vld [vmem:[#allocation3 + $0xad0] sm:$0xff]  ;;  %v529_v60 = vld [vmem:[#allocation3 + $0xad8] sm:$0xff] }
 0x13c   :  { %6755 = vmatpush1.bf16.msra.mxu0 %v12825_v16  ;;  %6919 = vmatpush1.bf16.msra.mxu1 %v12827_v42  ;;  %v12937_v16 = vcombine.low %v424_v0, %v432_v1  ;;  %v12939_v42 = vcombine.low %v425_v2, %v433_v4  ;;  %v536_v0 = vld [vmem:[#allocation3 + $0xb10] sm:$0xff]  ;;  %v537_v2 = vld [vmem:[#allocation3 + $0xb18] sm:$0xff] }
 0x13d   :  { %6756 = vmatprep.subr.bf16.mxu0 %v12842_v17  ;;  %6920 = vmatprep.subr.bf16.mxu1 %v12844_v23  ;;  %v12954_v17 = vcombine.high %v440_v10, %v448_v11  ;;  %v12956_v23 = vcombine.high %v441_v12, %v449_v15  ;;  %v544_v1 = vld [vmem:[#allocation3 + $0xb50] sm:$0xff]  ;;  %v545_v4 = vld [vmem:[#allocation3 + $0xb58] sm:$0xff] }
 0x140   :  { %6757 = vmatpush1.bf16.msra.mxu0 %v12841_v26  ;;  %6921 = vmatpush1.bf16.msra.mxu1 %v12843_v14  ;;  %v12953_v26 = vcombine.low %v440_v10, %v448_v11  ;;  %v12955_v14 = vcombine.low %v441_v12, %v449_v15  ;;  %v552_v10 = vld [vmem:[#allocation3 + $0xb90] sm:$0xff]  ;;  %v13052_v12 = vcombine.high %v537_v2, %v545_v4  ;;  %v561_v15 = vld [vmem:[#allocation3 + $0xbd8] sm:$0xff] }
 0x141   :  { %6758 = vmatprep.subr.bf16.mxu0 %v12858_v25  ;;  %6922 = vmatprep.subr.bf16.mxu1 %v12860_v32  ;;  %v12970_v25 = vcombine.high %v456_v19, %v464_v20  ;;  %v12972_v32 = vcombine.high %v457_v21, %v465_v24  ;;  %v560_v11 = vld [vmem:[#allocation3 + $0xbd0] sm:$0xff] }
 0x144   :  { %6759 = vmatpush1.bf16.msra.mxu0 %v12857_v34  ;;  %6923 = vmatpush1.bf16.msra.mxu1 %v12859_v35  ;;  %v12969_v34 = vcombine.low %v456_v19, %v464_v20  ;;  %v12971_v35 = vcombine.low %v457_v21, %v465_v24  ;;  %v568_v19 = vld [vmem:[#allocation3 + $0xc10] sm:$0xff]  ;;  %v569_v21 = vld [vmem:[#allocation3 + $0xc18] sm:$0xff] }
 0x145   :  { %6760 = vmatprep.subr.bf16.mxu0 %v12874_v36  ;;  %6924 = vmatprep.subr.bf16.mxu1 %v12876_v41  ;;  %v12986_v36 = vcombine.high %v472_v28, %v480_v29  ;;  %v12988_v41 = vcombine.high %v473_v31, %v481_v33  ;;  %v576_v20 = vld [vmem:[#allocation3 + $0xc50] sm:$0xff]  ;;  %v577_v24 = vld [vmem:[#allocation3 + $0xc58] sm:$0xff] }
 0x148   :  { %6761 = vmatpush1.bf16.msra.mxu0 %v12873_v44  ;;  %6925 = vmatpush1.bf16.msra.mxu1 %v12875_v45  ;;  %v12985_v44 = vcombine.low %v472_v28, %v480_v29  ;;  %v12987_v45 = vcombine.low %v473_v31, %v481_v33  ;;  %v584_v28 = vld [vmem:[#allocation3 + $0xc90] sm:$0xff]  ;;  %v585_v31 = vld [vmem:[#allocation3 + $0xc98] sm:$0xff] }
 0x149   :  { %6762 = vmatprep.subr.bf16.mxu0 %v12890_v9  ;;  %6926 = vmatprep.subr.bf16.mxu1 %v12892_v50  ;;  %v13002_v9 = vcombine.high %v488_v38, %v496_v39  ;;  %v13004_v50 = vcombine.high %v489_v40, %v497_v43  ;;  %v592_v29 = vld [vmem:[#allocation3 + $0xcd0] sm:$0xff]  ;;  %v593_v33 = vld [vmem:[#allocation3 + $0xcd8] sm:$0xff] }
 0x14c   :  { %6763 = vmatpush1.bf16.msra.mxu0 %v12889_v53  ;;  %6927 = vmatpush1.bf16.msra.mxu1 %v12891_v54  ;;  %v13001_v53 = vcombine.low %v488_v38, %v496_v39  ;;  %v13003_v54 = vcombine.low %v489_v40, %v497_v43  ;;  %v600_v38 = vld [vmem:[#allocation3 + $0xd10] sm:$0xff]  ;;  %v601_v40 = vld [vmem:[#allocation3 + $0xd18] sm:$0xff] }
 0x14d   :  { %6764 = vmatprep.subr.bf16.mxu0 %v12906_v55  ;;  %6928 = vmatprep.subr.bf16.mxu1 %v12908_v59  ;;  %v13018_v55 = vcombine.high %v504_v47, %v512_v48  ;;  %v13020_v59 = vcombine.high %v505_v49, %v513_v51  ;;  %v608_v39 = vld [vmem:[#allocation3 + $0xd50] sm:$0xff]  ;;  %v609_v43 = vld [vmem:[#allocation3 + $0xd58] sm:$0xff] }
 0x150   :  { %6765 = vmatpush1.bf16.msra.mxu0 %v12905_v27  ;;  %6929 = vmatpush1.bf16.msra.mxu1 %v12907_v62  ;;  %v13017_v27 = vcombine.low %v504_v47, %v512_v48  ;;  %v13019_v62 = vcombine.low %v505_v49, %v513_v51  ;;  %v616_v47 = vld [vmem:[#allocation3 + $0xd90] sm:$0xff]  ;;  %v617_v49 = vld [vmem:[#allocation3 + $0xd98] sm:$0xff] }
 0x151   :  { %6766 = vmatprep.subr.bf16.mxu0 %v12922_v63  ;;  %6930 = vmatprep.subr.bf16.mxu1 %v12924_v3  ;;  %v13034_v63 = vcombine.high %v520_v56, %v528_v57  ;;  %v13036_v3 = vcombine.high %v521_v58, %v529_v60  ;;  %v624_v48 = vld [vmem:[#allocation3 + $0xdd0] sm:$0xff]  ;;  %v625_v51 = vld [vmem:[#allocation3 + $0xdd8] sm:$0xff] }
 0x154   :  { %6767 = vmatpush1.bf16.msra.mxu0 %v12921_v6  ;;  %6931 = vmatpush1.bf16.msra.mxu1 %v12923_v7  ;;  %v13033_v6 = vcombine.low %v520_v56, %v528_v57  ;;  %v13035_v7 = vcombine.low %v521_v58, %v529_v60  ;;  %v632_v56 = vld [vmem:[#allocation3 + $0xe10] sm:$0xff]  ;;  %v633_v58 = vld [vmem:[#allocation3 + $0xe18] sm:$0xff] }
 0x155   :  { %6768 = vmatprep.subr.bf16.mxu0 %v12938_v8  ;;  %6932 = vmatprep.subr.bf16.mxu1 %v12940_v13  ;;  %v13050_v8 = vcombine.high %v536_v0, %v544_v1  ;;  %v553_v13 = vld [vmem:[#allocation3 + $0xb98] sm:$0xff]  ;;  %v640_v57 = vld [vmem:[#allocation3 + $0xe50] sm:$0xff] }
 0x156   :  { %v641_v60 = vld [vmem:[#allocation3 + $0xe58] sm:$0xff] }
 0x158   :  { %6769 = vmatpush1.bf16.msra.mxu0 %v12937_v16  ;;  %6933 = vmatpush1.bf16.msra.mxu1 %v12939_v42  ;;  %v13049_v16 = vcombine.low %v536_v0, %v544_v1  ;;  %v13051_v42 = vcombine.low %v537_v2, %v545_v4  ;;  %v648_v0 = vld [vmem:[#allocation3 + $0xe90] sm:$0xff]  ;;  %v649_v2 = vld [vmem:[#allocation3 + $0xe98] sm:$0xff] }
 0x159   :  { %6779 = vmatprep.subr.bf16.mxu0 %v12954_v17  ;;  %6943 = vmatprep.subr.bf16.mxu1 %v12956_v23  ;;  %v13066_v17 = vcombine.high %v552_v10, %v560_v11  ;;  %v13068_v23 = vcombine.high %v553_v13, %v561_v15  ;;  %v656_v1 = vld [vmem:[#allocation3 + $0xed0] sm:$0xff]  ;;  %v657_v4 = vld [vmem:[#allocation3 + $0xed8] sm:$0xff] }
 0x15b   :  { %6771 = vmatmul.mubr.bf16.vlgmr.msra.gmra.mrb[4].mxu0 %v15647_v18  ;;  %6935 = vmatmul.mubr.bf16.vlgmr.msra.gmra.mrb[4].mxu1 %v15647_v18 }
 0x15c   :  { %6780 = vmatpush1.bf16.msra.mxu0 %v12953_v26  ;;  %6944 = vmatpush1.bf16.msra.mxu1 %v12955_v14  ;;  %v13065_v26 = vcombine.low %v552_v10, %v560_v11  ;;  %v13067_v14 = vcombine.low %v553_v13, %v561_v15  ;;  %v664_v10 = vld [vmem:[#allocation3 + $0xf10] sm:$0xff]  ;;  %v13164_v13 = vcombine.high %v649_v2, %v657_v4  ;;  %v673_v15 = vld [vmem:[#allocation3 + $0xf58] sm:$0xff] }
 0x15d   :  { %6781 = vmatprep.subr.bf16.mxu0 %v12970_v25  ;;  %6945 = vmatprep.subr.bf16.mxu1 %v12972_v32  ;;  %v13082_v25 = vcombine.high %v568_v19, %v576_v20  ;;  %v13084_v32 = vcombine.high %v569_v21, %v577_v24  ;;  %v672_v11 = vld [vmem:[#allocation3 + $0xf50] sm:$0xff] }
 0x15e   :  { %6811 = vmatprep.mubr.bf16.mxu0 %v15657_v30  ;;  %6975 = vmatprep.mubr.bf16.mxu1 %v15657_v30 }
 0x160   :  { %6782 = vmatpush1.bf16.msra.mxu0 %v12969_v34  ;;  %6946 = vmatpush1.bf16.msra.mxu1 %v12971_v35  ;;  %v13081_v34 = vcombine.low %v568_v19, %v576_v20  ;;  %v13083_v35 = vcombine.low %v569_v21, %v577_v24  ;;  %v680_v19 = vld [vmem:[#allocation3 + $0xf90] sm:$0xff]  ;;  %v681_v21 = vld [vmem:[#allocation3 + $0xf98] sm:$0xff] }
 0x161   :  { %6783 = vmatprep.subr.bf16.mxu0 %v12986_v36  ;;  %6947 = vmatprep.subr.bf16.mxu1 %v12988_v41  ;;  %v13098_v36 = vcombine.high %v584_v28, %v592_v29  ;;  %v13100_v41 = vcombine.high %v585_v31, %v593_v33  ;;  %v688_v20 = vld [vmem:[#allocation3 + $0xfd0] sm:$0xff]  ;;  %v689_v24 = vld [vmem:[#allocation3 + $0xfd8] sm:$0xff] }
 0x164   :  { %6784 = vmatpush1.bf16.msra.mxu0 %v12985_v44  ;;  %6948 = vmatpush1.bf16.msra.mxu1 %v12987_v45  ;;  %v13097_v44 = vcombine.low %v584_v28, %v592_v29  ;;  %v13099_v45 = vcombine.low %v585_v31, %v593_v33  ;;  %v696_v28 = vld [vmem:[#allocation3 + $0x1010] sm:$0xff]  ;;  %v697_v31 = vld [vmem:[#allocation3 + $0x1018] sm:$0xff] }
 0x165   :  { %6785 = vmatprep.subr.bf16.mxu0 %v13002_v9  ;;  %6949 = vmatprep.subr.bf16.mxu1 %v13004_v50  ;;  %v13114_v9 = vcombine.high %v600_v38, %v608_v39  ;;  %v13116_v50 = vcombine.high %v601_v40, %v609_v43  ;;  %v704_v29 = vld [vmem:[#allocation3 + $0x1050] sm:$0xff]  ;;  %v705_v33 = vld [vmem:[#allocation3 + $0x1058] sm:$0xff] }
 0x168   :  { %6786 = vmatpush1.bf16.msra.mxu0 %v13001_v53  ;;  %6950 = vmatpush1.bf16.msra.mxu1 %v13003_v54  ;;  %v13113_v53 = vcombine.low %v600_v38, %v608_v39  ;;  %v13115_v54 = vcombine.low %v601_v40, %v609_v43  ;;  %v712_v38 = vld [vmem:[#allocation3 + $0x1090] sm:$0xff]  ;;  %v713_v40 = vld [vmem:[#allocation3 + $0x1098] sm:$0xff] }
 0x169   :  { %6787 = vmatprep.subr.bf16.mxu0 %v13018_v55  ;;  %6951 = vmatprep.subr.bf16.mxu1 %v13020_v59  ;;  %v13130_v55 = vcombine.high %v616_v47, %v624_v48  ;;  %v13132_v59 = vcombine.high %v617_v49, %v625_v51  ;;  %v720_v39 = vld [vmem:[#allocation3 + $0x10d0] sm:$0xff]  ;;  %v721_v43 = vld [vmem:[#allocation3 + $0x10d8] sm:$0xff] }
 0x16c   :  { %6788 = vmatpush1.bf16.msra.mxu0 %v13017_v27  ;;  %6952 = vmatpush1.bf16.msra.mxu1 %v13019_v62  ;;  %v13129_v27 = vcombine.low %v616_v47, %v624_v48  ;;  %v13131_v62 = vcombine.low %v617_v49, %v625_v51  ;;  %v728_v47 = vld [vmem:[#allocation3 + $0x1110] sm:$0xff]  ;;  %v729_v49 = vld [vmem:[#allocation3 + $0x1118] sm:$0xff] }
 0x16d   :  { %6789 = vmatprep.subr.bf16.mxu0 %v13034_v63  ;;  %6953 = vmatprep.subr.bf16.mxu1 %v13036_v3  ;;  %v13146_v63 = vcombine.high %v632_v56, %v640_v57  ;;  %v13148_v3 = vcombine.high %v633_v58, %v641_v60  ;;  %v736_v48 = vld [vmem:[#allocation3 + $0x1150] sm:$0xff]  ;;  %v737_v51 = vld [vmem:[#allocation3 + $0x1158] sm:$0xff] }
 0x170   :  { %6790 = vmatpush1.bf16.msra.mxu0 %v13033_v6  ;;  %6954 = vmatpush1.bf16.msra.mxu1 %v13035_v7  ;;  %v13145_v6 = vcombine.low %v632_v56, %v640_v57  ;;  %v13147_v7 = vcombine.low %v633_v58, %v641_v60  ;;  %v744_v56 = vld [vmem:[#allocation3 + $0x1190] sm:$0xff]  ;;  %v745_v58 = vld [vmem:[#allocation3 + $0x1198] sm:$0xff] }
 0x171   :  { %6791 = vmatprep.subr.bf16.mxu0 %v13050_v8  ;;  %6955 = vmatprep.subr.bf16.mxu1 %v13052_v12  ;;  %v13162_v8 = vcombine.high %v648_v0, %v656_v1  ;;  %v665_v12 = vld [vmem:[#allocation3 + $0xf18] sm:$0xff]  ;;  %v752_v57 = vld [vmem:[#allocation3 + $0x11d0] sm:$0xff] }
 0x172   :  { %v753_v60 = vld [vmem:[#allocation3 + $0x11d8] sm:$0xff] }
 0x174   :  { %6792 = vmatpush1.bf16.msra.mxu0 %v13049_v16  ;;  %6956 = vmatpush1.bf16.msra.mxu1 %v13051_v42  ;;  %v13161_v16 = vcombine.low %v648_v0, %v656_v1  ;;  %v13163_v42 = vcombine.low %v649_v2, %v657_v4  ;;  %v760_v0 = vld [vmem:[#allocation3 + $0x1210] sm:$0xff]  ;;  %v761_v2 = vld [vmem:[#allocation3 + $0x1218] sm:$0xff] }
 0x175   :  { %6793 = vmatprep.subr.bf16.mxu0 %v13066_v17  ;;  %6957 = vmatprep.subr.bf16.mxu1 %v13068_v23  ;;  %v13178_v17 = vcombine.high %v664_v10, %v672_v11  ;;  %v13180_v23 = vcombine.high %v665_v12, %v673_v15  ;;  %v768_v1 = vld [vmem:[#allocation3 + $0x1250] sm:$0xff]  ;;  %v769_v4 = vld [vmem:[#allocation3 + $0x1258] sm:$0xff] }
 0x178   :  { %6794 = vmatpush1.bf16.msra.mxu0 %v13065_v26  ;;  %6958 = vmatpush1.bf16.msra.mxu1 %v13067_v14  ;;  %v13177_v26 = vcombine.low %v664_v10, %v672_v11  ;;  %v13179_v14 = vcombine.low %v665_v12, %v673_v15  ;;  %v776_v10 = vld [vmem:[#allocation3 + $0x1290] sm:$0xff]  ;;  %v777_v12 = vld [vmem:[#allocation3 + $0x1298] sm:$0xff] }
 0x179   :  { %6795 = vmatprep.subr.bf16.mxu0 %v13082_v25  ;;  %6959 = vmatprep.subr.bf16.mxu1 %v13084_v32  ;;  %v13194_v25 = vcombine.high %v680_v19, %v688_v20  ;;  %v13196_v32 = vcombine.high %v681_v21, %v689_v24  ;;  %v784_v11 = vld [vmem:[#allocation3 + $0x12d0] sm:$0xff]  ;;  %v785_v15 = vld [vmem:[#allocation3 + $0x12d8] sm:$0xff] }
 0x17c   :  { %6796 = vmatpush1.bf16.msra.mxu0 %v13081_v34  ;;  %6960 = vmatpush1.bf16.msra.mxu1 %v13083_v35  ;;  %v13193_v34 = vcombine.low %v680_v19, %v688_v20  ;;  %v13195_v35 = vcombine.low %v681_v21, %v689_v24  ;;  %v792_v19 = vld [vmem:[#allocation3 + $0x1310] sm:$0xff]  ;;  %v793_v21 = vld [vmem:[#allocation3 + $0x1318] sm:$0xff] }
 0x17d   :  { %6797 = vmatprep.subr.bf16.mxu0 %v13098_v36  ;;  %6961 = vmatprep.subr.bf16.mxu1 %v13100_v41  ;;  %v13210_v36 = vcombine.high %v696_v28, %v704_v29  ;;  %v13212_v41 = vcombine.high %v697_v31, %v705_v33  ;;  %v800_v20 = vld [vmem:[#allocation3 + $0x1350] sm:$0xff]  ;;  %v801_v24 = vld [vmem:[#allocation3 + $0x1358] sm:$0xff] }
 0x180   :  { %6798 = vmatpush1.bf16.msra.mxu0 %v13097_v44  ;;  %6962 = vmatpush1.bf16.msra.mxu1 %v13099_v45  ;;  %v13209_v44 = vcombine.low %v696_v28, %v704_v29  ;;  %v13211_v45 = vcombine.low %v697_v31, %v705_v33  ;;  %v808_v28 = vld [vmem:[#allocation3 + $0x1390] sm:$0xff]  ;;  %v809_v31 = vld [vmem:[#allocation3 + $0x1398] sm:$0xff] }
 0x181   :  { %6799 = vmatprep.subr.bf16.mxu0 %v13114_v9  ;;  %6963 = vmatprep.subr.bf16.mxu1 %v13116_v50  ;;  %v13226_v9 = vcombine.high %v712_v38, %v720_v39  ;;  %v13228_v50 = vcombine.high %v713_v40, %v721_v43  ;;  %v816_v29 = vld [vmem:[#allocation3 + $0x13d0] sm:$0xff]  ;;  %v817_v33 = vld [vmem:[#allocation3 + $0x13d8] sm:$0xff] }
 0x184   :  { %6800 = vmatpush1.bf16.msra.mxu0 %v13113_v53  ;;  %6964 = vmatpush1.bf16.msra.mxu1 %v13115_v54  ;;  %v13225_v53 = vcombine.low %v712_v38, %v720_v39  ;;  %v13227_v54 = vcombine.low %v713_v40, %v721_v43  ;;  %v824_v38 = vld [vmem:[#allocation3 + $0x1410] sm:$0xff]  ;;  %v825_v40 = vld [vmem:[#allocation3 + $0x1418] sm:$0xff] }
 0x185   :  { %6801 = vmatprep.subr.bf16.mxu0 %v13130_v55  ;;  %6965 = vmatprep.subr.bf16.mxu1 %v13132_v59  ;;  %v13242_v55 = vcombine.high %v728_v47, %v736_v48  ;;  %v13244_v59 = vcombine.high %v729_v49, %v737_v51  ;;  %v832_v39 = vld [vmem:[#allocation3 + $0x1450] sm:$0xff]  ;;  %v833_v43 = vld [vmem:[#allocation3 + $0x1458] sm:$0xff] }
 0x188   :  { %6802 = vmatpush1.bf16.msra.mxu0 %v13129_v27  ;;  %6966 = vmatpush1.bf16.msra.mxu1 %v13131_v62  ;;  %v13241_v27 = vcombine.low %v728_v47, %v736_v48  ;;  %v13243_v62 = vcombine.low %v729_v49, %v737_v51  ;;  %v840_v47 = vld [vmem:[#allocation3 + $0x1490] sm:$0xff]  ;;  %v841_v49 = vld [vmem:[#allocation3 + $0x1498] sm:$0xff] }
 0x189   :  { %6803 = vmatprep.subr.bf16.mxu0 %v13146_v63  ;;  %6967 = vmatprep.subr.bf16.mxu1 %v13148_v3  ;;  %v13258_v63 = vcombine.high %v744_v56, %v752_v57  ;;  %v13260_v3 = vcombine.high %v745_v58, %v753_v60  ;;  %v848_v48 = vld [vmem:[#allocation3 + $0x14d0] sm:$0xff]  ;;  %v849_v51 = vld [vmem:[#allocation3 + $0x14d8] sm:$0xff] }
 0x18c   :  { %6804 = vmatpush1.bf16.msra.mxu0 %v13145_v6  ;;  %6968 = vmatpush1.bf16.msra.mxu1 %v13147_v7  ;;  %v13257_v6 = vcombine.low %v744_v56, %v752_v57  ;;  %v13259_v7 = vcombine.low %v745_v58, %v753_v60  ;;  %v856_v56 = vld [vmem:[#allocation3 + $0x1510] sm:$0xff]  ;;  %v857_v58 = vld [vmem:[#allocation3 + $0x1518] sm:$0xff] }
 0x18d   :  { %6805 = vmatprep.subr.bf16.mxu0 %v13162_v8  ;;  %6969 = vmatprep.subr.bf16.mxu1 %v13164_v13  ;;  %v13274_v8 = vcombine.high %v760_v0, %v768_v1  ;;  %v13276_v13 = vcombine.high %v761_v2, %v769_v4  ;;  %v864_v57 = vld [vmem:[#allocation3 + $0x1550] sm:$0xff]  ;;  %v865_v60 = vld [vmem:[#allocation3 + $0x1558] sm:$0xff] }
 0x190   :  { %6806 = vmatpush1.bf16.msra.mxu0 %v13161_v16  ;;  %6970 = vmatpush1.bf16.msra.mxu1 %v13163_v42  ;;  %v13273_v16 = vcombine.low %v760_v0, %v768_v1  ;;  %v13275_v42 = vcombine.low %v761_v2, %v769_v4  ;;  %v872_v0 = vld [vmem:[#allocation3 + $0x1590] sm:$0xff]  ;;  %v873_v2 = vld [vmem:[#allocation3 + $0x1598] sm:$0xff] }
 0x191   :  { %6807 = vmatprep.subr.bf16.mxu0 %v13178_v17  ;;  %6971 = vmatprep.subr.bf16.mxu1 %v13180_v23  ;;  %v13290_v17 = vcombine.high %v776_v10, %v784_v11  ;;  %v13292_v23 = vcombine.high %v777_v12, %v785_v15  ;;  %v880_v1 = vld [vmem:[#allocation3 + $0x15d0] sm:$0xff]  ;;  %v881_v4 = vld [vmem:[#allocation3 + $0x15d8] sm:$0xff] }
 0x194   :  { %6808 = vmatpush1.bf16.msra.mxu0 %v13177_v26  ;;  %6972 = vmatpush1.bf16.msra.mxu1 %v13179_v14  ;;  %v13289_v26 = vcombine.low %v776_v10, %v784_v11  ;;  %v13291_v14 = vcombine.low %v777_v12, %v785_v15  ;;  %v888_v10 = vld [vmem:[#allocation3 + $0x1610] sm:$0xff]  ;;  %v13388_v11 = vcombine.high %v873_v2, %v881_v4  ;;  %v897_v15 = vld [vmem:[#allocation3 + $0x1658] sm:$0xff] }
 0x195   :  { %6809 = vmatprep.subr.bf16.mxu0 %v13194_v25  ;;  %6973 = vmatprep.subr.bf16.mxu1 %v13196_v32  ;;  %v13306_v25 = vcombine.high %v792_v19, %v800_v20  ;;  %v13308_v32 = vcombine.high %v793_v21, %v801_v24  ;;  %v896_v12 = vld [vmem:[#allocation3 + $0x1650] sm:$0xff] }
 0x198   :  { %6810 = vmatpush1.bf16.msra.mxu0 %v13193_v34  ;;  %6974 = vmatpush1.bf16.msra.mxu1 %v13195_v35  ;;  %v13305_v34 = vcombine.low %v792_v19, %v800_v20  ;;  %v13307_v35 = vcombine.low %v793_v21, %v801_v24  ;;  %v904_v20 = vld [vmem:[#allocation3 + $0x1690] sm:$0xff]  ;;  %v913_v24 = vld [vmem:[#allocation3 + $0x16d8] sm:$0xff] }
 0x199   :  { %6820 = vmatprep.subr.bf16.mxu0 %v13210_v36  ;;  %6984 = vmatprep.subr.bf16.mxu1 %v13212_v41  ;;  %v13322_v36 = vcombine.high %v808_v28, %v816_v29  ;;  %v13324_v41 = vcombine.high %v809_v31, %v817_v33  ;;  %v912_v21 = vld [vmem:[#allocation3 + $0x16d0] sm:$0xff] }
 0x19b   :  { %6812 = vmatmul.mubr.bf16.vlgmr.msra.gmra.mrb[4].mxu0 %v15672_v37  ;;  %6976 = vmatmul.mubr.bf16.vlgmr.msra.gmra.mrb[4].mxu1 %v15672_v37 }
 0x19c   :  { %6821 = vmatpush1.bf16.msra.mxu0 %v13209_v44  ;;  %6985 = vmatpush1.bf16.msra.mxu1 %v13211_v45  ;;  %v13321_v44 = vcombine.low %v808_v28, %v816_v29  ;;  %v13323_v45 = vcombine.low %v809_v31, %v817_v33  ;;  %v920_v29 = vld [vmem:[#allocation3 + $0x1710] sm:$0xff]  ;;  %v929_v33 = vld [vmem:[#allocation3 + $0x1758] sm:$0xff] }
 0x19d   :  { %6822 = vmatprep.subr.bf16.mxu0 %v13226_v9  ;;  %6986 = vmatprep.subr.bf16.mxu1 %v13228_v50  ;;  %v13338_v9 = vcombine.high %v824_v38, %v832_v39  ;;  %v13340_v50 = vcombine.high %v825_v40, %v833_v43  ;;  %v928_v31 = vld [vmem:[#allocation3 + $0x1750] sm:$0xff] }
 0x19e   :  { %6852 = vmatprep.mubr.bf16.mxu0 %v15674_v46  ;;  %7016 = vmatprep.mubr.bf16.mxu1 %v15674_v46 }
 0x1a0   :  { %6823 = vmatpush1.bf16.msra.mxu0 %v13225_v53  ;;  %6987 = vmatpush1.bf16.msra.mxu1 %v13227_v54  ;;  %v13337_v53 = vcombine.low %v824_v38, %v832_v39  ;;  %v13339_v54 = vcombine.low %v825_v40, %v833_v43  ;;  %v936_v39 = vld [vmem:[#allocation3 + $0x1790] sm:$0xff]  ;;  %v945_v43 = vld [vmem:[#allocation3 + $0x17d8] sm:$0xff] }
 0x1a1   :  { %6824 = vmatprep.subr.bf16.mxu0 %v13242_v55  ;;  %6988 = vmatprep.subr.bf16.mxu1 %v13244_v59  ;;  %v13354_v55 = vcombine.high %v840_v47, %v848_v48  ;;  %v13356_v59 = vcombine.high %v841_v49, %v849_v51  ;;  %v944_v40 = vld [vmem:[#allocation3 + $0x17d0] sm:$0xff] }
 0x1a4   :  { %6825 = vmatpush1.bf16.msra.mxu0 %v13241_v27  ;;  %6989 = vmatpush1.bf16.msra.mxu1 %v13243_v62  ;;  %v13353_v27 = vcombine.low %v840_v47, %v848_v48  ;;  %v13355_v62 = vcombine.low %v841_v49, %v849_v51  ;;  %v952_v48 = vld [vmem:[#allocation3 + $0x1810] sm:$0xff]  ;;  %v961_v51 = vld [vmem:[#allocation3 + $0x1858] sm:$0xff] }
 0x1a5   :  { %6826 = vmatprep.subr.bf16.mxu0 %v13258_v63  ;;  %6990 = vmatprep.subr.bf16.mxu1 %v13260_v3  ;;  %v13370_v63 = vcombine.high %v856_v56, %v864_v57  ;;  %v13372_v3 = vcombine.high %v857_v58, %v865_v60  ;;  %v960_v49 = vld [vmem:[#allocation3 + $0x1850] sm:$0xff] }
 0x1a8   :  { %6827 = vmatpush1.bf16.msra.mxu0 %v13257_v6  ;;  %6991 = vmatpush1.bf16.msra.mxu1 %v13259_v7  ;;  %v13369_v6 = vcombine.low %v856_v56, %v864_v57  ;;  %v13371_v7 = vcombine.low %v857_v58, %v865_v60  ;;  %v968_v57 = vld [vmem:[#allocation3 + $0x1890] sm:$0xff]  ;;  %v977_v60 = vld [vmem:[#allocation3 + $0x18d8] sm:$0xff] }
 0x1a9   :  { %6828 = vmatprep.subr.bf16.mxu0 %v13274_v8  ;;  %6992 = vmatprep.subr.bf16.mxu1 %v13276_v13  ;;  %v13386_v8 = vcombine.high %v872_v0, %v880_v1  ;;  %v889_v13 = vld [vmem:[#allocation3 + $0x1618] sm:$0xff]  ;;  %v976_v58 = vld [vmem:[#allocation3 + $0x18d0] sm:$0xff] }
 0x1aa   :  { %v13404_v19 = vcombine.high %v889_v13, %v897_v15 }
 0x1ac   :  { %6829 = vmatpush1.bf16.msra.mxu0 %v13273_v16  ;;  %6993 = vmatpush1.bf16.msra.mxu1 %v13275_v42  ;;  %v13385_v16 = vcombine.low %v872_v0, %v880_v1  ;;  %v13387_v42 = vcombine.low %v873_v2, %v881_v4  ;;  %v984_v1 = vld [vmem:[#allocation3 + $0x1910] sm:$0xff]  ;;  %v993_v4 = vld [vmem:[#allocation3 + $0x1958] sm:$0xff] }
 0x1ad   :  { %6830 = vmatprep.subr.bf16.mxu0 %v13290_v17  ;;  %6994 = vmatprep.subr.bf16.mxu1 %v13292_v23  ;;  %v13402_v17 = vcombine.high %v888_v10, %v896_v12  ;;  %v905_v23 = vld [vmem:[#allocation3 + $0x1698] sm:$0xff]  ;;  %v992_v2 = vld [vmem:[#allocation3 + $0x1950] sm:$0xff] }
 0x1ae   :  { %v13420_v28 = vcombine.high %v905_v23, %v913_v24 }
 0x1b0   :  { %6831 = vmatpush1.bf16.msra.mxu0 %v13289_v26  ;;  %6995 = vmatpush1.bf16.msra.mxu1 %v13291_v14  ;;  %v13401_v26 = vcombine.low %v888_v10, %v896_v12  ;;  %v13403_v14 = vcombine.low %v889_v13, %v897_v15  ;;  %v1008_v12 = vld [vmem:[#allocation3 + $0x19d0] sm:$0xff]  ;;  %v1001_v13 = vld [vmem:[#allocation3 + $0x1998] sm:$0xff] }
 0x1b1   :  { %6832 = vmatprep.subr.bf16.mxu0 %v13306_v25  ;;  %6996 = vmatprep.subr.bf16.mxu1 %v13308_v32  ;;  %v13418_v25 = vcombine.high %v904_v20, %v912_v21  ;;  %v921_v32 = vld [vmem:[#allocation3 + $0x1718] sm:$0xff] }
 0x1b2   :  { %v13436_v38 = vcombine.high %v921_v32, %v929_v33  ;;  %v1009_v15 = vld [vmem:[#allocation3 + $0x19d8] sm:$0xff] }
 0x1b4   :  { %6833 = vmatpush1.bf16.msra.mxu0 %v13305_v34  ;;  %6997 = vmatpush1.bf16.msra.mxu1 %v13307_v35  ;;  %v13417_v34 = vcombine.low %v904_v20, %v912_v21  ;;  %v13419_v35 = vcombine.low %v905_v23, %v913_v24  ;;  %v1016_v20 = vld [vmem:[#allocation3 + $0x1a10] sm:$0xff]  ;;  %v1017_v23 = vld [vmem:[#allocation3 + $0x1a18] sm:$0xff] }
 0x1b5   :  { %6834 = vmatprep.subr.bf16.mxu0 %v13322_v36  ;;  %6998 = vmatprep.subr.bf16.mxu1 %v13324_v41  ;;  %v13434_v36 = vcombine.high %v920_v29, %v928_v31  ;;  %v937_v41 = vld [vmem:[#allocation3 + $0x1798] sm:$0xff]  ;;  %v1024_v21 = vld [vmem:[#allocation3 + $0x1a50] sm:$0xff] }
 0x1b6   :  { %v13452_v47 = vcombine.high %v937_v41, %v945_v43  ;;  %v1025_v24 = vld [vmem:[#allocation3 + $0x1a58] sm:$0xff] }
 0x1b8   :  { %6835 = vmatpush1.bf16.msra.mxu0 %v13321_v44  ;;  %6999 = vmatpush1.bf16.msra.mxu1 %v13323_v45  ;;  %v13433_v44 = vcombine.low %v920_v29, %v928_v31  ;;  %v13435_v45 = vcombine.low %v921_v32, %v929_v33  ;;  %v1032_v29 = vld [vmem:[#allocation3 + $0x1a90] sm:$0xff]  ;;  %v1033_v32 = vld [vmem:[#allocation3 + $0x1a98] sm:$0xff] }
 0x1b9   :  { %6836 = vmatprep.subr.bf16.mxu0 %v13338_v9  ;;  %7000 = vmatprep.subr.bf16.mxu1 %v13340_v50  ;;  %v13450_v9 = vcombine.high %v936_v39, %v944_v40  ;;  %v953_v50 = vld [vmem:[#allocation3 + $0x1818] sm:$0xff]  ;;  %v1040_v31 = vld [vmem:[#allocation3 + $0x1ad0] sm:$0xff] }
 0x1ba   :  { %v13468_v56 = vcombine.high %v953_v50, %v961_v51  ;;  %v1041_v33 = vld [vmem:[#allocation3 + $0x1ad8] sm:$0xff] }
 0x1bc   :  { %6837 = vmatpush1.bf16.msra.mxu0 %v13337_v53  ;;  %7001 = vmatpush1.bf16.msra.mxu1 %v13339_v54  ;;  %v13449_v53 = vcombine.low %v936_v39, %v944_v40  ;;  %v13451_v54 = vcombine.low %v937_v41, %v945_v43  ;;  %v1048_v39 = vld [vmem:[#allocation3 + $0x1b10] sm:$0xff]  ;;  %v1049_v41 = vld [vmem:[#allocation3 + $0x1b18] sm:$0xff] }
 0x1bd   :  { %6838 = vmatprep.subr.bf16.mxu0 %v13354_v55  ;;  %7002 = vmatprep.subr.bf16.mxu1 %v13356_v59  ;;  %v13466_v55 = vcombine.high %v952_v48, %v960_v49  ;;  %v969_v59 = vld [vmem:[#allocation3 + $0x1898] sm:$0xff]  ;;  %v1056_v40 = vld [vmem:[#allocation3 + $0x1b50] sm:$0xff] }
 0x1be   :  { %v13484_v0 = vcombine.high %v969_v59, %v977_v60  ;;  %v1057_v43 = vld [vmem:[#allocation3 + $0x1b58] sm:$0xff] }
 0x1c0   :  { %6839 = vmatpush1.bf16.msra.mxu0 %v13353_v27  ;;  %7003 = vmatpush1.bf16.msra.mxu1 %v13355_v62  ;;  %v13465_v27 = vcombine.low %v952_v48, %v960_v49  ;;  %v13467_v62 = vcombine.low %v953_v50, %v961_v51  ;;  %v13564_v48 = vcombine.high %v1049_v41, %v1057_v43  ;;  %v1064_v49 = vld [vmem:[#allocation3 + $0x1b90] sm:$0xff] }
 0x1c1   :  { %6840 = vmatprep.subr.bf16.mxu0 %v13370_v63  ;;  %7004 = vmatprep.subr.bf16.mxu1 %v13372_v3  ;;  %v13482_v63 = vcombine.high %v968_v57, %v976_v58  ;;  %v985_v3 = vld [vmem:[#allocation3 + $0x1918] sm:$0xff]  ;;  %v1072_v50 = vld [vmem:[#allocation3 + $0x1bd0] sm:$0xff] }
 0x1c2   :  { %v13500_v10 = vcombine.high %v985_v3, %v993_v4 }
 0x1c4   :  { %6841 = vmatpush1.bf16.msra.mxu0 %v13369_v6  ;;  %7005 = vmatpush1.bf16.msra.mxu1 %v13371_v7  ;;  %v13481_v6 = vcombine.low %v968_v57, %v976_v58  ;;  %v13483_v7 = vcombine.low %v969_v59, %v977_v60  ;;  %v13561_v57 = vcombine.low %v1048_v39, %v1056_v40 }
 0x1c5   :  { %6842 = vmatprep.subr.bf16.mxu0 %v13386_v8  ;;  %7006 = vmatprep.subr.bf16.mxu1 %v13388_v11  ;;  %v13498_v8 = vcombine.high %v984_v1, %v992_v2  ;;  %v1000_v11 = vld [vmem:[#allocation3 + $0x1990] sm:$0xff]  ;;  %v13563_v60 = vcombine.low %v1049_v41, %v1057_v43  ;;  %v1145_v41 = vld [vmem:[#allocation3 + $0x1e18] sm:$0xff] }
 0x1c6   :  { %v1153_v43 = vld [vmem:[#allocation3 + $0x1e58] sm:$0xff] }
 0x1c8   :  { %6843 = vmatpush1.bf16.msra.mxu0 %v13385_v16  ;;  %7007 = vmatpush1.bf16.msra.mxu1 %v13387_v42  ;;  %v13497_v16 = vcombine.low %v984_v1, %v992_v2  ;;  %v13499_v42 = vcombine.low %v985_v3, %v993_v4  ;;  %v1088_v1 = vld [vmem:[#allocation3 + $0x1c50] sm:$0xff]  ;;  %v1081_v3 = vld [vmem:[#allocation3 + $0x1c18] sm:$0xff] }
 0x1c9   :  { %6844 = vmatprep.subr.bf16.mxu0 %v13402_v17  ;;  %7008 = vmatprep.subr.bf16.mxu1 %v13404_v19  ;;  %v13514_v17 = vcombine.high %v1000_v11, %v1008_v12  ;;  %v13516_v19 = vcombine.high %v1001_v13, %v1009_v15  ;;  %v1089_v4 = vld [vmem:[#allocation3 + $0x1c58] sm:$0xff] }
 0x1cc   :  { %6845 = vmatpush1.bf16.msra.mxu0 %v13401_v26  ;;  %7009 = vmatpush1.bf16.msra.mxu1 %v13403_v14  ;;  %v13513_v26 = vcombine.low %v1000_v11, %v1008_v12  ;;  %v13515_v14 = vcombine.low %v1001_v13, %v1009_v15  ;;  %v1096_v11 = vld [vmem:[#allocation3 + $0x1c90] sm:$0xff]  ;;  %v1097_v13 = vld [vmem:[#allocation3 + $0x1c98] sm:$0xff] }
 0x1cd   :  { %6846 = vmatprep.subr.bf16.mxu0 %v13418_v25  ;;  %7010 = vmatprep.subr.bf16.mxu1 %v13420_v28  ;;  %v13530_v25 = vcombine.high %v1016_v20, %v1024_v21  ;;  %v13532_v28 = vcombine.high %v1017_v23, %v1025_v24  ;;  %v1104_v12 = vld [vmem:[#allocation3 + $0x1cd0] sm:$0xff]  ;;  %v1105_v15 = vld [vmem:[#allocation3 + $0x1cd8] sm:$0xff] }
 0x1d0   :  { %6847 = vmatpush1.bf16.msra.mxu0 %v13417_v34  ;;  %7011 = vmatpush1.bf16.msra.mxu1 %v13419_v35  ;;  %v13529_v34 = vcombine.low %v1016_v20, %v1024_v21  ;;  %v13531_v35 = vcombine.low %v1017_v23, %v1025_v24  ;;  %v1112_v20 = vld [vmem:[#allocation3 + $0x1d10] sm:$0xff]  ;;  %v1113_v23 = vld [vmem:[#allocation3 + $0x1d18] sm:$0xff] }
 0x1d1   :  { %6848 = vmatprep.subr.bf16.mxu0 %v13434_v36  ;;  %7012 = vmatprep.subr.bf16.mxu1 %v13436_v38  ;;  %v13546_v36 = vcombine.high %v1032_v29, %v1040_v31  ;;  %v13548_v38 = vcombine.high %v1033_v32, %v1041_v33  ;;  %v1120_v21 = vld [vmem:[#allocation3 + $0x1d50] sm:$0xff]  ;;  %v1121_v24 = vld [vmem:[#allocation3 + $0x1d58] sm:$0xff] }
 0x1d4   :  { %6849 = vmatpush1.bf16.msra.mxu0 %v13433_v44  ;;  %7013 = vmatpush1.bf16.msra.mxu1 %v13435_v45  ;;  %v13545_v44 = vcombine.low %v1032_v29, %v1040_v31  ;;  %v13547_v45 = vcombine.low %v1033_v32, %v1041_v33  ;;  %v1128_v29 = vld [vmem:[#allocation3 + $0x1d90] sm:$0xff]  ;;  %v1129_v32 = vld [vmem:[#allocation3 + $0x1d98] sm:$0xff] }
 0x1d5   :  { %6850 = vmatprep.subr.bf16.mxu0 %v13450_v9  ;;  %7014 = vmatprep.subr.bf16.mxu1 %v13452_v47  ;;  %v13562_v9 = vcombine.high %v1048_v39, %v1056_v40  ;;  %v1136_v31 = vld [vmem:[#allocation3 + $0x1dd0] sm:$0xff]  ;;  %v1137_v33 = vld [vmem:[#allocation3 + $0x1dd8] sm:$0xff] }
 0x1d6   :  { %v1144_v39 = vld [vmem:[#allocation3 + $0x1e10] sm:$0xff] }
 0x1d7   :  { %v1152_v40 = vld [vmem:[#allocation3 + $0x1e50] sm:$0xff] }
 0x1d8   :  { %6851 = vmatpush1.bf16.msra.mxu0 %v13449_v53  ;;  %7015 = vmatpush1.bf16.msra.mxu1 %v13451_v54  ;;  %v1065_v53 = vld [vmem:[#allocation3 + $0x1b98] sm:$0xff] }
 0x1d9   :  { %6861 = vmatprep.subr.bf16.mxu0 %v13466_v55  ;;  %7025 = vmatprep.subr.bf16.mxu1 %v13468_v56  ;;  %v1073_v54 = vld [vmem:[#allocation3 + $0x1bd8] sm:$0xff] }
 0x1db   :  { %6853 = vmatmul.mubr.bf16.vlgmr.msra.gmra.mrb[4].mxu0 %v15686_v52  ;;  %7017 = vmatmul.mubr.bf16.vlgmr.msra.gmra.mrb[4].mxu1 %v15686_v52 }
 0x1dc   :  { %6862 = vmatpush1.bf16.msra.mxu0 %v13465_v27  ;;  %7026 = vmatpush1.bf16.msra.mxu1 %v13467_v62  ;;  %v13578_v27 = vcombine.high %v1064_v49, %v1072_v50 }
 0x1dd   :  { %6863 = vmatprep.subr.bf16.mxu0 %v13482_v63  ;;  %7027 = vmatprep.subr.bf16.mxu1 %v13484_v0  ;;  %v13580_v63 = vcombine.high %v1065_v53, %v1073_v54  ;;  %v1080_v0 = vld [vmem:[#allocation3 + $0x1c10] sm:$0xff] }
 0x1de   :  { %6893 = vmatprep.mubr.bf16.mxu0 %v15688_v61  ;;  %7057 = vmatprep.mubr.bf16.mxu1 %v15688_v61 }
 0x1e0   :  { %6864 = vmatpush1.bf16.msra.mxu0 %v13481_v6  ;;  %7028 = vmatpush1.bf16.msra.mxu1 %v13483_v7  ;;  %v13577_v6 = vcombine.low %v1064_v49, %v1072_v50  ;;  %v13579_v7 = vcombine.low %v1065_v53, %v1073_v54  ;;  %v1160_v49 = vld [vmem:[#allocation3 + $0x1e90] sm:$0xff]  ;;  %v1161_v53 = vld [vmem:[#allocation3 + $0x1e98] sm:$0xff] }
 0x1e1   :  { %6865 = vmatprep.subr.bf16.mxu0 %v13498_v8  ;;  %7029 = vmatprep.subr.bf16.mxu1 %v13500_v10  ;;  %v13594_v8 = vcombine.high %v1080_v0, %v1088_v1  ;;  %v13596_v10 = vcombine.high %v1081_v3, %v1089_v4  ;;  %v1168_v50 = vld [vmem:[#allocation3 + $0x1ed0] sm:$0xff]  ;;  %v1169_v54 = vld [vmem:[#allocation3 + $0x1ed8] sm:$0xff] }
 0x1e4   :  { %6866 = vmatpush1.bf16.msra.mxu0 %v13497_v16  ;;  %7030 = vmatpush1.bf16.msra.mxu1 %v13499_v42  ;;  %v13593_v16 = vcombine.low %v1080_v0, %v1088_v1  ;;  %v13595_v42 = vcombine.low %v1081_v3, %v1089_v4  ;;  %v1185_v0 = vld [vmem:[#allocation3 + $0x1f58] sm:$0xff]  ;;  %v13673_v1 = vcombine.low %v1160_v49, %v1168_v50 }
 0x1e5   :  { %6867 = vmatprep.subr.bf16.mxu0 %v13514_v17  ;;  %7031 = vmatprep.subr.bf16.mxu1 %v13516_v19  ;;  %v13610_v17 = vcombine.high %v1096_v11, %v1104_v12  ;;  %v13612_v19 = vcombine.high %v1097_v13, %v1105_v15 }
 0x1e8   :  { %6868 = vmatpush1.bf16.msra.mxu0 %v13513_v26  ;;  %7032 = vmatpush1.bf16.msra.mxu1 %v13515_v14  ;;  %v13609_v26 = vcombine.low %v1096_v11, %v1104_v12  ;;  %v13611_v14 = vcombine.low %v1097_v13, %v1105_v15 }
 0x1e9   :  { %6869 = vmatprep.subr.bf16.mxu0 %v13530_v25  ;;  %7033 = vmatprep.subr.bf16.mxu1 %v13532_v28  ;;  %v13626_v25 = vcombine.high %v1112_v20, %v1120_v21  ;;  %v13628_v28 = vcombine.high %v1113_v23, %v1121_v24 }
 0x1ec   :  { %6870 = vmatpush1.bf16.msra.mxu0 %v13529_v34  ;;  %7034 = vmatpush1.bf16.msra.mxu1 %v13531_v35  ;;  %v13625_v34 = vcombine.low %v1112_v20, %v1120_v21  ;;  %v13627_v35 = vcombine.low %v1113_v23, %v1121_v24 }
 0x1ed   :  { %6871 = vmatprep.subr.bf16.mxu0 %v13546_v36  ;;  %7035 = vmatprep.subr.bf16.mxu1 %v13548_v38  ;;  %v13642_v36 = vcombine.high %v1128_v29, %v1136_v31  ;;  %v13644_v38 = vcombine.high %v1129_v32, %v1137_v33 }
 0x1ee   :  { %v15714_v47 = vpop.f32.mrb[0].mxu0  ;;  %v15718_v55 = vpop.f32.mrb[0].mxu1 }
 0x1ef   :  { %v15716_v51 = vpop.f32.mrb[1].mxu0  ;;  %v15720_v58 = vpop.f32.mrb[1].mxu1 }
 0x1f0   :  { %v6571_v56 = vpop.f32.mrb[2].mxu0  ;;  %6872 = vmatpush1.bf16.msra.mxu0 %v13545_v44  ;;  %7036 = vmatpush1.bf16.msra.mxu1 %v13547_v45  ;;  %v6735_v62 = vpop.f32.mrb[2].mxu1  ;;  %v13641_v44 = vcombine.low %v1128_v29, %v1136_v31  ;;  %v13643_v45 = vcombine.low %v1129_v32, %v1137_v33 }
 0x1f1   :  { %v6572_v59 = vpop.f32.mrb[3].mxu0  ;;  %6873 = vmatprep.subr.bf16.mxu0 %v13562_v9  ;;  %7037 = vmatprep.subr.bf16.mxu1 %v13564_v48  ;;  %v6736_v2 = vpop.f32.mrb[3].mxu1  ;;  %v13658_v9 = vcombine.high %v1144_v39, %v1152_v40  ;;  %v13660_v48 = vcombine.high %v1145_v41, %v1153_v43  ;;  %v13657_v56 = vcombine.low %v1144_v39, %v1152_v40  ;;  %v1184_v62 = vld [vmem:[#allocation3 + $0x1f50] sm:$0xff] }
 0x1f2   :  { %v13674_v59 = vcombine.high %v1160_v49, %v1168_v50  ;;  %v13675_v2 = vcombine.low %v1161_v53, %v1169_v54 }
 0x1f4   :  { %6874 = vmatpush1.bf16.msra.mxu0 %v13561_v57  ;;  %7038 = vmatpush1.bf16.msra.mxu1 %v13563_v60  ;;  %v13659_v57 = vcombine.low %v1145_v41, %v1153_v43  ;;  %v13676_v60 = vcombine.high %v1161_v53, %v1169_v54 }
 0x1f5   :  { %6875 = vmatprep.subr.bf16.mxu0 %v13578_v27  ;;  %7039 = vmatprep.subr.bf16.mxu1 %v13580_v63  ;;  %v1176_v27 = vld [vmem:[#allocation3 + $0x1f10] sm:$0xff]  ;;  %v1177_v63 = vld [vmem:[#allocation3 + $0x1f18] sm:$0xff] }
 0x1f6   :  { %v13690_v3 = vcombine.high %v1176_v27, %v1184_v62  ;;  %v13692_v4 = vcombine.high %v1177_v63, %v1185_v0  ;;  %v13689_v11 = vcombine.low %v1176_v27, %v1184_v62  ;;  %v13691_v12 = vcombine.low %v1177_v63, %v1185_v0 }
 0x1f8   :  { %6876 = vmatpush1.bf16.msra.mxu0 %v13577_v6  ;;  %7040 = vmatpush1.bf16.msra.mxu1 %v13579_v7  ;;  %v1192_v6 = vld [vmem:[#allocation3 + $0x1f90] sm:$0xff] }
 0x1f9   :  { %6877 = vmatprep.subr.bf16.mxu0 %v13594_v8  ;;  %7041 = vmatprep.subr.bf16.mxu1 %v13596_v10  ;;  %v1200_v7 = vld [vmem:[#allocation3 + $0x1fd0] sm:$0xff]  ;;  %v1193_v8 = vld [vmem:[#allocation3 + $0x1f98] sm:$0xff] }
 0x1fa   :  { %v1201_v10 = vld [vmem:[#allocation3 + $0x1fd8] sm:$0xff]  ;;  %v13706_v13 = vcombine.high %v1192_v6, %v1200_v7  ;;  %v13705_v20 = vcombine.low %v1192_v6, %v1200_v7 }
 0x1fb   :  { %v13708_v15 = vcombine.high %v1193_v8, %v1201_v10  ;;  %v13707_v21 = vcombine.low %v1193_v8, %v1201_v10 }
 0x1fc   :  { %6878 = vmatpush1.bf16.msra.mxu0 %v13593_v16  ;;  %7042 = vmatpush1.bf16.msra.mxu1 %v13595_v42  ;;  %v186_v16 = vld [vmem:[#allocation3 + $0x20] sm:$0xff] }
 0x1fd   :  { %6879 = vmatprep.subr.bf16.mxu0 %v13610_v17  ;;  %7043 = vmatprep.subr.bf16.mxu1 %v13612_v19  ;;  %v194_v42 = vld [vmem:[#allocation3 + $0x60] sm:$0xff]  ;;  %v187_v17 = vld [vmem:[#allocation3 + $0x28] sm:$0xff] }
 0x1fe   :  { %v195_v19 = vld [vmem:[#allocation3 + $0x68] sm:$0xff]  ;;  %v12702_v23 = vcombine.high %v186_v16, %v194_v42  ;;  %v12701_v29 = vcombine.low %v186_v16, %v194_v42 }
 0x1ff   :  { %v12704_v24 = vcombine.high %v187_v17, %v195_v19  ;;  %v12703_v31 = vcombine.low %v187_v17, %v195_v19 }
 0x200   :  { %6880 = vmatpush1.bf16.msra.mxu0 %v13609_v26  ;;  %7044 = vmatpush1.bf16.msra.mxu1 %v13611_v14  ;;  %v202_v26 = vld [vmem:[#allocation3 + $0xa0] sm:$0xff] }
 0x201   :  { %6881 = vmatprep.subr.bf16.mxu0 %v13626_v25  ;;  %7045 = vmatprep.subr.bf16.mxu1 %v13628_v28  ;;  %v210_v14 = vld [vmem:[#allocation3 + $0xe0] sm:$0xff]  ;;  %v203_v25 = vld [vmem:[#allocation3 + $0xa8] sm:$0xff] }
 0x202   :  { %v211_v28 = vld [vmem:[#allocation3 + $0xe8] sm:$0xff]  ;;  %v12718_v32 = vcombine.high %v202_v26, %v210_v14  ;;  %v12717_v39 = vcombine.low %v202_v26, %v210_v14 }
 0x203   :  { %v12720_v33 = vcombine.high %v203_v25, %v211_v28  ;;  %v12719_v40 = vcombine.low %v203_v25, %v211_v28 }
 0x204   :  { %6882 = vmatpush1.bf16.msra.mxu0 %v13625_v34  ;;  %7046 = vmatpush1.bf16.msra.mxu1 %v13627_v35  ;;  %v218_v34 = vld [vmem:[#allocation3 + $0x120] sm:$0xff] }
 0x205   :  { %6883 = vmatprep.subr.bf16.mxu0 %v13642_v36  ;;  %7047 = vmatprep.subr.bf16.mxu1 %v13644_v38  ;;  %v226_v35 = vld [vmem:[#allocation3 + $0x160] sm:$0xff]  ;;  %v219_v36 = vld [vmem:[#allocation3 + $0x128] sm:$0xff] }
 0x206   :  { %v227_v38 = vld [vmem:[#allocation3 + $0x168] sm:$0xff]  ;;  %v12734_v41 = vcombine.high %v218_v34, %v226_v35  ;;  %v12733_v49 = vcombine.low %v218_v34, %v226_v35 }
 0x207   :  { %v12736_v43 = vcombine.high %v219_v36, %v227_v38  ;;  %v12735_v50 = vcombine.low %v219_v36, %v227_v38 }
 0x208   :  { %6884 = vmatpush1.bf16.msra.mxu0 %v13641_v44  ;;  %7048 = vmatpush1.bf16.msra.mxu1 %v13643_v45  ;;  %v234_v44 = vld [vmem:[#allocation3 + $0x1a0] sm:$0xff] }
 0x209   :  { %6885 = vmatprep.subr.bf16.mxu0 %v13658_v9  ;;  %7049 = vmatprep.subr.bf16.mxu1 %v13660_v48  ;;  %v242_v45 = vld [vmem:[#allocation3 + $0x1e0] sm:$0xff]  ;;  %v235_v9 = vld [vmem:[#allocation3 + $0x1a8] sm:$0xff] }
 0x20a   :  { %v243_v48 = vld [vmem:[#allocation3 + $0x1e8] sm:$0xff]  ;;  %v12750_v53 = vcombine.high %v234_v44, %v242_v45  ;;  %v12749_v27 = vcombine.low %v234_v44, %v242_v45 }
 0x20b   :  { %v12752_v54 = vcombine.high %v235_v9, %v243_v48  ;;  %v12751_v62 = vcombine.low %v235_v9, %v243_v48 }
 0x20c   :  { %6886 = vmatpush1.bf16.msra.mxu0 %v13657_v56  ;;  %7050 = vmatpush1.bf16.msra.mxu1 %v13659_v57  ;;  %v250_v56 = vld [vmem:[#allocation3 + $0x220] sm:$0xff] }
 0x20d   :  { %6887 = vmatprep.subr.bf16.mxu0 %v13674_v59  ;;  %7051 = vmatprep.subr.bf16.mxu1 %v13676_v60  ;;  %v258_v57 = vld [vmem:[#allocation3 + $0x260] sm:$0xff]  ;;  %v251_v59 = vld [vmem:[#allocation3 + $0x228] sm:$0xff] }
 0x20e   :  { %v259_v60 = vld [vmem:[#allocation3 + $0x268] sm:$0xff]  ;;  %v12766_v63 = vcombine.high %v250_v56, %v258_v57  ;;  %v12765_v6 = vcombine.low %v250_v56, %v258_v57 }
 0x20f   :  { %v12768_v0 = vcombine.high %v251_v59, %v259_v60  ;;  %v12767_v7 = vcombine.low %v251_v59, %v259_v60 }
 0x210   :  { %6888 = vmatpush1.bf16.msra.mxu0 %v13673_v1  ;;  %7052 = vmatpush1.bf16.msra.mxu1 %v13675_v2  ;;  %v266_v1 = vld [vmem:[#allocation3 + $0x2a0] sm:$0xff] }
 0x211   :  { %6889 = vmatprep.subr.bf16.mxu0 %v13690_v3  ;;  %7053 = vmatprep.subr.bf16.mxu1 %v13692_v4  ;;  %v274_v2 = vld [vmem:[#allocation3 + $0x2e0] sm:$0xff]  ;;  %v267_v3 = vld [vmem:[#allocation3 + $0x2a8] sm:$0xff] }
 0x212   :  { %v275_v4 = vld [vmem:[#allocation3 + $0x2e8] sm:$0xff]  ;;  %v12782_v8 = vcombine.high %v266_v1, %v274_v2  ;;  %v12781_v16 = vcombine.low %v266_v1, %v274_v2 }
 0x213   :  { %v12784_v10 = vcombine.high %v267_v3, %v275_v4  ;;  %v12783_v42 = vcombine.low %v267_v3, %v275_v4 }
 0x214   :  { %6890 = vmatpush1.bf16.msra.mxu0 %v13689_v11  ;;  %7054 = vmatpush1.bf16.msra.mxu1 %v13691_v12  ;;  %v282_v11 = vld [vmem:[#allocation3 + $0x320] sm:$0xff] }
 0x215   :  { %6891 = vmatprep.subr.bf16.mxu0 %v13706_v13  ;;  %7055 = vmatprep.subr.bf16.mxu1 %v13708_v15  ;;  %v290_v12 = vld [vmem:[#allocation3 + $0x360] sm:$0xff]  ;;  %v283_v13 = vld [vmem:[#allocation3 + $0x328] sm:$0xff] }
 0x216   :  { %v291_v15 = vld [vmem:[#allocation3 + $0x368] sm:$0xff]  ;;  %v12798_v17 = vcombine.high %v282_v11, %v290_v12  ;;  %v12797_v26 = vcombine.low %v282_v11, %v290_v12 }
 0x217   :  { %v12800_v19 = vcombine.high %v283_v13, %v291_v15  ;;  %v12799_v14 = vcombine.low %v283_v13, %v291_v15 }
 0x218   :  { %6892 = vmatpush1.bf16.msra.mxu0 %v13705_v20  ;;  %7056 = vmatpush1.bf16.msra.mxu1 %v13707_v21  ;;  %v298_v20 = vld [vmem:[#allocation3 + $0x3a0] sm:$0xff] }
 0x219   :  { %7066 = vmatprep.subr.bf16.mxu0 %v12702_v23  ;;  %7230 = vmatprep.subr.bf16.mxu1 %v12704_v24  ;;  %v306_v21 = vld [vmem:[#allocation3 + $0x3e0] sm:$0xff]  ;;  %v299_v23 = vld [vmem:[#allocation3 + $0x3a8] sm:$0xff] }
 0x21a   :  { %v307_v24 = vld [vmem:[#allocation3 + $0x3e8] sm:$0xff]  ;;  %v12814_v25 = vcombine.high %v298_v20, %v306_v21  ;;  %v12813_v34 = vcombine.low %v298_v20, %v306_v21 }
 0x21b   :  { %6894 = vmatmul.mubr.bf16.vlgmr.msra.gmra.mrb[4].mxu0 %v15696_v5  ;;  %7058 = vmatmul.mubr.bf16.vlgmr.msra.gmra.mrb[4].mxu1 %v15696_v5  ;;  %v12816_v28 = vcombine.high %v299_v23, %v307_v24  ;;  %v12815_v35 = vcombine.low %v299_v23, %v307_v24 }
 0x21c   :  { %7067 = vmatpush1.bf16.msra.mxu0 %v12701_v29  ;;  %7231 = vmatpush1.bf16.msra.mxu1 %v12703_v31  ;;  %v314_v29 = vld [vmem:[#allocation3 + $0x420] sm:$0xff] }
 0x21d   :  { %7068 = vmatprep.subr.bf16.mxu0 %v12718_v32  ;;  %7232 = vmatprep.subr.bf16.mxu1 %v12720_v33  ;;  %v322_v31 = vld [vmem:[#allocation3 + $0x460] sm:$0xff]  ;;  %v315_v32 = vld [vmem:[#allocation3 + $0x428] sm:$0xff] }
 0x21e   :  { %7098 = vmatprep.mubr.bf16.mxu0 %v15637_v22  ;;  %7262 = vmatprep.mubr.bf16.mxu1 %v15637_v22  ;;  %v323_v33 = vld [vmem:[#allocation3 + $0x468] sm:$0xff]  ;;  %v12830_v36 = vcombine.high %v314_v29, %v322_v31  ;;  %v12829_v44 = vcombine.low %v314_v29, %v322_v31 }
 0x21f   :  { %v12832_v38 = vcombine.high %v315_v32, %v323_v33  ;;  %v12831_v45 = vcombine.low %v315_v32, %v323_v33 }
 0x220   :  { %7069 = vmatpush1.bf16.msra.mxu0 %v12717_v39  ;;  %7233 = vmatpush1.bf16.msra.mxu1 %v12719_v40  ;;  %v330_v39 = vld [vmem:[#allocation3 + $0x4a0] sm:$0xff] }
 0x221   :  { %7070 = vmatprep.subr.bf16.mxu0 %v12734_v41  ;;  %7234 = vmatprep.subr.bf16.mxu1 %v12736_v43  ;;  %v338_v40 = vld [vmem:[#allocation3 + $0x4e0] sm:$0xff]  ;;  %v331_v41 = vld [vmem:[#allocation3 + $0x4a8] sm:$0xff] }
 0x222   :  { %v339_v43 = vld [vmem:[#allocation3 + $0x4e8] sm:$0xff]  ;;  %v12846_v9 = vcombine.high %v330_v39, %v338_v40  ;;  %v12845_v56 = vcombine.low %v330_v39, %v338_v40 }
 0x223   :  { %v12848_v48 = vcombine.high %v331_v41, %v339_v43  ;;  %v12847_v57 = vcombine.low %v331_v41, %v339_v43 }
 0x224   :  { %7071 = vmatpush1.bf16.msra.mxu0 %v12733_v49  ;;  %7235 = vmatpush1.bf16.msra.mxu1 %v12735_v50  ;;  %v346_v49 = vld [vmem:[#allocation3 + $0x520] sm:$0xff] }
 0x225   :  { %7072 = vmatprep.subr.bf16.mxu0 %v12750_v53  ;;  %7236 = vmatprep.subr.bf16.mxu1 %v12752_v54  ;;  %v354_v50 = vld [vmem:[#allocation3 + $0x560] sm:$0xff]  ;;  %v347_v53 = vld [vmem:[#allocation3 + $0x528] sm:$0xff] }
 0x226   :  { %v355_v54 = vld [vmem:[#allocation3 + $0x568] sm:$0xff]  ;;  %v12862_v59 = vcombine.high %v346_v49, %v354_v50  ;;  %v12861_v1 = vcombine.low %v346_v49, %v354_v50 }
 0x227   :  { %v12864_v60 = vcombine.high %v347_v53, %v355_v54  ;;  %v12863_v2 = vcombine.low %v347_v53, %v355_v54 }
 0x228   :  { %7073 = vmatpush1.bf16.msra.mxu0 %v12749_v27  ;;  %7237 = vmatpush1.bf16.msra.mxu1 %v12751_v62  ;;  %v362_v27 = vld [vmem:[#allocation3 + $0x5a0] sm:$0xff] }
 0x229   :  { %7074 = vmatprep.subr.bf16.mxu0 %v12766_v63  ;;  %7238 = vmatprep.subr.bf16.mxu1 %v12768_v0  ;;  %v370_v62 = vld [vmem:[#allocation3 + $0x5e0] sm:$0xff]  ;;  %v363_v63 = vld [vmem:[#allocation3 + $0x5a8] sm:$0xff] }
 0x22a   :  { %v371_v0 = vld [vmem:[#allocation3 + $0x5e8] sm:$0xff]  ;;  %v12878_v3 = vcombine.high %v362_v27, %v370_v62  ;;  %v12877_v11 = vcombine.low %v362_v27, %v370_v62 }
 0x22b   :  { %v12880_v4 = vcombine.high %v363_v63, %v371_v0  ;;  %v12879_v12 = vcombine.low %v363_v63, %v371_v0 }
 0x22c   :  { %7075 = vmatpush1.bf16.msra.mxu0 %v12765_v6  ;;  %7239 = vmatpush1.bf16.msra.mxu1 %v12767_v7  ;;  %v378_v6 = vld [vmem:[#allocation3 + $0x620] sm:$0xff] }
 0x22d   :  { %7076 = vmatprep.subr.bf16.mxu0 %v12782_v8  ;;  %7240 = vmatprep.subr.bf16.mxu1 %v12784_v10  ;;  %v386_v7 = vld [vmem:[#allocation3 + $0x660] sm:$0xff]  ;;  %v379_v8 = vld [vmem:[#allocation3 + $0x628] sm:$0xff] }
 0x22e   :  { %v387_v10 = vld [vmem:[#allocation3 + $0x668] sm:$0xff]  ;;  %v12894_v13 = vcombine.high %v378_v6, %v386_v7  ;;  %v12893_v20 = vcombine.low %v378_v6, %v386_v7 }
 0x22f   :  { %v12896_v15 = vcombine.high %v379_v8, %v387_v10  ;;  %v12895_v21 = vcombine.low %v379_v8, %v387_v10 }
 0x230   :  { %7077 = vmatpush1.bf16.msra.mxu0 %v12781_v16  ;;  %7241 = vmatpush1.bf16.msra.mxu1 %v12783_v42  ;;  %v394_v16 = vld [vmem:[#allocation3 + $0x6a0] sm:$0xff] }
 0x231   :  { %7078 = vmatprep.subr.bf16.mxu0 %v12798_v17  ;;  %7242 = vmatprep.subr.bf16.mxu1 %v12800_v19  ;;  %v402_v42 = vld [vmem:[#allocation3 + $0x6e0] sm:$0xff]  ;;  %v395_v17 = vld [vmem:[#allocation3 + $0x6a8] sm:$0xff] }
 0x232   :  { %v403_v19 = vld [vmem:[#allocation3 + $0x6e8] sm:$0xff]  ;;  %v12910_v23 = vcombine.high %v394_v16, %v402_v42  ;;  %v12909_v29 = vcombine.low %v394_v16, %v402_v42 }
 0x233   :  { %v12912_v24 = vcombine.high %v395_v17, %v403_v19  ;;  %v12911_v31 = vcombine.low %v395_v17, %v403_v19 }
 0x234   :  { %7079 = vmatpush1.bf16.msra.mxu0 %v12797_v26  ;;  %7243 = vmatpush1.bf16.msra.mxu1 %v12799_v14  ;;  %v410_v26 = vld [vmem:[#allocation3 + $0x720] sm:$0xff] }
 0x235   :  { %7080 = vmatprep.subr.bf16.mxu0 %v12814_v25  ;;  %7244 = vmatprep.subr.bf16.mxu1 %v12816_v28  ;;  %v418_v14 = vld [vmem:[#allocation3 + $0x760] sm:$0xff]  ;;  %v411_v25 = vld [vmem:[#allocation3 + $0x728] sm:$0xff] }
 0x236   :  { %v419_v28 = vld [vmem:[#allocation3 + $0x768] sm:$0xff]  ;;  %v12926_v32 = vcombine.high %v410_v26, %v418_v14  ;;  %v12925_v39 = vcombine.low %v410_v26, %v418_v14 }
 0x237   :  { %v12928_v33 = vcombine.high %v411_v25, %v419_v28  ;;  %v12927_v40 = vcombine.low %v411_v25, %v419_v28 }
 0x238   :  { %7081 = vmatpush1.bf16.msra.mxu0 %v12813_v34  ;;  %7245 = vmatpush1.bf16.msra.mxu1 %v12815_v35  ;;  %v426_v34 = vld [vmem:[#allocation3 + $0x7a0] sm:$0xff] }
 0x239   :  { %7082 = vmatprep.subr.bf16.mxu0 %v12830_v36  ;;  %7246 = vmatprep.subr.bf16.mxu1 %v12832_v38  ;;  %v434_v35 = vld [vmem:[#allocation3 + $0x7e0] sm:$0xff]  ;;  %v427_v36 = vld [vmem:[#allocation3 + $0x7a8] sm:$0xff] }
 0x23a   :  { %v435_v38 = vld [vmem:[#allocation3 + $0x7e8] sm:$0xff]  ;;  %v12942_v41 = vcombine.high %v426_v34, %v434_v35  ;;  %v12941_v49 = vcombine.low %v426_v34, %v434_v35 }
 0x23b   :  { %v12944_v43 = vcombine.high %v427_v36, %v435_v38  ;;  %v12943_v50 = vcombine.low %v427_v36, %v435_v38 }
 0x23c   :  { %7083 = vmatpush1.bf16.msra.mxu0 %v12829_v44  ;;  %7247 = vmatpush1.bf16.msra.mxu1 %v12831_v45  ;;  %v442_v44 = vld [vmem:[#allocation3 + $0x820] sm:$0xff] }
 0x23d   :  { %7084 = vmatprep.subr.bf16.mxu0 %v12846_v9  ;;  %7248 = vmatprep.subr.bf16.mxu1 %v12848_v48  ;;  %v450_v45 = vld [vmem:[#allocation3 + $0x860] sm:$0xff]  ;;  %v443_v9 = vld [vmem:[#allocation3 + $0x828] sm:$0xff] }
 0x23e   :  { %v451_v48 = vld [vmem:[#allocation3 + $0x868] sm:$0xff]  ;;  %v12958_v53 = vcombine.high %v442_v44, %v450_v45  ;;  %v12957_v27 = vcombine.low %v442_v44, %v450_v45 }
 0x23f   :  { %v12960_v54 = vcombine.high %v443_v9, %v451_v48  ;;  %v12959_v62 = vcombine.low %v443_v9, %v451_v48 }
 0x240   :  { %7085 = vmatpush1.bf16.msra.mxu0 %v12845_v56  ;;  %7249 = vmatpush1.bf16.msra.mxu1 %v12847_v57  ;;  %v458_v56 = vld [vmem:[#allocation3 + $0x8a0] sm:$0xff] }
 0x241   :  { %7086 = vmatprep.subr.bf16.mxu0 %v12862_v59  ;;  %7250 = vmatprep.subr.bf16.mxu1 %v12864_v60  ;;  %v466_v57 = vld [vmem:[#allocation3 + $0x8e0] sm:$0xff]  ;;  %v459_v59 = vld [vmem:[#allocation3 + $0x8a8] sm:$0xff] }
 0x242   :  { %v467_v60 = vld [vmem:[#allocation3 + $0x8e8] sm:$0xff]  ;;  %v12974_v63 = vcombine.high %v458_v56, %v466_v57  ;;  %v12973_v6 = vcombine.low %v458_v56, %v466_v57 }
 0x243   :  { %v12976_v0 = vcombine.high %v459_v59, %v467_v60  ;;  %v12975_v7 = vcombine.low %v459_v59, %v467_v60 }
 0x244   :  { %7087 = vmatpush1.bf16.msra.mxu0 %v12861_v1  ;;  %7251 = vmatpush1.bf16.msra.mxu1 %v12863_v2  ;;  %v474_v1 = vld [vmem:[#allocation3 + $0x920] sm:$0xff] }
 0x245   :  { %7088 = vmatprep.subr.bf16.mxu0 %v12878_v3  ;;  %7252 = vmatprep.subr.bf16.mxu1 %v12880_v4  ;;  %v482_v2 = vld [vmem:[#allocation3 + $0x960] sm:$0xff]  ;;  %v475_v3 = vld [vmem:[#allocation3 + $0x928] sm:$0xff] }
 0x246   :  { %v483_v4 = vld [vmem:[#allocation3 + $0x968] sm:$0xff]  ;;  %v12990_v8 = vcombine.high %v474_v1, %v482_v2  ;;  %v12989_v16 = vcombine.low %v474_v1, %v482_v2 }
 0x247   :  { %v12992_v10 = vcombine.high %v475_v3, %v483_v4  ;;  %v12991_v42 = vcombine.low %v475_v3, %v483_v4 }
 0x248   :  { %7089 = vmatpush1.bf16.msra.mxu0 %v12877_v11  ;;  %7253 = vmatpush1.bf16.msra.mxu1 %v12879_v12  ;;  %v490_v11 = vld [vmem:[#allocation3 + $0x9a0] sm:$0xff] }
 0x249   :  { %7090 = vmatprep.subr.bf16.mxu0 %v12894_v13  ;;  %7254 = vmatprep.subr.bf16.mxu1 %v12896_v15  ;;  %v498_v12 = vld [vmem:[#allocation3 + $0x9e0] sm:$0xff]  ;;  %v491_v13 = vld [vmem:[#allocation3 + $0x9a8] sm:$0xff] }
 0x24a   :  { %v499_v15 = vld [vmem:[#allocation3 + $0x9e8] sm:$0xff]  ;;  %v13006_v17 = vcombine.high %v490_v11, %v498_v12  ;;  %v13005_v26 = vcombine.low %v490_v11, %v498_v12 }
 0x24b   :  { %v13008_v19 = vcombine.high %v491_v13, %v499_v15  ;;  %v13007_v14 = vcombine.low %v491_v13, %v499_v15 }
 0x24c   :  { %7091 = vmatpush1.bf16.msra.mxu0 %v12893_v20  ;;  %7255 = vmatpush1.bf16.msra.mxu1 %v12895_v21  ;;  %v506_v20 = vld [vmem:[#allocation3 + $0xa20] sm:$0xff] }
 0x24d   :  { %7092 = vmatprep.subr.bf16.mxu0 %v12910_v23  ;;  %7256 = vmatprep.subr.bf16.mxu1 %v12912_v24  ;;  %v514_v21 = vld [vmem:[#allocation3 + $0xa60] sm:$0xff]  ;;  %v507_v23 = vld [vmem:[#allocation3 + $0xa28] sm:$0xff] }
 0x24e   :  { %v515_v24 = vld [vmem:[#allocation3 + $0xa68] sm:$0xff]  ;;  %v13022_v25 = vcombine.high %v506_v20, %v514_v21  ;;  %v13021_v34 = vcombine.low %v506_v20, %v514_v21 }
 0x24f   :  { %v13024_v28 = vcombine.high %v507_v23, %v515_v24  ;;  %v13023_v35 = vcombine.low %v507_v23, %v515_v24 }
 0x250   :  { %7093 = vmatpush1.bf16.msra.mxu0 %v12909_v29  ;;  %7257 = vmatpush1.bf16.msra.mxu1 %v12911_v31  ;;  %v522_v29 = vld [vmem:[#allocation3 + $0xaa0] sm:$0xff] }
 0x251   :  { %7094 = vmatprep.subr.bf16.mxu0 %v12926_v32  ;;  %7258 = vmatprep.subr.bf16.mxu1 %v12928_v33  ;;  %v530_v31 = vld [vmem:[#allocation3 + $0xae0] sm:$0xff]  ;;  %v523_v32 = vld [vmem:[#allocation3 + $0xaa8] sm:$0xff] }
 0x252   :  { %v531_v33 = vld [vmem:[#allocation3 + $0xae8] sm:$0xff]  ;;  %v13038_v36 = vcombine.high %v522_v29, %v530_v31  ;;  %v13037_v44 = vcombine.low %v522_v29, %v530_v31 }
 0x253   :  { %v13040_v38 = vcombine.high %v523_v32, %v531_v33  ;;  %v13039_v45 = vcombine.low %v523_v32, %v531_v33 }
 0x254   :  { %7095 = vmatpush1.bf16.msra.mxu0 %v12925_v39  ;;  %7259 = vmatpush1.bf16.msra.mxu1 %v12927_v40  ;;  %v538_v39 = vld [vmem:[#allocation3 + $0xb20] sm:$0xff] }
 0x255   :  { %7096 = vmatprep.subr.bf16.mxu0 %v12942_v41  ;;  %7260 = vmatprep.subr.bf16.mxu1 %v12944_v43  ;;  %v546_v40 = vld [vmem:[#allocation3 + $0xb60] sm:$0xff]  ;;  %v539_v41 = vld [vmem:[#allocation3 + $0xb28] sm:$0xff] }
 0x256   :  { %v547_v43 = vld [vmem:[#allocation3 + $0xb68] sm:$0xff]  ;;  %v13054_v9 = vcombine.high %v538_v39, %v546_v40  ;;  %v13053_v56 = vcombine.low %v538_v39, %v546_v40 }
 0x257   :  { %v13056_v48 = vcombine.high %v539_v41, %v547_v43  ;;  %v13055_v57 = vcombine.low %v539_v41, %v547_v43 }
 0x258   :  { %7097 = vmatpush1.bf16.msra.mxu0 %v12941_v49  ;;  %7261 = vmatpush1.bf16.msra.mxu1 %v12943_v50  ;;  %v554_v49 = vld [vmem:[#allocation3 + $0xba0] sm:$0xff] }
 0x259   :  { %7107 = vmatprep.subr.bf16.mxu0 %v12958_v53  ;;  %7271 = vmatprep.subr.bf16.mxu1 %v12960_v54  ;;  %v562_v50 = vld [vmem:[#allocation3 + $0xbe0] sm:$0xff]  ;;  %v555_v53 = vld [vmem:[#allocation3 + $0xba8] sm:$0xff] }
 0x25a   :  { %v563_v54 = vld [vmem:[#allocation3 + $0xbe8] sm:$0xff]  ;;  %v13070_v59 = vcombine.high %v554_v49, %v562_v50  ;;  %v13069_v1 = vcombine.low %v554_v49, %v562_v50 }
 0x25b   :  { %7099 = vmatmul.mubr.bf16.vlgmr.msra.gmra.mrb[8].mxu0 %v15647_v18  ;;  %7263 = vmatmul.mubr.bf16.vlgmr.msra.gmra.mrb[8].mxu1 %v15647_v18  ;;  %v13072_v60 = vcombine.high %v555_v53, %v563_v54  ;;  %v13071_v2 = vcombine.low %v555_v53, %v563_v54 }
 0x25c   :  { %7108 = vmatpush1.bf16.msra.mxu0 %v12957_v27  ;;  %7272 = vmatpush1.bf16.msra.mxu1 %v12959_v62  ;;  %v570_v27 = vld [vmem:[#allocation3 + $0xc20] sm:$0xff] }
 0x25d   :  { %7109 = vmatprep.subr.bf16.mxu0 %v12974_v63  ;;  %7273 = vmatprep.subr.bf16.mxu1 %v12976_v0  ;;  %v578_v62 = vld [vmem:[#allocation3 + $0xc60] sm:$0xff]  ;;  %v571_v63 = vld [vmem:[#allocation3 + $0xc28] sm:$0xff] }
 0x25e   :  { %7139 = vmatprep.mubr.bf16.mxu0 %v15657_v30  ;;  %7303 = vmatprep.mubr.bf16.mxu1 %v15657_v30  ;;  %v579_v0 = vld [vmem:[#allocation3 + $0xc68] sm:$0xff]  ;;  %v13086_v3 = vcombine.high %v570_v27, %v578_v62  ;;  %v13085_v11 = vcombine.low %v570_v27, %v578_v62 }
 0x25f   :  { %v13088_v4 = vcombine.high %v571_v63, %v579_v0  ;;  %v13087_v12 = vcombine.low %v571_v63, %v579_v0 }
 0x260   :  { %7110 = vmatpush1.bf16.msra.mxu0 %v12973_v6  ;;  %7274 = vmatpush1.bf16.msra.mxu1 %v12975_v7  ;;  %v586_v6 = vld [vmem:[#allocation3 + $0xca0] sm:$0xff] }
 0x261   :  { %7111 = vmatprep.subr.bf16.mxu0 %v12990_v8  ;;  %7275 = vmatprep.subr.bf16.mxu1 %v12992_v10  ;;  %v594_v7 = vld [vmem:[#allocation3 + $0xce0] sm:$0xff]  ;;  %v587_v8 = vld [vmem:[#allocation3 + $0xca8] sm:$0xff] }
 0x262   :  { %v595_v10 = vld [vmem:[#allocation3 + $0xce8] sm:$0xff]  ;;  %v13102_v13 = vcombine.high %v586_v6, %v594_v7  ;;  %v13101_v20 = vcombine.low %v586_v6, %v594_v7 }
 0x263   :  { %v13104_v15 = vcombine.high %v587_v8, %v595_v10  ;;  %v13103_v21 = vcombine.low %v587_v8, %v595_v10 }
 0x264   :  { %7112 = vmatpush1.bf16.msra.mxu0 %v12989_v16  ;;  %7276 = vmatpush1.bf16.msra.mxu1 %v12991_v42  ;;  %v602_v16 = vld [vmem:[#allocation3 + $0xd20] sm:$0xff] }
 0x265   :  { %7113 = vmatprep.subr.bf16.mxu0 %v13006_v17  ;;  %7277 = vmatprep.subr.bf16.mxu1 %v13008_v19  ;;  %v610_v42 = vld [vmem:[#allocation3 + $0xd60] sm:$0xff]  ;;  %v603_v17 = vld [vmem:[#allocation3 + $0xd28] sm:$0xff] }
 0x266   :  { %v611_v19 = vld [vmem:[#allocation3 + $0xd68] sm:$0xff]  ;;  %v13118_v23 = vcombine.high %v602_v16, %v610_v42  ;;  %v13117_v29 = vcombine.low %v602_v16, %v610_v42 }
 0x267   :  { %v13120_v24 = vcombine.high %v603_v17, %v611_v19  ;;  %v13119_v31 = vcombine.low %v603_v17, %v611_v19 }
 0x268   :  { %7114 = vmatpush1.bf16.msra.mxu0 %v13005_v26  ;;  %7278 = vmatpush1.bf16.msra.mxu1 %v13007_v14  ;;  %v618_v26 = vld [vmem:[#allocation3 + $0xda0] sm:$0xff] }
 0x269   :  { %7115 = vmatprep.subr.bf16.mxu0 %v13022_v25  ;;  %7279 = vmatprep.subr.bf16.mxu1 %v13024_v28  ;;  %v626_v14 = vld [vmem:[#allocation3 + $0xde0] sm:$0xff]  ;;  %v619_v25 = vld [vmem:[#allocation3 + $0xda8] sm:$0xff] }
 0x26a   :  { %v627_v28 = vld [vmem:[#allocation3 + $0xde8] sm:$0xff]  ;;  %v13134_v32 = vcombine.high %v618_v26, %v626_v14  ;;  %v13133_v39 = vcombine.low %v618_v26, %v626_v14 }
 0x26b   :  { %v13136_v33 = vcombine.high %v619_v25, %v627_v28  ;;  %v13135_v40 = vcombine.low %v619_v25, %v627_v28 }
 0x26c   :  { %7116 = vmatpush1.bf16.msra.mxu0 %v13021_v34  ;;  %7280 = vmatpush1.bf16.msra.mxu1 %v13023_v35  ;;  %v634_v34 = vld [vmem:[#allocation3 + $0xe20] sm:$0xff] }
 0x26d   :  { %7117 = vmatprep.subr.bf16.mxu0 %v13038_v36  ;;  %7281 = vmatprep.subr.bf16.mxu1 %v13040_v38  ;;  %v642_v35 = vld [vmem:[#allocation3 + $0xe60] sm:$0xff]  ;;  %v635_v36 = vld [vmem:[#allocation3 + $0xe28] sm:$0xff] }
 0x26e   :  { %v643_v38 = vld [vmem:[#allocation3 + $0xe68] sm:$0xff]  ;;  %v13150_v41 = vcombine.high %v634_v34, %v642_v35  ;;  %v13149_v49 = vcombine.low %v634_v34, %v642_v35 }
 0x26f   :  { %v13152_v43 = vcombine.high %v635_v36, %v643_v38  ;;  %v13151_v50 = vcombine.low %v635_v36, %v643_v38 }
 0x270   :  { %7118 = vmatpush1.bf16.msra.mxu0 %v13037_v44  ;;  %7282 = vmatpush1.bf16.msra.mxu1 %v13039_v45  ;;  %v650_v44 = vld [vmem:[#allocation3 + $0xea0] sm:$0xff] }
 0x271   :  { %7119 = vmatprep.subr.bf16.mxu0 %v13054_v9  ;;  %7283 = vmatprep.subr.bf16.mxu1 %v13056_v48  ;;  %v658_v45 = vld [vmem:[#allocation3 + $0xee0] sm:$0xff]  ;;  %v651_v9 = vld [vmem:[#allocation3 + $0xea8] sm:$0xff] }
 0x272   :  { %v659_v48 = vld [vmem:[#allocation3 + $0xee8] sm:$0xff]  ;;  %v13166_v53 = vcombine.high %v650_v44, %v658_v45  ;;  %v13165_v27 = vcombine.low %v650_v44, %v658_v45 }
 0x273   :  { %v13168_v54 = vcombine.high %v651_v9, %v659_v48  ;;  %v13167_v62 = vcombine.low %v651_v9, %v659_v48 }
 0x274   :  { %7120 = vmatpush1.bf16.msra.mxu0 %v13053_v56  ;;  %7284 = vmatpush1.bf16.msra.mxu1 %v13055_v57  ;;  %v666_v56 = vld [vmem:[#allocation3 + $0xf20] sm:$0xff] }
 0x275   :  { %7121 = vmatprep.subr.bf16.mxu0 %v13070_v59  ;;  %7285 = vmatprep.subr.bf16.mxu1 %v13072_v60  ;;  %v674_v57 = vld [vmem:[#allocation3 + $0xf60] sm:$0xff]  ;;  %v667_v59 = vld [vmem:[#allocation3 + $0xf28] sm:$0xff] }
 0x276   :  { %v675_v60 = vld [vmem:[#allocation3 + $0xf68] sm:$0xff]  ;;  %v13182_v63 = vcombine.high %v666_v56, %v674_v57  ;;  %v13181_v6 = vcombine.low %v666_v56, %v674_v57 }
 0x277   :  { %v13184_v0 = vcombine.high %v667_v59, %v675_v60  ;;  %v13183_v7 = vcombine.low %v667_v59, %v675_v60 }
 0x278   :  { %7122 = vmatpush1.bf16.msra.mxu0 %v13069_v1  ;;  %7286 = vmatpush1.bf16.msra.mxu1 %v13071_v2  ;;  %v682_v1 = vld [vmem:[#allocation3 + $0xfa0] sm:$0xff] }
 0x279   :  { %7123 = vmatprep.subr.bf16.mxu0 %v13086_v3  ;;  %7287 = vmatprep.subr.bf16.mxu1 %v13088_v4  ;;  %v690_v2 = vld [vmem:[#allocation3 + $0xfe0] sm:$0xff]  ;;  %v683_v3 = vld [vmem:[#allocation3 + $0xfa8] sm:$0xff] }
 0x27a   :  { %v691_v4 = vld [vmem:[#allocation3 + $0xfe8] sm:$0xff]  ;;  %v13198_v8 = vcombine.high %v682_v1, %v690_v2  ;;  %v13197_v16 = vcombine.low %v682_v1, %v690_v2 }
 0x27b   :  { %v13200_v10 = vcombine.high %v683_v3, %v691_v4  ;;  %v13199_v42 = vcombine.low %v683_v3, %v691_v4 }
 0x27c   :  { %7124 = vmatpush1.bf16.msra.mxu0 %v13085_v11  ;;  %7288 = vmatpush1.bf16.msra.mxu1 %v13087_v12  ;;  %v698_v11 = vld [vmem:[#allocation3 + $0x1020] sm:$0xff] }
 0x27d   :  { %7125 = vmatprep.subr.bf16.mxu0 %v13102_v13  ;;  %7289 = vmatprep.subr.bf16.mxu1 %v13104_v15  ;;  %v706_v12 = vld [vmem:[#allocation3 + $0x1060] sm:$0xff]  ;;  %v699_v13 = vld [vmem:[#allocation3 + $0x1028] sm:$0xff] }
 0x27e   :  { %v707_v15 = vld [vmem:[#allocation3 + $0x1068] sm:$0xff]  ;;  %v13214_v17 = vcombine.high %v698_v11, %v706_v12  ;;  %v13213_v26 = vcombine.low %v698_v11, %v706_v12 }
 0x27f   :  { %v13216_v19 = vcombine.high %v699_v13, %v707_v15  ;;  %v13215_v14 = vcombine.low %v699_v13, %v707_v15 }
 0x280   :  { %7126 = vmatpush1.bf16.msra.mxu0 %v13101_v20  ;;  %7290 = vmatpush1.bf16.msra.mxu1 %v13103_v21  ;;  %v714_v20 = vld [vmem:[#allocation3 + $0x10a0] sm:$0xff] }
 0x281   :  { %7127 = vmatprep.subr.bf16.mxu0 %v13118_v23  ;;  %7291 = vmatprep.subr.bf16.mxu1 %v13120_v24  ;;  %v722_v21 = vld [vmem:[#allocation3 + $0x10e0] sm:$0xff]  ;;  %v715_v23 = vld [vmem:[#allocation3 + $0x10a8] sm:$0xff] }
 0x282   :  { %v723_v24 = vld [vmem:[#allocation3 + $0x10e8] sm:$0xff]  ;;  %v13230_v25 = vcombine.high %v714_v20, %v722_v21  ;;  %v13229_v34 = vcombine.low %v714_v20, %v722_v21 }
 0x283   :  { %v13232_v28 = vcombine.high %v715_v23, %v723_v24  ;;  %v13231_v35 = vcombine.low %v715_v23, %v723_v24 }
 0x284   :  { %7128 = vmatpush1.bf16.msra.mxu0 %v13117_v29  ;;  %7292 = vmatpush1.bf16.msra.mxu1 %v13119_v31  ;;  %v730_v29 = vld [vmem:[#allocation3 + $0x1120] sm:$0xff] }
 0x285   :  { %7129 = vmatprep.subr.bf16.mxu0 %v13134_v32  ;;  %7293 = vmatprep.subr.bf16.mxu1 %v13136_v33  ;;  %v738_v31 = vld [vmem:[#allocation3 + $0x1160] sm:$0xff]  ;;  %v731_v32 = vld [vmem:[#allocation3 + $0x1128] sm:$0xff] }
 0x286   :  { %v739_v33 = vld [vmem:[#allocation3 + $0x1168] sm:$0xff]  ;;  %v13246_v36 = vcombine.high %v730_v29, %v738_v31  ;;  %v13245_v44 = vcombine.low %v730_v29, %v738_v31 }
 0x287   :  { %v13248_v38 = vcombine.high %v731_v32, %v739_v33  ;;  %v13247_v45 = vcombine.low %v731_v32, %v739_v33 }
 0x288   :  { %7130 = vmatpush1.bf16.msra.mxu0 %v13133_v39  ;;  %7294 = vmatpush1.bf16.msra.mxu1 %v13135_v40  ;;  %v746_v39 = vld [vmem:[#allocation3 + $0x11a0] sm:$0xff] }
 0x289   :  { %7131 = vmatprep.subr.bf16.mxu0 %v13150_v41  ;;  %7295 = vmatprep.subr.bf16.mxu1 %v13152_v43  ;;  %v754_v40 = vld [vmem:[#allocation3 + $0x11e0] sm:$0xff]  ;;  %v747_v41 = vld [vmem:[#allocation3 + $0x11a8] sm:$0xff] }
 0x28a   :  { %v755_v43 = vld [vmem:[#allocation3 + $0x11e8] sm:$0xff]  ;;  %v13262_v9 = vcombine.high %v746_v39, %v754_v40  ;;  %v13261_v56 = vcombine.low %v746_v39, %v754_v40 }
 0x28b   :  { %v13264_v48 = vcombine.high %v747_v41, %v755_v43  ;;  %v13263_v57 = vcombine.low %v747_v41, %v755_v43 }
 0x28c   :  { %7132 = vmatpush1.bf16.msra.mxu0 %v13149_v49  ;;  %7296 = vmatpush1.bf16.msra.mxu1 %v13151_v50  ;;  %v762_v49 = vld [vmem:[#allocation3 + $0x1220] sm:$0xff] }
 0x28d   :  { %7133 = vmatprep.subr.bf16.mxu0 %v13166_v53  ;;  %7297 = vmatprep.subr.bf16.mxu1 %v13168_v54  ;;  %v770_v50 = vld [vmem:[#allocation3 + $0x1260] sm:$0xff]  ;;  %v763_v53 = vld [vmem:[#allocation3 + $0x1228] sm:$0xff] }
 0x28e   :  { %v771_v54 = vld [vmem:[#allocation3 + $0x1268] sm:$0xff]  ;;  %v13278_v59 = vcombine.high %v762_v49, %v770_v50  ;;  %v13277_v1 = vcombine.low %v762_v49, %v770_v50 }
 0x28f   :  { %v13280_v60 = vcombine.high %v763_v53, %v771_v54  ;;  %v13279_v2 = vcombine.low %v763_v53, %v771_v54 }
 0x290   :  { %7134 = vmatpush1.bf16.msra.mxu0 %v13165_v27  ;;  %7298 = vmatpush1.bf16.msra.mxu1 %v13167_v62  ;;  %v778_v27 = vld [vmem:[#allocation3 + $0x12a0] sm:$0xff] }
 0x291   :  { %7135 = vmatprep.subr.bf16.mxu0 %v13182_v63  ;;  %7299 = vmatprep.subr.bf16.mxu1 %v13184_v0  ;;  %v786_v62 = vld [vmem:[#allocation3 + $0x12e0] sm:$0xff]  ;;  %v779_v63 = vld [vmem:[#allocation3 + $0x12a8] sm:$0xff] }
 0x292   :  { %v787_v0 = vld [vmem:[#allocation3 + $0x12e8] sm:$0xff]  ;;  %v13294_v3 = vcombine.high %v778_v27, %v786_v62  ;;  %v13293_v11 = vcombine.low %v778_v27, %v786_v62 }
 0x293   :  { %v13296_v4 = vcombine.high %v779_v63, %v787_v0  ;;  %v13295_v12 = vcombine.low %v779_v63, %v787_v0 }
 0x294   :  { %7136 = vmatpush1.bf16.msra.mxu0 %v13181_v6  ;;  %7300 = vmatpush1.bf16.msra.mxu1 %v13183_v7  ;;  %v794_v6 = vld [vmem:[#allocation3 + $0x1320] sm:$0xff] }
 0x295   :  { %7137 = vmatprep.subr.bf16.mxu0 %v13198_v8  ;;  %7301 = vmatprep.subr.bf16.mxu1 %v13200_v10  ;;  %v802_v7 = vld [vmem:[#allocation3 + $0x1360] sm:$0xff]  ;;  %v795_v8 = vld [vmem:[#allocation3 + $0x1328] sm:$0xff] }
 0x296   :  { %v803_v10 = vld [vmem:[#allocation3 + $0x1368] sm:$0xff]  ;;  %v13310_v13 = vcombine.high %v794_v6, %v802_v7  ;;  %v13309_v20 = vcombine.low %v794_v6, %v802_v7 }
 0x297   :  { %v13312_v15 = vcombine.high %v795_v8, %v803_v10  ;;  %v13311_v21 = vcombine.low %v795_v8, %v803_v10 }
 0x298   :  { %7138 = vmatpush1.bf16.msra.mxu0 %v13197_v16  ;;  %7302 = vmatpush1.bf16.msra.mxu1 %v13199_v42  ;;  %v810_v16 = vld [vmem:[#allocation3 + $0x13a0] sm:$0xff] }
 0x299   :  { %7148 = vmatprep.subr.bf16.mxu0 %v13214_v17  ;;  %7312 = vmatprep.subr.bf16.mxu1 %v13216_v19  ;;  %v818_v42 = vld [vmem:[#allocation3 + $0x13e0] sm:$0xff]  ;;  %v811_v17 = vld [vmem:[#allocation3 + $0x13a8] sm:$0xff] }
 0x29a   :  { %v819_v19 = vld [vmem:[#allocation3 + $0x13e8] sm:$0xff]  ;;  %v13326_v23 = vcombine.high %v810_v16, %v818_v42  ;;  %v13325_v29 = vcombine.low %v810_v16, %v818_v42 }
 0x29b   :  { %7140 = vmatmul.mubr.bf16.vlgmr.msra.gmra.mrb[8].mxu0 %v15672_v37  ;;  %7304 = vmatmul.mubr.bf16.vlgmr.msra.gmra.mrb[8].mxu1 %v15672_v37  ;;  %v13328_v24 = vcombine.high %v811_v17, %v819_v19  ;;  %v13327_v31 = vcombine.low %v811_v17, %v819_v19 }
 0x29c   :  { %7149 = vmatpush1.bf16.msra.mxu0 %v13213_v26  ;;  %7313 = vmatpush1.bf16.msra.mxu1 %v13215_v14  ;;  %v826_v26 = vld [vmem:[#allocation3 + $0x1420] sm:$0xff] }
 0x29d   :  { %7150 = vmatprep.subr.bf16.mxu0 %v13230_v25  ;;  %7314 = vmatprep.subr.bf16.mxu1 %v13232_v28  ;;  %v834_v14 = vld [vmem:[#allocation3 + $0x1460] sm:$0xff]  ;;  %v827_v25 = vld [vmem:[#allocation3 + $0x1428] sm:$0xff] }
 0x29e   :  { %7180 = vmatprep.mubr.bf16.mxu0 %v15674_v46  ;;  %7344 = vmatprep.mubr.bf16.mxu1 %v15674_v46  ;;  %v835_v28 = vld [vmem:[#allocation3 + $0x1468] sm:$0xff]  ;;  %v13342_v32 = vcombine.high %v826_v26, %v834_v14  ;;  %v13341_v39 = vcombine.low %v826_v26, %v834_v14 }
 0x29f   :  { %v13344_v33 = vcombine.high %v827_v25, %v835_v28  ;;  %v13343_v40 = vcombine.low %v827_v25, %v835_v28 }
 0x2a0   :  { %7151 = vmatpush1.bf16.msra.mxu0 %v13229_v34  ;;  %7315 = vmatpush1.bf16.msra.mxu1 %v13231_v35  ;;  %v842_v34 = vld [vmem:[#allocation3 + $0x14a0] sm:$0xff] }
 0x2a1   :  { %7152 = vmatprep.subr.bf16.mxu0 %v13246_v36  ;;  %7316 = vmatprep.subr.bf16.mxu1 %v13248_v38  ;;  %v850_v35 = vld [vmem:[#allocation3 + $0x14e0] sm:$0xff]  ;;  %v843_v36 = vld [vmem:[#allocation3 + $0x14a8] sm:$0xff] }
 0x2a2   :  { %v851_v38 = vld [vmem:[#allocation3 + $0x14e8] sm:$0xff]  ;;  %v13358_v41 = vcombine.high %v842_v34, %v850_v35  ;;  %v13357_v49 = vcombine.low %v842_v34, %v850_v35 }
 0x2a3   :  { %v13360_v43 = vcombine.high %v843_v36, %v851_v38  ;;  %v13359_v50 = vcombine.low %v843_v36, %v851_v38 }
 0x2a4   :  { %7153 = vmatpush1.bf16.msra.mxu0 %v13245_v44  ;;  %7317 = vmatpush1.bf16.msra.mxu1 %v13247_v45  ;;  %v858_v44 = vld [vmem:[#allocation3 + $0x1520] sm:$0xff] }
 0x2a5   :  { %7154 = vmatprep.subr.bf16.mxu0 %v13262_v9  ;;  %7318 = vmatprep.subr.bf16.mxu1 %v13264_v48  ;;  %v866_v45 = vld [vmem:[#allocation3 + $0x1560] sm:$0xff]  ;;  %v859_v9 = vld [vmem:[#allocation3 + $0x1528] sm:$0xff] }
 0x2a6   :  { %v867_v48 = vld [vmem:[#allocation3 + $0x1568] sm:$0xff]  ;;  %v13374_v53 = vcombine.high %v858_v44, %v866_v45  ;;  %v13373_v27 = vcombine.low %v858_v44, %v866_v45 }
 0x2a7   :  { %v13376_v54 = vcombine.high %v859_v9, %v867_v48  ;;  %v13375_v62 = vcombine.low %v859_v9, %v867_v48 }
 0x2a8   :  { %7155 = vmatpush1.bf16.msra.mxu0 %v13261_v56  ;;  %7319 = vmatpush1.bf16.msra.mxu1 %v13263_v57  ;;  %v874_v56 = vld [vmem:[#allocation3 + $0x15a0] sm:$0xff] }
 0x2a9   :  { %7156 = vmatprep.subr.bf16.mxu0 %v13278_v59  ;;  %7320 = vmatprep.subr.bf16.mxu1 %v13280_v60  ;;  %v882_v57 = vld [vmem:[#allocation3 + $0x15e0] sm:$0xff]  ;;  %v875_v59 = vld [vmem:[#allocation3 + $0x15a8] sm:$0xff] }
 0x2aa   :  { %v883_v60 = vld [vmem:[#allocation3 + $0x15e8] sm:$0xff]  ;;  %v13390_v63 = vcombine.high %v874_v56, %v882_v57  ;;  %v13389_v6 = vcombine.low %v874_v56, %v882_v57 }
 0x2ab   :  { %v13392_v0 = vcombine.high %v875_v59, %v883_v60  ;;  %v13391_v7 = vcombine.low %v875_v59, %v883_v60 }
 0x2ac   :  { %7157 = vmatpush1.bf16.msra.mxu0 %v13277_v1  ;;  %7321 = vmatpush1.bf16.msra.mxu1 %v13279_v2  ;;  %v890_v1 = vld [vmem:[#allocation3 + $0x1620] sm:$0xff] }
 0x2ad   :  { %7158 = vmatprep.subr.bf16.mxu0 %v13294_v3  ;;  %7322 = vmatprep.subr.bf16.mxu1 %v13296_v4  ;;  %v898_v2 = vld [vmem:[#allocation3 + $0x1660] sm:$0xff]  ;;  %v891_v3 = vld [vmem:[#allocation3 + $0x1628] sm:$0xff] }
 0x2ae   :  { %v899_v4 = vld [vmem:[#allocation3 + $0x1668] sm:$0xff]  ;;  %v13406_v8 = vcombine.high %v890_v1, %v898_v2  ;;  %v13405_v16 = vcombine.low %v890_v1, %v898_v2 }
 0x2af   :  { %v13408_v10 = vcombine.high %v891_v3, %v899_v4  ;;  %v13407_v42 = vcombine.low %v891_v3, %v899_v4 }
 0x2b0   :  { %7159 = vmatpush1.bf16.msra.mxu0 %v13293_v11  ;;  %7323 = vmatpush1.bf16.msra.mxu1 %v13295_v12  ;;  %v906_v11 = vld [vmem:[#allocation3 + $0x16a0] sm:$0xff] }
 0x2b1   :  { %7160 = vmatprep.subr.bf16.mxu0 %v13310_v13  ;;  %7324 = vmatprep.subr.bf16.mxu1 %v13312_v15  ;;  %v914_v12 = vld [vmem:[#allocation3 + $0x16e0] sm:$0xff]  ;;  %v907_v13 = vld [vmem:[#allocation3 + $0x16a8] sm:$0xff] }
 0x2b2   :  { %v915_v15 = vld [vmem:[#allocation3 + $0x16e8] sm:$0xff]  ;;  %v13422_v17 = vcombine.high %v906_v11, %v914_v12  ;;  %v13421_v26 = vcombine.low %v906_v11, %v914_v12 }
 0x2b3   :  { %v13424_v19 = vcombine.high %v907_v13, %v915_v15  ;;  %v13423_v14 = vcombine.low %v907_v13, %v915_v15 }
 0x2b4   :  { %7161 = vmatpush1.bf16.msra.mxu0 %v13309_v20  ;;  %7325 = vmatpush1.bf16.msra.mxu1 %v13311_v21  ;;  %v922_v20 = vld [vmem:[#allocation3 + $0x1720] sm:$0xff] }
 0x2b5   :  { %7162 = vmatprep.subr.bf16.mxu0 %v13326_v23  ;;  %7326 = vmatprep.subr.bf16.mxu1 %v13328_v24  ;;  %v930_v21 = vld [vmem:[#allocation3 + $0x1760] sm:$0xff]  ;;  %v923_v23 = vld [vmem:[#allocation3 + $0x1728] sm:$0xff] }
 0x2b6   :  { %v931_v24 = vld [vmem:[#allocation3 + $0x1768] sm:$0xff]  ;;  %v13438_v25 = vcombine.high %v922_v20, %v930_v21  ;;  %v13437_v34 = vcombine.low %v922_v20, %v930_v21 }
 0x2b7   :  { %v13440_v28 = vcombine.high %v923_v23, %v931_v24  ;;  %v13439_v35 = vcombine.low %v923_v23, %v931_v24 }
 0x2b8   :  { %7163 = vmatpush1.bf16.msra.mxu0 %v13325_v29  ;;  %7327 = vmatpush1.bf16.msra.mxu1 %v13327_v31  ;;  %v938_v29 = vld [vmem:[#allocation3 + $0x17a0] sm:$0xff] }
 0x2b9   :  { %7164 = vmatprep.subr.bf16.mxu0 %v13342_v32  ;;  %7328 = vmatprep.subr.bf16.mxu1 %v13344_v33  ;;  %v946_v31 = vld [vmem:[#allocation3 + $0x17e0] sm:$0xff]  ;;  %v939_v32 = vld [vmem:[#allocation3 + $0x17a8] sm:$0xff] }
 0x2ba   :  { %v947_v33 = vld [vmem:[#allocation3 + $0x17e8] sm:$0xff]  ;;  %v13454_v36 = vcombine.high %v938_v29, %v946_v31  ;;  %v13453_v44 = vcombine.low %v938_v29, %v946_v31 }
 0x2bb   :  { %v13456_v38 = vcombine.high %v939_v32, %v947_v33  ;;  %v13455_v45 = vcombine.low %v939_v32, %v947_v33 }
 0x2bc   :  { %7165 = vmatpush1.bf16.msra.mxu0 %v13341_v39  ;;  %7329 = vmatpush1.bf16.msra.mxu1 %v13343_v40  ;;  %v954_v39 = vld [vmem:[#allocation3 + $0x1820] sm:$0xff] }
 0x2bd   :  { %7166 = vmatprep.subr.bf16.mxu0 %v13358_v41  ;;  %7330 = vmatprep.subr.bf16.mxu1 %v13360_v43  ;;  %v962_v40 = vld [vmem:[#allocation3 + $0x1860] sm:$0xff]  ;;  %v955_v41 = vld [vmem:[#allocation3 + $0x1828] sm:$0xff] }
 0x2be   :  { %v963_v43 = vld [vmem:[#allocation3 + $0x1868] sm:$0xff]  ;;  %v13470_v9 = vcombine.high %v954_v39, %v962_v40  ;;  %v13469_v56 = vcombine.low %v954_v39, %v962_v40 }
 0x2bf   :  { %v13472_v48 = vcombine.high %v955_v41, %v963_v43  ;;  %v13471_v57 = vcombine.low %v955_v41, %v963_v43 }
 0x2c0   :  { %7167 = vmatpush1.bf16.msra.mxu0 %v13357_v49  ;;  %7331 = vmatpush1.bf16.msra.mxu1 %v13359_v50  ;;  %v970_v49 = vld [vmem:[#allocation3 + $0x18a0] sm:$0xff] }
 0x2c1   :  { %7168 = vmatprep.subr.bf16.mxu0 %v13374_v53  ;;  %7332 = vmatprep.subr.bf16.mxu1 %v13376_v54  ;;  %v978_v50 = vld [vmem:[#allocation3 + $0x18e0] sm:$0xff]  ;;  %v971_v53 = vld [vmem:[#allocation3 + $0x18a8] sm:$0xff] }
 0x2c2   :  { %v979_v54 = vld [vmem:[#allocation3 + $0x18e8] sm:$0xff]  ;;  %v13486_v59 = vcombine.high %v970_v49, %v978_v50  ;;  %v13485_v1 = vcombine.low %v970_v49, %v978_v50 }
 0x2c3   :  { %v13488_v60 = vcombine.high %v971_v53, %v979_v54  ;;  %v13487_v2 = vcombine.low %v971_v53, %v979_v54  ;;  %v1067_v49 = vld [vmem:[#allocation3 + $0x1ba8] sm:$0xff] }
 0x2c4   :  { %7169 = vmatpush1.bf16.msra.mxu0 %v13373_v27  ;;  %7333 = vmatpush1.bf16.msra.mxu1 %v13375_v62  ;;  %v986_v27 = vld [vmem:[#allocation3 + $0x1920] sm:$0xff]  ;;  %v1075_v50 = vld [vmem:[#allocation3 + $0x1be8] sm:$0xff] }
 0x2c5   :  { %7170 = vmatprep.subr.bf16.mxu0 %v13390_v63  ;;  %7334 = vmatprep.subr.bf16.mxu1 %v13392_v0  ;;  %v994_v62 = vld [vmem:[#allocation3 + $0x1960] sm:$0xff]  ;;  %v987_v63 = vld [vmem:[#allocation3 + $0x1928] sm:$0xff] }
 0x2c6   :  { %v995_v0 = vld [vmem:[#allocation3 + $0x1968] sm:$0xff]  ;;  %v13502_v3 = vcombine.high %v986_v27, %v994_v62  ;;  %v13501_v11 = vcombine.low %v986_v27, %v994_v62 }
 0x2c7   :  { %v13504_v4 = vcombine.high %v987_v63, %v995_v0  ;;  %v13503_v12 = vcombine.low %v987_v63, %v995_v0  ;;  %v13584_v63 = vcombine.high %v1067_v49, %v1075_v50  ;;  %v1082_v0 = vld [vmem:[#allocation3 + $0x1c20] sm:$0xff] }
 0x2c8   :  { %7171 = vmatpush1.bf16.msra.mxu0 %v13389_v6  ;;  %7335 = vmatpush1.bf16.msra.mxu1 %v13391_v7  ;;  %v1002_v6 = vld [vmem:[#allocation3 + $0x19a0] sm:$0xff] }
 0x2c9   :  { %7172 = vmatprep.subr.bf16.mxu0 %v13406_v8  ;;  %7336 = vmatprep.subr.bf16.mxu1 %v13408_v10  ;;  %v1010_v7 = vld [vmem:[#allocation3 + $0x19e0] sm:$0xff]  ;;  %v1003_v8 = vld [vmem:[#allocation3 + $0x19a8] sm:$0xff] }
 0x2ca   :  { %v1011_v10 = vld [vmem:[#allocation3 + $0x19e8] sm:$0xff]  ;;  %v13518_v13 = vcombine.high %v1002_v6, %v1010_v7  ;;  %v13517_v20 = vcombine.low %v1002_v6, %v1010_v7  ;;  %v13583_v7 = vcombine.low %v1067_v49, %v1075_v50 }
 0x2cb   :  { %v13520_v15 = vcombine.high %v1003_v8, %v1011_v10  ;;  %v13519_v21 = vcombine.low %v1003_v8, %v1011_v10 }
 0x2cc   :  { %7173 = vmatpush1.bf16.msra.mxu0 %v13405_v16  ;;  %7337 = vmatpush1.bf16.msra.mxu1 %v13407_v42  ;;  %v1018_v16 = vld [vmem:[#allocation3 + $0x1a20] sm:$0xff] }
 0x2cd   :  { %7174 = vmatprep.subr.bf16.mxu0 %v13422_v17  ;;  %7338 = vmatprep.subr.bf16.mxu1 %v13424_v19  ;;  %v1026_v42 = vld [vmem:[#allocation3 + $0x1a60] sm:$0xff]  ;;  %v1019_v17 = vld [vmem:[#allocation3 + $0x1a28] sm:$0xff] }
 0x2ce   :  { %v1027_v19 = vld [vmem:[#allocation3 + $0x1a68] sm:$0xff]  ;;  %v13534_v23 = vcombine.high %v1018_v16, %v1026_v42  ;;  %v13533_v29 = vcombine.low %v1018_v16, %v1026_v42 }
 0x2cf   :  { %v13536_v24 = vcombine.high %v1019_v17, %v1027_v19  ;;  %v13535_v31 = vcombine.low %v1019_v17, %v1027_v19 }
 0x2d0   :  { %7175 = vmatpush1.bf16.msra.mxu0 %v13421_v26  ;;  %7339 = vmatpush1.bf16.msra.mxu1 %v13423_v14  ;;  %v1034_v26 = vld [vmem:[#allocation3 + $0x1aa0] sm:$0xff] }
 0x2d1   :  { %7176 = vmatprep.subr.bf16.mxu0 %v13438_v25  ;;  %7340 = vmatprep.subr.bf16.mxu1 %v13440_v28  ;;  %v1042_v14 = vld [vmem:[#allocation3 + $0x1ae0] sm:$0xff]  ;;  %v1035_v25 = vld [vmem:[#allocation3 + $0x1aa8] sm:$0xff] }
 0x2d2   :  { %v1043_v28 = vld [vmem:[#allocation3 + $0x1ae8] sm:$0xff]  ;;  %v13550_v32 = vcombine.high %v1034_v26, %v1042_v14  ;;  %v13549_v39 = vcombine.low %v1034_v26, %v1042_v14 }
 0x2d3   :  { %v13552_v33 = vcombine.high %v1035_v25, %v1043_v28  ;;  %v13551_v40 = vcombine.low %v1035_v25, %v1043_v28 }
 0x2d4   :  { %7177 = vmatpush1.bf16.msra.mxu0 %v13437_v34  ;;  %7341 = vmatpush1.bf16.msra.mxu1 %v13439_v35  ;;  %v1050_v34 = vld [vmem:[#allocation3 + $0x1b20] sm:$0xff] }
 0x2d5   :  { %7178 = vmatprep.subr.bf16.mxu0 %v13454_v36  ;;  %7342 = vmatprep.subr.bf16.mxu1 %v13456_v38  ;;  %v1058_v35 = vld [vmem:[#allocation3 + $0x1b60] sm:$0xff]  ;;  %v1051_v36 = vld [vmem:[#allocation3 + $0x1b28] sm:$0xff] }
 0x2d6   :  { %v1059_v38 = vld [vmem:[#allocation3 + $0x1b68] sm:$0xff]  ;;  %v13566_v41 = vcombine.high %v1050_v34, %v1058_v35 }
 0x2d8   :  { %7179 = vmatpush1.bf16.msra.mxu0 %v13453_v44  ;;  %7343 = vmatpush1.bf16.msra.mxu1 %v13455_v45  ;;  %v13568_v44 = vcombine.high %v1051_v36, %v1059_v38  ;;  %v1066_v45 = vld [vmem:[#allocation3 + $0x1ba0] sm:$0xff] }
 0x2d9   :  { %7189 = vmatprep.subr.bf16.mxu0 %v13470_v9  ;;  %7353 = vmatprep.subr.bf16.mxu1 %v13472_v48  ;;  %v1074_v9 = vld [vmem:[#allocation3 + $0x1be0] sm:$0xff] }
 0x2da   :  { %v13582_v27 = vcombine.high %v1066_v45, %v1074_v9  ;;  %v13581_v6 = vcombine.low %v1066_v45, %v1074_v9 }
 0x2db   :  { %7181 = vmatmul.mubr.bf16.vlgmr.msra.gmra.mrb[8].mxu0 %v15686_v52  ;;  %7345 = vmatmul.mubr.bf16.vlgmr.msra.gmra.mrb[8].mxu1 %v15686_v52 }
 0x2dc   :  { %7190 = vmatpush1.bf16.msra.mxu0 %v13469_v56  ;;  %7354 = vmatpush1.bf16.msra.mxu1 %v13471_v57  ;;  %v13565_v56 = vcombine.low %v1050_v34, %v1058_v35 }
 0x2dd   :  { %7191 = vmatprep.subr.bf16.mxu0 %v13486_v59  ;;  %7355 = vmatprep.subr.bf16.mxu1 %v13488_v60  ;;  %v13567_v60 = vcombine.low %v1051_v36, %v1059_v38 }
 0x2de   :  { %7221 = vmatprep.mubr.bf16.mxu0 %v15688_v61  ;;  %7385 = vmatprep.mubr.bf16.mxu1 %v15688_v61 }
 0x2e0   :  { %7192 = vmatpush1.bf16.msra.mxu0 %v13485_v1  ;;  %7356 = vmatpush1.bf16.msra.mxu1 %v13487_v2  ;;  %v1090_v1 = vld [vmem:[#allocation3 + $0x1c60] sm:$0xff] }
 0x2e1   :  { %7193 = vmatprep.subr.bf16.mxu0 %v13502_v3  ;;  %7357 = vmatprep.subr.bf16.mxu1 %v13504_v4  ;;  %v1083_v3 = vld [vmem:[#allocation3 + $0x1c28] sm:$0xff]  ;;  %v13598_v8 = vcombine.high %v1082_v0, %v1090_v1  ;;  %v13597_v16 = vcombine.low %v1082_v0, %v1090_v1  ;;  %v1178_v1 = vld [vmem:[#allocation3 + $0x1f20] sm:$0xff] }
 0x2e2   :  { %v1091_v4 = vld [vmem:[#allocation3 + $0x1c68] sm:$0xff] }
 0x2e3   :  { %v13600_v10 = vcombine.high %v1083_v3, %v1091_v4  ;;  %v13599_v42 = vcombine.low %v1083_v3, %v1091_v4  ;;  %v1179_v3 = vld [vmem:[#allocation3 + $0x1f28] sm:$0xff] }
 0x2e4   :  { %7194 = vmatpush1.bf16.msra.mxu0 %v13501_v11  ;;  %7358 = vmatpush1.bf16.msra.mxu1 %v13503_v12  ;;  %v1098_v11 = vld [vmem:[#allocation3 + $0x1ca0] sm:$0xff]  ;;  %v1187_v4 = vld [vmem:[#allocation3 + $0x1f68] sm:$0xff] }
 0x2e5   :  { %7195 = vmatprep.subr.bf16.mxu0 %v13518_v13  ;;  %7359 = vmatprep.subr.bf16.mxu1 %v13520_v15  ;;  %v1106_v12 = vld [vmem:[#allocation3 + $0x1ce0] sm:$0xff]  ;;  %v1099_v13 = vld [vmem:[#allocation3 + $0x1ca8] sm:$0xff] }
 0x2e6   :  { %v1107_v15 = vld [vmem:[#allocation3 + $0x1ce8] sm:$0xff]  ;;  %v13614_v17 = vcombine.high %v1098_v11, %v1106_v12  ;;  %v13613_v26 = vcombine.low %v1098_v11, %v1106_v12  ;;  %v1194_v11 = vld [vmem:[#allocation3 + $0x1fa0] sm:$0xff] }
 0x2e7   :  { %v13616_v19 = vcombine.high %v1099_v13, %v1107_v15  ;;  %v13615_v14 = vcombine.low %v1099_v13, %v1107_v15  ;;  %v1202_v12 = vld [vmem:[#allocation3 + $0x1fe0] sm:$0xff]  ;;  %v1195_v13 = vld [vmem:[#allocation3 + $0x1fa8] sm:$0xff] }
 0x2e8   :  { %7196 = vmatpush1.bf16.msra.mxu0 %v13517_v20  ;;  %7360 = vmatpush1.bf16.msra.mxu1 %v13519_v21  ;;  %v1114_v20 = vld [vmem:[#allocation3 + $0x1d20] sm:$0xff]  ;;  %v1203_v15 = vld [vmem:[#allocation3 + $0x1fe8] sm:$0xff] }
 0x2e9   :  { %7197 = vmatprep.subr.bf16.mxu0 %v13534_v23  ;;  %7361 = vmatprep.subr.bf16.mxu1 %v13536_v24  ;;  %v1122_v21 = vld [vmem:[#allocation3 + $0x1d60] sm:$0xff]  ;;  %v1115_v23 = vld [vmem:[#allocation3 + $0x1d28] sm:$0xff] }
 0x2ea   :  { %v1123_v24 = vld [vmem:[#allocation3 + $0x1d68] sm:$0xff]  ;;  %v13630_v25 = vcombine.high %v1114_v20, %v1122_v21  ;;  %v13629_v34 = vcombine.low %v1114_v20, %v1122_v21  ;;  %v188_v20 = vld [vmem:[#allocation3 + $0x30] sm:$0xff] }
 0x2eb   :  { %v13632_v28 = vcombine.high %v1115_v23, %v1123_v24  ;;  %v13631_v35 = vcombine.low %v1115_v23, %v1123_v24  ;;  %v196_v21 = vld [vmem:[#allocation3 + $0x70] sm:$0xff]  ;;  %v189_v23 = vld [vmem:[#allocation3 + $0x38] sm:$0xff] }
 0x2ec   :  { %7198 = vmatpush1.bf16.msra.mxu0 %v13533_v29  ;;  %7362 = vmatpush1.bf16.msra.mxu1 %v13535_v31  ;;  %v1130_v29 = vld [vmem:[#allocation3 + $0x1da0] sm:$0xff]  ;;  %v197_v24 = vld [vmem:[#allocation3 + $0x78] sm:$0xff] }
 0x2ed   :  { %7199 = vmatprep.subr.bf16.mxu0 %v13550_v32  ;;  %7363 = vmatprep.subr.bf16.mxu1 %v13552_v33  ;;  %v1138_v31 = vld [vmem:[#allocation3 + $0x1de0] sm:$0xff]  ;;  %v1131_v32 = vld [vmem:[#allocation3 + $0x1da8] sm:$0xff] }
 0x2ee   :  { %v15738_v43 = vpop.f32.mrb[4].mxu0  ;;  %v15742_v53 = vpop.f32.mrb[4].mxu1  ;;  %v1139_v33 = vld [vmem:[#allocation3 + $0x1de8] sm:$0xff]  ;;  %v13646_v36 = vcombine.high %v1130_v29, %v1138_v31  ;;  %v13645_v45 = vcombine.low %v1130_v29, %v1138_v31  ;;  %v204_v29 = vld [vmem:[#allocation3 + $0xb0] sm:$0xff] }
 0x2ef   :  { %v15740_v48 = vpop.f32.mrb[5].mxu0  ;;  %v15744_v57 = vpop.f32.mrb[5].mxu1  ;;  %v13648_v38 = vcombine.high %v1131_v32, %v1139_v33  ;;  %v13647_v9 = vcombine.low %v1131_v32, %v1139_v33  ;;  %v212_v31 = vld [vmem:[#allocation3 + $0xf0] sm:$0xff]  ;;  %v205_v32 = vld [vmem:[#allocation3 + $0xb8] sm:$0xff] }
 0x2f0   :  { %v6899_v54 = vpop.f32.mrb[6].mxu0  ;;  %7200 = vmatpush1.bf16.msra.mxu0 %v13549_v39  ;;  %7364 = vmatpush1.bf16.msra.mxu1 %v13551_v40  ;;  %v7063_v62 = vpop.f32.mrb[6].mxu1  ;;  %v1146_v39 = vld [vmem:[#allocation3 + $0x1e20] sm:$0xff]  ;;  %v213_v33 = vld [vmem:[#allocation3 + $0xf8] sm:$0xff] }
 0x2f1   :  { %v6900_v59 = vpop.f32.mrb[7].mxu0  ;;  %7201 = vmatprep.subr.bf16.mxu0 %v13566_v41  ;;  %7365 = vmatprep.subr.bf16.mxu1 %v13568_v44  ;;  %v7064_v2 = vpop.f32.mrb[7].mxu1  ;;  %v1154_v40 = vld [vmem:[#allocation3 + $0x1e60] sm:$0xff]  ;;  %v1147_v41 = vld [vmem:[#allocation3 + $0x1e28] sm:$0xff] }
 0x2f2   :  { %v1155_v44 = vld [vmem:[#allocation3 + $0x1e68] sm:$0xff]  ;;  %v13662_v49 = vcombine.high %v1146_v39, %v1154_v40  ;;  %v1162_v54 = vld [vmem:[#allocation3 + $0x1ea0] sm:$0xff] }
 0x2f3   :  { %v13664_v50 = vcombine.high %v1147_v41, %v1155_v44  ;;  %v1163_v59 = vld [vmem:[#allocation3 + $0x1ea8] sm:$0xff]  ;;  %v13663_v62 = vcombine.low %v1147_v41, %v1155_v44  ;;  %v1186_v2 = vld [vmem:[#allocation3 + $0x1f60] sm:$0xff]  ;;  %v221_v41 = vld [vmem:[#allocation3 + $0x138] sm:$0xff] }
 0x2f4   :  { %7202 = vmatpush1.bf16.msra.mxu0 %v13565_v56  ;;  %7366 = vmatpush1.bf16.msra.mxu1 %v13567_v60  ;;  %v1170_v56 = vld [vmem:[#allocation3 + $0x1ee0] sm:$0xff]  ;;  %v1171_v60 = vld [vmem:[#allocation3 + $0x1ee8] sm:$0xff]  ;;  %v229_v44 = vld [vmem:[#allocation3 + $0x178] sm:$0xff] }
 0x2f5   :  { %7203 = vmatprep.subr.bf16.mxu0 %v13582_v27  ;;  %7367 = vmatprep.subr.bf16.mxu1 %v13584_v63  ;;  %v13661_v27 = vcombine.low %v1146_v39, %v1154_v40  ;;  %v13678_v63 = vcombine.high %v1162_v54, %v1170_v56  ;;  %v13680_v0 = vcombine.high %v1163_v59, %v1171_v60  ;;  %v220_v39 = vld [vmem:[#allocation3 + $0x130] sm:$0xff] }
 0x2f6   :  { %v228_v40 = vld [vmem:[#allocation3 + $0x170] sm:$0xff] }
 0x2f8   :  { %7204 = vmatpush1.bf16.msra.mxu0 %v13581_v6  ;;  %7368 = vmatpush1.bf16.msra.mxu1 %v13583_v7  ;;  %v13677_v6 = vcombine.low %v1162_v54, %v1170_v56  ;;  %v13679_v7 = vcombine.low %v1163_v59, %v1171_v60  ;;  %v236_v54 = vld [vmem:[#allocation3 + $0x1b0] sm:$0xff]  ;;  %v237_v59 = vld [vmem:[#allocation3 + $0x1b8] sm:$0xff] }
 0x2f9   :  { %7205 = vmatprep.subr.bf16.mxu0 %v13598_v8  ;;  %7369 = vmatprep.subr.bf16.mxu1 %v13600_v10  ;;  %v13694_v8 = vcombine.high %v1178_v1, %v1186_v2  ;;  %v13696_v10 = vcombine.high %v1179_v3, %v1187_v4  ;;  %v244_v56 = vld [vmem:[#allocation3 + $0x1f0] sm:$0xff]  ;;  %v245_v60 = vld [vmem:[#allocation3 + $0x1f8] sm:$0xff] }
 0x2fc   :  { %7206 = vmatpush1.bf16.msra.mxu0 %v13597_v16  ;;  %7370 = vmatpush1.bf16.msra.mxu1 %v13599_v42  ;;  %v13693_v16 = vcombine.low %v1178_v1, %v1186_v2  ;;  %v13695_v42 = vcombine.low %v1179_v3, %v1187_v4  ;;  %v252_v1 = vld [vmem:[#allocation3 + $0x230] sm:$0xff]  ;;  %v253_v3 = vld [vmem:[#allocation3 + $0x238] sm:$0xff] }
 0x2fd   :  { %7207 = vmatprep.subr.bf16.mxu0 %v13614_v17  ;;  %7371 = vmatprep.subr.bf16.mxu1 %v13616_v19  ;;  %v13710_v17 = vcombine.high %v1194_v11, %v1202_v12  ;;  %v13712_v19 = vcombine.high %v1195_v13, %v1203_v15  ;;  %v260_v2 = vld [vmem:[#allocation3 + $0x270] sm:$0xff]  ;;  %v261_v4 = vld [vmem:[#allocation3 + $0x278] sm:$0xff] }
 0x300   :  { %7208 = vmatpush1.bf16.msra.mxu0 %v13613_v26  ;;  %7372 = vmatpush1.bf16.msra.mxu1 %v13615_v14  ;;  %v13709_v26 = vcombine.low %v1194_v11, %v1202_v12  ;;  %v13711_v14 = vcombine.low %v1195_v13, %v1203_v15  ;;  %v276_v11 = vld [vmem:[#allocation3 + $0x2f0] sm:$0xff]  ;;  %v269_v12 = vld [vmem:[#allocation3 + $0x2b8] sm:$0xff]  ;;  %v12769_v15 = vcombine.low %v252_v1, %v260_v2 }
 0x301   :  { %7209 = vmatprep.subr.bf16.mxu0 %v13630_v25  ;;  %7373 = vmatprep.subr.bf16.mxu1 %v13632_v28  ;;  %v12706_v25 = vcombine.high %v188_v20, %v196_v21  ;;  %v12708_v28 = vcombine.high %v189_v23, %v197_v24  ;;  %v277_v13 = vld [vmem:[#allocation3 + $0x2f8] sm:$0xff] }
 0x304   :  { %7210 = vmatpush1.bf16.msra.mxu0 %v13629_v34  ;;  %7374 = vmatpush1.bf16.msra.mxu1 %v13631_v35  ;;  %v12705_v34 = vcombine.low %v188_v20, %v196_v21  ;;  %v12707_v35 = vcombine.low %v189_v23, %v197_v24  ;;  %v292_v20 = vld [vmem:[#allocation3 + $0x370] sm:$0xff]  ;;  %v285_v21 = vld [vmem:[#allocation3 + $0x338] sm:$0xff] }
 0x305   :  { %7211 = vmatprep.subr.bf16.mxu0 %v13646_v36  ;;  %7375 = vmatprep.subr.bf16.mxu1 %v13648_v38  ;;  %v12722_v36 = vcombine.high %v204_v29, %v212_v31  ;;  %v12724_v38 = vcombine.high %v205_v32, %v213_v33  ;;  %v293_v23 = vld [vmem:[#allocation3 + $0x378] sm:$0xff] }
 0x308   :  { %7212 = vmatpush1.bf16.msra.mxu0 %v13645_v45  ;;  %7376 = vmatpush1.bf16.msra.mxu1 %v13647_v9  ;;  %v12721_v45 = vcombine.low %v204_v29, %v212_v31  ;;  %v12723_v9 = vcombine.low %v205_v32, %v213_v33  ;;  %v308_v29 = vld [vmem:[#allocation3 + $0x3f0] sm:$0xff]  ;;  %v301_v31 = vld [vmem:[#allocation3 + $0x3b8] sm:$0xff] }
 0x309   :  { %7213 = vmatprep.subr.bf16.mxu0 %v13662_v49  ;;  %7377 = vmatprep.subr.bf16.mxu1 %v13664_v50  ;;  %v12738_v49 = vcombine.high %v220_v39, %v228_v40  ;;  %v12740_v50 = vcombine.high %v221_v41, %v229_v44  ;;  %v309_v32 = vld [vmem:[#allocation3 + $0x3f8] sm:$0xff] }
 0x30c   :  { %7214 = vmatpush1.bf16.msra.mxu0 %v13661_v27  ;;  %7378 = vmatpush1.bf16.msra.mxu1 %v13663_v62  ;;  %v12737_v27 = vcombine.low %v220_v39, %v228_v40  ;;  %v12739_v62 = vcombine.low %v221_v41, %v229_v44  ;;  %v324_v39 = vld [vmem:[#allocation3 + $0x470] sm:$0xff]  ;;  %v317_v40 = vld [vmem:[#allocation3 + $0x438] sm:$0xff] }
 0x30d   :  { %7215 = vmatprep.subr.bf16.mxu0 %v13678_v63  ;;  %7379 = vmatprep.subr.bf16.mxu1 %v13680_v0  ;;  %v12754_v63 = vcombine.high %v236_v54, %v244_v56  ;;  %v12756_v0 = vcombine.high %v237_v59, %v245_v60  ;;  %v325_v41 = vld [vmem:[#allocation3 + $0x478] sm:$0xff] }
 0x310   :  { %7216 = vmatpush1.bf16.msra.mxu0 %v13677_v6  ;;  %7380 = vmatpush1.bf16.msra.mxu1 %v13679_v7  ;;  %v12753_v6 = vcombine.low %v236_v54, %v244_v56  ;;  %v12755_v7 = vcombine.low %v237_v59, %v245_v60  ;;  %v340_v54 = vld [vmem:[#allocation3 + $0x4f0] sm:$0xff]  ;;  %v333_v56 = vld [vmem:[#allocation3 + $0x4b8] sm:$0xff] }
 0x311   :  { %7217 = vmatprep.subr.bf16.mxu0 %v13694_v8  ;;  %7381 = vmatprep.subr.bf16.mxu1 %v13696_v10  ;;  %v12770_v8 = vcombine.high %v252_v1, %v260_v2  ;;  %v268_v10 = vld [vmem:[#allocation3 + $0x2b0] sm:$0xff]  ;;  %v341_v59 = vld [vmem:[#allocation3 + $0x4f8] sm:$0xff] }
 0x312   :  { %v12785_v24 = vcombine.low %v268_v10, %v276_v11  ;;  %v356_v1 = vld [vmem:[#allocation3 + $0x570] sm:$0xff]  ;;  %v349_v2 = vld [vmem:[#allocation3 + $0x538] sm:$0xff] }
 0x314   :  { %7218 = vmatpush1.bf16.msra.mxu0 %v13693_v16  ;;  %7382 = vmatpush1.bf16.msra.mxu1 %v13695_v42  ;;  %v12771_v16 = vcombine.low %v253_v3, %v261_v4  ;;  %v12786_v42 = vcombine.high %v268_v10, %v276_v11  ;;  %v372_v10 = vld [vmem:[#allocation3 + $0x5f0] sm:$0xff]  ;;  %v365_v11 = vld [vmem:[#allocation3 + $0x5b8] sm:$0xff] }
 0x315   :  { %7219 = vmatprep.subr.bf16.mxu0 %v13710_v17  ;;  %7383 = vmatprep.subr.bf16.mxu1 %v13712_v19  ;;  %v12788_v17 = vcombine.high %v269_v12, %v277_v13  ;;  %v284_v19 = vld [vmem:[#allocation3 + $0x330] sm:$0xff] }
 0x316   :  { %v12801_v33 = vcombine.low %v284_v19, %v292_v20 }
 0x318   :  { %7220 = vmatpush1.bf16.msra.mxu0 %v13709_v26  ;;  %7384 = vmatpush1.bf16.msra.mxu1 %v13711_v14  ;;  %v12787_v26 = vcombine.low %v269_v12, %v277_v13  ;;  %v12802_v14 = vcombine.high %v284_v19, %v292_v20  ;;  %v373_v12 = vld [vmem:[#allocation3 + $0x5f8] sm:$0xff]  ;;  %v388_v19 = vld [vmem:[#allocation3 + $0x670] sm:$0xff] }
 0x319   :  { %7394 = vmatprep.subr.bf16.mxu0 %v12706_v25  ;;  %7558 = vmatprep.subr.bf16.mxu1 %v12708_v28  ;;  %v12804_v25 = vcombine.high %v285_v21, %v293_v23  ;;  %v300_v28 = vld [vmem:[#allocation3 + $0x3b0] sm:$0xff]  ;;  %v381_v20 = vld [vmem:[#allocation3 + $0x638] sm:$0xff] }
 0x31a   :  { %v12817_v44 = vcombine.low %v300_v28, %v308_v29 }
 0x31b   :  { %7222 = vmatmul.mubr.bf16.vlgmr.msra.gmra.mrb[8].mxu0 %v15696_v5  ;;  %7386 = vmatmul.mubr.bf16.vlgmr.msra.gmra.mrb[8].mxu1 %v15696_v5 }
 0x31c   :  { %7395 = vmatpush1.bf16.msra.mxu0 %v12705_v34  ;;  %7559 = vmatpush1.bf16.msra.mxu1 %v12707_v35  ;;  %v12803_v34 = vcombine.low %v285_v21, %v293_v23  ;;  %v12818_v35 = vcombine.high %v300_v28, %v308_v29  ;;  %v389_v21 = vld [vmem:[#allocation3 + $0x678] sm:$0xff]  ;;  %v404_v28 = vld [vmem:[#allocation3 + $0x6f0] sm:$0xff] }
 0x31d   :  { %7396 = vmatprep.subr.bf16.mxu0 %v12722_v36  ;;  %7560 = vmatprep.subr.bf16.mxu1 %v12724_v38  ;;  %v12820_v36 = vcombine.high %v301_v31, %v309_v32  ;;  %v316_v38 = vld [vmem:[#allocation3 + $0x430] sm:$0xff]  ;;  %v397_v29 = vld [vmem:[#allocation3 + $0x6b8] sm:$0xff] }
 0x31e   :  { %7426 = vmatprep.mubr.bf16.mxu0 %v15637_v22  ;;  %7590 = vmatprep.mubr.bf16.mxu1 %v15637_v22  ;;  %v12772_v22 = vcombine.high %v253_v3, %v261_v4  ;;  %v12833_v60 = vcombine.low %v316_v38, %v324_v39  ;;  %v357_v3 = vld [vmem:[#allocation3 + $0x578] sm:$0xff] }
 0x320   :  { %7397 = vmatpush1.bf16.msra.mxu0 %v12721_v45  ;;  %7561 = vmatpush1.bf16.msra.mxu1 %v12723_v9  ;;  %v12819_v45 = vcombine.low %v301_v31, %v309_v32  ;;  %v12834_v9 = vcombine.high %v316_v38, %v324_v39  ;;  %v405_v31 = vld [vmem:[#allocation3 + $0x6f8] sm:$0xff]  ;;  %v420_v38 = vld [vmem:[#allocation3 + $0x770] sm:$0xff] }
 0x321   :  { %7398 = vmatprep.subr.bf16.mxu0 %v12738_v49  ;;  %7562 = vmatprep.subr.bf16.mxu1 %v12740_v50  ;;  %v12836_v49 = vcombine.high %v317_v40, %v325_v41  ;;  %v332_v50 = vld [vmem:[#allocation3 + $0x4b0] sm:$0xff]  ;;  %v413_v39 = vld [vmem:[#allocation3 + $0x738] sm:$0xff] }
 0x322   :  { %v12849_v4 = vcombine.low %v332_v50, %v340_v54 }
 0x324   :  { %7399 = vmatpush1.bf16.msra.mxu0 %v12737_v27  ;;  %7563 = vmatpush1.bf16.msra.mxu1 %v12739_v62  ;;  %v12835_v27 = vcombine.low %v317_v40, %v325_v41  ;;  %v12850_v62 = vcombine.high %v332_v50, %v340_v54  ;;  %v421_v40 = vld [vmem:[#allocation3 + $0x778] sm:$0xff]  ;;  %v436_v50 = vld [vmem:[#allocation3 + $0x7f0] sm:$0xff] }
 0x325   :  { %7400 = vmatprep.subr.bf16.mxu0 %v12754_v63  ;;  %7564 = vmatprep.subr.bf16.mxu1 %v12756_v0  ;;  %v12852_v63 = vcombine.high %v333_v56, %v341_v59  ;;  %v348_v0 = vld [vmem:[#allocation3 + $0x530] sm:$0xff]  ;;  %v429_v54 = vld [vmem:[#allocation3 + $0x7b8] sm:$0xff] }
 0x326   :  { %v12865_v13 = vcombine.low %v348_v0, %v356_v1 }
 0x328   :  { %7401 = vmatpush1.bf16.msra.mxu0 %v12753_v6  ;;  %7565 = vmatpush1.bf16.msra.mxu1 %v12755_v7  ;;  %v12851_v6 = vcombine.low %v333_v56, %v341_v59  ;;  %v12866_v7 = vcombine.high %v348_v0, %v356_v1  ;;  %v437_v56 = vld [vmem:[#allocation3 + $0x7f8] sm:$0xff]  ;;  %v452_v0 = vld [vmem:[#allocation3 + $0x870] sm:$0xff] }
 0x329   :  { %7402 = vmatprep.subr.bf16.mxu0 %v12770_v8  ;;  %7566 = vmatprep.subr.bf16.mxu1 %v12772_v22  ;;  %v12868_v8 = vcombine.high %v349_v2, %v357_v3  ;;  %v364_v22 = vld [vmem:[#allocation3 + $0x5b0] sm:$0xff]  ;;  %v445_v1 = vld [vmem:[#allocation3 + $0x838] sm:$0xff] }
 0x32a   :  { %v12881_v23 = vcombine.low %v364_v22, %v372_v10 }
 0x32c   :  { %7403 = vmatpush1.bf16.msra.mxu0 %v12769_v15  ;;  %7567 = vmatpush1.bf16.msra.mxu1 %v12771_v16  ;;  %v12867_v15 = vcombine.low %v349_v2, %v357_v3  ;;  %v12882_v16 = vcombine.high %v364_v22, %v372_v10  ;;  %v453_v2 = vld [vmem:[#allocation3 + $0x878] sm:$0xff]  ;;  %v468_v22 = vld [vmem:[#allocation3 + $0x8f0] sm:$0xff] }
 0x32d   :  { %7404 = vmatprep.subr.bf16.mxu0 %v12786_v42  ;;  %7568 = vmatprep.subr.bf16.mxu1 %v12788_v17  ;;  %v12884_v42 = vcombine.high %v365_v11, %v373_v12  ;;  %v380_v17 = vld [vmem:[#allocation3 + $0x630] sm:$0xff]  ;;  %v461_v10 = vld [vmem:[#allocation3 + $0x8b8] sm:$0xff] }
 0x32e   :  { %v12897_v32 = vcombine.low %v380_v17, %v388_v19 }
 0x330   :  { %7405 = vmatpush1.bf16.msra.mxu0 %v12785_v24  ;;  %7569 = vmatpush1.bf16.msra.mxu1 %v12787_v26  ;;  %v12883_v24 = vcombine.low %v365_v11, %v373_v12  ;;  %v12898_v26 = vcombine.high %v380_v17, %v388_v19  ;;  %v469_v11 = vld [vmem:[#allocation3 + $0x8f8] sm:$0xff]  ;;  %v484_v17 = vld [vmem:[#allocation3 + $0x970] sm:$0xff] }
 0x331   :  { %7406 = vmatprep.subr.bf16.mxu0 %v12802_v14  ;;  %7570 = vmatprep.subr.bf16.mxu1 %v12804_v25  ;;  %v12900_v14 = vcombine.high %v381_v20, %v389_v21  ;;  %v396_v25 = vld [vmem:[#allocation3 + $0x6b0] sm:$0xff]  ;;  %v477_v19 = vld [vmem:[#allocation3 + $0x938] sm:$0xff] }
 0x332   :  { %v12913_v41 = vcombine.low %v396_v25, %v404_v28 }
 0x334   :  { %7407 = vmatpush1.bf16.msra.mxu0 %v12801_v33  ;;  %7571 = vmatpush1.bf16.msra.mxu1 %v12803_v34  ;;  %v12899_v33 = vcombine.low %v381_v20, %v389_v21  ;;  %v12914_v34 = vcombine.high %v396_v25, %v404_v28  ;;  %v485_v20 = vld [vmem:[#allocation3 + $0x978] sm:$0xff]  ;;  %v500_v25 = vld [vmem:[#allocation3 + $0x9f0] sm:$0xff] }
 0x335   :  { %7408 = vmatprep.subr.bf16.mxu0 %v12818_v35  ;;  %7572 = vmatprep.subr.bf16.mxu1 %v12820_v36  ;;  %v12916_v35 = vcombine.high %v397_v29, %v405_v31  ;;  %v412_v36 = vld [vmem:[#allocation3 + $0x730] sm:$0xff]  ;;  %v493_v28 = vld [vmem:[#allocation3 + $0x9b8] sm:$0xff] }
 0x336   :  { %v12929_v59 = vcombine.low %v412_v36, %v420_v38 }
 0x338   :  { %7409 = vmatpush1.bf16.msra.mxu0 %v12817_v44  ;;  %7573 = vmatpush1.bf16.msra.mxu1 %v12819_v45  ;;  %v12915_v44 = vcombine.low %v397_v29, %v405_v31  ;;  %v12930_v45 = vcombine.high %v412_v36, %v420_v38  ;;  %v501_v29 = vld [vmem:[#allocation3 + $0x9f8] sm:$0xff] }
 0x339   :  { %7410 = vmatprep.subr.bf16.mxu0 %v12834_v9  ;;  %7574 = vmatprep.subr.bf16.mxu1 %v12836_v49  ;;  %v12932_v9 = vcombine.high %v413_v39, %v421_v40  ;;  %v428_v49 = vld [vmem:[#allocation3 + $0x7b0] sm:$0xff]  ;;  %v509_v36 = vld [vmem:[#allocation3 + $0xa38] sm:$0xff] }
 0x33a   :  { %v12945_v3 = vcombine.low %v428_v49, %v436_v50  ;;  %v517_v38 = vld [vmem:[#allocation3 + $0xa78] sm:$0xff] }
 0x33c   :  { %7411 = vmatpush1.bf16.msra.mxu0 %v12833_v60  ;;  %7575 = vmatpush1.bf16.msra.mxu1 %v12835_v27  ;;  %v12931_v60 = vcombine.low %v413_v39, %v421_v40  ;;  %v12946_v27 = vcombine.high %v428_v49, %v436_v50  ;;  %v13011_v40 = vcombine.low %v493_v28, %v501_v29  ;;  %v533_v49 = vld [vmem:[#allocation3 + $0xaf8] sm:$0xff] }
 0x33d   :  { %7412 = vmatprep.subr.bf16.mxu0 %v12850_v62  ;;  %7576 = vmatprep.subr.bf16.mxu1 %v12852_v63  ;;  %v12948_v62 = vcombine.high %v429_v54, %v437_v56  ;;  %v444_v63 = vld [vmem:[#allocation3 + $0x830] sm:$0xff] }
 0x33e   :  { %v12961_v12 = vcombine.low %v444_v63, %v452_v0 }
 0x340   :  { %7413 = vmatpush1.bf16.msra.mxu0 %v12849_v4  ;;  %7577 = vmatpush1.bf16.msra.mxu1 %v12851_v6  ;;  %v12947_v4 = vcombine.low %v429_v54, %v437_v56  ;;  %v12962_v6 = vcombine.high %v444_v63, %v452_v0  ;;  %v13027_v54 = vcombine.low %v509_v36, %v517_v38  ;;  %v549_v63 = vld [vmem:[#allocation3 + $0xb78] sm:$0xff] }
 0x341   :  { %7414 = vmatprep.subr.bf16.mxu0 %v12866_v7  ;;  %7578 = vmatprep.subr.bf16.mxu1 %v12868_v8  ;;  %v12964_v7 = vcombine.high %v445_v1, %v453_v2  ;;  %v460_v8 = vld [vmem:[#allocation3 + $0x8b0] sm:$0xff] }
 0x342   :  { %v12977_v21 = vcombine.low %v460_v8, %v468_v22 }
 0x344   :  { %7415 = vmatpush1.bf16.msra.mxu0 %v12865_v13  ;;  %7579 = vmatpush1.bf16.msra.mxu1 %v12867_v15  ;;  %v12963_v13 = vcombine.low %v445_v1, %v453_v2  ;;  %v12978_v15 = vcombine.high %v460_v8, %v468_v22  ;;  %v565_v8 = vld [vmem:[#allocation3 + $0xbf8] sm:$0xff] }
 0x345   :  { %7416 = vmatprep.subr.bf16.mxu0 %v12882_v16  ;;  %7580 = vmatprep.subr.bf16.mxu1 %v12884_v42  ;;  %v12980_v16 = vcombine.high %v461_v10, %v469_v11  ;;  %v476_v42 = vld [vmem:[#allocation3 + $0x930] sm:$0xff] }
 0x346   :  { %v12993_v31 = vcombine.low %v476_v42, %v484_v17 }
 0x348   :  { %7417 = vmatpush1.bf16.msra.mxu0 %v12881_v23  ;;  %7581 = vmatpush1.bf16.msra.mxu1 %v12883_v24  ;;  %v12979_v23 = vcombine.low %v461_v10, %v469_v11  ;;  %v12994_v24 = vcombine.high %v476_v42, %v484_v17  ;;  %v581_v42 = vld [vmem:[#allocation3 + $0xc78] sm:$0xff] }
 0x349   :  { %7418 = vmatprep.subr.bf16.mxu0 %v12898_v26  ;;  %7582 = vmatprep.subr.bf16.mxu1 %v12900_v14  ;;  %v12996_v26 = vcombine.high %v477_v19, %v485_v20  ;;  %v492_v14 = vld [vmem:[#allocation3 + $0x9b0] sm:$0xff] }
 0x34a   :  { %v13009_v39 = vcombine.low %v492_v14, %v500_v25 }
 0x34c   :  { %7419 = vmatpush1.bf16.msra.mxu0 %v12897_v32  ;;  %7583 = vmatpush1.bf16.msra.mxu1 %v12899_v33  ;;  %v13010_v32 = vcombine.high %v492_v14, %v500_v25  ;;  %v13012_v33 = vcombine.high %v493_v28, %v501_v29  ;;  %v597_v14 = vld [vmem:[#allocation3 + $0xcf8] sm:$0xff] }
 0x34d   :  { %7420 = vmatprep.subr.bf16.mxu0 %v12914_v34  ;;  %7584 = vmatprep.subr.bf16.mxu1 %v12916_v35  ;;  %v508_v34 = vld [vmem:[#allocation3 + $0xa30] sm:$0xff] }
 0x34e   :  { %v516_v35 = vld [vmem:[#allocation3 + $0xa70] sm:$0xff] }
 0x34f   :  { %v13025_v50 = vcombine.low %v508_v34, %v516_v35 }
 0x350   :  { %7421 = vmatpush1.bf16.msra.mxu0 %v12913_v41  ;;  %7585 = vmatpush1.bf16.msra.mxu1 %v12915_v44  ;;  %v13026_v41 = vcombine.high %v508_v34, %v516_v35  ;;  %v524_v44 = vld [vmem:[#allocation3 + $0xab0] sm:$0xff]  ;;  %v613_v34 = vld [vmem:[#allocation3 + $0xd78] sm:$0xff] }
 0x351   :  { %7422 = vmatprep.subr.bf16.mxu0 %v12930_v45  ;;  %7586 = vmatprep.subr.bf16.mxu1 %v12932_v9  ;;  %v532_v45 = vld [vmem:[#allocation3 + $0xaf0] sm:$0xff]  ;;  %v525_v9 = vld [vmem:[#allocation3 + $0xab8] sm:$0xff] }
 0x352   :  { %v13042_v56 = vcombine.high %v524_v44, %v532_v45  ;;  %v13041_v0 = vcombine.low %v524_v44, %v532_v45  ;;  %v13043_v1 = vcombine.low %v525_v9, %v533_v49  ;;  %v629_v44 = vld [vmem:[#allocation3 + $0xdf8] sm:$0xff] }
 0x354   :  { %7423 = vmatpush1.bf16.msra.mxu0 %v12929_v59  ;;  %7587 = vmatpush1.bf16.msra.mxu1 %v12931_v60  ;;  %v13044_v59 = vcombine.high %v525_v9, %v533_v49  ;;  %v540_v60 = vld [vmem:[#allocation3 + $0xb30] sm:$0xff] }
 0x355   :  { %7424 = vmatprep.subr.bf16.mxu0 %v12946_v27  ;;  %7588 = vmatprep.subr.bf16.mxu1 %v12948_v62  ;;  %v548_v27 = vld [vmem:[#allocation3 + $0xb70] sm:$0xff]  ;;  %v541_v62 = vld [vmem:[#allocation3 + $0xb38] sm:$0xff] }
 0x356   :  { %v13058_v2 = vcombine.high %v540_v60, %v548_v27  ;;  %v13057_v22 = vcombine.low %v540_v60, %v548_v27  ;;  %v13059_v10 = vcombine.low %v541_v62, %v549_v63  ;;  %v645_v60 = vld [vmem:[#allocation3 + $0xe78] sm:$0xff] }
 0x358   :  { %7425 = vmatpush1.bf16.msra.mxu0 %v12945_v3  ;;  %7589 = vmatpush1.bf16.msra.mxu1 %v12947_v4  ;;  %v13060_v3 = vcombine.high %v541_v62, %v549_v63  ;;  %v556_v4 = vld [vmem:[#allocation3 + $0xbb0] sm:$0xff] }
 0x359   :  { %7435 = vmatprep.subr.bf16.mxu0 %v12962_v6  ;;  %7599 = vmatprep.subr.bf16.mxu1 %v12964_v7  ;;  %v564_v6 = vld [vmem:[#allocation3 + $0xbf0] sm:$0xff]  ;;  %v557_v7 = vld [vmem:[#allocation3 + $0xbb8] sm:$0xff] }
 0x35a   :  { %v13074_v11 = vcombine.high %v556_v4, %v564_v6  ;;  %v13073_v17 = vcombine.low %v556_v4, %v564_v6  ;;  %v661_v4 = vld [vmem:[#allocation3 + $0xef8] sm:$0xff] }
 0x35b   :  { %7427 = vmatmul.mubr.bf16.vlgmr.msra.gmra.mrb[12].mxu0 %v15647_v18  ;;  %7591 = vmatmul.mubr.bf16.vlgmr.msra.gmra.mrb[12].mxu1 %v15647_v18  ;;  %v12995_v18 = vcombine.low %v477_v19, %v485_v20  ;;  %v13075_v19 = vcombine.low %v557_v7, %v565_v8 }
 0x35c   :  { %7436 = vmatpush1.bf16.msra.mxu0 %v12961_v12  ;;  %7600 = vmatpush1.bf16.msra.mxu1 %v12963_v13  ;;  %v13076_v12 = vcombine.high %v557_v7, %v565_v8  ;;  %v572_v13 = vld [vmem:[#allocation3 + $0xc30] sm:$0xff] }
 0x35d   :  { %7437 = vmatprep.subr.bf16.mxu0 %v12978_v15  ;;  %7601 = vmatprep.subr.bf16.mxu1 %v12980_v16  ;;  %v580_v15 = vld [vmem:[#allocation3 + $0xc70] sm:$0xff]  ;;  %v573_v16 = vld [vmem:[#allocation3 + $0xc38] sm:$0xff] }
 0x35e   :  { %7467 = vmatprep.mubr.bf16.mxu0 %v15657_v30  ;;  %7631 = vmatprep.mubr.bf16.mxu1 %v15657_v30  ;;  %v13028_v30 = vcombine.high %v509_v36, %v517_v38  ;;  %v13090_v20 = vcombine.high %v572_v13, %v580_v15  ;;  %v13089_v25 = vcombine.low %v572_v13, %v580_v15  ;;  %v677_v13 = vld [vmem:[#allocation3 + $0xf78] sm:$0xff] }
 0x35f   :  { %v13091_v28 = vcombine.low %v573_v16, %v581_v42 }
 0x360   :  { %7438 = vmatpush1.bf16.msra.mxu0 %v12977_v21  ;;  %7602 = vmatpush1.bf16.msra.mxu1 %v12979_v23  ;;  %v13092_v21 = vcombine.high %v573_v16, %v581_v42  ;;  %v588_v23 = vld [vmem:[#allocation3 + $0xcb0] sm:$0xff] }
 0x361   :  { %7439 = vmatprep.subr.bf16.mxu0 %v12994_v24  ;;  %7603 = vmatprep.subr.bf16.mxu1 %v12996_v26  ;;  %v596_v24 = vld [vmem:[#allocation3 + $0xcf0] sm:$0xff]  ;;  %v589_v26 = vld [vmem:[#allocation3 + $0xcb8] sm:$0xff] }
 0x362   :  { %v13106_v29 = vcombine.high %v588_v23, %v596_v24  ;;  %v13105_v35 = vcombine.low %v588_v23, %v596_v24  ;;  %v13107_v36 = vcombine.low %v589_v26, %v597_v14  ;;  %v693_v23 = vld [vmem:[#allocation3 + $0xff8] sm:$0xff] }
 0x364   :  { %7440 = vmatpush1.bf16.msra.mxu0 %v12993_v31  ;;  %7604 = vmatpush1.bf16.msra.mxu1 %v12995_v18  ;;  %v13108_v31 = vcombine.high %v589_v26, %v597_v14  ;;  %v604_v18 = vld [vmem:[#allocation3 + $0xd30] sm:$0xff] }
 0x365   :  { %7441 = vmatprep.subr.bf16.mxu0 %v13010_v32  ;;  %7605 = vmatprep.subr.bf16.mxu1 %v13012_v33  ;;  %v612_v32 = vld [vmem:[#allocation3 + $0xd70] sm:$0xff]  ;;  %v605_v33 = vld [vmem:[#allocation3 + $0xd38] sm:$0xff] }
 0x366   :  { %v13122_v38 = vcombine.high %v604_v18, %v612_v32  ;;  %v13121_v45 = vcombine.low %v604_v18, %v612_v32  ;;  %v13123_v9 = vcombine.low %v605_v33, %v613_v34  ;;  %v709_v18 = vld [vmem:[#allocation3 + $0x1078] sm:$0xff] }
 0x368   :  { %7442 = vmatpush1.bf16.msra.mxu0 %v13009_v39  ;;  %7606 = vmatpush1.bf16.msra.mxu1 %v13011_v40  ;;  %v13124_v39 = vcombine.high %v605_v33, %v613_v34  ;;  %v620_v40 = vld [vmem:[#allocation3 + $0xdb0] sm:$0xff] }
 0x369   :  { %7443 = vmatprep.subr.bf16.mxu0 %v13026_v41  ;;  %7607 = vmatprep.subr.bf16.mxu1 %v13028_v30  ;;  %v628_v41 = vld [vmem:[#allocation3 + $0xdf0] sm:$0xff]  ;;  %v621_v30 = vld [vmem:[#allocation3 + $0xdb8] sm:$0xff] }
 0x36a   :  { %v13138_v49 = vcombine.high %v620_v40, %v628_v41  ;;  %v13137_v27 = vcombine.low %v620_v40, %v628_v41  ;;  %v13139_v62 = vcombine.low %v621_v30, %v629_v44  ;;  %v725_v40 = vld [vmem:[#allocation3 + $0x10f8] sm:$0xff] }
 0x36c   :  { %7444 = vmatpush1.bf16.msra.mxu0 %v13025_v50  ;;  %7608 = vmatpush1.bf16.msra.mxu1 %v13027_v54  ;;  %v13140_v50 = vcombine.high %v621_v30, %v629_v44  ;;  %v636_v54 = vld [vmem:[#allocation3 + $0xe30] sm:$0xff] }
 0x36d   :  { %7445 = vmatprep.subr.bf16.mxu0 %v13042_v56  ;;  %7609 = vmatprep.subr.bf16.mxu1 %v13044_v59  ;;  %v644_v56 = vld [vmem:[#allocation3 + $0xe70] sm:$0xff]  ;;  %v637_v59 = vld [vmem:[#allocation3 + $0xe38] sm:$0xff] }
 0x36e   :  { %v13154_v63 = vcombine.high %v636_v54, %v644_v56  ;;  %v13153_v6 = vcombine.low %v636_v54, %v644_v56  ;;  %v13155_v7 = vcombine.low %v637_v59, %v645_v60  ;;  %v741_v54 = vld [vmem:[#allocation3 + $0x1178] sm:$0xff] }
 0x370   :  { %7446 = vmatpush1.bf16.msra.mxu0 %v13041_v0  ;;  %7610 = vmatpush1.bf16.msra.mxu1 %v13043_v1  ;;  %v13156_v0 = vcombine.high %v637_v59, %v645_v60  ;;  %v652_v1 = vld [vmem:[#allocation3 + $0xeb0] sm:$0xff] }
 0x371   :  { %7447 = vmatprep.subr.bf16.mxu0 %v13058_v2  ;;  %7611 = vmatprep.subr.bf16.mxu1 %v13060_v3  ;;  %v660_v2 = vld [vmem:[#allocation3 + $0xef0] sm:$0xff]  ;;  %v653_v3 = vld [vmem:[#allocation3 + $0xeb8] sm:$0xff] }
 0x372   :  { %v13170_v8 = vcombine.high %v652_v1, %v660_v2  ;;  %v13169_v15 = vcombine.low %v652_v1, %v660_v2  ;;  %v13171_v16 = vcombine.low %v653_v3, %v661_v4  ;;  %v757_v1 = vld [vmem:[#allocation3 + $0x11f8] sm:$0xff] }
 0x374   :  { %7448 = vmatpush1.bf16.msra.mxu0 %v13057_v22  ;;  %7612 = vmatpush1.bf16.msra.mxu1 %v13059_v10  ;;  %v13172_v22 = vcombine.high %v653_v3, %v661_v4  ;;  %v668_v10 = vld [vmem:[#allocation3 + $0xf30] sm:$0xff] }
 0x375   :  { %7449 = vmatprep.subr.bf16.mxu0 %v13074_v11  ;;  %7613 = vmatprep.subr.bf16.mxu1 %v13076_v12  ;;  %v676_v11 = vld [vmem:[#allocation3 + $0xf70] sm:$0xff]  ;;  %v669_v12 = vld [vmem:[#allocation3 + $0xf38] sm:$0xff] }
 0x376   :  { %v13186_v42 = vcombine.high %v668_v10, %v676_v11  ;;  %v13185_v24 = vcombine.low %v668_v10, %v676_v11  ;;  %v13187_v26 = vcombine.low %v669_v12, %v677_v13 }
 0x378   :  { %7450 = vmatpush1.bf16.msra.mxu0 %v13073_v17  ;;  %7614 = vmatpush1.bf16.msra.mxu1 %v13075_v19  ;;  %v13188_v17 = vcombine.high %v669_v12, %v677_v13  ;;  %v684_v19 = vld [vmem:[#allocation3 + $0xfb0] sm:$0xff] }
 0x379   :  { %7451 = vmatprep.subr.bf16.mxu0 %v13090_v20  ;;  %7615 = vmatprep.subr.bf16.mxu1 %v13092_v21  ;;  %v692_v20 = vld [vmem:[#allocation3 + $0xff0] sm:$0xff]  ;;  %v685_v21 = vld [vmem:[#allocation3 + $0xfb8] sm:$0xff] }
 0x37a   :  { %v13202_v14 = vcombine.high %v684_v19, %v692_v20  ;;  %v13201_v32 = vcombine.low %v684_v19, %v692_v20  ;;  %v13203_v33 = vcombine.low %v685_v21, %v693_v23  ;;  %v780_v13 = vld [vmem:[#allocation3 + $0x12b0] sm:$0xff] }
 0x37c   :  { %7452 = vmatpush1.bf16.msra.mxu0 %v13089_v25  ;;  %7616 = vmatpush1.bf16.msra.mxu1 %v13091_v28  ;;  %v13204_v25 = vcombine.high %v685_v21, %v693_v23  ;;  %v700_v28 = vld [vmem:[#allocation3 + $0x1030] sm:$0xff] }
 0x37d   :  { %7453 = vmatprep.subr.bf16.mxu0 %v13106_v29  ;;  %7617 = vmatprep.subr.bf16.mxu1 %v13108_v31  ;;  %v708_v29 = vld [vmem:[#allocation3 + $0x1070] sm:$0xff]  ;;  %v701_v31 = vld [vmem:[#allocation3 + $0x1038] sm:$0xff] }
 0x37e   :  { %v13218_v34 = vcombine.high %v700_v28, %v708_v29  ;;  %v13217_v41 = vcombine.low %v700_v28, %v708_v29  ;;  %v13219_v30 = vcombine.low %v701_v31, %v709_v18  ;;  %v796_v23 = vld [vmem:[#allocation3 + $0x1330] sm:$0xff] }
 0x380   :  { %7454 = vmatpush1.bf16.msra.mxu0 %v13105_v35  ;;  %7618 = vmatpush1.bf16.msra.mxu1 %v13107_v36  ;;  %v13220_v35 = vcombine.high %v701_v31, %v709_v18  ;;  %v716_v36 = vld [vmem:[#allocation3 + $0x10b0] sm:$0xff] }
 0x381   :  { %7455 = vmatprep.subr.bf16.mxu0 %v13122_v38  ;;  %7619 = vmatprep.subr.bf16.mxu1 %v13124_v39  ;;  %v724_v38 = vld [vmem:[#allocation3 + $0x10f0] sm:$0xff]  ;;  %v717_v39 = vld [vmem:[#allocation3 + $0x10b8] sm:$0xff] }
 0x382   :  { %v13234_v44 = vcombine.high %v716_v36, %v724_v38  ;;  %v13233_v56 = vcombine.low %v716_v36, %v724_v38  ;;  %v13235_v59 = vcombine.low %v717_v39, %v725_v40  ;;  %v812_v18 = vld [vmem:[#allocation3 + $0x13b0] sm:$0xff] }
 0x384   :  { %7456 = vmatpush1.bf16.msra.mxu0 %v13121_v45  ;;  %7620 = vmatpush1.bf16.msra.mxu1 %v13123_v9  ;;  %v13236_v45 = vcombine.high %v717_v39, %v725_v40  ;;  %v732_v9 = vld [vmem:[#allocation3 + $0x1130] sm:$0xff] }
 0x385   :  { %7457 = vmatprep.subr.bf16.mxu0 %v13138_v49  ;;  %7621 = vmatprep.subr.bf16.mxu1 %v13140_v50  ;;  %v740_v49 = vld [vmem:[#allocation3 + $0x1170] sm:$0xff]  ;;  %v733_v50 = vld [vmem:[#allocation3 + $0x1138] sm:$0xff] }
 0x386   :  { %v13250_v60 = vcombine.high %v732_v9, %v740_v49  ;;  %v13249_v2 = vcombine.low %v732_v9, %v740_v49  ;;  %v828_v40 = vld [vmem:[#allocation3 + $0x1430] sm:$0xff] }
 0x388   :  { %7458 = vmatpush1.bf16.msra.mxu0 %v13137_v27  ;;  %7622 = vmatpush1.bf16.msra.mxu1 %v13139_v62  ;;  %v13252_v27 = vcombine.high %v733_v50, %v741_v54  ;;  %v748_v62 = vld [vmem:[#allocation3 + $0x11b0] sm:$0xff] }
 0x389   :  { %7459 = vmatprep.subr.bf16.mxu0 %v13154_v63  ;;  %7623 = vmatprep.subr.bf16.mxu1 %v13156_v0  ;;  %v756_v63 = vld [vmem:[#allocation3 + $0x11f0] sm:$0xff]  ;;  %v749_v0 = vld [vmem:[#allocation3 + $0x11b8] sm:$0xff] }
 0x38a   :  { %v13266_v3 = vcombine.high %v748_v62, %v756_v63  ;;  %v13268_v4 = vcombine.high %v749_v0, %v757_v1  ;;  %v13265_v10 = vcombine.low %v748_v62, %v756_v63  ;;  %v13267_v11 = vcombine.low %v749_v0, %v757_v1  ;;  %v860_v1 = vld [vmem:[#allocation3 + $0x1530] sm:$0xff] }
 0x38c   :  { %7460 = vmatpush1.bf16.msra.mxu0 %v13153_v6  ;;  %7624 = vmatpush1.bf16.msra.mxu1 %v13155_v7  ;;  %v764_v6 = vld [vmem:[#allocation3 + $0x1230] sm:$0xff] }
 0x38d   :  { %7461 = vmatprep.subr.bf16.mxu0 %v13170_v8  ;;  %7625 = vmatprep.subr.bf16.mxu1 %v13172_v22  ;;  %v772_v7 = vld [vmem:[#allocation3 + $0x1270] sm:$0xff]  ;;  %v765_v8 = vld [vmem:[#allocation3 + $0x1238] sm:$0xff] }
 0x38e   :  { %v773_v22 = vld [vmem:[#allocation3 + $0x1278] sm:$0xff]  ;;  %v13282_v12 = vcombine.high %v764_v6, %v772_v7 }
 0x38f   :  { %v13283_v19 = vcombine.low %v765_v8, %v773_v22 }
 0x390   :  { %7462 = vmatpush1.bf16.msra.mxu0 %v13169_v15  ;;  %7626 = vmatpush1.bf16.msra.mxu1 %v13171_v16  ;;  %v788_v15 = vld [vmem:[#allocation3 + $0x12f0] sm:$0xff]  ;;  %v781_v16 = vld [vmem:[#allocation3 + $0x12b8] sm:$0xff] }
 0x391   :  { %7463 = vmatprep.subr.bf16.mxu0 %v13186_v42  ;;  %7627 = vmatprep.subr.bf16.mxu1 %v13188_v17  ;;  %v789_v42 = vld [vmem:[#allocation3 + $0x12f8] sm:$0xff]  ;;  %v13281_v17 = vcombine.low %v764_v6, %v772_v7  ;;  %v13298_v20 = vcombine.high %v780_v13, %v788_v15 }
 0x392   :  { %v13300_v21 = vcombine.high %v781_v16, %v789_v42  ;;  %v13299_v28 = vcombine.low %v781_v16, %v789_v42  ;;  %v892_v42 = vld [vmem:[#allocation3 + $0x1630] sm:$0xff] }
 0x394   :  { %7464 = vmatpush1.bf16.msra.mxu0 %v13185_v24  ;;  %7628 = vmatpush1.bf16.msra.mxu1 %v13187_v26  ;;  %v804_v24 = vld [vmem:[#allocation3 + $0x1370] sm:$0xff]  ;;  %v797_v26 = vld [vmem:[#allocation3 + $0x1338] sm:$0xff] }
 0x395   :  { %7465 = vmatprep.subr.bf16.mxu0 %v13202_v14  ;;  %7629 = vmatprep.subr.bf16.mxu1 %v13204_v25  ;;  %v805_v14 = vld [vmem:[#allocation3 + $0x1378] sm:$0xff]  ;;  %v13297_v25 = vcombine.low %v780_v13, %v788_v15  ;;  %v13314_v29 = vcombine.high %v796_v23, %v804_v24 }
 0x396   :  { %v13316_v31 = vcombine.high %v797_v26, %v805_v14  ;;  %v13315_v36 = vcombine.low %v797_v26, %v805_v14  ;;  %v908_v14 = vld [vmem:[#allocation3 + $0x16b0] sm:$0xff] }
 0x398   :  { %7466 = vmatpush1.bf16.msra.mxu0 %v13201_v32  ;;  %7630 = vmatpush1.bf16.msra.mxu1 %v13203_v33  ;;  %v820_v32 = vld [vmem:[#allocation3 + $0x13f0] sm:$0xff]  ;;  %v813_v33 = vld [vmem:[#allocation3 + $0x13b8] sm:$0xff] }
 0x399   :  { %7476 = vmatprep.subr.bf16.mxu0 %v13218_v34  ;;  %7640 = vmatprep.subr.bf16.mxu1 %v13220_v35  ;;  %v821_v34 = vld [vmem:[#allocation3 + $0x13f8] sm:$0xff]  ;;  %v13313_v35 = vcombine.low %v796_v23, %v804_v24  ;;  %v13330_v38 = vcombine.high %v812_v18, %v820_v32 }
 0x39a   :  { %v13332_v39 = vcombine.high %v813_v33, %v821_v34  ;;  %v13331_v9 = vcombine.low %v813_v33, %v821_v34  ;;  %v924_v34 = vld [vmem:[#allocation3 + $0x1730] sm:$0xff] }
 0x39b   :  { %7468 = vmatmul.mubr.bf16.vlgmr.msra.gmra.mrb[12].mxu0 %v15672_v37  ;;  %7632 = vmatmul.mubr.bf16.vlgmr.msra.gmra.mrb[12].mxu1 %v15672_v37  ;;  %v13251_v37 = vcombine.low %v733_v50, %v741_v54  ;;  %v844_v54 = vld [vmem:[#allocation3 + $0x14b0] sm:$0xff] }
 0x39c   :  { %7477 = vmatpush1.bf16.msra.mxu0 %v13217_v41  ;;  %7641 = vmatpush1.bf16.msra.mxu1 %v13219_v30  ;;  %v836_v41 = vld [vmem:[#allocation3 + $0x1470] sm:$0xff]  ;;  %v829_v30 = vld [vmem:[#allocation3 + $0x1438] sm:$0xff] }
 0x39d   :  { %7478 = vmatprep.subr.bf16.mxu0 %v13234_v44  ;;  %7642 = vmatprep.subr.bf16.mxu1 %v13236_v45  ;;  %v837_v44 = vld [vmem:[#allocation3 + $0x1478] sm:$0xff]  ;;  %v13329_v45 = vcombine.low %v812_v18, %v820_v32  ;;  %v13346_v49 = vcombine.high %v828_v40, %v836_v41 }
 0x39e   :  { %7508 = vmatprep.mubr.bf16.mxu0 %v15674_v46  ;;  %7672 = vmatprep.mubr.bf16.mxu1 %v15674_v46  ;;  %v13284_v46 = vcombine.high %v765_v8, %v773_v22  ;;  %v13348_v50 = vcombine.high %v829_v30, %v837_v44  ;;  %v13347_v62 = vcombine.low %v829_v30, %v837_v44  ;;  %v876_v22 = vld [vmem:[#allocation3 + $0x15b0] sm:$0xff] }
 0x39f   :  { %v940_v44 = vld [vmem:[#allocation3 + $0x17b0] sm:$0xff] }
 0x3a0   :  { %7479 = vmatpush1.bf16.msra.mxu0 %v13233_v56  ;;  %7643 = vmatpush1.bf16.msra.mxu1 %v13235_v59  ;;  %v852_v56 = vld [vmem:[#allocation3 + $0x14f0] sm:$0xff]  ;;  %v845_v59 = vld [vmem:[#allocation3 + $0x14b8] sm:$0xff] }
 0x3a1   :  { %7480 = vmatprep.subr.bf16.mxu0 %v13250_v60  ;;  %7644 = vmatprep.subr.bf16.mxu1 %v13252_v27  ;;  %v853_v60 = vld [vmem:[#allocation3 + $0x14f8] sm:$0xff]  ;;  %v13345_v27 = vcombine.low %v828_v40, %v836_v41  ;;  %v13362_v63 = vcombine.high %v844_v54, %v852_v56 }
 0x3a2   :  { %v13364_v0 = vcombine.high %v845_v59, %v853_v60  ;;  %v13363_v6 = vcombine.low %v845_v59, %v853_v60  ;;  %v956_v60 = vld [vmem:[#allocation3 + $0x1830] sm:$0xff] }
 0x3a4   :  { %7481 = vmatpush1.bf16.msra.mxu0 %v13249_v2  ;;  %7645 = vmatpush1.bf16.msra.mxu1 %v13251_v37  ;;  %v868_v2 = vld [vmem:[#allocation3 + $0x1570] sm:$0xff]  ;;  %v861_v37 = vld [vmem:[#allocation3 + $0x1538] sm:$0xff] }
 0x3a5   :  { %7482 = vmatprep.subr.bf16.mxu0 %v13266_v3  ;;  %7646 = vmatprep.subr.bf16.mxu1 %v13268_v4  ;;  %v869_v3 = vld [vmem:[#allocation3 + $0x1578] sm:$0xff]  ;;  %v13361_v4 = vcombine.low %v844_v54, %v852_v56  ;;  %v13378_v7 = vcombine.high %v860_v1, %v868_v2 }
 0x3a6   :  { %v13380_v8 = vcombine.high %v861_v37, %v869_v3  ;;  %v13379_v13 = vcombine.low %v861_v37, %v869_v3  ;;  %v972_v3 = vld [vmem:[#allocation3 + $0x18b0] sm:$0xff] }
 0x3a8   :  { %7483 = vmatpush1.bf16.msra.mxu0 %v13265_v10  ;;  %7647 = vmatpush1.bf16.msra.mxu1 %v13267_v11  ;;  %v884_v10 = vld [vmem:[#allocation3 + $0x15f0] sm:$0xff]  ;;  %v877_v11 = vld [vmem:[#allocation3 + $0x15b8] sm:$0xff] }
 0x3a9   :  { %7484 = vmatprep.subr.bf16.mxu0 %v13282_v12  ;;  %7648 = vmatprep.subr.bf16.mxu1 %v13284_v46  ;;  %v885_v12 = vld [vmem:[#allocation3 + $0x15f8] sm:$0xff]  ;;  %v13377_v46 = vcombine.low %v860_v1, %v868_v2  ;;  %v13394_v15 = vcombine.high %v876_v22, %v884_v10 }
 0x3aa   :  { %v13396_v16 = vcombine.high %v877_v11, %v885_v12  ;;  %v13395_v23 = vcombine.low %v877_v11, %v885_v12  ;;  %v988_v12 = vld [vmem:[#allocation3 + $0x1930] sm:$0xff] }
 0x3ac   :  { %7485 = vmatpush1.bf16.msra.mxu0 %v13281_v17  ;;  %7649 = vmatpush1.bf16.msra.mxu1 %v13283_v19  ;;  %v900_v17 = vld [vmem:[#allocation3 + $0x1670] sm:$0xff]  ;;  %v893_v19 = vld [vmem:[#allocation3 + $0x1638] sm:$0xff] }
 0x3ad   :  { %7486 = vmatprep.subr.bf16.mxu0 %v13298_v20  ;;  %7650 = vmatprep.subr.bf16.mxu1 %v13300_v21  ;;  %v901_v20 = vld [vmem:[#allocation3 + $0x1678] sm:$0xff]  ;;  %v13393_v21 = vcombine.low %v876_v22, %v884_v10  ;;  %v13410_v24 = vcombine.high %v892_v42, %v900_v17 }
 0x3ae   :  { %v13412_v26 = vcombine.high %v893_v19, %v901_v20  ;;  %v13411_v18 = vcombine.low %v893_v19, %v901_v20  ;;  %v1004_v20 = vld [vmem:[#allocation3 + $0x19b0] sm:$0xff] }
 0x3b0   :  { %7487 = vmatpush1.bf16.msra.mxu0 %v13297_v25  ;;  %7651 = vmatpush1.bf16.msra.mxu1 %v13299_v28  ;;  %v916_v25 = vld [vmem:[#allocation3 + $0x16f0] sm:$0xff]  ;;  %v909_v28 = vld [vmem:[#allocation3 + $0x16b8] sm:$0xff] }
 0x3b1   :  { %7488 = vmatprep.subr.bf16.mxu0 %v13314_v29  ;;  %7652 = vmatprep.subr.bf16.mxu1 %v13316_v31  ;;  %v917_v29 = vld [vmem:[#allocation3 + $0x16f8] sm:$0xff]  ;;  %v13409_v31 = vcombine.low %v892_v42, %v900_v17  ;;  %v13426_v32 = vcombine.high %v908_v14, %v916_v25 }
 0x3b2   :  { %v13428_v33 = vcombine.high %v909_v28, %v917_v29  ;;  %v13427_v40 = vcombine.low %v909_v28, %v917_v29  ;;  %v1020_v28 = vld [vmem:[#allocation3 + $0x1a30] sm:$0xff] }
 0x3b3   :  { %v1028_v29 = vld [vmem:[#allocation3 + $0x1a70] sm:$0xff] }
 0x3b4   :  { %7489 = vmatpush1.bf16.msra.mxu0 %v13313_v35  ;;  %7653 = vmatpush1.bf16.msra.mxu1 %v13315_v36  ;;  %v932_v35 = vld [vmem:[#allocation3 + $0x1770] sm:$0xff]  ;;  %v925_v36 = vld [vmem:[#allocation3 + $0x1738] sm:$0xff] }
 0x3b5   :  { %7490 = vmatprep.subr.bf16.mxu0 %v13330_v38  ;;  %7654 = vmatprep.subr.bf16.mxu1 %v13332_v39  ;;  %v933_v38 = vld [vmem:[#allocation3 + $0x1778] sm:$0xff]  ;;  %v13425_v39 = vcombine.low %v908_v14, %v916_v25  ;;  %v13442_v41 = vcombine.high %v924_v34, %v932_v35 }
 0x3b6   :  { %v13444_v30 = vcombine.high %v925_v36, %v933_v38  ;;  %v13443_v54 = vcombine.low %v925_v36, %v933_v38  ;;  %v1044_v36 = vld [vmem:[#allocation3 + $0x1af0] sm:$0xff]  ;;  %v1037_v38 = vld [vmem:[#allocation3 + $0x1ab8] sm:$0xff] }
 0x3b8   :  { %7491 = vmatpush1.bf16.msra.mxu0 %v13329_v45  ;;  %7655 = vmatpush1.bf16.msra.mxu1 %v13331_v9  ;;  %v948_v45 = vld [vmem:[#allocation3 + $0x17f0] sm:$0xff]  ;;  %v941_v9 = vld [vmem:[#allocation3 + $0x17b8] sm:$0xff] }
 0x3b9   :  { %7492 = vmatprep.subr.bf16.mxu0 %v13346_v49  ;;  %7656 = vmatprep.subr.bf16.mxu1 %v13348_v50  ;;  %v949_v49 = vld [vmem:[#allocation3 + $0x17f8] sm:$0xff]  ;;  %v13441_v50 = vcombine.low %v924_v34, %v932_v35  ;;  %v13458_v56 = vcombine.high %v940_v44, %v948_v45  ;;  %v13538_v34 = vcombine.high %v1020_v28, %v1028_v29  ;;  %v1036_v35 = vld [vmem:[#allocation3 + $0x1ab0] sm:$0xff] }
 0x3ba   :  { %v13460_v59 = vcombine.high %v941_v9, %v949_v49  ;;  %v13459_v1 = vcombine.low %v941_v9, %v949_v49  ;;  %v1060_v9 = vld [vmem:[#allocation3 + $0x1b70] sm:$0xff]  ;;  %v1210_v49 = vlaneseq }
 0x3bc   :  { %7493 = vmatpush1.bf16.msra.mxu0 %v13345_v27  ;;  %7657 = vmatpush1.bf16.msra.mxu1 %v13347_v62  ;;  %v964_v27 = vld [vmem:[#allocation3 + $0x1870] sm:$0xff]  ;;  %v957_v62 = vld [vmem:[#allocation3 + $0x1838] sm:$0xff] }
 0x3bd   :  { %7494 = vmatprep.subr.bf16.mxu0 %v13362_v63  ;;  %7658 = vmatprep.subr.bf16.mxu1 %v13364_v0  ;;  %v965_v63 = vld [vmem:[#allocation3 + $0x1878] sm:$0xff]  ;;  %v13457_v0 = vcombine.low %v940_v44, %v948_v45  ;;  %v13474_v2 = vcombine.high %v956_v60, %v964_v27  ;;  %v1052_v45 = vld [vmem:[#allocation3 + $0x1b30] sm:$0xff] }
 0x3be   :  { %v13476_v37 = vcombine.high %v957_v62, %v965_v63  ;;  %v13475_v22 = vcombine.low %v957_v62, %v965_v63  ;;  %v1068_v63 = vld [vmem:[#allocation3 + $0x1bb0] sm:$0xff] }
 0x3c0   :  { %7495 = vmatpush1.bf16.msra.mxu0 %v13361_v4  ;;  %7659 = vmatpush1.bf16.msra.mxu1 %v13363_v6  ;;  %v980_v4 = vld [vmem:[#allocation3 + $0x18f0] sm:$0xff]  ;;  %v973_v6 = vld [vmem:[#allocation3 + $0x18b8] sm:$0xff] }
 0x3c1   :  { %7496 = vmatprep.subr.bf16.mxu0 %v13378_v7  ;;  %7660 = vmatprep.subr.bf16.mxu1 %v13380_v8  ;;  %v981_v7 = vld [vmem:[#allocation3 + $0x18f8] sm:$0xff]  ;;  %v13473_v8 = vcombine.low %v956_v60, %v964_v27  ;;  %v13490_v10 = vcombine.high %v972_v3, %v980_v4  ;;  %v13570_v60 = vcombine.high %v1052_v45, %v1060_v9 }
 0x3c2   :  { %v13492_v11 = vcombine.high %v973_v6, %v981_v7  ;;  %v13491_v42 = vcombine.low %v973_v6, %v981_v7  ;;  %v13569_v7 = vcombine.low %v1052_v45, %v1060_v9  ;;  %v1140_v45 = vld [vmem:[#allocation3 + $0x1df0] sm:$0xff] }
 0x3c4   :  { %7497 = vmatpush1.bf16.msra.mxu0 %v13377_v46  ;;  %7661 = vmatpush1.bf16.msra.mxu1 %v13379_v13  ;;  %v996_v46 = vld [vmem:[#allocation3 + $0x1970] sm:$0xff]  ;;  %v989_v13 = vld [vmem:[#allocation3 + $0x1938] sm:$0xff] }
 0x3c5   :  { %7498 = vmatprep.subr.bf16.mxu0 %v13394_v15  ;;  %7662 = vmatprep.subr.bf16.mxu1 %v13396_v16  ;;  %v997_v15 = vld [vmem:[#allocation3 + $0x1978] sm:$0xff]  ;;  %v13489_v16 = vcombine.low %v972_v3, %v980_v4  ;;  %v13506_v17 = vcombine.high %v988_v12, %v996_v46 }
 0x3c6   :  { %v13508_v19 = vcombine.high %v989_v13, %v997_v15  ;;  %v1077_v3 = vld [vmem:[#allocation3 + $0x1bf8] sm:$0xff] }
 0x3c8   :  { %7499 = vmatpush1.bf16.msra.mxu0 %v13393_v21  ;;  %7663 = vmatpush1.bf16.msra.mxu1 %v13395_v23  ;;  %v1012_v21 = vld [vmem:[#allocation3 + $0x19f0] sm:$0xff]  ;;  %v1005_v23 = vld [vmem:[#allocation3 + $0x19b8] sm:$0xff] }
 0x3c9   :  { %7500 = vmatprep.subr.bf16.mxu0 %v13410_v24  ;;  %7664 = vmatprep.subr.bf16.mxu1 %v13412_v26  ;;  %v1013_v24 = vld [vmem:[#allocation3 + $0x19f8] sm:$0xff]  ;;  %v13505_v26 = vcombine.low %v988_v12, %v996_v46  ;;  %v13522_v14 = vcombine.high %v1004_v20, %v1012_v21 }
 0x3ca   :  { %v13524_v25 = vcombine.high %v1005_v23, %v1013_v24 }
 0x3cc   :  { %7501 = vmatpush1.bf16.msra.mxu0 %v13409_v31  ;;  %7665 = vmatpush1.bf16.msra.mxu1 %v13411_v18  ;;  %v1021_v31 = vld [vmem:[#allocation3 + $0x1a38] sm:$0xff] }
 0x3cd   :  { %7502 = vmatprep.subr.bf16.mxu0 %v13426_v32  ;;  %7666 = vmatprep.subr.bf16.mxu1 %v13428_v33  ;;  %v1029_v18 = vld [vmem:[#allocation3 + $0x1a78] sm:$0xff]  ;;  %v13521_v32 = vcombine.low %v1004_v20, %v1012_v21  ;;  %v13523_v33 = vcombine.low %v1005_v23, %v1013_v24  ;;  %v15778_v20 = vld [vmem:[%s17745_s4] sm:$0xff] }
 0x3d0   :  { %7503 = vmatpush1.bf16.msra.mxu0 %v13425_v39  ;;  %7667 = vmatpush1.bf16.msra.mxu1 %v13427_v40  ;;  %v1045_v39 = vld [vmem:[#allocation3 + $0x1af8] sm:$0xff]  ;;  %v13537_v40 = vcombine.low %v1020_v28, %v1028_v29 }
 0x3d1   :  { %7504 = vmatprep.subr.bf16.mxu0 %v13442_v41  ;;  %7668 = vmatprep.subr.bf16.mxu1 %v13444_v30  ;;  %v13539_v41 = vcombine.low %v1021_v31, %v1029_v18  ;;  %v13554_v30 = vcombine.high %v1036_v35, %v1044_v36  ;;  %v13556_v44 = vcombine.high %v1037_v38, %v1045_v39  ;;  %v1101_v28 = vld [vmem:[#allocation3 + $0x1cb8] sm:$0xff] }
 0x3d2   :  { %v1109_v29 = vld [vmem:[#allocation3 + $0x1cf8] sm:$0xff] }
 0x3d4   :  { %7505 = vmatpush1.bf16.msra.mxu0 %v13441_v50  ;;  %7669 = vmatpush1.bf16.msra.mxu1 %v13443_v54  ;;  %v1053_v50 = vld [vmem:[#allocation3 + $0x1b38] sm:$0xff] }
 0x3d5   :  { %7506 = vmatprep.subr.bf16.mxu0 %v13458_v56  ;;  %7670 = vmatprep.subr.bf16.mxu1 %v13460_v59  ;;  %v1061_v54 = vld [vmem:[#allocation3 + $0x1b78] sm:$0xff]  ;;  %v13553_v56 = vcombine.low %v1036_v35, %v1044_v36  ;;  %v13555_v59 = vcombine.low %v1037_v38, %v1045_v39 }
 0x3d6   :  { %v13572_v62 = vcombine.high %v1053_v50, %v1061_v54  ;;  %v1117_v36 = vld [vmem:[#allocation3 + $0x1d38] sm:$0xff] }
 0x3d7   :  { %v1125_v38 = vld [vmem:[#allocation3 + $0x1d78] sm:$0xff] }
 0x3d8   :  { %7507 = vmatpush1.bf16.msra.mxu0 %v13457_v0  ;;  %7671 = vmatpush1.bf16.msra.mxu1 %v13459_v1  ;;  %v1076_v0 = vld [vmem:[#allocation3 + $0x1bf0] sm:$0xff]  ;;  %v15764_v1 = vshrl.u32 %v1210_v49, 7  ;;  %v1133_v49 = vld [vmem:[#allocation3 + $0x1db8] sm:$0xff] }
 0x3d9   :  { %7517 = vmatprep.subr.bf16.mxu0 %v13474_v2  ;;  %7681 = vmatprep.subr.bf16.mxu1 %v13476_v37  ;;  %v1069_v37 = vld [vmem:[#allocation3 + $0x1bb8] sm:$0xff]  ;;  %v13585_v21 = vcombine.low %v1068_v63, %v1076_v0 }
 0x3da   :  { %v13588_v46 = vcombine.high %v1069_v37, %v1077_v3  ;;  %v13587_v23 = vcombine.low %v1069_v37, %v1077_v3  ;;  %v1157_v37 = vld [vmem:[#allocation3 + $0x1e78] sm:$0xff] }
 0x3db   :  { %7509 = vmatmul.mubr.bf16.vlgmr.msra.gmra.mrb[12].mxu0 %v15686_v52  ;;  %7673 = vmatmul.mubr.bf16.vlgmr.msra.gmra.mrb[12].mxu1 %v15686_v52  ;;  %v13507_v52 = vcombine.low %v989_v13, %v997_v15  ;;  %v1084_v13 = vld [vmem:[#allocation3 + $0x1c30] sm:$0xff] }
 0x3dc   :  { %7518 = vmatpush1.bf16.msra.mxu0 %v13473_v8  ;;  %7682 = vmatpush1.bf16.msra.mxu1 %v13475_v22  ;;  %v1092_v15 = vld [vmem:[#allocation3 + $0x1c70] sm:$0xff] }
 0x3dd   :  { %7519 = vmatprep.subr.bf16.mxu0 %v13490_v10  ;;  %7683 = vmatprep.subr.bf16.mxu1 %v13492_v11  ;;  %v13571_v10 = vcombine.low %v1053_v50, %v1061_v54  ;;  %v13586_v11 = vcombine.high %v1068_v63, %v1076_v0  ;;  %v13602_v24 = vcombine.high %v1084_v13, %v1092_v15  ;;  %v1141_v50 = vld [vmem:[#allocation3 + $0x1df8] sm:$0xff] }
 0x3de   :  { %7549 = vmatprep.mubr.bf16.mxu0 %v15688_v61  ;;  %7713 = vmatprep.mubr.bf16.mxu1 %v15688_v61  ;;  %v13540_v61 = vcombine.high %v1021_v31, %v1029_v18  ;;  %v13601_v31 = vcombine.low %v1084_v13, %v1092_v15  ;;  %v1149_v0 = vld [vmem:[#allocation3 + $0x1e38] sm:$0xff] }
 0x3df   :  { %v13667_v15 = vcombine.low %v1149_v0, %v1157_v37 }
 0x3e0   :  { %7520 = vmatpush1.bf16.msra.mxu0 %v13489_v16  ;;  %7684 = vmatpush1.bf16.msra.mxu1 %v13491_v42  ;;  %v15773_v42 = vsub.s32 1, %v15764_v1 }
 0x3e1   :  { %7521 = vmatprep.subr.bf16.mxu0 %v13506_v17  ;;  %7685 = vmatprep.subr.bf16.mxu1 %v13508_v19  ;;  %v1085_v17 = vld [vmem:[#allocation3 + $0x1c38] sm:$0xff] }
 0x3e2   :  { %v1093_v19 = vld [vmem:[#allocation3 + $0x1c78] sm:$0xff] }
 0x3e3   :  { %v13603_v18 = vcombine.low %v1085_v17, %v1093_v19 }
 0x3e4   :  { %7522 = vmatpush1.bf16.msra.mxu0 %v13505_v26  ;;  %7686 = vmatpush1.bf16.msra.mxu1 %v13507_v52  ;;  %v13604_v26 = vcombine.high %v1085_v17, %v1093_v19  ;;  %v1100_v52 = vld [vmem:[#allocation3 + $0x1cb0] sm:$0xff] }
 0x3e5   :  { %7523 = vmatprep.subr.bf16.mxu0 %v13522_v14  ;;  %7687 = vmatprep.subr.bf16.mxu1 %v13524_v25  ;;  %v1108_v14 = vld [vmem:[#allocation3 + $0x1cf0] sm:$0xff]  ;;  %v1217_v25 = vrot.slane %v15778_v20, %v15773_v42 }
 0x3e6   :  { %v13617_v39 = vcombine.low %v1100_v52, %v1108_v14  ;;  %v1180_v19 = vld [vmem:[#allocation3 + $0x1f30] sm:$0xff] }
 0x3e7   :  { %v15783_v35 = vadd.f32 %v15716_v51, %v1217_v25  ;;  %v13635_v51 = vcombine.low %v1117_v36, %v1125_v38 }
 0x3e8   :  { %7524 = vmatpush1.bf16.msra.mxu0 %v13521_v32  ;;  %7688 = vmatpush1.bf16.msra.mxu1 %v13523_v33  ;;  %v13618_v32 = vcombine.high %v1100_v52, %v1108_v14  ;;  %v13620_v33 = vcombine.high %v1101_v28, %v1109_v29 }
 0x3e9   :  { %7525 = vmatprep.subr.bf16.mxu0 %v13538_v34  ;;  %7689 = vmatprep.subr.bf16.mxu1 %v13540_v61  ;;  %v1116_v34 = vld [vmem:[#allocation3 + $0x1d30] sm:$0xff]  ;;  %v7739_v9 = vmin.f32 %v15783_v35, 0.0  ;;  %vm7723_vm0 = vcmp.gt.f32.partialorder %v15783_v35, 0.0 }
 0x3ea   :  { %v1124_v61 = vld [vmem:[#allocation3 + $0x1d70] sm:$0xff] }
 0x3eb   :  { %v13633_v54 = vcombine.low %v1116_v34, %v1124_v61  ;;  %v7756_v63 = vmul.f32 1.442695, %v7739_v9  ;;  %v14676_v9 = vld [vmem:[%s17746_s5 + $0xc8] ss:$12 sps:$4 sm:$0xff]  }
 0x3ec   :  { %7526 = vmatpush1.bf16.msra.mxu0 %v13537_v40  ;;  %7690 = vmatpush1.bf16.msra.mxu1 %v13539_v41  ;;  %v13619_v40 = vcombine.low %v1101_v28, %v1109_v29  ;;  %v13634_v41 = vcombine.high %v1116_v34, %v1124_v61  ;;  %v1196_v28 = vld [vmem:[#allocation3 + $0x1fb0] sm:$0xff] }
 0x3ed   :  { %7527 = vmatprep.subr.bf16.mxu0 %v13554_v30  ;;  %7691 = vmatprep.subr.bf16.mxu1 %v13556_v44  ;;  %v13636_v30 = vcombine.high %v1117_v36, %v1125_v38  ;;  %v1132_v44 = vld [vmem:[#allocation3 + $0x1db0] sm:$0xff]  ;;  %15427 = vpow2.f32 %v7756_v63  ;;  %v15787_v36 = vsub.s32 0, %v15764_v1 }
 0x3ee   :  { %v15762_v27 = vpop.f32.mrb[8].mxu0  ;;  %v15768_v4 = vpop.f32.mrb[8].mxu1  ;;  %v13649_v3 = vcombine.low %v1132_v44, %v1140_v45  ;;  %v1204_v29 = vld [vmem:[#allocation3 + $0x1ff0] sm:$0xff] }
 0x3ef   :  { %v15766_v2 = vpop.f32.mrb[9].mxu0  ;;  %v15770_v8 = vpop.f32.mrb[9].mxu1  ;;  %v13714_v61 = vcombine.high %v1196_v28, %v1204_v29  ;;  %v14685_v63 = vld [vmem:[%s17746_s5 + $0x34] ss:$12 sps:$4 sm:$0xff]  }
 0x3f0   :  { %v7227_v6 = vpop.f32.mrb[10].mxu0  ;;  %7528 = vmatpush1.bf16.msra.mxu0 %v13553_v56  ;;  %7692 = vmatpush1.bf16.msra.mxu1 %v13555_v59  ;;  %v7391_v12 = vpop.f32.mrb[10].mxu1  ;;  %v13650_v56 = vcombine.high %v1132_v44, %v1140_v45  ;;  %v13652_v59 = vcombine.high %v1133_v49, %v1141_v50  ;;  %v14675_v44 = vld [vmem:[%s17746_s5 + $0x4] ss:$12 sps:$4 sm:$0xff]   ;;  %v1213_v45 = vrot.slane %v15778_v20, %v15787_v36 }
 0x3f1   :  { %v7228_v22 = vpop.f32.mrb[11].mxu0  ;;  %7529 = vmatprep.subr.bf16.mxu0 %v13570_v60  ;;  %7693 = vmatprep.subr.bf16.mxu1 %v13572_v62  ;;  %v7392_v16 = vpop.f32.mrb[11].mxu1  ;;  %v1148_v60 = vld [vmem:[#allocation3 + $0x1e30] sm:$0xff]  ;;  %v13651_v6 = vcombine.low %v1133_v49, %v1141_v50  ;;  %v1165_v12 = vld [vmem:[#allocation3 + $0x1eb8] sm:$0xff]  ;;  %v14673_v50 = vld [vmem:[%s17746_s5] ss:$12 sps:$4 sm:$0xff]  }
 0x3f2   :  { %v1156_v62 = vld [vmem:[#allocation3 + $0x1e70] sm:$0xff]  ;;  %v13668_v22 = vcombine.high %v1149_v0, %v1157_v37 }
 0x3f3   :  { %v13665_v13 = vcombine.low %v1148_v60, %v1156_v62 }
 0x3f4   :  { %7530 = vmatpush1.bf16.msra.mxu0 %v13569_v7  ;;  %7694 = vmatpush1.bf16.msra.mxu1 %v13571_v10  ;;  %v13666_v7 = vcombine.high %v1148_v60, %v1156_v62  ;;  %v1164_v10 = vld [vmem:[#allocation3 + $0x1eb0] sm:$0xff]  ;;  %v14681_v62 = vld [vmem:[%s17746_s5 + $0xe0] ss:$12 sps:$4 sm:$0xff]  }
 0x3f5   :  { %7531 = vmatprep.subr.bf16.mxu0 %v13586_v11  ;;  %7695 = vmatprep.subr.bf16.mxu1 %v13588_v46  ;;  %v1172_v11 = vld [vmem:[#allocation3 + $0x1ef0] sm:$0xff]  ;;  %v1173_v46 = vld [vmem:[#allocation3 + $0x1ef8] sm:$0xff] }
 0x3f6   :  { %v13682_v16 = vcombine.high %v1164_v10, %v1172_v11  ;;  %v13684_v17 = vcombine.high %v1165_v12, %v1173_v46  ;;  %v13683_v52 = vcombine.low %v1165_v12, %v1173_v46  ;;  %v14688_v12 = vld [vmem:[%s17746_s5 + $0x48] ss:$12 sps:$4 sm:$0xff]   ;;  %v14692_v46 = vld [vmem:[%s17746_s5 + $0x50] ss:$12 sps:$4 sm:$0xff]  }
 0x3f8   :  { %7532 = vmatpush1.bf16.msra.mxu0 %v13585_v21  ;;  %7696 = vmatpush1.bf16.msra.mxu1 %v13587_v23  ;;  %v1188_v21 = vld [vmem:[#allocation3 + $0x1f70] sm:$0xff]  ;;  %v1181_v23 = vld [vmem:[#allocation3 + $0x1f38] sm:$0xff] }
 0x3f9   :  { %7533 = vmatprep.subr.bf16.mxu0 %v13602_v24  ;;  %7697 = vmatprep.subr.bf16.mxu1 %v13604_v26  ;;  %v1189_v24 = vld [vmem:[#allocation3 + $0x1f78] sm:$0xff]  ;;  %v13681_v26 = vcombine.low %v1164_v10, %v1172_v11  ;;  %v13698_v14 = vcombine.high %v1180_v19, %v1188_v21 }
 0x3fa   :  { %v13700_v25 = vcombine.high %v1181_v23, %v1189_v24  ;;  %v13699_v34 = vcombine.low %v1181_v23, %v1189_v24  ;;  %v14691_v10 = vld [vmem:[%s17746_s5 + $0x110] ss:$12 sps:$4 sm:$0xff]   ;;  %v14698_v23 = vld [vmem:[%s17746_s5 + $0x78] ss:$12 sps:$4 sm:$0xff]   ;;  %v14702_v24 = vld [vmem:[%s17746_s5 + $0x80] ss:$12 sps:$4 sm:$0xff]  }
 0x3fc   :  { %7534 = vmatpush1.bf16.msra.mxu0 %v13601_v31  ;;  %7698 = vmatpush1.bf16.msra.mxu1 %v13603_v18  ;;  %v1197_v31 = vld [vmem:[#allocation3 + $0x1fb8] sm:$0xff] }
 0x3fd   :  { %7535 = vmatprep.subr.bf16.mxu0 %v13618_v32  ;;  %7699 = vmatprep.subr.bf16.mxu1 %v13620_v33  ;;  %v1205_v18 = vld [vmem:[#allocation3 + $0x1ff8] sm:$0xff]  ;;  %v13697_v32 = vcombine.low %v1180_v19, %v1188_v21  ;;  %v15428_v33 = vpop.eup %15427  ;;  %v14701_v21 = vld [vmem:[%s17746_s5 + $0x140] ss:$12 sps:$4 sm:$0xff]  }
 0x3fe   :  { %v13716_v38 = vcombine.high %v1197_v31, %v1205_v18  ;;  %v14700_v19 = vld [vmem:[%s17746_s5 + $0x7c] ss:$12 sps:$4 sm:$0xff]  }
 0x400   :  { %7536 = vmatpush1.bf16.msra.mxu0 %v13617_v39  ;;  %7700 = vmatpush1.bf16.msra.mxu1 %v13619_v40  ;;  %v1224_v39 = vsub.s32 3, %v15764_v1  ;;  %v13713_v40 = vcombine.low %v1196_v28, %v1204_v29  ;;  %v14707_v29 = vld [vmem:[%s17746_s5 + $0x98] ss:$12 sps:$4 sm:$0xff]  }
 0x401   :  { %7537 = vmatprep.subr.bf16.mxu0 %v13634_v41  ;;  %7701 = vmatprep.subr.bf16.mxu1 %v13636_v30  ;;  %v13718_v41 = vadd.f32 -1.0, %v15428_v33  ;;  %v13715_v30 = vcombine.low %v1197_v31, %v1205_v18  ;;  %v14710_v31 = vld [vmem:[%s17746_s5 + $0xac] ss:$12 sps:$4 sm:$0xff]   ;;  %v15895_v18 = vsub.s32 2, %v15764_v1 }
 0x402   :  { %v1225_v49 = vrot.slane %v15778_v20, %v1224_v39 }
 0x404   :  { %7538 = vmatpush1.bf16.msra.mxu0 %v13633_v54  ;;  %7702 = vmatpush1.bf16.msra.mxu1 %v13635_v51  ;;  %v7803_v54 = vsel %vm7723_vm0, %v15783_v35, %v13718_v41  ;;  %v14677_v51 = vld [vmem:[%s17746_s5 + $0x8] ss:$12 sps:$4 sm:$0xff]   ;;  %v15816_v60 = vadd.f32 %v15720_v58, %v1225_v49  ;;  %v14682_v58 = vld [vmem:[%s17746_s5 + $0x20] ss:$12 sps:$4 sm:$0xff]   ;;  %v14715_v41 = vld [vmem:[%s17746_s5 + $0xc4] ss:$12 sps:$4 sm:$0xff]  }
 0x405   :  { %7539 = vmatprep.subr.bf16.mxu0 %v13650_v56  ;;  %7703 = vmatprep.subr.bf16.mxu1 %v13652_v59  ;;  %v15810_v56 = vadd.f32 %v15714_v47, %v1213_v45  ;;  %v14680_v59 = vld [vmem:[%s17746_s5 + $0x1c] ss:$12 sps:$4 sm:$0xff]   ;;  %v7819_v35 = vpack.c.bf16 %v7803_v54, %v7803_v54  ;;  %v14678_v47 = vld [vmem:[%s17746_s5 + $0x18] ss:$12 sps:$4 sm:$0xff]   ;;  %v14713_v49 = vld [vmem:[%s17746_s5 + $0xc0] ss:$12 sps:$4 sm:$0xff]  }
 0x406   :  { %v7741_v37 = vmin.f32 %v15816_v60, 0.0  ;;  %vm7725_vm1 = vcmp.gt.f32.partialorder %v15816_v60, 0.0  ;;  %v14717_v54 = vld [vmem:[%s17746_s5 + $0x188] ss:$12 sps:$4 sm:$0xff]   ;;  %vm12653_vm0 = vcmask 254976  }
 0x407   :  { %v7738_v0 = vmin.f32 %v15810_v56, 0.0  ;;  %vm7722_vm2 = vcmp.gt.f32.partialorder %v15810_v56, 0.0 }
 0x408   :  { %7540 = vmatpush1.bf16.msra.mxu0 %v13649_v3  ;;  %7704 = vmatpush1.bf16.msra.mxu1 %v13651_v6  ;;  %v14683_v3 = vld [vmem:[%s17746_s5 + $0x30] ss:$12 sps:$4 sm:$0xff]   ;;  %v14687_v6 = vld [vmem:[%s17746_s5 + $0x38] ss:$12 sps:$4 sm:$0xff]   ;;  %v7760_v11 = vmul.f32 1.442695, %v7741_v37 }
 0x409   :  { %7541 = vmatprep.subr.bf16.mxu0 %v13666_v7  ;;  %7705 = vmatprep.subr.bf16.mxu1 %v13668_v22  ;;  %v14690_v7 = vld [vmem:[%s17746_s5 + $0x4c] ss:$12 sps:$4 sm:$0xff]   ;;  %v7754_v22 = vmul.f32 1.442695, %v7738_v0 }
 0x40a   :  { %v14727_v37 = vld [vmem:[%s17746_s5 + $0x1b8] ss:$12 sps:$4 sm:$0xff]  }
 0x40b   :  { %15429 = vpow2.f32 %v7754_v22 }
 0x40c   :  { %7542 = vmatpush1.bf16.msra.mxu0 %v13665_v13  ;;  %7706 = vmatpush1.bf16.msra.mxu1 %v13667_v15  ;;  %v14695_v13 = vld [vmem:[%s17746_s5 + $0x64] ss:$12 sps:$4 sm:$0xff]   ;;  %v14696_v15 = vld [vmem:[%s17746_s5 + $0x128] ss:$12 sps:$4 sm:$0xff]   ;;  %15431 = vpow2.f32 %v7760_v11 }
 0x40d   :  { %7543 = vmatprep.subr.bf16.mxu0 %v13682_v16  ;;  %7707 = vmatprep.subr.bf16.mxu1 %v13684_v17  ;;  %v14693_v16 = vld [vmem:[%s17746_s5 + $0x60] ss:$12 sps:$4 sm:$0xff]   ;;  %v14697_v17 = vld [vmem:[%s17746_s5 + $0x68] ss:$12 sps:$4 sm:$0xff]   ;;  %v14732_v11 = vld [vmem:[%s17746_s5 + $0x1d0] ss:$12 sps:$4 sm:$0xff]  }
 0x410   :  { %7544 = vmatpush1.bf16.msra.mxu0 %v13681_v26  ;;  %7708 = vmatpush1.bf16.msra.mxu1 %v13683_v52  ;;  %v14705_v26 = vld [vmem:[%s17746_s5 + $0x94] ss:$12 sps:$4 sm:$0xff]   ;;  %v14706_v52 = vld [vmem:[%s17746_s5 + $0x158] ss:$12 sps:$4 sm:$0xff]  }
 0x411   :  { %7545 = vmatprep.subr.bf16.mxu0 %v13698_v14  ;;  %7709 = vmatprep.subr.bf16.mxu1 %v13700_v25  ;;  %v14703_v25 = vld [vmem:[%s17746_s5 + $0x90] ss:$12 sps:$4 sm:$0xff]  }
 0x414   :  { %7546 = vmatpush1.bf16.msra.mxu0 %v13697_v32  ;;  %7710 = vmatpush1.bf16.msra.mxu1 %v13699_v34  ;;  %v14711_v32 = vld [vmem:[%s17746_s5 + $0x170] ss:$12 sps:$4 sm:$0xff]   ;;  %v1232_v34 = vsub.s32 5, %v15764_v1 }
 0x415   :  { %7547 = vmatprep.subr.bf16.mxu0 %v13714_v61  ;;  %7711 = vmatprep.subr.bf16.mxu1 %v13716_v38  ;;  %v15430_v14 = vpop.eup %15429  ;;  %v14708_v61 = vld [vmem:[%s17746_s5 + $0xa8] ss:$12 sps:$4 sm:$0xff]  }
 0x416   :  { %v15432_v28 = vpop.eup %15431  ;;  %v13717_v33 = vadd.f32 -1.0, %v15430_v14  ;;  %v14747_v14 = vld [vmem:[%s17746_s5 + $0x218] ss:$12 sps:$4 sm:$0xff]  }
 0x417   :  { %v13720_v38 = vadd.f32 -1.0, %v15432_v28 }
 0x418   :  { %7548 = vmatpush1.bf16.msra.mxu0 %v13713_v40  ;;  %7712 = vmatpush1.bf16.msra.mxu1 %v13715_v30  ;;  %v14712_v40 = vld [vmem:[%s17746_s5 + $0xb0] ss:$12 sps:$4 sm:$0xff]   ;;  %v1221_v30 = vrot.slane %v15778_v20, %v15895_v18  ;;  %v7802_v45 = vsel %vm7722_vm2, %v15810_v56, %v13717_v33  ;;  %v1240_v33 = vsub.s32 7, %v15764_v1 }
 0x419   :  { %10411 = vmatprep.subr.bf16.mxu0 %v14675_v44  ;;  %14299 = vmatprep.subr.bf16.mxu1 %v14676_v9  ;;  %v14716_v44 = vld [vmem:[%s17746_s5 + $0x248] ss:$12 sps:$4 sm:$0xff]   ;;  %v1233_v9 = vrot.slane %v15778_v20, %v1232_v34 }
 0x41a   :  { %v15931_v56 = vadd.f32 %v15718_v55, %v1221_v30  ;;  %v14718_v55 = vld [vmem:[%s17746_s5 + $0xd8] ss:$12 sps:$4 sm:$0xff]  }
 0x41b   :  { %7550 = vmatmul.mubr.bf16.vlgmr.msra.gmra.mrb[12].mxu0 %v15696_v5  ;;  %7714 = vmatmul.mubr.bf16.vlgmr.msra.gmra.mrb[12].mxu1 %v15696_v5  ;;  %v14686_v5 = vld [vmem:[%s17746_s5 + $0xf8] ss:$12 sps:$4 sm:$0xff]  }
 0x41c   :  { %10412 = vmatpush1.bf16.msra.mxu0 %v14673_v50  ;;  %10443 = vmatprep.mubr.bf16.mxu0 %v7819_v35  ;;  %v7805_v50 = vsel %vm7725_vm1, %v15816_v60, %v13720_v38  ;;  %v14721_v60 = vld [vmem:[%s17746_s5 + $0x260] ss:$12 sps:$4 sm:$0xff]   ;;  %vm7724_vm3 = vcmp.gt.f32.partialorder %v15931_v56, 0.0  ;;  %v14752_v38 = vld [vmem:[%s17746_s5 + $0x230] ss:$12 sps:$4 sm:$0xff]   ;;  %vm11322_vm1 = vcmask 261120  }
 0x41d   :  { %14300 = vmatpush3.bf16.msra.mxu1 %v14677_v51  ;;  %10771 = vmatprep.mubr.bf16.mxu1 %v7819_v35  ;;  %v15928_v51 = vpack.c.bf16 %v7802_v45, %v7802_v45  ;;  %v15939_v35 = vpack.c.bf16 %v7805_v50, %v7805_v50  ;;  %v14757_v50 = vld [vmem:[%s17746_s5 + $0x308] ss:$12 sps:$4 sm:$0xff]  }
 0x41e   :  { %10413 = vmatprep.subr.bf16.mxu0 %v14680_v59  ;;  %14301 = vmatprep.subr.bf16.mxu1 %v14681_v62  ;;  %v14720_v59 = vld [vmem:[%s17746_s5 + $0xdc] ss:$12 sps:$4 sm:$0xff]   ;;  %v15942_v62 = vadd.f32 %v15740_v48, %v1233_v9  ;;  %v7740_v48 = vmin.f32 %v15931_v56, 0.0  ;;  %v1241_v9 = vrot.slane %v15778_v20, %v1240_v33 }
 0x420   :  { %10414 = vmatpush1.bf16.msra.mxu0 %v14678_v47  ;;  %v14722_v47 = vld [vmem:[%s17746_s5 + $0x1a0] ss:$12 sps:$4 sm:$0xff]   ;;  %v7743_v0 = vmin.f32 %v15942_v62, 0.0  ;;  %vm7727_vm4 = vcmp.gt.f32.partialorder %v15942_v62, 0.0 }
 0x421   :  { %14302 = vmatpush3.bf16.msra.mxu1 %v14682_v58  ;;  %10415 = vmatprep.subr.bf16.mxu0 %v14685_v63  ;;  %v14725_v58 = vld [vmem:[%s17746_s5 + $0xf4] ss:$12 sps:$4 sm:$0xff]   ;;  %v14726_v63 = vld [vmem:[%s17746_s5 + $0x278] ss:$12 sps:$4 sm:$0xff]  }
 0x422   :  { %14303 = vmatprep.subr.bf16.mxu1 %v14686_v5  ;;  %v14723_v5 = vld [vmem:[%s17746_s5 + $0xf0] ss:$12 sps:$4 sm:$0xff]   ;;  %v7764_v22 = vmul.f32 1.442695, %v7743_v0  ;;  %v14767_v0 = vld [vmem:[%s17746_s5 + $0x338] ss:$12 sps:$4 sm:$0xff]  }
 0x424   :  { %10416 = vmatpush1.bf16.msra.mxu0 %v14683_v3  ;;  %v14730_v3 = vld [vmem:[%s17746_s5 + $0x10c] ss:$12 sps:$4 sm:$0xff]  }
 0x425   :  { %14304 = vmatpush3.bf16.msra.mxu1 %v14687_v6  ;;  %10417 = vmatprep.subr.bf16.mxu0 %v14690_v7  ;;  %v7758_v6 = vmul.f32 1.442695, %v7740_v48  ;;  %v14731_v7 = vld [vmem:[%s17746_s5 + $0x290] ss:$12 sps:$4 sm:$0xff]   ;;  %v14766_v48 = vld [vmem:[%s17746_s5 + $0x3f8] ss:$12 sps:$4 sm:$0xff]  }
 0x426   :  { %14305 = vmatprep.subr.bf16.mxu1 %v14691_v10  ;;  %v14728_v10 = vld [vmem:[%s17746_s5 + $0x108] ss:$12 sps:$4 sm:$0xff]  }
 0x427   :  { %15433 = vpow2.f32 %v7758_v6 }
 0x428   :  { %10418 = vmatpush1.bf16.msra.mxu0 %v14688_v12  ;;  %v14735_v12 = vld [vmem:[%s17746_s5 + $0x124] ss:$12 sps:$4 sm:$0xff]   ;;  %15435 = vpow2.f32 %v7764_v22 }
 0x429   :  { %14306 = vmatpush3.bf16.msra.mxu1 %v14692_v46  ;;  %10419 = vmatprep.subr.bf16.mxu0 %v14695_v13  ;;  %v14736_v46 = vld [vmem:[%s17746_s5 + $0x2a8] ss:$12 sps:$4 sm:$0xff]   ;;  %v14733_v13 = vld [vmem:[%s17746_s5 + $0x120] ss:$12 sps:$4 sm:$0xff]   ;;  %v14772_v22 = vld [vmem:[%s17746_s5 + $0x350] ss:$12 sps:$4 sm:$0xff]  }
 0x42a   :  { %14307 = vmatprep.subr.bf16.mxu1 %v14696_v15  ;;  %v14737_v15 = vld [vmem:[%s17746_s5 + $0x1e8] ss:$12 sps:$4 sm:$0xff]  }
 0x42c   :  { %10420 = vmatpush1.bf16.msra.mxu0 %v14693_v16  ;;  %v14740_v16 = vld [vmem:[%s17746_s5 + $0x13c] ss:$12 sps:$4 sm:$0xff]  }
 0x42d   :  { %14308 = vmatpush3.bf16.msra.mxu1 %v14697_v17  ;;  %10421 = vmatprep.subr.bf16.mxu0 %v14700_v19  ;;  %v14741_v17 = vld [vmem:[%s17746_s5 + $0x2c0] ss:$12 sps:$4 sm:$0xff]   ;;  %v14738_v19 = vld [vmem:[%s17746_s5 + $0x138] ss:$12 sps:$4 sm:$0xff]  }
 0x42e   :  { %14309 = vmatprep.subr.bf16.mxu1 %v14701_v21  ;;  %v14742_v21 = vld [vmem:[%s17746_s5 + $0x200] ss:$12 sps:$4 sm:$0xff]  }
 0x430   :  { %10422 = vmatpush1.bf16.msra.mxu0 %v14698_v23  ;;  %v14745_v23 = vld [vmem:[%s17746_s5 + $0x154] ss:$12 sps:$4 sm:$0xff]  }
 0x431   :  { %14310 = vmatpush3.bf16.msra.mxu1 %v14702_v24  ;;  %10423 = vmatprep.subr.bf16.mxu0 %v14705_v26  ;;  %v14746_v24 = vld [vmem:[%s17746_s5 + $0x2d8] ss:$12 sps:$4 sm:$0xff]   ;;  %v15434_v26 = vpop.eup %15433 }
 0x432   :  { %14311 = vmatprep.subr.bf16.mxu1 %v14706_v52  ;;  %v14743_v52 = vld [vmem:[%s17746_s5 + $0x150] ss:$12 sps:$4 sm:$0xff]   ;;  %v15436_v28 = vpop.eup %15435 }
 0x434   :  { %10424 = vmatpush1.bf16.msra.mxu0 %v14703_v25  ;;  %v14750_v25 = vld [vmem:[%s17746_s5 + $0x16c] ss:$12 sps:$4 sm:$0xff]  }
 0x435   :  { %14312 = vmatpush3.bf16.msra.mxu1 %v14707_v29  ;;  %10425 = vmatprep.subr.bf16.mxu0 %v14710_v31  ;;  %v1228_v29 = vsub.s32 4, %v15764_v1  ;;  %v14751_v31 = vld [vmem:[%s17746_s5 + $0x2f0] ss:$12 sps:$4 sm:$0xff]  }
 0x436   :  { %14313 = vmatprep.subr.bf16.mxu1 %v14711_v32  ;;  %v13719_v32 = vadd.f32 -1.0, %v15434_v26 }
 0x437   :  { %v1229_v30 = vrot.slane %v15778_v20, %v1228_v29 }
 0x438   :  { %10426 = vmatpush1.bf16.msra.mxu0 %v14708_v61  ;;  %v14748_v61 = vld [vmem:[%s17746_s5 + $0x168] ss:$12 sps:$4 sm:$0xff]   ;;  %v7804_v45 = vsel %vm7724_vm3, %v15931_v56, %v13719_v32 }
 0x439   :  { %14314 = vmatpush3.bf16.msra.mxu1 %v14712_v40  ;;  %10427 = vmatprep.subr.bf16.mxu0 %v14715_v41  ;;  %v14755_v40 = vld [vmem:[%s17746_s5 + $0x184] ss:$12 sps:$4 sm:$0xff]   ;;  %v13722_v41 = vadd.f32 -1.0, %v15436_v28  ;;  %v16050_v56 = vpack.c.bf16 %v7804_v45, %v7804_v45  ;;  %v14788_v32 = vld [vmem:[%s17746_s5 + $0x228] ss:$12 sps:$4 sm:$0xff]  }
 0x43a   :  { %14321 = vmatprep.subr.bf16.mxu1 %v14716_v44  ;;  %v14756_v44 = vld [vmem:[%s17746_s5 + $0x3c8] ss:$12 sps:$4 sm:$0xff]   ;;  %v14791_v28 = vld [vmem:[%s17746_s5 + $0x470] ss:$12 sps:$4 sm:$0xff]  }
 0x43c   :  { %10772 = vmatmul.mubr.bf16.vlgmr.msra.gmra.mrb[16].mxu1 %v15928_v51  ;;  %10428 = vmatpush1.bf16.msra.mxu0 %v14713_v49  ;;  %v14753_v49 = vld [vmem:[%s17746_s5 + $0x180] ss:$12 sps:$4 sm:$0xff]  }
 0x43d   :  { %14322 = vmatpush3.bf16.msra.mxu1 %v14717_v54  ;;  %10811 = vmatprep.mubr.bf16.mxu1 %v15939_v35  ;;  %v7807_v54 = vsel %vm7727_vm4, %v15942_v62, %v13722_v41  ;;  %v14795_v41 = vld [vmem:[%s17746_s5 + $0x244] ss:$12 sps:$4 sm:$0xff]   ;;  %vm11876_vm4 = vcmask 25600  }
 0x43e   :  { %10429 = vmatprep.subr.bf16.mxu0 %v14720_v59  ;;  %14323 = vmatprep.subr.bf16.mxu1 %v14721_v60  ;;  %v16053_v59 = vadd.f32 %v15738_v43, %v1229_v30  ;;  %v14760_v60 = vld [vmem:[%s17746_s5 + $0x19c] ss:$12 sps:$4 sm:$0xff]   ;;  %v16066_v62 = vpack.c.bf16 %v7807_v54, %v7807_v54  ;;  %v14758_v43 = vld [vmem:[%s17746_s5 + $0x198] ss:$12 sps:$4 sm:$0xff]  }
 0x440   :  { %10430 = vmatpush1.bf16.msra.mxu0 %v14718_v55  ;;  %v16059_v55 = vadd.f32 %v15744_v57, %v1241_v9  ;;  %v14762_v57 = vld [vmem:[%s17746_s5 + $0x320] ss:$12 sps:$4 sm:$0xff]   ;;  %vm7726_vm6 = vcmp.gt.f32.partialorder %v16053_v59, 0.0 }
 0x441   :  { %14324 = vmatpush3.bf16.msra.mxu1 %v14722_v47  ;;  %10431 = vmatprep.subr.bf16.mxu0 %v14725_v58  ;;  %v14761_v47 = vld [vmem:[%s17746_s5 + $0x3e0] ss:$12 sps:$4 sm:$0xff]   ;;  %v7742_v58 = vmin.f32 %v16053_v59, 0.0 }
 0x442   :  { %14325 = vmatprep.subr.bf16.mxu1 %v14726_v63  ;;  %v14763_v63 = vld [vmem:[%s17746_s5 + $0x1b0] ss:$12 sps:$4 sm:$0xff]   ;;  %vm7729_vm5 = vcmp.gt.f32.partialorder %v16059_v55, 0.0 }
 0x444   :  { %10432 = vmatpush1.bf16.msra.mxu0 %v14723_v5  ;;  %v14770_v5 = vld [vmem:[%s17746_s5 + $0x1cc] ss:$12 sps:$4 sm:$0xff]  }
 0x445   :  { %14326 = vmatpush3.bf16.msra.mxu1 %v14727_v37  ;;  %10433 = vmatprep.subr.bf16.mxu0 %v14730_v3  ;;  %v7762_v37 = vmul.f32 1.442695, %v7742_v58  ;;  %v14771_v3 = vld [vmem:[%s17746_s5 + $0x410] ss:$12 sps:$4 sm:$0xff]   ;;  %v14806_v58 = vld [vmem:[%s17746_s5 + $0x578] ss:$12 sps:$4 sm:$0xff]  }
 0x446   :  { %14327 = vmatprep.subr.bf16.mxu1 %v14731_v7  ;;  %v14768_v7 = vld [vmem:[%s17746_s5 + $0x1c8] ss:$12 sps:$4 sm:$0xff]  }
 0x447   :  { %15437 = vpow2.f32 %v7762_v37  ;;  %v14811_v37 = vld [vmem:[%s17746_s5 + $0x590] ss:$12 sps:$4 sm:$0xff]  }
 0x448   :  { %10434 = vmatpush1.bf16.msra.mxu0 %v14728_v10  ;;  %v14775_v10 = vld [vmem:[%s17746_s5 + $0x1e4] ss:$12 sps:$4 sm:$0xff]  }
 0x449   :  { %14328 = vmatpush3.bf16.msra.mxu1 %v14732_v11  ;;  %10435 = vmatprep.subr.bf16.mxu0 %v14735_v12  ;;  %v14776_v11 = vld [vmem:[%s17746_s5 + $0x428] ss:$12 sps:$4 sm:$0xff]   ;;  %v14773_v12 = vld [vmem:[%s17746_s5 + $0x1e0] ss:$12 sps:$4 sm:$0xff]  }
 0x44a   :  { %14329 = vmatprep.subr.bf16.mxu1 %v14736_v46  ;;  %v14777_v46 = vld [vmem:[%s17746_s5 + $0x368] ss:$12 sps:$4 sm:$0xff]  }
 0x44c   :  { %10436 = vmatpush1.bf16.msra.mxu0 %v14733_v13  ;;  %v14780_v13 = vld [vmem:[%s17746_s5 + $0x1fc] ss:$12 sps:$4 sm:$0xff]  }
 0x44d   :  { %14330 = vmatpush3.bf16.msra.mxu1 %v14737_v15  ;;  %10437 = vmatprep.subr.bf16.mxu0 %v14740_v16  ;;  %v14781_v15 = vld [vmem:[%s17746_s5 + $0x440] ss:$12 sps:$4 sm:$0xff]   ;;  %v14778_v16 = vld [vmem:[%s17746_s5 + $0x1f8] ss:$12 sps:$4 sm:$0xff]  }
 0x44e   :  { %14331 = vmatprep.subr.bf16.mxu1 %v14741_v17  ;;  %v14782_v17 = vld [vmem:[%s17746_s5 + $0x380] ss:$12 sps:$4 sm:$0xff]  }
 0x450   :  { %10438 = vmatpush1.bf16.msra.mxu0 %v14738_v19  ;;  %v14785_v19 = vld [vmem:[%s17746_s5 + $0x214] ss:$12 sps:$4 sm:$0xff]  }
 0x451   :  { %14332 = vmatpush3.bf16.msra.mxu1 %v14742_v21  ;;  %10439 = vmatprep.subr.bf16.mxu0 %v14745_v23  ;;  %v14786_v21 = vld [vmem:[%s17746_s5 + $0x458] ss:$12 sps:$4 sm:$0xff]   ;;  %v15438_v23 = vpop.eup %15437 }
 0x452   :  { %14333 = vmatprep.subr.bf16.mxu1 %v14746_v24  ;;  %v14783_v24 = vld [vmem:[%s17746_s5 + $0x210] ss:$12 sps:$4 sm:$0xff]  }
 0x454   :  { %10440 = vmatpush1.bf16.msra.mxu0 %v14743_v52  ;;  %v14787_v52 = vld [vmem:[%s17746_s5 + $0x398] ss:$12 sps:$4 sm:$0xff]  }
 0x455   :  { %14334 = vmatpush3.bf16.msra.mxu1 %v14747_v14  ;;  %10441 = vmatprep.subr.bf16.mxu0 %v14750_v25  ;;  %v14790_v14 = vld [vmem:[%s17746_s5 + $0x22c] ss:$12 sps:$4 sm:$0xff]   ;;  %v1236_v25 = vsub.s32 6, %v15764_v1 }
 0x456   :  { %14335 = vmatprep.subr.bf16.mxu1 %v14751_v31  ;;  %v13721_v31 = vadd.f32 -1.0, %v15438_v23  ;;  %v14823_v23 = vld [vmem:[%s17746_s5 + $0x2d0] ss:$12 sps:$4 sm:$0xff]  }
 0x457   :  { %v1237_v30 = vrot.slane %v15778_v20, %v1236_v25  ;;  %v14797_v20 = vld [vmem:[%s17746_s5 + $0x488] ss:$12 sps:$4 sm:$0xff]  }
 0x458   :  { %10442 = vmatpush1.bf16.msra.mxu0 %v14748_v61  ;;  %v7806_v45 = vsel %vm7726_vm6, %v16053_v59, %v13721_v31  ;;  %v14828_v31 = vld [vmem:[%s17746_s5 + $0x2e8] ss:$12 sps:$4 sm:$0xff]  }
 0x459   :  { %14336 = vmatpush3.bf16.msra.mxu1 %v14752_v38  ;;  %10452 = vmatprep.subr.bf16.mxu0 %v14755_v40  ;;  %v16152_v38 = vld [vmem:[%s17745_s4 + $0x8] sm:$0xff]  ;;  %v14792_v40 = vld [vmem:[%s17746_s5 + $0x3b0] ss:$12 sps:$4 sm:$0xff]   ;;  %v16177_v54 = vpack.c.bf16 %v7806_v45, %v7806_v45  ;;  %v16180_v59 = vadd.f32 %v15742_v53, %v1237_v30  ;;  %v14798_v53 = vld [vmem:[%s17746_s5 + $0x258] ss:$12 sps:$4 sm:$0xff]  }
 0x45a   :  { %14343 = vmatprep.subr.bf16.mxu1 %v14756_v44  ;;  %v14796_v44 = vld [vmem:[%s17746_s5 + $0x548] ss:$12 sps:$4 sm:$0xff]   ;;  %v1249_v9 = vrot.slane %v16152_v38, %v15773_v42  ;;  %v1257_v45 = vrot.slane %v16152_v38, %v1224_v39 }
 0x45b   :  { %10444 = vmatmul.mubr.bf16.vlgmr.msra.gmra.mrb[16].mxu0 %v15928_v51  ;;  %v14765_v51 = vld [vmem:[%s17746_s5 + $0x1b4] ss:$12 sps:$4 sm:$0xff]   ;;  %vm7728_vm7 = vcmp.gt.f32.partialorder %v16180_v59, 0.0  ;;  %v14840_v39 = vld [vmem:[%s17746_s5 + $0x31c] ss:$12 sps:$4 sm:$0xff]  }
 0x45c   :  { %10812 = vmatmul.mubr.bf16.vlgmr.msra.gmra.mrb[20].mxu1 %v16050_v56  ;;  %10453 = vmatpush1.bf16.msra.mxu0 %v14753_v49  ;;  %v14793_v49 = vld [vmem:[%s17746_s5 + $0x240] ss:$12 sps:$4 sm:$0xff]   ;;  %v14836_v30 = vld [vmem:[%s17746_s5 + $0x6c8] ss:$12 sps:$4 sm:$0xff]  }
 0x45d   :  { %10484 = vmatprep.mubr.bf16.mxu0 %v15939_v35  ;;  %14344 = vmatpush3.bf16.msra.mxu1 %v14757_v50  ;;  %v7745_v35 = vmin.f32 %v16059_v55, 0.0 }
 0x45e   :  { %10851 = vmatprep.mubr.bf16.mxu1 %v16066_v62  ;;  %10454 = vmatprep.subr.bf16.mxu0 %v14760_v60  ;;  %v14800_v60 = vld [vmem:[%s17746_s5 + $0x25c] ss:$12 sps:$4 sm:$0xff]  }
 0x45f   :  { %14345 = vmatprep.subr.bf16.mxu1 %v14761_v47  ;;  %v7768_v6 = vmul.f32 1.442695, %v7745_v35  ;;  %v14803_v35 = vld [vmem:[%s17746_s5 + $0x270] ss:$12 sps:$4 sm:$0xff]  }
 0x460   :  { %10455 = vmatpush1.bf16.msra.mxu0 %v14758_v43  ;;  %v16191_v43 = vadd.f32 %v15766_v2, %v1249_v9  ;;  %v7744_v2 = vmin.f32 %v16180_v59, 0.0  ;;  %v14833_v9 = vld [vmem:[%s17746_s5 + $0x300] ss:$12 sps:$4 sm:$0xff]  }
 0x461   :  { %14346 = vmatpush3.bf16.msra.mxu1 %v14762_v57  ;;  %10456 = vmatprep.subr.bf16.mxu0 %v14765_v51  ;;  %15439 = vpow2.f32 %v7768_v6  ;;  %v14802_v57 = vld [vmem:[%s17746_s5 + $0x4a0] ss:$12 sps:$4 sm:$0xff]   ;;  %v14808_v6 = vld [vmem:[%s17746_s5 + $0x288] ss:$12 sps:$4 sm:$0xff]  }
 0x462   :  { %14347 = vmatprep.subr.bf16.mxu1 %v14766_v48  ;;  %v14805_v51 = vld [vmem:[%s17746_s5 + $0x274] ss:$12 sps:$4 sm:$0xff]   ;;  %v7747_v48 = vmin.f32 %v16191_v43, 0.0  ;;  %vm7731_vm8 = vcmp.gt.f32.partialorder %v16191_v43, 0.0 }
 0x464   :  { %10457 = vmatpush1.bf16.msra.mxu0 %v14763_v63  ;;  %v14807_v63 = vld [vmem:[%s17746_s5 + $0x4b8] ss:$12 sps:$4 sm:$0xff]  }
 0x465   :  { %14348 = vmatpush3.bf16.msra.mxu1 %v14767_v0  ;;  %10458 = vmatprep.subr.bf16.mxu0 %v14770_v5  ;;  %v14810_v0 = vld [vmem:[%s17746_s5 + $0x28c] ss:$12 sps:$4 sm:$0xff]   ;;  %v7766_v5 = vmul.f32 1.442695, %v7744_v2 }
 0x466   :  { %14349 = vmatprep.subr.bf16.mxu1 %v14771_v3  ;;  %v7772_v3 = vmul.f32 1.442695, %v7747_v48  ;;  %v14847_v2 = vld [vmem:[%s17746_s5 + $0x638] ss:$12 sps:$4 sm:$0xff]  }
 0x467   :  { %15441 = vpow2.f32 %v7766_v5  ;;  %v14852_v5 = vld [vmem:[%s17746_s5 + $0x650] ss:$12 sps:$4 sm:$0xff]  }
 0x468   :  { %10459 = vmatpush1.bf16.msra.mxu0 %v14768_v7  ;;  %v14812_v7 = vld [vmem:[%s17746_s5 + $0x4d0] ss:$12 sps:$4 sm:$0xff]   ;;  %15443 = vpow2.f32 %v7772_v3  ;;  %v14856_v3 = vld [vmem:[%s17746_s5 + $0x728] ss:$12 sps:$4 sm:$0xff]  }
 0x469   :  { %14350 = vmatpush3.bf16.msra.mxu1 %v14772_v22  ;;  %10460 = vmatprep.subr.bf16.mxu0 %v14775_v10  ;;  %v14815_v22 = vld [vmem:[%s17746_s5 + $0x2a4] ss:$12 sps:$4 sm:$0xff]   ;;  %v14816_v10 = vld [vmem:[%s17746_s5 + $0x5a8] ss:$12 sps:$4 sm:$0xff]  }
 0x46a   :  { %14351 = vmatprep.subr.bf16.mxu1 %v14776_v11  ;;  %v14813_v11 = vld [vmem:[%s17746_s5 + $0x2a0] ss:$12 sps:$4 sm:$0xff]  }
 0x46b   :  { %v15440_v26 = vpop.eup %15439 }
 0x46c   :  { %10461 = vmatpush1.bf16.msra.mxu0 %v14773_v12  ;;  %v13724_v61 = vadd.f32 -1.0, %v15440_v26  ;;  %v14817_v12 = vld [vmem:[%s17746_s5 + $0x4e8] ss:$12 sps:$4 sm:$0xff]   ;;  %v14830_v26 = vld [vmem:[%s17746_s5 + $0x2ec] ss:$12 sps:$4 sm:$0xff]  }
 0x46d   :  { %14352 = vmatpush3.bf16.msra.mxu1 %v14777_v46  ;;  %10462 = vmatprep.subr.bf16.mxu0 %v14780_v13  ;;  %v14820_v46 = vld [vmem:[%s17746_s5 + $0x2bc] ss:$12 sps:$4 sm:$0xff]   ;;  %v14821_v13 = vld [vmem:[%s17746_s5 + $0x5c0] ss:$12 sps:$4 sm:$0xff]  }
 0x46e   :  { %14353 = vmatprep.subr.bf16.mxu1 %v14781_v15  ;;  %v7809_v50 = vsel %vm7729_vm5, %v16059_v55, %v13724_v61  ;;  %v14801_v55 = vld [vmem:[%s17746_s5 + $0x560] ss:$12 sps:$4 sm:$0xff]   ;;  %v14818_v15 = vld [vmem:[%s17746_s5 + $0x2b8] ss:$12 sps:$4 sm:$0xff]  }
 0x46f   :  { %v16188_v47 = vpack.c.bf16 %v7809_v50, %v7809_v50  ;;  %v14835_v61 = vld [vmem:[%s17746_s5 + $0x304] ss:$12 sps:$4 sm:$0xff]  }
 0x470   :  { %10463 = vmatpush1.bf16.msra.mxu0 %v14778_v16  ;;  %v14822_v16 = vld [vmem:[%s17746_s5 + $0x500] ss:$12 sps:$4 sm:$0xff]  }
 0x471   :  { %14354 = vmatpush3.bf16.msra.mxu1 %v14782_v17  ;;  %10464 = vmatprep.subr.bf16.mxu0 %v14785_v19  ;;  %v14825_v17 = vld [vmem:[%s17746_s5 + $0x2d4] ss:$12 sps:$4 sm:$0xff]   ;;  %v14826_v19 = vld [vmem:[%s17746_s5 + $0x5d8] ss:$12 sps:$4 sm:$0xff]  }
 0x472   :  { %14355 = vmatprep.subr.bf16.mxu1 %v14786_v21  ;;  %v15442_v21 = vpop.eup %15441 }
 0x474   :  { %10465 = vmatpush1.bf16.msra.mxu0 %v14783_v24  ;;  %v14827_v24 = vld [vmem:[%s17746_s5 + $0x518] ss:$12 sps:$4 sm:$0xff]  }
 0x475   :  { %14356 = vmatpush3.bf16.msra.mxu1 %v14787_v52  ;;  %10466 = vmatprep.subr.bf16.mxu0 %v14790_v14  ;;  %v15444_v52 = vpop.eup %15443  ;;  %v14831_v14 = vld [vmem:[%s17746_s5 + $0x5f0] ss:$12 sps:$4 sm:$0xff]  }
 0x476   :  { %14357 = vmatprep.subr.bf16.mxu1 %v14791_v28  ;;  %v13723_v28 = vadd.f32 -1.0, %v15442_v21  ;;  %v14870_v21 = vld [vmem:[%s17746_s5 + $0x3ac] ss:$12 sps:$4 sm:$0xff]  }
 0x478   :  { %10467 = vmatpush1.bf16.msra.mxu0 %v14788_v32  ;;  %v14832_v32 = vld [vmem:[%s17746_s5 + $0x530] ss:$12 sps:$4 sm:$0xff]  }
 0x479   :  { %14358 = vmatpush3.bf16.msra.mxu1 %v14792_v40  ;;  %10468 = vmatprep.subr.bf16.mxu0 %v14795_v41  ;;  %v13726_v40 = vadd.f32 -1.0, %v15444_v52  ;;  %v1245_v41 = vrot.slane %v16152_v38, %v15787_v36 }
 0x47a   :  { %14365 = vmatprep.subr.bf16.mxu1 %v14796_v44  ;;  %v7808_v44 = vsel %vm7728_vm7, %v16180_v59, %v13723_v28  ;;  %v14875_v28 = vld [vmem:[%s17746_s5 + $0x3c4] ss:$12 sps:$4 sm:$0xff]  }
 0x47b   :  { %v7811_v50 = vsel %vm7731_vm8, %v16191_v43, %v13726_v40  ;;  %v16299_v59 = vadd.f32 %v15762_v27, %v1245_v41  ;;  %v14838_v27 = vld [vmem:[%s17746_s5 + $0x318] ss:$12 sps:$4 sm:$0xff]   ;;  %v14873_v40 = vld [vmem:[%s17746_s5 + $0x3c0] ss:$12 sps:$4 sm:$0xff]  }
 0x47c   :  { %10852 = vmatmul.mubr.bf16.vlgmr.msra.gmra.mrb[24].mxu1 %v16177_v54  ;;  %10469 = vmatpush1.bf16.msra.mxu0 %v14793_v49  ;;  %v14837_v49 = vld [vmem:[%s17746_s5 + $0x608] ss:$12 sps:$4 sm:$0xff]   ;;  %v16312_v43 = vpack.c.bf16 %v7811_v50, %v7811_v50 }
 0x47d   :  { %14366 = vmatpush3.bf16.msra.mxu1 %v14797_v20  ;;  %10891 = vmatprep.mubr.bf16.mxu1 %v16188_v47  ;;  %v16296_v20 = vpack.c.bf16 %v7808_v44, %v7808_v44  ;;  %vm7730_vm10 = vcmp.gt.f32.partialorder %v16299_v59, 0.0 }
 0x47e   :  { %10470 = vmatprep.subr.bf16.mxu0 %v14800_v60  ;;  %14367 = vmatprep.subr.bf16.mxu1 %v14801_v55  ;;  %v16305_v60 = vadd.f32 %v15770_v8, %v1257_v45  ;;  %v14841_v55 = vld [vmem:[%s17746_s5 + $0x6e0] ss:$12 sps:$4 sm:$0xff]  }
 0x47f   :  { %v14842_v8 = vld [vmem:[%s17746_s5 + $0x620] ss:$12 sps:$4 sm:$0xff]  }
 0x480   :  { %10471 = vmatpush1.bf16.msra.mxu0 %v14798_v53  ;;  %v7746_v53 = vmin.f32 %v16299_v59, 0.0  ;;  %vm7733_vm9 = vcmp.gt.f32.partialorder %v16305_v60, 0.0 }
 0x481   :  { %14368 = vmatpush3.bf16.msra.mxu1 %v14802_v57  ;;  %10472 = vmatprep.subr.bf16.mxu0 %v14805_v51  ;;  %v14846_v57 = vld [vmem:[%s17746_s5 + $0x6f8] ss:$12 sps:$4 sm:$0xff]   ;;  %v14843_v51 = vld [vmem:[%s17746_s5 + $0x330] ss:$12 sps:$4 sm:$0xff]  }
 0x482   :  { %14369 = vmatprep.subr.bf16.mxu1 %v14806_v58  ;;  %v14850_v58 = vld [vmem:[%s17746_s5 + $0x34c] ss:$12 sps:$4 sm:$0xff]   ;;  %v7770_v48 = vmul.f32 1.442695, %v7746_v53 }
 0x484   :  { %10473 = vmatpush1.bf16.msra.mxu0 %v14803_v35  ;;  %v14851_v35 = vld [vmem:[%s17746_s5 + $0x710] ss:$12 sps:$4 sm:$0xff]   ;;  %15445 = vpow2.f32 %v7770_v48  ;;  %v14893_v48 = vld [vmem:[%s17746_s5 + $0x420] ss:$12 sps:$4 sm:$0xff]  }
 0x485   :  { %14370 = vmatpush3.bf16.msra.mxu1 %v14807_v63  ;;  %10474 = vmatprep.subr.bf16.mxu0 %v14810_v0  ;;  %v14848_v0 = vld [vmem:[%s17746_s5 + $0x348] ss:$12 sps:$4 sm:$0xff]  }
 0x486   :  { %14371 = vmatprep.subr.bf16.mxu1 %v14811_v37  ;;  %v14855_v37 = vld [vmem:[%s17746_s5 + $0x364] ss:$12 sps:$4 sm:$0xff]  }
 0x488   :  { %10475 = vmatpush1.bf16.msra.mxu0 %v14808_v6  ;;  %v14853_v6 = vld [vmem:[%s17746_s5 + $0x360] ss:$12 sps:$4 sm:$0xff]  }
 0x489   :  { %14372 = vmatpush3.bf16.msra.mxu1 %v14812_v7  ;;  %10476 = vmatprep.subr.bf16.mxu0 %v14815_v22  ;;  %v14857_v7 = vld [vmem:[%s17746_s5 + $0x668] ss:$12 sps:$4 sm:$0xff]  }
 0x48a   :  { %14373 = vmatprep.subr.bf16.mxu1 %v14816_v10  ;;  %v14860_v22 = vld [vmem:[%s17746_s5 + $0x37c] ss:$12 sps:$4 sm:$0xff]   ;;  %v14861_v10 = vld [vmem:[%s17746_s5 + $0x740] ss:$12 sps:$4 sm:$0xff]  }
 0x48c   :  { %10477 = vmatpush1.bf16.msra.mxu0 %v14813_v11  ;;  %v14858_v11 = vld [vmem:[%s17746_s5 + $0x378] ss:$12 sps:$4 sm:$0xff]  }
 0x48d   :  { %14374 = vmatpush3.bf16.msra.mxu1 %v14817_v12  ;;  %10478 = vmatprep.subr.bf16.mxu0 %v14820_v46  ;;  %v14862_v12 = vld [vmem:[%s17746_s5 + $0x680] ss:$12 sps:$4 sm:$0xff]  }
 0x48e   :  { %14375 = vmatprep.subr.bf16.mxu1 %v14821_v13  ;;  %v14865_v46 = vld [vmem:[%s17746_s5 + $0x394] ss:$12 sps:$4 sm:$0xff]   ;;  %v14866_v13 = vld [vmem:[%s17746_s5 + $0x758] ss:$12 sps:$4 sm:$0xff]  }
 0x490   :  { %10479 = vmatpush1.bf16.msra.mxu0 %v14818_v15  ;;  %v15446_v15 = vpop.eup %15445 }
 0x491   :  { %14376 = vmatpush3.bf16.msra.mxu1 %v14822_v16  ;;  %10480 = vmatprep.subr.bf16.mxu0 %v14825_v17  ;;  %v14863_v16 = vld [vmem:[%s17746_s5 + $0x390] ss:$12 sps:$4 sm:$0xff]  }
 0x492   :  { %14377 = vmatprep.subr.bf16.mxu1 %v14826_v19  ;;  %v14867_v19 = vld [vmem:[%s17746_s5 + $0x698] ss:$12 sps:$4 sm:$0xff]  }
 0x494   :  { %10481 = vmatpush1.bf16.msra.mxu0 %v14823_v23  ;;  %v14871_v23 = vld [vmem:[%s17746_s5 + $0x770] ss:$12 sps:$4 sm:$0xff]  }
 0x495   :  { %14378 = vmatpush3.bf16.msra.mxu1 %v14827_v24  ;;  %10482 = vmatprep.subr.bf16.mxu0 %v14830_v26  ;;  %v13725_v24 = vadd.f32 -1.0, %v15446_v15  ;;  %v14868_v26 = vld [vmem:[%s17746_s5 + $0x3a8] ss:$12 sps:$4 sm:$0xff]   ;;  %v14912_v15 = vld [vmem:[%s17746_s5 + $0x830] ss:$12 sps:$4 sm:$0xff]  }
 0x496   :  { %14379 = vmatprep.subr.bf16.mxu1 %v14831_v14  ;;  %v14872_v14 = vld [vmem:[%s17746_s5 + $0x6b0] ss:$12 sps:$4 sm:$0xff]  }
 0x498   :  { %10483 = vmatpush1.bf16.msra.mxu0 %v14828_v31  ;;  %v1253_v31 = vrot.slane %v16152_v38, %v15895_v18 }
 0x499   :  { %14380 = vmatpush3.bf16.msra.mxu1 %v14832_v32  ;;  %10493 = vmatprep.subr.bf16.mxu0 %v14835_v61  ;;  %v14876_v32 = vld [vmem:[%s17746_s5 + $0x848] ss:$12 sps:$4 sm:$0xff]   ;;  %v7810_v61 = vsel %vm7730_vm10, %v16299_v59, %v13725_v24  ;;  %v14878_v59 = vld [vmem:[%s17746_s5 + $0x3d8] ss:$12 sps:$4 sm:$0xff]  }
 0x49a   :  { %14387 = vmatprep.subr.bf16.mxu1 %v14836_v30  ;;  %v14877_v30 = vld [vmem:[%s17746_s5 + $0x788] ss:$12 sps:$4 sm:$0xff]   ;;  %v16414_v44 = vpack.c.bf16 %v7810_v61, %v7810_v61  ;;  %v16417_v45 = vadd.f32 %v15768_v4, %v1253_v31  ;;  %v14882_v4 = vld [vmem:[%s17746_s5 + $0x7a0] ss:$12 sps:$4 sm:$0xff]   ;;  %v14932_v31 = vld [vmem:[%s17746_s5 + $0x9f8] ss:$12 sps:$4 sm:$0xff]  }
 0x49b   :  { %10485 = vmatmul.mubr.bf16.vlgmr.msra.gmra.mrb[16].mxu0 %v16050_v56  ;;  %v14845_v56 = vld [vmem:[%s17746_s5 + $0x334] ss:$12 sps:$4 sm:$0xff]   ;;  %v14936_v61 = vld [vmem:[%s17746_s5 + $0x938] ss:$12 sps:$4 sm:$0xff]  }
 0x49c   :  { %10892 = vmatmul.mubr.bf16.vlgmr.msra.gmra.mrb[28].mxu1 %v16296_v20  ;;  %10494 = vmatpush1.bf16.msra.mxu0 %v14833_v9  ;;  %v14880_v9 = vld [vmem:[%s17746_s5 + $0x3dc] ss:$12 sps:$4 sm:$0xff]   ;;  %vm7732_vm11 = vcmp.gt.f32.partialorder %v16417_v45, 0.0 }
 0x49d   :  { %10525 = vmatprep.mubr.bf16.mxu0 %v16066_v62  ;;  %14388 = vmatpush3.bf16.msra.mxu1 %v14837_v49  ;;  %v7749_v62 = vmin.f32 %v16305_v60, 0.0  ;;  %v14881_v49 = vld [vmem:[%s17746_s5 + $0x860] ss:$12 sps:$4 sm:$0xff]  }
 0x49e   :  { %10931 = vmatprep.mubr.bf16.mxu1 %v16312_v43  ;;  %10495 = vmatprep.subr.bf16.mxu0 %v14840_v39  ;;  %v14885_v39 = vld [vmem:[%s17746_s5 + $0x3f4] ss:$12 sps:$4 sm:$0xff]  }
 0x49f   :  { %14389 = vmatprep.subr.bf16.mxu1 %v14841_v55  ;;  %v7776_v63 = vmul.f32 1.442695, %v7749_v62  ;;  %v14886_v55 = vld [vmem:[%s17746_s5 + $0x878] ss:$12 sps:$4 sm:$0xff]   ;;  %v14888_v62 = vld [vmem:[%s17746_s5 + $0x408] ss:$12 sps:$4 sm:$0xff]  }
 0x4a0   :  { %10496 = vmatpush1.bf16.msra.mxu0 %v14838_v27  ;;  %v14883_v27 = vld [vmem:[%s17746_s5 + $0x3f0] ss:$12 sps:$4 sm:$0xff]  }
 0x4a1   :  { %14390 = vmatpush3.bf16.msra.mxu1 %v14842_v8  ;;  %10497 = vmatprep.subr.bf16.mxu0 %v14845_v56  ;;  %15447 = vpow2.f32 %v7776_v63  ;;  %v14887_v8 = vld [vmem:[%s17746_s5 + $0x7b8] ss:$12 sps:$4 sm:$0xff]   ;;  %v14900_v63 = vld [vmem:[%s17746_s5 + $0x43c] ss:$12 sps:$4 sm:$0xff]  }
 0x4a2   :  { %14391 = vmatprep.subr.bf16.mxu1 %v14846_v57  ;;  %v14890_v56 = vld [vmem:[%s17746_s5 + $0x40c] ss:$12 sps:$4 sm:$0xff]   ;;  %v14891_v57 = vld [vmem:[%s17746_s5 + $0x890] ss:$12 sps:$4 sm:$0xff]  }
 0x4a4   :  { %10498 = vmatpush1.bf16.msra.mxu0 %v14843_v51  ;;  %v14892_v51 = vld [vmem:[%s17746_s5 + $0x7d0] ss:$12 sps:$4 sm:$0xff]  }
 0x4a5   :  { %14392 = vmatpush3.bf16.msra.mxu1 %v14847_v2  ;;  %10499 = vmatprep.subr.bf16.mxu0 %v14850_v58  ;;  %v14895_v2 = vld [vmem:[%s17746_s5 + $0x424] ss:$12 sps:$4 sm:$0xff]   ;;  %v14896_v58 = vld [vmem:[%s17746_s5 + $0x8a8] ss:$12 sps:$4 sm:$0xff]  }
 0x4a6   :  { %14393 = vmatprep.subr.bf16.mxu1 %v14851_v35  ;;  %v14897_v35 = vld [vmem:[%s17746_s5 + $0x7e8] ss:$12 sps:$4 sm:$0xff]  }
 0x4a8   :  { %10500 = vmatpush1.bf16.msra.mxu0 %v14848_v0  ;;  %v14901_v0 = vld [vmem:[%s17746_s5 + $0x8c0] ss:$12 sps:$4 sm:$0xff]  }
 0x4a9   :  { %14394 = vmatpush3.bf16.msra.mxu1 %v14852_v5  ;;  %10501 = vmatprep.subr.bf16.mxu0 %v14855_v37  ;;  %v14898_v5 = vld [vmem:[%s17746_s5 + $0x438] ss:$12 sps:$4 sm:$0xff]   ;;  %v14902_v37 = vld [vmem:[%s17746_s5 + $0x800] ss:$12 sps:$4 sm:$0xff]  }
 0x4aa   :  { %14395 = vmatprep.subr.bf16.mxu1 %v14856_v3  ;;  %v14905_v3 = vld [vmem:[%s17746_s5 + $0x454] ss:$12 sps:$4 sm:$0xff]  }
 0x4ab   :  { %v15448_v17 = vpop.eup %15447 }
 0x4ac   :  { %10502 = vmatpush1.bf16.msra.mxu0 %v14853_v6  ;;  %v13728_v52 = vadd.f32 -1.0, %v15448_v17  ;;  %v14906_v6 = vld [vmem:[%s17746_s5 + $0x8d8] ss:$12 sps:$4 sm:$0xff]   ;;  %v14922_v17 = vld [vmem:[%s17746_s5 + $0x9c8] ss:$12 sps:$4 sm:$0xff]  }
 0x4ad   :  { %14396 = vmatpush3.bf16.msra.mxu1 %v14857_v7  ;;  %10503 = vmatprep.subr.bf16.mxu0 %v14860_v22  ;;  %v14903_v22 = vld [vmem:[%s17746_s5 + $0x450] ss:$12 sps:$4 sm:$0xff]  }
 0x4ae   :  { %14397 = vmatprep.subr.bf16.mxu1 %v14861_v10  ;;  %v7813_v41 = vsel %vm7733_vm9, %v16305_v60, %v13728_v52  ;;  %v7748_v60 = vmin.f32 %v16417_v45, 0.0  ;;  %v14907_v10 = vld [vmem:[%s17746_s5 + $0x818] ss:$12 sps:$4 sm:$0xff]   ;;  %v14927_v52 = vld [vmem:[%s17746_s5 + $0x9e0] ss:$12 sps:$4 sm:$0xff]  }
 0x4af   :  { %v16425_v50 = vpack.c.bf16 %v7813_v41, %v7813_v41  ;;  %v14923_v41 = vld [vmem:[%s17746_s5 + $0x4c8] ss:$12 sps:$4 sm:$0xff]  }
 0x4b0   :  { %10504 = vmatpush1.bf16.msra.mxu0 %v14858_v11  ;;  %v7774_v53 = vmul.f32 1.442695, %v7748_v60  ;;  %v14910_v11 = vld [vmem:[%s17746_s5 + $0x46c] ss:$12 sps:$4 sm:$0xff]  }
 0x4b1   :  { %14398 = vmatpush3.bf16.msra.mxu1 %v14862_v12  ;;  %10505 = vmatprep.subr.bf16.mxu0 %v14865_v46  ;;  %v14911_v12 = vld [vmem:[%s17746_s5 + $0x8f0] ss:$12 sps:$4 sm:$0xff]   ;;  %v14947_v60 = vld [vmem:[%s17746_s5 + $0xa40] ss:$12 sps:$4 sm:$0xff]  }
 0x4b2   :  { %14399 = vmatprep.subr.bf16.mxu1 %v14866_v13  ;;  %15449 = vpow2.f32 %v7774_v53  ;;  %v14908_v13 = vld [vmem:[%s17746_s5 + $0x468] ss:$12 sps:$4 sm:$0xff]   ;;  %v14951_v53 = vld [vmem:[%s17746_s5 + $0x980] ss:$12 sps:$4 sm:$0xff]  }
 0x4b4   :  { %10506 = vmatpush1.bf16.msra.mxu0 %v14863_v16  ;;  %v14915_v16 = vld [vmem:[%s17746_s5 + $0x484] ss:$12 sps:$4 sm:$0xff]  }
 0x4b5   :  { %14400 = vmatpush3.bf16.msra.mxu1 %v14867_v19  ;;  %10507 = vmatprep.subr.bf16.mxu0 %v14870_v21  ;;  %v14913_v21 = vld [vmem:[%s17746_s5 + $0x480] ss:$12 sps:$4 sm:$0xff]  }
 0x4b6   :  { %14401 = vmatprep.subr.bf16.mxu1 %v14871_v23  ;;  %v14918_v23 = vld [vmem:[%s17746_s5 + $0x49c] ss:$12 sps:$4 sm:$0xff]  }
 0x4b8   :  { %10508 = vmatpush1.bf16.msra.mxu0 %v14868_v26  ;;  %v14926_v26 = vld [vmem:[%s17746_s5 + $0x908] ss:$12 sps:$4 sm:$0xff]  }
 0x4b9   :  { %14402 = vmatpush3.bf16.msra.mxu1 %v14872_v14  ;;  %10509 = vmatprep.subr.bf16.mxu0 %v14875_v28  ;;  %v14916_v14 = vld [vmem:[%s17746_s5 + $0x498] ss:$12 sps:$4 sm:$0xff]   ;;  %v14921_v28 = vld [vmem:[%s17746_s5 + $0x4b4] ss:$12 sps:$4 sm:$0xff]  }
 0x4ba   :  { %14409 = vmatprep.subr.bf16.mxu1 %v14876_v32  ;;  %v14925_v32 = vld [vmem:[%s17746_s5 + $0x4cc] ss:$12 sps:$4 sm:$0xff]  }
 0x4bc   :  { %10932 = vmatmul.mubr.bf16.vlgmr.msra.gmra.mrb[32].mxu1 %v16414_v44  ;;  %10510 = vmatpush1.bf16.msra.mxu0 %v14873_v40  ;;  %v15450_v7 = vpop.eup %15449  ;;  %v14937_v40 = vld [vmem:[%s17746_s5 + $0xa10] ss:$12 sps:$4 sm:$0xff]  }
 0x4bd   :  { %14410 = vmatpush3.bf16.msra.mxu1 %v14877_v30  ;;  %10971 = vmatprep.mubr.bf16.mxu1 %v16425_v50  ;;  %v13727_v46 = vadd.f32 -1.0, %v15450_v7  ;;  %v14930_v30 = vld [vmem:[%s17746_s5 + $0x4e4] ss:$12 sps:$4 sm:$0xff]  }
 0x4be   :  { %10511 = vmatprep.subr.bf16.mxu0 %v14880_v9  ;;  %14411 = vmatprep.subr.bf16.mxu1 %v14881_v49  ;;  %v14942_v9 = vld [vmem:[%s17746_s5 + $0xa28] ss:$12 sps:$4 sm:$0xff]   ;;  %v14928_v49 = vld [vmem:[%s17746_s5 + $0x4e0] ss:$12 sps:$4 sm:$0xff]  }
 0x4bf   :  { %v7812_v19 = vsel %vm7732_vm11, %v16417_v45, %v13727_v46  ;;  %v14941_v45 = vld [vmem:[%s17746_s5 + $0x950] ss:$12 sps:$4 sm:$0xff]   ;;  %v14943_v46 = vld [vmem:[%s17746_s5 + $0x528] ss:$12 sps:$4 sm:$0xff]  }
 0x4c0   :  { %10512 = vmatpush1.bf16.msra.mxu0 %v14878_v59  ;;  %v16522_v24 = vpack.c.bf16 %v7812_v19, %v7812_v19  ;;  %v14935_v59 = vld [vmem:[%s17746_s5 + $0x4fc] ss:$12 sps:$4 sm:$0xff]   ;;  %v14948_v19 = vld [vmem:[%s17746_s5 + $0x540] ss:$12 sps:$4 sm:$0xff]  }
 0x4c1   :  { %14412 = vmatpush3.bf16.msra.mxu1 %v14882_v4  ;;  %10513 = vmatprep.subr.bf16.mxu0 %v14885_v39  ;;  %v14946_v4 = vld [vmem:[%s17746_s5 + $0x968] ss:$12 sps:$4 sm:$0xff]   ;;  %v1261_v39 = vrot.slane %v16152_v38, %v1228_v29  ;;  %v1273_v29 = vrot.slane %v16152_v38, %v1240_v33  ;;  %v14938_v33 = vld [vmem:[%s17746_s5 + $0x510] ss:$12 sps:$4 sm:$0xff]  }
 0x4c2   :  { %14413 = vmatprep.subr.bf16.mxu1 %v14886_v55  ;;  %v1265_v55 = vrot.slane %v16152_v38, %v1232_v34 }
 0x4c4   :  { %10514 = vmatpush1.bf16.msra.mxu0 %v14883_v27  ;;  %v14933_v27 = vld [vmem:[%s17746_s5 + $0x4f8] ss:$12 sps:$4 sm:$0xff]  }
 0x4c5   :  { %14414 = vmatpush3.bf16.msra.mxu1 %v14887_v8  ;;  %10515 = vmatprep.subr.bf16.mxu0 %v14890_v56  ;;  %v14940_v8 = vld [vmem:[%s17746_s5 + $0x514] ss:$12 sps:$4 sm:$0xff]  }
 0x4c6   :  { %14415 = vmatprep.subr.bf16.mxu1 %v14891_v57 }
 0x4c8   :  { %10516 = vmatpush1.bf16.msra.mxu0 %v14888_v62  ;;  %v14952_v62 = vld [vmem:[%s17746_s5 + $0xa58] ss:$12 sps:$4 sm:$0xff]  }
 0x4c9   :  { %14416 = vmatpush3.bf16.msra.mxu1 %v14892_v51  ;;  %10517 = vmatprep.subr.bf16.mxu0 %v14895_v2 }
 0x4ca   :  { %14417 = vmatprep.subr.bf16.mxu1 %v14896_v58 }
 0x4cc   :  { %10518 = vmatpush1.bf16.msra.mxu0 %v14893_v48 }
 0x4cd   :  { %14418 = vmatpush3.bf16.msra.mxu1 %v14897_v35  ;;  %10519 = vmatprep.subr.bf16.mxu0 %v14900_v63 }
 0x4ce   :  { %14419 = vmatprep.subr.bf16.mxu1 %v14901_v0  ;;  %v14945_v0 = vld [vmem:[%s17746_s5 + $0x52c] ss:$12 sps:$4 sm:$0xff]  }
 0x4d0   :  { %10520 = vmatpush1.bf16.msra.mxu0 %v14898_v5 }
 0x4d1   :  { %14420 = vmatpush3.bf16.msra.mxu1 %v14902_v37  ;;  %10521 = vmatprep.subr.bf16.mxu0 %v14905_v3 }
 0x4d2   :  { %14421 = vmatprep.subr.bf16.mxu1 %v14906_v6  ;;  %v14956_v6 = vld [vmem:[%s17746_s5 + $0x998] ss:$12 sps:$4 sm:$0xff]  }
 0x4d4   :  { %10522 = vmatpush1.bf16.msra.mxu0 %v14903_v22 }
 0x4d5   :  { %14422 = vmatpush3.bf16.msra.mxu1 %v14907_v10  ;;  %10523 = vmatprep.subr.bf16.mxu0 %v14910_v11  ;;  %v14957_v10 = vld [vmem:[%s17746_s5 + $0xa70] ss:$12 sps:$4 sm:$0xff]  }
 0x4d6   :  { %14423 = vmatprep.subr.bf16.mxu1 %v14911_v12 }
 0x4d8   :  { %10524 = vmatpush1.bf16.msra.mxu0 %v14908_v13  ;;  %v14950_v13 = vld [vmem:[%s17746_s5 + $0x544] ss:$12 sps:$4 sm:$0xff]  }
 0x4d9   :  { %14424 = vmatpush3.bf16.msra.mxu1 %v14912_v15  ;;  %10534 = vmatprep.subr.bf16.mxu0 %v14915_v16  ;;  %v14961_v16 = vld [vmem:[%s17746_s5 + $0x9b0] ss:$12 sps:$4 sm:$0xff]  }
 0x4da   :  { %14431 = vmatprep.subr.bf16.mxu1 %v14922_v17  ;;  %v14962_v17 = vld [vmem:[%s17746_s5 + $0xb48] ss:$12 sps:$4 sm:$0xff]  }
 0x4db   :  { %10526 = vmatmul.mubr.bf16.vlgmr.msra.gmra.mrb[16].mxu0 %v16177_v54  ;;  %v14931_v54 = vld [vmem:[%s17746_s5 + $0x920] ss:$12 sps:$4 sm:$0xff]  }
 0x4dc   :  { %10972 = vmatmul.mubr.bf16.vlgmr.msra.gmra.mrb[36].mxu1 %v16522_v24  ;;  %10535 = vmatpush1.bf16.msra.mxu0 %v14913_v21  ;;  %v14955_v21 = vld [vmem:[%s17746_s5 + $0x55c] ss:$12 sps:$4 sm:$0xff]  }
 0x4dd   :  { %10566 = vmatprep.mubr.bf16.mxu0 %v16188_v47  ;;  %10536 = vmatprep.subr.bf16.mxu0 %v14918_v23  ;;  %v14919_v47 = vld [vmem:[%s17746_s5 + $0x4b0] ss:$12 sps:$4 sm:$0xff]   ;;  %v14953_v23 = vld [vmem:[%s17746_s5 + $0x558] ss:$12 sps:$4 sm:$0xff]  }
 0x4de   :  { %14432 = vmatpush3.bf16.msra.mxu1 %v14926_v26  ;;  %v14960_v26 = vld [vmem:[%s17746_s5 + $0x574] ss:$12 sps:$4 sm:$0xff]  }
 0x4df   :  { %14433 = vmatprep.subr.bf16.mxu1 %v14927_v52 }
 0x4e0   :  { %10537 = vmatpush1.bf16.msra.mxu0 %v14916_v14  ;;  %v1269_v14 = vrot.slane %v16152_v38, %v1236_v25 }
 0x4e1   :  { %10538 = vmatprep.subr.bf16.mxu0 %v14921_v28 }
 0x4e2   :  { %14434 = vmatpush3.bf16.msra.mxu1 %v14931_v54 }
 0x4e3   :  { %14435 = vmatprep.subr.bf16.mxu1 %v14932_v31  ;;  %v14958_v31 = vld [vmem:[%s17746_s5 + $0x570] ss:$12 sps:$4 sm:$0xff]  }
 0x4e4   :  { %10539 = vmatpush1.bf16.msra.mxu0 %v14919_v47 }
 0x4e5   :  { %10540 = vmatprep.subr.bf16.mxu0 %v14925_v32  ;;  %v14965_v32 = vld [vmem:[%s17746_s5 + $0x58c] ss:$12 sps:$4 sm:$0xff]  }
 0x4e6   :  { %14436 = vmatpush3.bf16.msra.mxu1 %v14936_v61 }
 0x4e7   :  { %14437 = vmatprep.subr.bf16.mxu1 %v14937_v40 }
 0x4e8   :  { %10541 = vmatpush1.bf16.msra.mxu0 %v14923_v41 }
 0x4e9   :  { %10542 = vmatprep.subr.bf16.mxu0 %v14930_v30  ;;  %v14963_v30 = vld [vmem:[%s17746_s5 + $0x588] ss:$12 sps:$4 sm:$0xff]  }
 0x4ea   :  { %14438 = vmatpush3.bf16.msra.mxu1 %v14941_v45  ;;  %v14966_v45 = vld [vmem:[%s17746_s5 + $0xa88] ss:$12 sps:$4 sm:$0xff]  }
 0x4eb   :  { %14439 = vmatprep.subr.bf16.mxu1 %v14942_v9 }
 0x4ec   :  { %10543 = vmatpush1.bf16.msra.mxu0 %v14928_v49  ;;  %v14967_v49 = vld [vmem:[%s17746_s5 + $0xb60] ss:$12 sps:$4 sm:$0xff]  }
 0x4ed   :  { %10544 = vmatprep.subr.bf16.mxu0 %v14935_v59  ;;  %v14970_v59 = vld [vmem:[%s17746_s5 + $0x5a4] ss:$12 sps:$4 sm:$0xff]  }
 0x4ee   :  { %v7551_v56 = vpop.f32.mrb[12].mxu0  ;;  %14440 = vmatpush3.bf16.msra.mxu1 %v14946_v4  ;;  %v7715_v51 = vpop.f32.mrb[12].mxu1 }
 0x4ef   :  { %v14531_v34 = vadd.f32 %v7551_v56, %v1261_v39  ;;  %v7553_v57 = vpop.f32.mrb[13].mxu0  ;;  %14441 = vmatprep.subr.bf16.mxu1 %v14947_v60  ;;  %v7717_v48 = vpop.f32.mrb[13].mxu1  ;;  %v16647_v25 = vadd.f32 %v7715_v51, %v1269_v14  ;;  %v15007_v14 = vld [vmem:[%s17746_s5 + $0x664] ss:$12 sps:$4 sm:$0xff]  }
 0x4f0   :  { %v14532_v2 = vadd.f32 %v7553_v57, %v1265_v55  ;;  %v7555_v58 = vpop.f32.mrb[14].mxu0  ;;  %10545 = vmatpush1.bf16.msra.mxu0 %v14933_v27  ;;  %v14534_v5 = vadd.f32 %v7717_v48, %v1273_v29  ;;  %v7719_v37 = vpop.f32.mrb[14].mxu1  ;;  %v14968_v55 = vld [vmem:[%s17746_s5 + $0x5a0] ss:$12 sps:$4 sm:$0xff]   ;;  %v14975_v29 = vld [vmem:[%s17746_s5 + $0x5bc] ss:$12 sps:$4 sm:$0xff]  }
 0x4f1   :  { %v7750_v35 = vmin.f32 %v14531_v34, 0.0  ;;  %v7556_v63 = vpop.f32.mrb[15].mxu0  ;;  %10546 = vmatprep.subr.bf16.mxu0 %v14940_v8  ;;  %v7720_v7 = vpop.f32.mrb[15].mxu1  ;;  %vm7734_vm12 = vcmp.gt.f32.partialorder %v14531_v34, 0.0  ;;  %v7752_v60 = vmin.f32 %v16647_v25, 0.0  ;;  %vm7736_vm15 = vcmp.gt.f32.partialorder %v16647_v25, 0.0 }
 0x4f2   :  { %v7751_v3 = vmin.f32 %v14532_v2, 0.0  ;;  %14442 = vmatpush3.bf16.msra.mxu1 %v14951_v53  ;;  %v7753_v11 = vmin.f32 %v14534_v5, 0.0  ;;  %vm7735_vm13 = vcmp.gt.f32.partialorder %v14532_v2, 0.0  ;;  %vm7737_vm14 = vcmp.gt.f32.partialorder %v14534_v5, 0.0  ;;  %v14971_v27 = vld [vmem:[%s17746_s5 + $0xaa0] ss:$12 sps:$4 sm:$0xff]  }
 0x4f3   :  { %v7778_v22 = vmul.f32 1.442695, %v7750_v35  ;;  %14443 = vmatprep.subr.bf16.mxu1 %v14952_v62  ;;  %v14972_v8 = vld [vmem:[%s17746_s5 + $0xb78] ss:$12 sps:$4 sm:$0xff]   ;;  %v7782_v56 = vmul.f32 1.442695, %v7752_v60 }
 0x4f4   :  { %v7780_v12 = vmul.f32 1.442695, %v7751_v3  ;;  %10547 = vmatpush1.bf16.msra.mxu0 %v14938_v33  ;;  %v7784_v15 = vmul.f32 1.442695, %v7753_v11  ;;  %v14973_v53 = vld [vmem:[%s17746_s5 + $0x5b8] ss:$12 sps:$4 sm:$0xff]  }
 0x4f5   :  { %15451 = vpow2.f32 %v7778_v22  ;;  %10548 = vmatprep.subr.bf16.mxu0 %v14945_v0  ;;  %v14977_v57 = vld [vmem:[%s17746_s5 + $0xb90] ss:$12 sps:$4 sm:$0xff]   ;;  %v14980_v62 = vld [vmem:[%s17746_s5 + $0x5d4] ss:$12 sps:$4 sm:$0xff]   ;;  %v14985_v0 = vld [vmem:[%s17746_s5 + $0x5ec] ss:$12 sps:$4 sm:$0xff]  }
 0x4f6   :  { %15453 = vpow2.f32 %v7780_v12  ;;  %14444 = vmatpush3.bf16.msra.mxu1 %v14956_v6  ;;  %v14978_v58 = vld [vmem:[%s17746_s5 + $0x5d0] ss:$12 sps:$4 sm:$0xff]   ;;  %v14982_v63 = vld [vmem:[%s17746_s5 + $0xba8] ss:$12 sps:$4 sm:$0xff]   ;;  %v14987_v6 = vld [vmem:[%s17746_s5 + $0xbc0] ss:$12 sps:$4 sm:$0xff]  }
 0x4f7   :  { %14445 = vmatprep.subr.bf16.mxu1 %v14957_v10  ;;  %15455 = vpow2.f32 %v7784_v15  ;;  %v14981_v33 = vld [vmem:[%s17746_s5 + $0xad0] ss:$12 sps:$4 sm:$0xff]   ;;  %v14983_v37 = vld [vmem:[%s17746_s5 + $0x5e8] ss:$12 sps:$4 sm:$0xff]   ;;  %v14988_v22 = vld [vmem:[%s17746_s5 + $0x600] ss:$12 sps:$4 sm:$0xff]  }
 0x4f8   :  { %10549 = vmatpush1.bf16.msra.mxu0 %v14943_v46  ;;  %15457 = vpow2.f32 %v7782_v56  ;;  %v14986_v3 = vld [vmem:[%s17746_s5 + $0xae8] ss:$12 sps:$4 sm:$0xff]   ;;  %v14990_v7 = vld [vmem:[%s17746_s5 + $0x604] ss:$12 sps:$4 sm:$0xff]   ;;  %v14991_v10 = vld [vmem:[%s17746_s5 + $0xb00] ss:$12 sps:$4 sm:$0xff]  }
 0x4f9   :  { %10550 = vmatprep.subr.bf16.mxu0 %v14950_v13  ;;  %v14992_v12 = vld [vmem:[%s17746_s5 + $0xbd8] ss:$12 sps:$4 sm:$0xff]   ;;  %v14995_v46 = vld [vmem:[%s17746_s5 + $0x61c] ss:$12 sps:$4 sm:$0xff]   ;;  %v15025_v56 = vld [vmem:[%s17746_s5 + $0x6f4] ss:$12 sps:$4 sm:$0xff]  }
 0x4fa   :  { %14446 = vmatpush3.bf16.msra.mxu1 %v14961_v16  ;;  %v14993_v15 = vld [vmem:[%s17746_s5 + $0x618] ss:$12 sps:$4 sm:$0xff]   ;;  %v15014_v60 = vld [vmem:[%s17746_s5 + $0x6a8] ss:$12 sps:$4 sm:$0xff]  }
 0x4fb   :  { %14453 = vmatprep.subr.bf16.mxu1 %v14962_v17  ;;  %v14996_v16 = vld [vmem:[%s17746_s5 + $0xb18] ss:$12 sps:$4 sm:$0xff]   ;;  %v15000_v17 = vld [vmem:[%s17746_s5 + $0x634] ss:$12 sps:$4 sm:$0xff]  }
 0x4fc   :  { %10551 = vmatpush1.bf16.msra.mxu0 %v14948_v19 }
 0x4fd   :  { %10552 = vmatprep.subr.bf16.mxu0 %v14955_v21  ;;  %v14998_v21 = vld [vmem:[%s17746_s5 + $0x630] ss:$12 sps:$4 sm:$0xff]  }
 0x4ff   :  { %v15452_v52 = vpop.eup %15451 }
 0x500   :  { %v15454_v28 = vpop.eup %15453  ;;  %v13729_v54 = vadd.f32 -1.0, %v15452_v52  ;;  %10553 = vmatpush1.bf16.msra.mxu0 %v14953_v23  ;;  %v15004_v23 = vld [vmem:[%s17746_s5 + $0x64c] ss:$12 sps:$4 sm:$0xff]   ;;  %v15002_v52 = vld [vmem:[%s17746_s5 + $0x648] ss:$12 sps:$4 sm:$0xff]  }
 0x501   :  { %10554 = vmatprep.subr.bf16.mxu0 %v14960_v26  ;;  %v13730_v47 = vadd.f32 -1.0, %v15454_v28  ;;  %v15456_v61 = vpop.eup %15455  ;;  %v15005_v28 = vld [vmem:[%s17746_s5 + $0x660] ss:$12 sps:$4 sm:$0xff]  }
 0x502   :  { %v7814_v40 = vsel %vm7734_vm12, %v14531_v34, %v13729_v54  ;;  %v13732_v38 = vadd.f32 -1.0, %v15456_v61  ;;  %v14976_v34 = vld [vmem:[%s17746_s5 + $0xab8] ss:$12 sps:$4 sm:$0xff]   ;;  %v15458_v11 = vpop.eup %15457  ;;  %v15010_v54 = vld [vmem:[%s17746_s5 + $0x67c] ss:$12 sps:$4 sm:$0xff]  }
 0x503   :  { %v7815_v1 = vsel %vm7735_vm13, %v14532_v2, %v13730_v47  ;;  %v16657_v9 = vpack.c.bf16 %v7814_v40, %v7814_v40  ;;  %v13731_v13 = vadd.f32 -1.0, %v15458_v11  ;;  %v15008_v47 = vld [vmem:[%s17746_s5 + $0x678] ss:$12 sps:$4 sm:$0xff]   ;;  %v15013_v61 = vld [vmem:[%s17746_s5 + $0x694] ss:$12 sps:$4 sm:$0xff]  }
 0x504   :  { %10555 = vmatpush1.bf16.msra.mxu0 %v14958_v31  ;;  %v16649_v41 = vpack.c.bf16 %v7815_v1, %v7815_v1  ;;  %v7817_v4 = vsel %vm7737_vm14, %v14534_v5, %v13732_v38  ;;  %v16776_v31 = vld [vmem:[%s17747_s6] sm:$0x7]  ;;  %v15046_v11 = vld [vmem:[%s17746_s5 + $0x79c] ss:$12 sps:$4 sm:$0xff]  }
 0x505   :  { %10556 = vmatprep.subr.bf16.mxu0 %v14965_v32  ;;  %v16666_v39 = vpack.c.bf16 %v7817_v4, %v7817_v4  ;;  %v7816_v19 = vsel %vm7736_vm15, %v16647_v25, %v13731_v13  ;;  %v8359_v32 = vrot.slane %v16776_v31, %v15895_v18  ;;  %v15011_v25 = vld [vmem:[%s17746_s5 + $0x690] ss:$12 sps:$4 sm:$0xff]  }
 0x506   :  { %11011 = vmatprep.mubr.bf16.mxu1 %v16649_v41  ;;  %v16758_v26 = vpack.c.bf16 %v7816_v19, %v7816_v19  ;;  %v15047_v13 = vld [vmem:[%s17746_s5 + $0x7b0] ss:$12 sps:$4 sm:$0xff]   ;;  %v15061_v19 = vld [vmem:[%s17746_s5 + $0x814] ss:$12 sps:$4 sm:$0xff]  }
 0x507   :  { %11012 = vmatmul.mubr.bf16.vlgmr.msra.gmra.mrb[40].mxu1 %v16657_v9 }
 0x508   :  { %14454 = vmatpush3.bf16.msra.mxu1 %v14966_v45  ;;  %10557 = vmatpush1.bf16.msra.mxu0 %v14963_v30 }
 0x509   :  { %14455 = vmatprep.subr.bf16.mxu1 %v14967_v49  ;;  %10558 = vmatprep.subr.bf16.mxu0 %v14970_v59  ;;  %v15016_v49 = vld [vmem:[%s17746_s5 + $0x6ac] ss:$12 sps:$4 sm:$0xff]  }
 0x50a   :  { %11051 = vmatprep.mubr.bf16.mxu1 %v16666_v39 }
 0x50c   :  { %14456 = vmatpush3.bf16.msra.mxu1 %v14971_v27  ;;  %10559 = vmatpush1.bf16.msra.mxu0 %v14968_v55  ;;  %v15019_v55 = vld [vmem:[%s17746_s5 + $0x6c4] ss:$12 sps:$4 sm:$0xff]   ;;  %v15017_v27 = vld [vmem:[%s17746_s5 + $0x6c0] ss:$12 sps:$4 sm:$0xff]  }
 0x50d   :  { %14457 = vmatprep.subr.bf16.mxu1 %v14972_v8  ;;  %10560 = vmatprep.subr.bf16.mxu0 %v14975_v29  ;;  %v15022_v8 = vld [vmem:[%s17746_s5 + $0x6dc] ss:$12 sps:$4 sm:$0xff]   ;;  %v15020_v29 = vld [vmem:[%s17746_s5 + $0x6d8] ss:$12 sps:$4 sm:$0xff]  }
 0x50f   :  { %v14315_v51 = vpop.f32.mrb[16].mxu1 }
 0x510   :  { %v14316_v2 = vpop.f32.mrb[17].mxu1  ;;  %14458 = vmatpush3.bf16.msra.mxu1 %v14976_v34  ;;  %10561 = vmatpush1.bf16.msra.mxu0 %v14973_v53  ;;  %v15023_v53 = vld [vmem:[%s17746_s5 + $0x6f0] ss:$12 sps:$4 sm:$0xff]   ;;  %v15028_v34 = vld [vmem:[%s17746_s5 + $0x70c] ss:$12 sps:$4 sm:$0xff]  }
 0x511   :  { %v16701_v48 = vadd.f32 %v14316_v2, %v14315_v51  ;;  %v14318_v35 = vpop.f32.mrb[18].mxu1  ;;  %14459 = vmatprep.subr.bf16.mxu1 %v14977_v57  ;;  %10562 = vmatprep.subr.bf16.mxu0 %v14980_v62  ;;  %v15026_v57 = vld [vmem:[%s17746_s5 + $0x708] ss:$12 sps:$4 sm:$0xff]   ;;  %v15031_v62 = vld [vmem:[%s17746_s5 + $0x724] ss:$12 sps:$4 sm:$0xff]  }
 0x512   :  { %v14319_v5 = vpop.f32.mrb[19].mxu1  ;;  %v15029_v51 = vld [vmem:[%s17746_s5 + $0x720] ss:$12 sps:$4 sm:$0xff]   ;;  %v15034_v2 = vld [vmem:[%s17746_s5 + $0x73c] ss:$12 sps:$4 sm:$0xff]  }
 0x513   :  { %v10774_v38 = vadd.f32 %v16701_v48, %v8359_v32  ;;  %v15062_v32 = vld [vmem:[%s17746_s5 + $0x828] ss:$12 sps:$4 sm:$0xff]  }
 0x514   :  { %14460 = vmatpush3.bf16.msra.mxu1 %v14981_v33  ;;  %10563 = vmatpush1.bf16.msra.mxu0 %v14978_v58  ;;  %v15032_v58 = vld [vmem:[%s17746_s5 + $0x738] ss:$12 sps:$4 sm:$0xff]   ;;  %v15037_v33 = vld [vmem:[%s17746_s5 + $0x754] ss:$12 sps:$4 sm:$0xff]  }
 0x515   :  { %14461 = vmatprep.subr.bf16.mxu1 %v14982_v63  ;;  %10564 = vmatprep.subr.bf16.mxu0 %v14985_v0  ;;  %v15035_v63 = vld [vmem:[%s17746_s5 + $0x750] ss:$12 sps:$4 sm:$0xff]  }
 0x518   :  { %14462 = vmatpush3.bf16.msra.mxu1 %v14986_v3  ;;  %10565 = vmatpush1.bf16.msra.mxu0 %v14983_v37  ;;  %v15040_v37 = vld [vmem:[%s17746_s5 + $0x76c] ss:$12 sps:$4 sm:$0xff]  }
 0x519   :  { %14463 = vmatprep.subr.bf16.mxu1 %v14987_v6  ;;  %10575 = vmatprep.subr.bf16.mxu0 %v14990_v7  ;;  %v15038_v7 = vld [vmem:[%s17746_s5 + $0x768] ss:$12 sps:$4 sm:$0xff]  }
 0x51b   :  { %10567 = vmatmul.mubr.bf16.vlgmr.msra.gmra.mrb[16].mxu0 %v16296_v20  ;;  %v14997_v20 = vld [vmem:[%s17746_s5 + $0xbf0] ss:$12 sps:$4 sm:$0xff]  }
 0x51c   :  { %14464 = vmatpush3.bf16.msra.mxu1 %v14991_v10  ;;  %10576 = vmatpush1.bf16.msra.mxu0 %v14988_v22  ;;  %v15043_v22 = vld [vmem:[%s17746_s5 + $0x784] ss:$12 sps:$4 sm:$0xff]   ;;  %v15041_v10 = vld [vmem:[%s17746_s5 + $0x780] ss:$12 sps:$4 sm:$0xff]  }
 0x51d   :  { %10607 = vmatprep.mubr.bf16.mxu0 %v16312_v43  ;;  %14465 = vmatprep.subr.bf16.mxu1 %v14992_v12  ;;  %v15001_v43 = vld [vmem:[%s17746_s5 + $0xb30] ss:$12 sps:$4 sm:$0xff]   ;;  %v15044_v12 = vld [vmem:[%s17746_s5 + $0x798] ss:$12 sps:$4 sm:$0xff]  }
 0x51e   :  { %10577 = vmatprep.subr.bf16.mxu0 %v14995_v46  ;;  %v15049_v46 = vld [vmem:[%s17746_s5 + $0x7b4] ss:$12 sps:$4 sm:$0xff]  }
 0x520   :  { %14466 = vmatpush3.bf16.msra.mxu1 %v14996_v16  ;;  %10578 = vmatpush1.bf16.msra.mxu0 %v14993_v15  ;;  %v15055_v15 = vld [vmem:[%s17746_s5 + $0x7e4] ss:$12 sps:$4 sm:$0xff]   ;;  %v15053_v16 = vld [vmem:[%s17746_s5 + $0x7e0] ss:$12 sps:$4 sm:$0xff]  }
 0x521   :  { %14467 = vmatprep.subr.bf16.mxu1 %v14997_v20  ;;  %10579 = vmatprep.subr.bf16.mxu0 %v15000_v17  ;;  %v15058_v20 = vld [vmem:[%s17746_s5 + $0x7fc] ss:$12 sps:$4 sm:$0xff]   ;;  %v15056_v17 = vld [vmem:[%s17746_s5 + $0x7f8] ss:$12 sps:$4 sm:$0xff]  }
 0x524   :  { %14468 = vmatpush3.bf16.msra.mxu1 %v15001_v43  ;;  %10580 = vmatpush1.bf16.msra.mxu0 %v14998_v21 }
 0x525   :  { %10581 = vmatprep.subr.bf16.mxu0 %v15004_v23  ;;  %v15059_v23 = vld [vmem:[%s17746_s5 + $0x810] ss:$12 sps:$4 sm:$0xff]  }
 0x527   :  { %11052 = vmatmul.mubr.bf16.vlgmr.msra.gmra.mrb[44].mxu1 %v16758_v26 }
 0x528   :  { %10582 = vmatpush1.bf16.msra.mxu0 %v15002_v52 }
 0x529   :  { %10583 = vmatprep.subr.bf16.mxu0 %v15007_v14 }
 0x52c   :  { %10584 = vmatpush1.bf16.msra.mxu0 %v15005_v28  ;;  %v15064_v28 = vld [vmem:[%s17746_s5 + $0x82c] ss:$12 sps:$4 sm:$0xff]  }
 0x52d   :  { %10585 = vmatprep.subr.bf16.mxu0 %v15010_v54 }
 0x52f   :  { %v14337_v40 = vpop.f32.mrb[20].mxu1 }
 0x530   :  { %v14338_v1 = vpop.f32.mrb[21].mxu1  ;;  %10586 = vmatpush1.bf16.msra.mxu0 %v15008_v47 }
 0x531   :  { %v14339_v30 = vadd.f32 %v14338_v1, %v14337_v40  ;;  %v14340_v45 = vpop.f32.mrb[22].mxu1  ;;  %10587 = vmatprep.subr.bf16.mxu0 %v15013_v61  ;;  %v15067_v61 = vld [vmem:[%s17746_s5 + $0x844] ss:$12 sps:$4 sm:$0xff]   ;;  %v15065_v40 = vld [vmem:[%s17746_s5 + $0x840] ss:$12 sps:$4 sm:$0xff]  }
 0x532   :  { %v14341_v59 = vpop.f32.mrb[23].mxu1  ;;  %v15070_v1 = vld [vmem:[%s17746_s5 + $0x85c] ss:$12 sps:$4 sm:$0xff]   ;;  %v15076_v45 = vld [vmem:[%s17746_s5 + $0x88c] ss:$12 sps:$4 sm:$0xff]  }
 0x533   :  { %v10814_v4 = vadd.f32 %v14339_v30, %v10774_v38  ;;  %v15073_v38 = vld [vmem:[%s17746_s5 + $0x874] ss:$12 sps:$4 sm:$0xff]   ;;  %v15071_v30 = vld [vmem:[%s17746_s5 + $0x870] ss:$12 sps:$4 sm:$0xff]  }
 0x534   :  { %10588 = vmatpush1.bf16.msra.mxu0 %v15011_v25  ;;  %v15068_v25 = vld [vmem:[%s17746_s5 + $0x858] ss:$12 sps:$4 sm:$0xff]  }
 0x535   :  { %10589 = vmatprep.subr.bf16.mxu0 %v15016_v49  ;;  %v15074_v49 = vld [vmem:[%s17746_s5 + $0x888] ss:$12 sps:$4 sm:$0xff]   ;;  %v15079_v59 = vld [vmem:[%s17746_s5 + $0x8a4] ss:$12 sps:$4 sm:$0xff]  }
 0x538   :  { %10590 = vmatpush1.bf16.msra.mxu0 %v15014_v60  ;;  %v15082_v60 = vld [vmem:[%s17746_s5 + $0x8bc] ss:$12 sps:$4 sm:$0xff]  }
 0x539   :  { %10591 = vmatprep.subr.bf16.mxu0 %v15019_v55  ;;  %v15080_v55 = vld [vmem:[%s17746_s5 + $0x8b8] ss:$12 sps:$4 sm:$0xff]  }
 0x53c   :  { %10592 = vmatpush1.bf16.msra.mxu0 %v15017_v27  ;;  %v15085_v27 = vld [vmem:[%s17746_s5 + $0x8d4] ss:$12 sps:$4 sm:$0xff]  }
 0x53d   :  { %10593 = vmatprep.subr.bf16.mxu0 %v15022_v8 }
 0x540   :  { %10594 = vmatpush1.bf16.msra.mxu0 %v15020_v29 }
 0x541   :  { %10595 = vmatprep.subr.bf16.mxu0 %v15025_v56  ;;  %v15083_v56 = vld [vmem:[%s17746_s5 + $0x8d0] ss:$12 sps:$4 sm:$0xff]  }
 0x544   :  { %10596 = vmatpush1.bf16.msra.mxu0 %v15023_v53 }
 0x545   :  { %10597 = vmatprep.subr.bf16.mxu0 %v15028_v34 }
 0x548   :  { %10598 = vmatpush1.bf16.msra.mxu0 %v15026_v57  ;;  %v15088_v57 = vld [vmem:[%s17746_s5 + $0x8ec] ss:$12 sps:$4 sm:$0xff]  }
 0x549   :  { %10599 = vmatprep.subr.bf16.mxu0 %v15031_v62 }
 0x54c   :  { %10600 = vmatpush1.bf16.msra.mxu0 %v15029_v51 }
 0x54d   :  { %10601 = vmatprep.subr.bf16.mxu0 %v15034_v2  ;;  %v15086_v2 = vld [vmem:[%s17746_s5 + $0x8e8] ss:$12 sps:$4 sm:$0xff]  }
 0x54f   :  { %v14359_v48 = vpop.f32.mrb[24].mxu1 }
 0x550   :  { %v14360_v35 = vpop.f32.mrb[25].mxu1  ;;  %10602 = vmatpush1.bf16.msra.mxu0 %v15032_v58  ;;  %v15091_v58 = vld [vmem:[%s17746_s5 + $0x904] ss:$12 sps:$4 sm:$0xff]  }
 0x551   :  { %v14361_v0 = vadd.f32 %v14360_v35, %v14359_v48  ;;  %v14362_v5 = vpop.f32.mrb[26].mxu1  ;;  %10603 = vmatprep.subr.bf16.mxu0 %v15037_v33  ;;  %v15089_v33 = vld [vmem:[%s17746_s5 + $0x900] ss:$12 sps:$4 sm:$0xff]   ;;  %v15094_v48 = vld [vmem:[%s17746_s5 + $0x91c] ss:$12 sps:$4 sm:$0xff]  }
 0x552   :  { %v14363_v3 = vpop.f32.mrb[27].mxu1  ;;  %v15092_v35 = vld [vmem:[%s17746_s5 + $0x918] ss:$12 sps:$4 sm:$0xff]   ;;  %v15191_v5 = vld [vmem:[%s17749_s8] ss:$8 sps:$4 sm:$0xff]  }
 0x553   :  { %v10854_v6 = vadd.f32 %v14361_v0, %v10814_v4  ;;  %v15077_v4 = vld [vmem:[%s17746_s5 + $0x8a0] ss:$12 sps:$4 sm:$0xff]   ;;  %v15095_v0 = vld [vmem:[%s17746_s5 + $0x930] ss:$12 sps:$4 sm:$0xff]   ;;  %v15098_v3 = vld [vmem:[%s17746_s5 + $0x948] ss:$12 sps:$4 sm:$0xff]  }
 0x554   :  { %10604 = vmatpush1.bf16.msra.mxu0 %v15035_v63  ;;  %v15097_v63 = vld [vmem:[%s17746_s5 + $0x934] ss:$12 sps:$4 sm:$0xff]  }
 0x555   :  { %10605 = vmatprep.subr.bf16.mxu0 %v15040_v37  ;;  %v15193_v37 = vld [vmem:[%s17749_s8 + $0x4] ss:$8 sps:$4 sm:$0xff]  }
 0x556   :  { %11326 = vmatprep.subr.bf16.mxu1 %v15193_v37  ;;  %v15134_v37 = vld [vmem:[%s17746_s5 + $0xa68] ss:$12 sps:$4 sm:$0xff]  }
 0x557   :  { %11327 = vmatpush1.bf16.msra.mxu1 %v15191_v5  ;;  %v15232_v5 = vld [vmem:[%s17749_s8 + $0xd4] ss:$8 sps:$4 sm:$0xff]  }
 0x558   :  { %10606 = vmatpush1.bf16.msra.mxu0 %v15038_v7  ;;  %v15103_v7 = vld [vmem:[%s17746_s5 + $0x964] ss:$12 sps:$4 sm:$0xff]  }
 0x559   :  { %10616 = vmatprep.subr.bf16.mxu0 %v15043_v22  ;;  %v15194_v22 = vld [vmem:[%s17749_s8 + $0x10] ss:$8 sps:$4 sm:$0xff]  }
 0x55b   :  { %10608 = vmatmul.mubr.bf16.vlgmr.msra.gmra.mrb[16].mxu0 %v16414_v44  ;;  %v15052_v44 = vld [vmem:[%s17746_s5 + $0x7cc] ss:$12 sps:$4 sm:$0xff]  }
 0x55c   :  { %10617 = vmatpush1.bf16.msra.mxu0 %v15041_v10  ;;  %10648 = vmatprep.mubr.bf16.mxu0 %v16425_v50  ;;  %v15050_v50 = vld [vmem:[%s17746_s5 + $0x7c8] ss:$12 sps:$4 sm:$0xff]   ;;  %v15199_v10 = vld [vmem:[%s17749_s8 + $0x24] ss:$8 sps:$4 sm:$0xff]  }
 0x55d   :  { %10618 = vmatprep.subr.bf16.mxu0 %v15046_v11  ;;  %v15101_v11 = vld [vmem:[%s17746_s5 + $0x960] ss:$12 sps:$4 sm:$0xff]  }
 0x560   :  { %10619 = vmatpush1.bf16.msra.mxu0 %v15044_v12  ;;  %v15106_v12 = vld [vmem:[%s17746_s5 + $0x97c] ss:$12 sps:$4 sm:$0xff]  }
 0x561   :  { %10620 = vmatprep.subr.bf16.mxu0 %v15049_v46  ;;  %v15197_v46 = vld [vmem:[%s17749_s8 + $0x20] ss:$8 sps:$4 sm:$0xff]  }
 0x564   :  { %10621 = vmatpush1.bf16.msra.mxu0 %v15047_v13  ;;  %v15202_v13 = vld [vmem:[%s17749_s8 + $0x34] ss:$8 sps:$4 sm:$0xff]  }
 0x565   :  { %10622 = vmatprep.subr.bf16.mxu0 %v15052_v44  ;;  %v15104_v44 = vld [vmem:[%s17746_s5 + $0x978] ss:$12 sps:$4 sm:$0xff]  }
 0x568   :  { %10623 = vmatpush1.bf16.msra.mxu0 %v15050_v50  ;;  %v15109_v50 = vld [vmem:[%s17746_s5 + $0x994] ss:$12 sps:$4 sm:$0xff]  }
 0x569   :  { %10624 = vmatprep.subr.bf16.mxu0 %v15055_v15  ;;  %v15200_v15 = vld [vmem:[%s17749_s8 + $0x30] ss:$8 sps:$4 sm:$0xff]  }
 0x56c   :  { %10625 = vmatpush1.bf16.msra.mxu0 %v15053_v16 }
 0x56d   :  { %10626 = vmatprep.subr.bf16.mxu0 %v15058_v20  ;;  %v15205_v20 = vld [vmem:[%s17749_s8 + $0x44] ss:$8 sps:$4 sm:$0xff]  }
 0x56f   :  { %v14381_v21 = vpop.f32.mrb[28].mxu1 }
 0x570   :  { %v14382_v43 = vpop.f32.mrb[29].mxu1  ;;  %10627 = vmatpush1.bf16.msra.mxu0 %v15056_v17 }
 0x571   :  { %v14383_v52 = vadd.f32 %v14382_v43, %v14381_v21  ;;  %v14384_v14 = vpop.f32.mrb[30].mxu1  ;;  %10628 = vmatprep.subr.bf16.mxu0 %v15061_v19  ;;  %v15107_v19 = vld [vmem:[%s17746_s5 + $0x990] ss:$12 sps:$4 sm:$0xff]  }
 0x572   :  { %v14385_v54 = vpop.f32.mrb[31].mxu1  ;;  %v15203_v14 = vld [vmem:[%s17749_s8 + $0x40] ss:$8 sps:$4 sm:$0xff]  }
 0x573   :  { %v10894_v47 = vadd.f32 %v14383_v52, %v10854_v6  ;;  %v15196_v6 = vld [vmem:[%s17749_s8 + $0x14] ss:$8 sps:$4 sm:$0xff]  }
 0x574   :  { %10629 = vmatpush1.bf16.msra.mxu0 %v15059_v23  ;;  %11328 = vmatprep.subr.bf16.mxu1 %v15196_v6  ;;  %v15112_v23 = vld [vmem:[%s17746_s5 + $0x9ac] ss:$12 sps:$4 sm:$0xff]   ;;  %v15208_v54 = vld [vmem:[%s17749_s8 + $0x54] ss:$8 sps:$4 sm:$0xff]  }
 0x575   :  { %10630 = vmatprep.subr.bf16.mxu0 %v15064_v28  ;;  %11329 = vmatpush1.bf16.msra.mxu1 %v15194_v22  ;;  %v15230_v6 = vld [vmem:[%s17749_s8 + $0xd0] ss:$8 sps:$4 sm:$0xff]   ;;  %v15142_v22 = vld [vmem:[%s17746_s5 + $0xa9c] ss:$12 sps:$4 sm:$0xff]  }
 0x576   :  { %11330 = vmatprep.subr.bf16.mxu1 %v15199_v10 }
 0x578   :  { %10631 = vmatpush1.bf16.msra.mxu0 %v15062_v32  ;;  %v15115_v32 = vld [vmem:[%s17746_s5 + $0x9c4] ss:$12 sps:$4 sm:$0xff]  }
 0x579   :  { %10632 = vmatprep.subr.bf16.mxu0 %v15067_v61  ;;  %11331 = vmatpush1.bf16.msra.mxu1 %v15197_v46  ;;  %v15206_v61 = vld [vmem:[%s17749_s8 + $0x50] ss:$8 sps:$4 sm:$0xff]  }
 0x57a   :  { %11332 = vmatprep.subr.bf16.mxu1 %v15202_v13  ;;  %v15140_v13 = vld [vmem:[%s17746_s5 + $0xa98] ss:$12 sps:$4 sm:$0xff]  }
 0x57c   :  { %10633 = vmatpush1.bf16.msra.mxu0 %v15065_v40  ;;  %v15211_v40 = vld [vmem:[%s17749_s8 + $0x64] ss:$8 sps:$4 sm:$0xff]  }
 0x57d   :  { %10634 = vmatprep.subr.bf16.mxu0 %v15070_v1  ;;  %11333 = vmatpush1.bf16.msra.mxu1 %v15200_v15  ;;  %v15113_v1 = vld [vmem:[%s17746_s5 + $0x9c0] ss:$12 sps:$4 sm:$0xff]  }
 0x57e   :  { %11334 = vmatprep.subr.bf16.mxu1 %v15205_v20  ;;  %v15151_v20 = vld [vmem:[%s17746_s5 + $0xae4] ss:$12 sps:$4 sm:$0xff]  }
 0x580   :  { %10635 = vmatpush1.bf16.msra.mxu0 %v15068_v25  ;;  %v15118_v25 = vld [vmem:[%s17746_s5 + $0x9dc] ss:$12 sps:$4 sm:$0xff]  }
 0x581   :  { %10636 = vmatprep.subr.bf16.mxu0 %v15073_v38  ;;  %11335 = vmatpush1.bf16.msra.mxu1 %v15203_v14  ;;  %v15209_v38 = vld [vmem:[%s17749_s8 + $0x60] ss:$8 sps:$4 sm:$0xff]  }
 0x582   :  { %11336 = vmatprep.subr.bf16.mxu1 %v15208_v54  ;;  %v15158_v14 = vld [vmem:[%s17746_s5 + $0xb28] ss:$12 sps:$4 sm:$0xff]   ;;  %v15161_v54 = vld [vmem:[%s17746_s5 + $0xb40] ss:$12 sps:$4 sm:$0xff]  }
 0x584   :  { %10637 = vmatpush1.bf16.msra.mxu0 %v15071_v30  ;;  %v15214_v30 = vld [vmem:[%s17749_s8 + $0x74] ss:$8 sps:$4 sm:$0xff]  }
 0x585   :  { %10638 = vmatprep.subr.bf16.mxu0 %v15076_v45  ;;  %11337 = vmatpush1.bf16.msra.mxu1 %v15206_v61  ;;  %v15116_v45 = vld [vmem:[%s17746_s5 + $0x9d8] ss:$12 sps:$4 sm:$0xff]  }
 0x586   :  { %11338 = vmatprep.subr.bf16.mxu1 %v15211_v40 }
 0x588   :  { %10639 = vmatpush1.bf16.msra.mxu0 %v15074_v49  ;;  %v15121_v49 = vld [vmem:[%s17746_s5 + $0x9f4] ss:$12 sps:$4 sm:$0xff]  }
 0x589   :  { %10640 = vmatprep.subr.bf16.mxu0 %v15079_v59  ;;  %11339 = vmatpush1.bf16.msra.mxu1 %v15209_v38  ;;  %v15212_v59 = vld [vmem:[%s17749_s8 + $0x70] ss:$8 sps:$4 sm:$0xff]   ;;  %v15169_v38 = vld [vmem:[%s17746_s5 + $0xb74] ss:$12 sps:$4 sm:$0xff]  }
 0x58a   :  { %11340 = vmatprep.subr.bf16.mxu1 %v15214_v30 }
 0x58c   :  { %10641 = vmatpush1.bf16.msra.mxu0 %v15077_v4  ;;  %v15217_v4 = vld [vmem:[%s17749_s8 + $0x84] ss:$8 sps:$4 sm:$0xff]  }
 0x58d   :  { %10642 = vmatprep.subr.bf16.mxu0 %v15082_v60  ;;  %v15119_v60 = vld [vmem:[%s17746_s5 + $0x9f0] ss:$12 sps:$4 sm:$0xff]   ;;  %11341 = vmatpush1.bf16.msra.mxu1 %v15212_v59 }
 0x58e   :  { %11342 = vmatprep.subr.bf16.mxu1 %v15217_v4  ;;  %v15167_v59 = vld [vmem:[%s17746_s5 + $0xb70] ss:$12 sps:$4 sm:$0xff]   ;;  %v15172_v4 = vld [vmem:[%s17746_s5 + $0xb8c] ss:$12 sps:$4 sm:$0xff]  }
 0x58f   :  { %v14403_v8 = vpop.f32.mrb[32].mxu1 }
 0x590   :  { %v14404_v29 = vpop.f32.mrb[33].mxu1  ;;  %10643 = vmatpush1.bf16.msra.mxu0 %v15080_v55  ;;  %v15124_v55 = vld [vmem:[%s17746_s5 + $0xa0c] ss:$12 sps:$4 sm:$0xff]  }
 0x591   :  { %v14405_v53 = vadd.f32 %v14404_v29, %v14403_v8  ;;  %v14406_v34 = vpop.f32.mrb[34].mxu1  ;;  %10644 = vmatprep.subr.bf16.mxu0 %v15085_v27  ;;  %v15215_v27 = vld [vmem:[%s17749_s8 + $0x80] ss:$8 sps:$4 sm:$0xff]   ;;  %v15220_v8 = vld [vmem:[%s17749_s8 + $0x94] ss:$8 sps:$4 sm:$0xff]  }
 0x592   :  { %v14407_v62 = vpop.f32.mrb[35].mxu1  ;;  %v15122_v29 = vld [vmem:[%s17746_s5 + $0xa08] ss:$12 sps:$4 sm:$0xff]   ;;  %11343 = vmatpush1.bf16.msra.mxu1 %v15215_v27  ;;  %v15223_v34 = vld [vmem:[%s17749_s8 + $0xa4] ss:$8 sps:$4 sm:$0xff]  }
 0x593   :  { %v10934_v51 = vadd.f32 %v14405_v53, %v10894_v47  ;;  %v15110_v47 = vld [vmem:[%s17746_s5 + $0x9a8] ss:$12 sps:$4 sm:$0xff]   ;;  %v15218_v53 = vld [vmem:[%s17749_s8 + $0x90] ss:$8 sps:$4 sm:$0xff]   ;;  %11344 = vmatprep.subr.bf16.mxu1 %v15220_v8  ;;  %v15173_v27 = vld [vmem:[%s17746_s5 + $0xba0] ss:$12 sps:$4 sm:$0xff]  }
 0x594   :  { %10645 = vmatpush1.bf16.msra.mxu0 %v15083_v56  ;;  %v15127_v56 = vld [vmem:[%s17746_s5 + $0xa24] ss:$12 sps:$4 sm:$0xff]   ;;  %v15130_v62 = vld [vmem:[%s17746_s5 + $0xa3c] ss:$12 sps:$4 sm:$0xff]  }
 0x595   :  { %10646 = vmatprep.subr.bf16.mxu0 %v15088_v57  ;;  %v15125_v57 = vld [vmem:[%s17746_s5 + $0xa20] ss:$12 sps:$4 sm:$0xff]   ;;  %v15178_v8 = vld [vmem:[%s17746_s5 + $0xbbc] ss:$12 sps:$4 sm:$0xff]  }
 0x596   :  { %11345 = vmatpush1.bf16.msra.mxu1 %v15218_v53  ;;  %v15179_v53 = vld [vmem:[%s17746_s5 + $0xbd0] ss:$12 sps:$4 sm:$0xff]  }
 0x597   :  { %11346 = vmatprep.subr.bf16.mxu1 %v15223_v34  ;;  %v15184_v34 = vld [vmem:[%s17746_s5 + $0xbec] ss:$12 sps:$4 sm:$0xff]  }
 0x598   :  { %10647 = vmatpush1.bf16.msra.mxu0 %v15086_v2  ;;  %v15226_v2 = vld [vmem:[%s17749_s8 + $0xb4] ss:$8 sps:$4 sm:$0xff]  }
 0x599   :  { %10657 = vmatprep.subr.bf16.mxu0 %v15091_v58  ;;  %v15128_v58 = vld [vmem:[%s17746_s5 + $0xa38] ss:$12 sps:$4 sm:$0xff]  }
 0x59b   :  { %10649 = vmatmul.mubr.bf16.vlgmr.msra.gmra.mrb[16].mxu0 %v16522_v24  ;;  %v15100_v24 = vld [vmem:[%s17746_s5 + $0x94c] ss:$12 sps:$4 sm:$0xff]  }
 0x59c   :  { %10658 = vmatpush1.bf16.msra.mxu0 %v15089_v33  ;;  %10689 = vmatprep.mubr.bf16.mxu0 %v16649_v41  ;;  %v15518_v41 = vmov 0   ;;  %v15133_v33 = vld [vmem:[%s17746_s5 + $0xa54] ss:$12 sps:$4 sm:$0xff]  }
 0x59d   :  { %10659 = vmatprep.subr.bf16.mxu0 %v15094_v48  ;;  %14666 = vset.pattern.permute.xlu0 %v15518_v41  ;;  %v15224_v48 = vld [vmem:[%s17749_s8 + $0xb0] ss:$8 sps:$4 sm:$0xff]  }
 0x5a0   :  { %10660 = vmatpush1.bf16.msra.mxu0 %v15092_v35  ;;  %v15229_v35 = vld [vmem:[%s17749_s8 + $0xc4] ss:$8 sps:$4 sm:$0xff]  }
 0x5a1   :  { %10661 = vmatprep.subr.bf16.mxu0 %v15097_v63  ;;  %v15131_v63 = vld [vmem:[%s17746_s5 + $0xa50] ss:$12 sps:$4 sm:$0xff]  }
 0x5a4   :  { %10662 = vmatpush1.bf16.msra.mxu0 %v15095_v0  ;;  %v15136_v0 = vld [vmem:[%s17746_s5 + $0xa6c] ss:$12 sps:$4 sm:$0xff]  }
 0x5a5   :  { %10663 = vmatprep.subr.bf16.mxu0 %v15100_v24  ;;  %v15227_v24 = vld [vmem:[%s17749_s8 + $0xc0] ss:$8 sps:$4 sm:$0xff]  }
 0x5a8   :  { %10664 = vmatpush1.bf16.msra.mxu0 %v15098_v3  ;;  %v15139_v3 = vld [vmem:[%s17746_s5 + $0xa84] ss:$12 sps:$4 sm:$0xff]  }
 0x5a9   :  { %10665 = vmatprep.subr.bf16.mxu0 %v15103_v7  ;;  %v15137_v7 = vld [vmem:[%s17746_s5 + $0xa80] ss:$12 sps:$4 sm:$0xff]  }
 0x5ac   :  { %10666 = vmatpush1.bf16.msra.mxu0 %v15101_v11 }
 0x5ad   :  { %10667 = vmatprep.subr.bf16.mxu0 %v15106_v12 }
 0x5af   :  { %v14425_v16 = vpop.f32.mrb[36].mxu1 }
 0x5b0   :  { %v14426_v17 = vpop.f32.mrb[37].mxu1  ;;  %10668 = vmatpush1.bf16.msra.mxu0 %v15104_v44 }
 0x5b1   :  { %v14427_v21 = vadd.f32 %v14426_v17, %v14425_v16  ;;  %v14428_v43 = vpop.f32.mrb[38].mxu1  ;;  %10669 = vmatprep.subr.bf16.mxu0 %v15109_v50  ;;  %v15145_v50 = vld [vmem:[%s17746_s5 + $0xab4] ss:$12 sps:$4 sm:$0xff]  }
 0x5b2   :  { %v14429_v52 = vpop.f32.mrb[39].mxu1  ;;  %v15146_v16 = vld [vmem:[%s17746_s5 + $0xac8] ss:$12 sps:$4 sm:$0xff]   ;;  %v15149_v17 = vld [vmem:[%s17746_s5 + $0xae0] ss:$12 sps:$4 sm:$0xff]  }
 0x5b3   :  { %v17020_v28 = vadd.f32 %v14427_v21, %v10934_v51  ;;  %v15221_v51 = vld [vmem:[%s17749_s8 + $0xa0] ss:$8 sps:$4 sm:$0xff]   ;;  %v15152_v21 = vld [vmem:[%s17746_s5 + $0xaf8] ss:$12 sps:$4 sm:$0xff]  }
 0x5b4   :  { %10670 = vmatpush1.bf16.msra.mxu0 %v15107_v19  ;;  %11347 = vmatpush1.bf16.msra.mxu1 %v15221_v51  ;;  %v15154_v19 = vld [vmem:[%s17746_s5 + $0xafc] ss:$12 sps:$4 sm:$0xff]   ;;  %v15157_v43 = vld [vmem:[%s17746_s5 + $0xb14] ss:$12 sps:$4 sm:$0xff]   ;;  %v15160_v52 = vld [vmem:[%s17746_s5 + $0xb2c] ss:$12 sps:$4 sm:$0xff]  }
 0x5b5   :  { %10671 = vmatprep.subr.bf16.mxu0 %v15112_v23  ;;  %11348 = vmatprep.subr.bf16.mxu1 %v15226_v2  ;;  %v15155_v23 = vld [vmem:[%s17746_s5 + $0xb10] ss:$12 sps:$4 sm:$0xff]   ;;  %v15185_v51 = vld [vmem:[%s17749_s8 + $0x100] ss:$8 sps:$4 sm:$0xff]  }
 0x5b6   :  { %v15190_v2 = vld [vmem:[%s17749_s8 + $0x114] ss:$8 sps:$4 sm:$0xff]  }
 0x5b8   :  { %10672 = vmatpush1.bf16.msra.mxu0 %v15110_v47  ;;  %11349 = vmatpush1.bf16.msra.mxu1 %v15224_v48  ;;  %v15166_v47 = vld [vmem:[%s17746_s5 + $0xb5c] ss:$12 sps:$4 sm:$0xff]  }
 0x5b9   :  { %10673 = vmatprep.subr.bf16.mxu0 %v15115_v32  ;;  %11350 = vmatprep.subr.bf16.mxu1 %v15229_v35  ;;  %v15233_v35 = vld [vmem:[%s17749_s8 + $0xe0] ss:$8 sps:$4 sm:$0xff]  }
 0x5bc   :  { %10674 = vmatpush1.bf16.msra.mxu0 %v15113_v1  ;;  %11351 = vmatpush1.bf16.msra.mxu1 %v15227_v24  ;;  %v15164_v1 = vld [vmem:[%s17746_s5 + $0xb58] ss:$12 sps:$4 sm:$0xff]  }
 0x5bd   :  { %10675 = vmatprep.subr.bf16.mxu0 %v15118_v25  ;;  %11352 = vmatprep.subr.bf16.mxu1 %v15232_v5  ;;  %v15241_v24 = vld [vmem:[%s17748_s7 + $0x4] ss:$8 sps:$4 sm:$0xff]   ;;  %v8351_v5 = vrot.slane %v16776_v31, %v15787_v36 }
 0x5c0   :  { %10676 = vmatpush1.bf16.msra.mxu0 %v15116_v45  ;;  %11353 = vmatpush1.bf16.msra.mxu1 %v15230_v6 }
 0x5c1   :  { %10677 = vmatprep.subr.bf16.mxu0 %v15121_v49 }
 0x5c4   :  { %10678 = vmatpush1.bf16.msra.mxu0 %v15119_v60  ;;  %v15170_v60 = vld [vmem:[%s17746_s5 + $0xb88] ss:$12 sps:$4 sm:$0xff]  }
 0x5c5   :  { %10679 = vmatprep.subr.bf16.mxu0 %v15124_v55  ;;  %v15175_v55 = vld [vmem:[%s17746_s5 + $0xba4] ss:$12 sps:$4 sm:$0xff]  }
 0x5c8   :  { %10680 = vmatpush1.bf16.msra.mxu0 %v15122_v29  ;;  %v15176_v29 = vld [vmem:[%s17746_s5 + $0xbb8] ss:$12 sps:$4 sm:$0xff]  }
 0x5c9   :  { %10681 = vmatprep.subr.bf16.mxu0 %v15127_v56  ;;  %v15181_v56 = vld [vmem:[%s17746_s5 + $0xbd4] ss:$12 sps:$4 sm:$0xff]  }
 0x5cc   :  { %10682 = vmatpush1.bf16.msra.mxu0 %v15125_v57  ;;  %v15182_v57 = vld [vmem:[%s17746_s5 + $0xbe8] ss:$12 sps:$4 sm:$0xff]  }
 0x5cd   :  { %10683 = vmatprep.subr.bf16.mxu0 %v15130_v62  ;;  %v15187_v62 = vld [vmem:[%s17749_s8 + $0x104] ss:$8 sps:$4 sm:$0xff]  }
 0x5d0   :  { %10684 = vmatpush1.bf16.msra.mxu0 %v15128_v58  ;;  %v15188_v58 = vld [vmem:[%s17749_s8 + $0x110] ss:$8 sps:$4 sm:$0xff]  }
 0x5d1   :  { %10685 = vmatprep.subr.bf16.mxu0 %v15133_v33 }
 0x5d4   :  { %10686 = vmatpush1.bf16.msra.mxu0 %v15131_v63  ;;  %v15238_v63 = vld [vmem:[%s17749_s8 + $0xf4] ss:$8 sps:$4 sm:$0xff]  }
 0x5d5   :  { %10687 = vmatprep.subr.bf16.mxu0 %v15136_v0  ;;  %v15236_v0 = vld [vmem:[%s17749_s8 + $0xf0] ss:$8 sps:$4 sm:$0xff]  }
 0x5d8   :  { %10688 = vmatpush1.bf16.msra.mxu0 %v15134_v37  ;;  %v8355_v37 = vrot.slane %v16776_v31, %v15773_v42 }
 0x5d9   :  { %10698 = vmatprep.subr.bf16.mxu0 %v15139_v3 }
 0x5da   :  { %v14447_v10 = vpop.f32.mrb[40].mxu1 }
 0x5db   :  { %10690 = vmatmul.mubr.bf16.vlgmr.msra.gmra.mrb[16].mxu0 %v16657_v9  ;;  %v14448_v11 = vpop.f32.mrb[41].mxu1  ;;  %v15143_v9 = vld [vmem:[%s17746_s5 + $0xab0] ss:$12 sps:$4 sm:$0xff]  }
 0x5dc   :  { %v14449_v12 = vadd.f32 %v14448_v11, %v14447_v10  ;;  %10699 = vmatpush1.bf16.msra.mxu0 %v15137_v7  ;;  %10730 = vmatprep.mubr.bf16.mxu0 %v16666_v39  ;;  %v14450_v46 = vpop.f32.mrb[42].mxu1  ;;  %v15148_v39 = vld [vmem:[%s17746_s5 + $0xacc] ss:$12 sps:$4 sm:$0xff]  }
 0x5dd   :  { %v14451_v44 = vpop.f32.mrb[43].mxu1  ;;  %10700 = vmatprep.subr.bf16.mxu0 %v15142_v22 }
 0x5de   :  { %v11014_v15 = vadd.f32 %v14449_v12, %v17020_v28  ;;  %v15163_v28 = vld [vmem:[%s17746_s5 + $0xb44] ss:$12 sps:$4 sm:$0xff]  }
 0x5e0   :  { %10701 = vmatpush1.bf16.msra.mxu0 %v15140_v13 }
 0x5e1   :  { %10702 = vmatprep.subr.bf16.mxu0 %v15145_v50 }
 0x5e4   :  { %10703 = vmatpush1.bf16.msra.mxu0 %v15143_v9  ;;  %v15244_v9 = vld [vmem:[%s17748_s7 + $0x14] ss:$8 sps:$4 sm:$0xff]  }
 0x5e5   :  { %10704 = vmatprep.subr.bf16.mxu0 %v15148_v39 }
 0x5e8   :  { %10705 = vmatpush1.bf16.msra.mxu0 %v15146_v16 }
 0x5e9   :  { %10706 = vmatprep.subr.bf16.mxu0 %v15151_v20 }
 0x5ec   :  { %10707 = vmatpush1.bf16.msra.mxu0 %v15149_v17  ;;  %v15242_v17 = vld [vmem:[%s17748_s7 + $0x10] ss:$8 sps:$4 sm:$0xff]  }
 0x5ed   :  { %10708 = vmatprep.subr.bf16.mxu0 %v15154_v19 }
 0x5f0   :  { %10709 = vmatpush1.bf16.msra.mxu0 %v15152_v21  ;;  %v15247_v21 = vld [vmem:[%s17748_s7 + $0x24] ss:$8 sps:$4 sm:$0xff]  }
 0x5f1   :  { %10710 = vmatprep.subr.bf16.mxu0 %v15157_v43  ;;  %v15245_v43 = vld [vmem:[%s17748_s7 + $0x20] ss:$8 sps:$4 sm:$0xff]  }
 0x5f4   :  { %10711 = vmatpush1.bf16.msra.mxu0 %v15155_v23  ;;  %v15250_v23 = vld [vmem:[%s17748_s7 + $0x34] ss:$8 sps:$4 sm:$0xff]  }
 0x5f5   :  { %10712 = vmatprep.subr.bf16.mxu0 %v15160_v52  ;;  %v15248_v52 = vld [vmem:[%s17748_s7 + $0x30] ss:$8 sps:$4 sm:$0xff]  }
 0x5f8   :  { %10713 = vmatpush1.bf16.msra.mxu0 %v15158_v14  ;;  %v15253_v14 = vld [vmem:[%s17748_s7 + $0x44] ss:$8 sps:$4 sm:$0xff]  }
 0x5f9   :  { %10714 = vmatprep.subr.bf16.mxu0 %v15163_v28  ;;  %v15251_v28 = vld [vmem:[%s17748_s7 + $0x40] ss:$8 sps:$4 sm:$0xff]  }
 0x5fa   :  { %v14469_v32 = vpop.f32.mrb[44].mxu1 }
 0x5fb   :  { %v14470_v61 = vpop.f32.mrb[45].mxu1 }
 0x5fc   :  { %v14471_v40 = vadd.f32 %v14470_v61, %v14469_v32  ;;  %10715 = vmatpush1.bf16.msra.mxu0 %v15161_v54  ;;  %v14472_v25 = vpop.f32.mrb[46].mxu1  ;;  %v15256_v54 = vld [vmem:[%s17748_s7 + $0x54] ss:$8 sps:$4 sm:$0xff]   ;;  %v15259_v32 = vld [vmem:[%s17748_s7 + $0x64] ss:$8 sps:$4 sm:$0xff]  }
 0x5fd   :  { %10716 = vmatprep.subr.bf16.mxu0 %v15166_v47  ;;  %v14473_v30 = vpop.f32.mrb[47].mxu1  ;;  %v15254_v47 = vld [vmem:[%s17748_s7 + $0x50] ss:$8 sps:$4 sm:$0xff]   ;;  %v15257_v61 = vld [vmem:[%s17748_s7 + $0x60] ss:$8 sps:$4 sm:$0xff]  }
 0x5fe   :  { %v11054_v45 = vadd.f32 %v14471_v40, %v11014_v15  ;;  %v15239_v15 = vld [vmem:[%s17748_s7] ss:$8 sps:$4 sm:$0xff]   ;;  %v15262_v40 = vld [vmem:[%s17748_s7 + $0x74] ss:$8 sps:$4 sm:$0xff]   ;;  %v15265_v25 = vld [vmem:[%s17748_s7 + $0x84] ss:$8 sps:$4 sm:$0xff]  }
 0x5ff   :  { %v15268_v30 = vld [vmem:[%s17748_s7 + $0x94] ss:$8 sps:$4 sm:$0xff]  }
 0x600   :  { %v14298_v49 = vrot.slane %v11054_v45, 10  ;;  %10717 = vmatpush1.bf16.msra.mxu0 %v15164_v1  ;;  %v17243_v33 = vpack.c.bf16 %v11054_v45, %v11054_v45  ;;  %v15260_v1 = vld [vmem:[%s17748_s7 + $0x70] ss:$8 sps:$4 sm:$0xff]  }
 0x601   :  { %10718 = vmatprep.subr.bf16.mxu0 %v15169_v38  ;;  %v15263_v38 = vld [vmem:[%s17748_s7 + $0x80] ss:$8 sps:$4 sm:$0xff]   ;;  %v15266_v45 = vld [vmem:[%s17748_s7 + $0x90] ss:$8 sps:$4 sm:$0xff]  }
 0x602   :  { %12654 = vst.msk [vmem:[%s17758_s17 + $0x8] sm:$0x3] %vm12653_vm0, %v14298_v49  ;;  %v11139_v48 = vrot.slane %v17243_v33, 1  ;;  %v15271_v49 = vld [vmem:[%s17748_s7 + $0xa4] ss:$8 sps:$4 sm:$0xff]  }
 0x604   :  { %10719 = vmatpush1.bf16.msra.mxu0 %v15167_v59  ;;  %v15269_v59 = vld [vmem:[%s17748_s7 + $0xa0] ss:$8 sps:$4 sm:$0xff]  }
 0x605   :  { %10720 = vmatprep.subr.bf16.mxu0 %v15172_v4  ;;  %v15274_v4 = vld [vmem:[%s17748_s7 + $0xb4] ss:$8 sps:$4 sm:$0xff]  }
 0x608   :  { %10721 = vmatpush1.bf16.msra.mxu0 %v15170_v60  ;;  %v15272_v60 = vld [vmem:[%s17748_s7 + $0xb0] ss:$8 sps:$4 sm:$0xff]  }
 0x609   :  { %10722 = vmatprep.subr.bf16.mxu0 %v15175_v55  ;;  %v15277_v55 = vld [vmem:[%s17748_s7 + $0xc4] ss:$8 sps:$4 sm:$0xff]  }
 0x60c   :  { %10723 = vmatpush1.bf16.msra.mxu0 %v15173_v27  ;;  %v15275_v27 = vld [vmem:[%s17748_s7 + $0xc0] ss:$8 sps:$4 sm:$0xff]  }
 0x60d   :  { %10724 = vmatprep.subr.bf16.mxu0 %v15178_v8  ;;  %v15280_v8 = vld [vmem:[%s17748_s7 + $0xd4] ss:$8 sps:$4 sm:$0xff]  }
 0x610   :  { %10725 = vmatpush1.bf16.msra.mxu0 %v15176_v29  ;;  %v15278_v29 = vld [vmem:[%s17748_s7 + $0xd0] ss:$8 sps:$4 sm:$0xff]  }
 0x611   :  { %10726 = vmatprep.subr.bf16.mxu0 %v15181_v56  ;;  %v15283_v56 = vld [vmem:[%s17748_s7 + $0xe4] ss:$8 sps:$4 sm:$0xff]  }
 0x614   :  { %10727 = vmatpush1.bf16.msra.mxu0 %v15179_v53  ;;  %v15281_v53 = vld [vmem:[%s17748_s7 + $0xe0] ss:$8 sps:$4 sm:$0xff]  }
 0x615   :  { %10728 = vmatprep.subr.bf16.mxu0 %v15184_v34  ;;  %v15286_v34 = vld [vmem:[%s17748_s7 + $0xf4] ss:$8 sps:$4 sm:$0xff]  }
 0x618   :  { %10729 = vmatpush1.bf16.msra.mxu0 %v15182_v57  ;;  %v15284_v57 = vld [vmem:[%s17748_s7 + $0xf0] ss:$8 sps:$4 sm:$0xff]  }
 0x619   :  { %11367 = vmatprep.subr.bf16.mxu0 %v15187_v62  ;;  %v15289_v62 = vld [vmem:[%s17748_s7 + $0x104] ss:$8 sps:$4 sm:$0xff]  }
 0x61b   :  { %10731 = vmatmul.mubr.bf16.vlgmr.msra.gmra.mrb[16].mxu0 %v16758_v26  ;;  %v15235_v26 = vld [vmem:[%s17749_s8 + $0xe4] ss:$8 sps:$4 sm:$0xff]  }
 0x61c   :  { %11368 = vmatpush1.bf16.msra.mxu0 %v15185_v51  ;;  %11399 = vmatprep.mubr.bf16.mxu0 %v15518_v41  ;;  %v15287_v51 = vld [vmem:[%s17748_s7 + $0x100] ss:$8 sps:$4 sm:$0xff]  }
 0x61d   :  { %11369 = vmatprep.subr.bf16.mxu0 %v15190_v2  ;;  %11354 = vmatprep.subr.bf16.mxu1 %v15235_v26  ;;  %v15292_v2 = vld [vmem:[%s17748_s7 + $0x114] ss:$8 sps:$4 sm:$0xff]   ;;  %v15294_v26 = vld [vmem:[%s17751_s10] sm:$0xff]  }
 0x61e   :  { %11355 = vmatpush1.bf16.msra.mxu1 %v15233_v35  ;;  %v15295_v35 = vld [vmem:[%s17751_s10 + $0x48] sm:$0xff]  }
 0x61f   :  { %11356 = vmatprep.subr.bf16.mxu1 %v15238_v63  ;;  %v15296_v63 = vld [vmem:[%s17751_s10 + $0x8] sm:$0xff]  }
 0x620   :  { %11370 = vmatpush1.bf16.msra.mxu0 %v15188_v58  ;;  %v15290_v58 = vld [vmem:[%s17748_s7 + $0x110] ss:$8 sps:$4 sm:$0xff]  }
 0x622   :  { %11357 = vmatpush1.bf16.msra.mxu1 %v15236_v0  ;;  %v15297_v0 = vld [vmem:[%s17751_s10 + $0x50] sm:$0xff]  }
 0x623   :  { %14153 = vmatmul.mubr.msk.bf16.vlgmr.msra.gmra.mrb[20].mxu0 %vm11322_vm1, %v11139_v48  ;;  %11591 = vmatprep.subr.bf16.mxu1 %v15241_v24  ;;  %v15293_v48 = vld [vmem:[%s17751_s10 + $0x40] sm:$0xff]   ;;  %v15298_v24 = vld [vmem:[%s17751_s10 + $0x10] sm:$0xff]  }
 0x6ee   :  { %v10732_v3 = vpop.f32.mrb[16].mxu0 }
 0x6ef   :  { %v14535_v6 = vadd.f32 %v10732_v3, %v8351_v5  ;;  %v10734_v7 = vpop.f32.mrb[17].mxu0  ;;  %v15299_v5 = vld [vmem:[%s17751_s10 + $0x58] sm:$0xff]   ;;  %v15301_v3 = vld [vmem:[%s17751_s10 + $0x60] sm:$0xff]  }
 0x6f0   :  { %v14536_v22 = vadd.f32 %v10734_v7, %v8355_v37  ;;  %v10736_v10 = vpop.f32.mrb[18].mxu0  ;;  %v15300_v37 = vld [vmem:[%s17751_s10 + $0x18] sm:$0xff]   ;;  %v15303_v7 = vld [vmem:[%s17751_s10 + $0x68] sm:$0xff]  }
 0x6f1   :  { %v17266_v11 = vpack.c.bf16 %v14535_v6, %v14535_v6  ;;  %v10737_v12 = vpop.f32.mrb[19].mxu0  ;;  %v15305_v10 = vld [vmem:[%s17751_s10 + $0x70] sm:$0xff]  }
 0x6f2   :  { %v17268_v46 = vpack.c.bf16 %v14536_v22, %v14536_v22  ;;  %v12645_v13 = vcombine.low %v14535_v6, %v14536_v22  ;;  %v15302_v6 = vld [vmem:[%s17751_s10 + $0x20] sm:$0xff]   ;;  %v15304_v22 = vld [vmem:[%s17751_s10 + $0x28] sm:$0xff]   ;;  %v15306_v12 = vld [vmem:[%s17751_s10 + $0x30] sm:$0xff]  }
 0x6f3   :  { %v11137_v31 = vrot.slane %v17266_v11, 1 }
 0x6f4   :  { %v14297_v44 = vrot.slane %v12645_v13, 10  ;;  %v11138_v50 = vrot.slane %v17268_v46, 1  ;;  %v15307_v13 = vld [vmem:[%s17751_s10 + $0x78] sm:$0xff]  }
 0x6f6   :  { %12652 = vst [vmem:[%s17758_s17] sm:$0x33] %v14297_v44  ;;  %11358 = vmatprep.mubr.bf16.mxu1 %v11138_v50  ;;  %v17281_v39 = vpop.f32.mrb[20].mxu0  ;;  %v15308_v44 = vld [vmem:[%s17751_s10 + $0x38] sm:$0xff]   ;;  %v15311_v50 = vld [vmem:[%s17753_s12 + $0x4] ss:$8 sps:$4 sm:$0xff]  }
 0x6f7   :  { %11359 = vmatmul.mubr.bf16.vlgmr.msra.gmra.mrb[48].mxu1 %v11137_v31  ;;  %v17283_v16 = vpop.f32.mrb[21].mxu0 }
 0x6f8   :  { %11592 = vmatpush1.bf16.msra.mxu1 %v15239_v15  ;;  %v11405_v20 = vpop.f32.mrb[22].mxu0  ;;  %11623 = vmatprep.mubr.bf16.mxu1 %v17268_v46 }
 0x6f9   :  { %v11406_v19 = vpop.f32.mrb[23].mxu0  ;;  %11593 = vmatprep.subr.bf16.mxu1 %v15244_v9 }
 0x6fc   :  { %11594 = vmatpush1.bf16.msra.mxu1 %v15242_v17 }
 0x6fd   :  { %11595 = vmatprep.subr.bf16.mxu1 %v15247_v21  ;;  %v11914_v21 = vld [vmem:[%s17767_s1] sm:$0x3] }
 0x6fe   :  { %11918 = vperm.xlu0 %14666, %v11914_v21   ;;  %v15351_v21 = vld [vmem:[%s17753_s12 + $0xe0] ss:$8 sps:$4 sm:$0xff]  }
 0x700   :  { %11596 = vmatpush1.bf16.msra.mxu1 %v15245_v43 }
 0x701   :  { %11597 = vmatprep.subr.bf16.mxu1 %v15250_v23 }
 0x704   :  { %11598 = vmatpush1.bf16.msra.mxu1 %v15248_v52 }
 0x705   :  { %11599 = vmatprep.subr.bf16.mxu1 %v15253_v14 }
 0x708   :  { %11600 = vmatpush1.bf16.msra.mxu1 %v15251_v28 }
 0x709   :  { %11601 = vmatprep.subr.bf16.mxu1 %v15256_v54 }
 0x70c   :  { %11602 = vmatpush1.bf16.msra.mxu1 %v15254_v47 }
 0x70d   :  { %11603 = vmatprep.subr.bf16.mxu1 %v15259_v32 }
 0x710   :  { %11604 = vmatpush1.bf16.msra.mxu1 %v15257_v61 }
 0x711   :  { %11605 = vmatprep.subr.bf16.mxu1 %v15262_v40 }
 0x714   :  { %11606 = vmatpush1.bf16.msra.mxu1 %v15260_v1 }
 0x715   :  { %11607 = vmatprep.subr.bf16.mxu1 %v15265_v25 }
 0x718   :  { %11608 = vmatpush1.bf16.msra.mxu1 %v15263_v38 }
 0x719   :  { %11609 = vmatprep.subr.bf16.mxu1 %v15268_v30 }
 0x71c   :  { %11610 = vmatpush1.bf16.msra.mxu1 %v15266_v45 }
 0x71d   :  { %11611 = vmatprep.subr.bf16.mxu1 %v15271_v49 }
 0x720   :  { %11612 = vmatpush1.bf16.msra.mxu1 %v15269_v59 }
 0x721   :  { %11613 = vmatprep.subr.bf16.mxu1 %v15274_v4 }
 0x724   :  { %11614 = vmatpush1.bf16.msra.mxu1 %v15272_v60 }
 0x725   :  { %11615 = vmatprep.subr.bf16.mxu1 %v15277_v55 }
 0x728   :  { %11616 = vmatpush1.bf16.msra.mxu1 %v15275_v27 }
 0x729   :  { %11617 = vmatprep.subr.bf16.mxu1 %v15280_v8 }
 0x72c   :  { %11618 = vmatpush1.bf16.msra.mxu1 %v15278_v29 }
 0x72d   :  { %11619 = vmatprep.subr.bf16.mxu1 %v15283_v56 }
 0x730   :  { %11620 = vmatpush1.bf16.msra.mxu1 %v15281_v53 }
 0x731   :  { %11621 = vmatprep.subr.bf16.mxu1 %v15286_v34 }
 0x734   :  { %11622 = vmatpush1.bf16.msra.mxu1 %v15284_v57  ;;  %v15309_v57 = vld [vmem:[%s17753_s12] ss:$8 sps:$4 sm:$0xff]  }
 0x735   :  { %11632 = vmatprep.subr.bf16.mxu1 %v15289_v62 }
 0x737   :  { %11624 = vmatmul.mubr.bf16.vlgmr.msra.gmra.mrb[52].mxu1 %v17266_v11 }
 0x738   :  { %11633 = vmatpush1.bf16.msra.mxu1 %v15287_v51  ;;  %11664 = vmatprep.mubr.bf16.mxu1 %v15518_v41  ;;  %v15314_v51 = vld [vmem:[%s17753_s12 + $0x14] ss:$8 sps:$4 sm:$0xff]  }
 0x739   :  { %11634 = vmatprep.subr.bf16.mxu1 %v15292_v2  ;;  %v15312_v2 = vld [vmem:[%s17753_s12 + $0x10] ss:$8 sps:$4 sm:$0xff]  }
 0x73c   :  { %11635 = vmatpush1.bf16.msra.mxu1 %v15290_v58  ;;  %v15317_v58 = vld [vmem:[%s17753_s12 + $0x24] ss:$8 sps:$4 sm:$0xff]  }
 0x73d   :  { %14475 = vmatprep.subr.bf16.mxu1 %v15293_v48  ;;  %v15315_v48 = vld [vmem:[%s17753_s12 + $0x20] ss:$8 sps:$4 sm:$0xff]  }
 0x73f   :  { %14190 = vmatmul.mubr.msk.bf16.vlgmr.msra.gmra.mrb[56].mxu1 %vm11322_vm1, %v17243_v33 }
 0x740   :  { %14476 = vmatpush3.bf16.msra.mxu1 %v15294_v26  ;;  %v15320_v26 = vld [vmem:[%s17753_s12 + $0x34] ss:$8 sps:$4 sm:$0xff]  }
 0x741   :  { %14477 = vmatprep.subr.bf16.mxu1 %v15295_v35  ;;  %v15323_v35 = vld [vmem:[%s17753_s12 + $0x44] ss:$8 sps:$4 sm:$0xff]  }
 0x744   :  { %14478 = vmatpush3.bf16.msra.mxu1 %v15296_v63  ;;  %v15321_v63 = vld [vmem:[%s17753_s12 + $0x40] ss:$8 sps:$4 sm:$0xff]  }
 0x745   :  { %14479 = vmatprep.subr.bf16.mxu1 %v15297_v0  ;;  %v15326_v0 = vld [vmem:[%s17753_s12 + $0x54] ss:$8 sps:$4 sm:$0xff]  }
 0x748   :  { %14480 = vmatpush3.bf16.msra.mxu1 %v15298_v24  ;;  %v15324_v24 = vld [vmem:[%s17753_s12 + $0x50] ss:$8 sps:$4 sm:$0xff]  }
 0x749   :  { %14481 = vmatprep.subr.bf16.mxu1 %v15299_v5  ;;  %v15329_v5 = vld [vmem:[%s17753_s12 + $0x64] ss:$8 sps:$4 sm:$0xff]  }
 0x74c   :  { %14482 = vmatpush3.bf16.msra.mxu1 %v15300_v37  ;;  %v15327_v37 = vld [vmem:[%s17753_s12 + $0x60] ss:$8 sps:$4 sm:$0xff]  }
 0x74d   :  { %14483 = vmatprep.subr.bf16.mxu1 %v15301_v3  ;;  %v15332_v3 = vld [vmem:[%s17753_s12 + $0x74] ss:$8 sps:$4 sm:$0xff]  }
 0x750   :  { %14484 = vmatpush3.bf16.msra.mxu1 %v15302_v6  ;;  %v15330_v6 = vld [vmem:[%s17753_s12 + $0x70] ss:$8 sps:$4 sm:$0xff]  }
 0x751   :  { %14485 = vmatprep.subr.bf16.mxu1 %v15303_v7  ;;  %v15335_v7 = vld [vmem:[%s17753_s12 + $0x84] ss:$8 sps:$4 sm:$0xff]  }
 0x754   :  { %14486 = vmatpush3.bf16.msra.mxu1 %v15304_v22  ;;  %v15333_v22 = vld [vmem:[%s17753_s12 + $0x80] ss:$8 sps:$4 sm:$0xff]  }
 0x755   :  { %14487 = vmatprep.subr.bf16.mxu1 %v15305_v10  ;;  %v15338_v10 = vld [vmem:[%s17753_s12 + $0x94] ss:$8 sps:$4 sm:$0xff]  }
 0x758   :  { %14488 = vmatpush3.bf16.msra.mxu1 %v15306_v12  ;;  %v15336_v12 = vld [vmem:[%s17753_s12 + $0x90] ss:$8 sps:$4 sm:$0xff]  }
 0x759   :  { %14489 = vmatprep.subr.bf16.mxu1 %v15307_v13  ;;  %v15341_v13 = vld [vmem:[%s17753_s12 + $0xa4] ss:$8 sps:$4 sm:$0xff]  }
 0x75c   :  { %14490 = vmatpush3.bf16.msra.mxu1 %v15308_v44  ;;  %v15339_v44 = vld [vmem:[%s17753_s12 + $0xa0] ss:$8 sps:$4 sm:$0xff]  }
 0x75d   :  { %12114 = vmatprep.subr.bf16.mxu1 %v15311_v50  ;;  %v15344_v50 = vld [vmem:[%s17753_s12 + $0xb4] ss:$8 sps:$4 sm:$0xff]  }
 0x7ca   :  { %v11360_v15 = vpop.f32.mrb[48].mxu1 }
 0x7cb   :  { %v11402_v31 = vadd.f32 %v17281_v39, %v11360_v15  ;;  %v11362_v9 = vpop.f32.mrb[49].mxu1  ;;  %v11673_v39 = vld [vmem:[%s17750_s9] sm:$0x3]  ;;  %v15342_v15 = vld [vmem:[%s17753_s12 + $0xb0] ss:$8 sps:$4 sm:$0xff]  }
 0x7cc   :  { %v11404_v20 = vadd.f32 %v17283_v16, %v11362_v9  ;;  %v11364_v17 = vpop.f32.mrb[50].mxu1  ;;  %v11678_v47 = vrot.slane %v11673_v39, %v15787_v36  ;;  %v11682_v32 = vrot.slane %v11673_v39, %v15773_v42  ;;  %v15345_v9 = vld [vmem:[%s17753_s12 + $0xc0] ss:$8 sps:$4 sm:$0xff]  }
 0x7cd   :  { %v11365_v19 = vpop.f32.mrb[51].mxu1  ;;  %v15348_v17 = vld [vmem:[%s17753_s12 + $0xd0] ss:$8 sps:$4 sm:$0xff]   ;;  %v15363_v39 = vld [vmem:[%s17756_s15] ss:$12 sps:$4 sm:$0xff]  }
 0x7ce   :  { %v15353_v19 = vld [vmem:[%s17753_s12 + $0xe4] ss:$8 sps:$4 sm:$0xff]  }
 0x80a   :  { %v11625_v43 = vpop.f32.mrb[52].mxu1 }
 0x80b   :  { %v11626_v23 = vadd.f32 %v11625_v43, %v11402_v31  ;;  %v11627_v52 = vpop.f32.mrb[53].mxu1  ;;  %v15347_v31 = vld [vmem:[%s17753_s12 + $0xc4] ss:$8 sps:$4 sm:$0xff]   ;;  %v15356_v43 = vld [vmem:[%s17753_s12 + $0xf4] ss:$8 sps:$4 sm:$0xff]  }
 0x80c   :  { %v11628_v14 = vadd.f32 %v11627_v52, %v11404_v20  ;;  %v11629_v28 = vpop.f32.mrb[54].mxu1  ;;  %v15350_v20 = vld [vmem:[%s17753_s12 + $0xd4] ss:$8 sps:$4 sm:$0xff]   ;;  %v15359_v52 = vld [vmem:[%s17753_s12 + $0x104] ss:$8 sps:$4 sm:$0xff]  }
 0x80d   :  { %v11630_v54 = vpop.f32.mrb[55].mxu1  ;;  %v15362_v28 = vld [vmem:[%s17753_s12 + $0x114] ss:$8 sps:$4 sm:$0xff]  }
 0x80e   :  { %v15360_v54 = vld [vmem:[%s17753_s12 + $0x110] ss:$8 sps:$4 sm:$0xff]  }
 0x812   :  { %v11666_v16 = vpop.f32.mrb[56].mxu1 }
 0x813   :  { %v11667_v61 = vadd.f32 %v11666_v16, %v11626_v23  ;;  %v11668_v40 = vpop.f32.mrb[57].mxu1  ;;  %v15354_v23 = vld [vmem:[%s17753_s12 + $0xf0] ss:$8 sps:$4 sm:$0xff]  }
 0x814   :  { %v11669_v1 = vadd.f32 %v11668_v40, %v11628_v14  ;;  %v11670_v25 = vpop.f32.mrb[58].mxu1  ;;  %v15357_v14 = vld [vmem:[%s17753_s12 + $0x100] ss:$8 sps:$4 sm:$0xff]   ;;  %v15369_v16 = vld [vmem:[%s17756_s15 + $0x30] ss:$12 sps:$4 sm:$0xff]  }
 0x815   :  { %v11685_v38 = vadd.f32 %v11678_v47, %v11667_v61  ;;  %v11671_v30 = vpop.f32.mrb[59].mxu1  ;;  %v15368_v47 = vld [vmem:[%s17756_s15 + $0x1c] ss:$12 sps:$4 sm:$0xff]   ;;  %v15377_v40 = vld [vmem:[%s17756_s15 + $0x64] ss:$12 sps:$4 sm:$0xff]  }
 0x816   :  { %v11686_v45 = vadd.f32 %v11682_v32, %v11669_v1  ;;  %v15374_v32 = vld [vmem:[%s17756_s15 + $0x4c] ss:$12 sps:$4 sm:$0xff]   ;;  %v15372_v61 = vld [vmem:[%s17756_s15 + $0x48] ss:$12 sps:$4 sm:$0xff]  }
 0x817   :  { %v11689_v49 = vmin.f32 %v11685_v38, 0.0  ;;  %vm11687_vm2 = vcmp.gt.f32.partialorder %v11685_v38, 0.0  ;;  %v15375_v1 = vld [vmem:[%s17756_s15 + $0x60] ss:$12 sps:$4 sm:$0xff]   ;;  %v15380_v25 = vld [vmem:[%s17756_s15 + $0x7c] ss:$12 sps:$4 sm:$0xff]  }
 0x818   :  { %v11690_v59 = vmin.f32 %v11686_v45, 0.0  ;;  %vm11688_vm3 = vcmp.gt.f32.partialorder %v11686_v45, 0.0  ;;  %v15383_v30 = vld [vmem:[%s17756_s15 + $0x94] ss:$12 sps:$4 sm:$0xff]  }
 0x819   :  { %v11691_v4 = vmul.f32 1.442695, %v11689_v49  ;;  %v15386_v49 = vld [vmem:[%s17756_s15 + $0xac] ss:$12 sps:$4 sm:$0xff]  }
 0x81a   :  { %v11693_v60 = vmul.f32 1.442695, %v11690_v59  ;;  %v15384_v59 = vld [vmem:[%s17756_s15 + $0xa8] ss:$12 sps:$4 sm:$0xff]  }
 0x81b   :  { %15459 = vpow2.f32 %v11691_v4  ;;  %v15389_v4 = vld [vmem:[%s17756_s15 + $0xc4] ss:$12 sps:$4 sm:$0xff]  }
 0x81c   :  { %15461 = vpow2.f32 %v11693_v60  ;;  %v15390_v60 = vld [vmem:[%s17756_s15 + $0xc8] ss:$12 sps:$4 sm:$0xff]  }
 0x81d   :  { %14497 = vmatprep.subr.bf16.mxu0 %v15390_v60 }
 0x825   :  { %v15460_v55 = vpop.eup %15459 }
 0x826   :  { %v15462_v27 = vpop.eup %15461  ;;  %v14191_v8 = vadd.f32 -1.0, %v15460_v55  ;;  %v15387_v55 = vld [vmem:[%s17756_s15 + $0xc0] ss:$12 sps:$4 sm:$0xff]  }
 0x827   :  { %v14192_v29 = vadd.f32 -1.0, %v15462_v27  ;;  %v15391_v27 = vld [vmem:[%s17756_s15 + $0x8] ss:$12 sps:$4 sm:$0xff]  }
 0x828   :  { %v11697_v56 = vsel %vm11687_vm2, %v11685_v38, %v14191_v8  ;;  %v15378_v38 = vld [vmem:[%s17756_s15 + $0x78] ss:$12 sps:$4 sm:$0xff]   ;;  %v15394_v8 = vld [vmem:[%s17756_s15 + $0xdc] ss:$12 sps:$4 sm:$0xff]   ;;  %14498 = vmatpush3.bf16.msra.mxu0 %v15391_v27 }
 0x829   :  { %v11698_v53 = vsel %vm11688_vm3, %v11686_v45, %v14192_v29  ;;  %v11699_v62 = vpack.c.bf16 %v11697_v56, %v11697_v56  ;;  %v15381_v45 = vld [vmem:[%s17756_s15 + $0x90] ss:$12 sps:$4 sm:$0xff]   ;;  %v15395_v29 = vld [vmem:[%s17756_s15 + $0xe0] ss:$12 sps:$4 sm:$0xff]   ;;  %v15392_v56 = vld [vmem:[%s17756_s15 + $0xd8] ss:$12 sps:$4 sm:$0xff]  }
 0x82a   :  { %v11700_v34 = vpack.c.bf16 %v11698_v53, %v11698_v53  ;;  %14499 = vmatprep.subr.bf16.mxu0 %v15395_v29  ;;  %v15396_v53 = vld [vmem:[%s17756_s15 + $0x20] ss:$12 sps:$4 sm:$0xff]  }
 0x82c   :  { %11868 = vmatprep.mubr.bf16.mxu1 %v11700_v34  ;;  %14500 = vmatpush3.bf16.msra.mxu0 %v15396_v53  ;;  %v15399_v34 = vld [vmem:[%s17756_s15 + $0xf4] ss:$12 sps:$4 sm:$0xff]  }
 0x82d   :  { %11869 = vmatmul.mubr.bf16.vlgmr.msra.gmra.mrb[60].mxu1 %v11699_v62  ;;  %v15397_v62 = vld [vmem:[%s17756_s15 + $0xf0] ss:$12 sps:$4 sm:$0xff]  }
 0x82e   :  { %12115 = vmatpush1.bf16.msra.mxu1 %v15309_v57  ;;  %12146 = vmatprep.mubr.bf16.mxu1 %v17268_v46  ;;  %v15318_v46 = vld [vmem:[%s17753_s12 + $0x30] ss:$8 sps:$4 sm:$0xff]  }
 0x82f   :  { %12116 = vmatprep.subr.bf16.mxu1 %v15314_v51  ;;  %v15400_v57 = vld [vmem:[%s17756_s15 + $0xf8] ss:$12 sps:$4 sm:$0xff]  }
 0x830   :  { %v15401_v51 = vld [vmem:[%s17756_s15 + $0x38] ss:$12 sps:$4 sm:$0xff]   ;;  %14501 = vmatprep.subr.bf16.mxu0 %v15400_v57 }
 0x831   :  { %14502 = vmatpush3.bf16.msra.mxu0 %v15401_v51 }
 0x832   :  { %12117 = vmatpush1.bf16.msra.mxu1 %v15312_v2  ;;  %v15404_v2 = vld [vmem:[%s17756_s15 + $0x10c] ss:$12 sps:$4 sm:$0xff]  }
 0x833   :  { %12118 = vmatprep.subr.bf16.mxu1 %v15317_v58  ;;  %v15405_v58 = vld [vmem:[%s17756_s15 + $0x110] ss:$12 sps:$4 sm:$0xff]  }
 0x834   :  { %14503 = vmatprep.subr.bf16.mxu0 %v15405_v58 }
 0x836   :  { %12119 = vmatpush1.bf16.msra.mxu1 %v15315_v48  ;;  %v15402_v48 = vld [vmem:[%s17756_s15 + $0x108] ss:$12 sps:$4 sm:$0xff]  }
 0x837   :  { %12120 = vmatprep.subr.bf16.mxu1 %v15320_v26  ;;  %v15406_v26 = vld [vmem:[%s17756_s15 + $0x50] ss:$12 sps:$4 sm:$0xff]  }
 0x838   :  { %14504 = vmatpush3.bf16.msra.mxu0 %v15406_v26 }
 0x83a   :  { %12121 = vmatpush1.bf16.msra.mxu1 %v15318_v46  ;;  %v15409_v46 = vld [vmem:[%s17756_s15 + $0x124] ss:$12 sps:$4 sm:$0xff]  }
 0x83b   :  { %12122 = vmatprep.subr.bf16.mxu1 %v15323_v35  ;;  %v15410_v35 = vld [vmem:[%s17756_s15 + $0x128] ss:$12 sps:$4 sm:$0xff]  }
 0x83c   :  { %14505 = vmatprep.subr.bf16.mxu0 %v15410_v35 }
 0x83e   :  { %12123 = vmatpush1.bf16.msra.mxu1 %v15321_v63  ;;  %v15407_v63 = vld [vmem:[%s17756_s15 + $0x120] ss:$12 sps:$4 sm:$0xff]  }
 0x83f   :  { %12124 = vmatprep.subr.bf16.mxu1 %v15326_v0  ;;  %v15411_v0 = vld [vmem:[%s17756_s15 + $0x68] ss:$12 sps:$4 sm:$0xff]  }
 0x840   :  { %14506 = vmatpush3.bf16.msra.mxu0 %v15411_v0 }
 0x842   :  { %12125 = vmatpush1.bf16.msra.mxu1 %v15324_v24  ;;  %v15414_v24 = vld [vmem:[%s17756_s15 + $0x13c] ss:$12 sps:$4 sm:$0xff]  }
 0x843   :  { %12126 = vmatprep.subr.bf16.mxu1 %v15329_v5  ;;  %v15415_v5 = vld [vmem:[%s17756_s15 + $0x140] ss:$12 sps:$4 sm:$0xff]  }
 0x844   :  { %14507 = vmatprep.subr.bf16.mxu0 %v15415_v5 }
 0x846   :  { %12127 = vmatpush1.bf16.msra.mxu1 %v15327_v37  ;;  %v15412_v37 = vld [vmem:[%s17756_s15 + $0x138] ss:$12 sps:$4 sm:$0xff]  }
 0x847   :  { %12128 = vmatprep.subr.bf16.mxu1 %v15332_v3  ;;  %v15416_v3 = vld [vmem:[%s17756_s15 + $0x80] ss:$12 sps:$4 sm:$0xff]  }
 0x848   :  { %14508 = vmatpush3.bf16.msra.mxu0 %v15416_v3 }
 0x84a   :  { %12129 = vmatpush1.bf16.msra.mxu1 %v15330_v6  ;;  %v15419_v6 = vld [vmem:[%s17756_s15 + $0x154] ss:$12 sps:$4 sm:$0xff]  }
 0x84b   :  { %12130 = vmatprep.subr.bf16.mxu1 %v15335_v7  ;;  %v15420_v7 = vld [vmem:[%s17756_s15 + $0x158] ss:$12 sps:$4 sm:$0xff]  }
 0x84c   :  { %14509 = vmatprep.subr.bf16.mxu0 %v15420_v7 }
 0x84e   :  { %12131 = vmatpush1.bf16.msra.mxu1 %v15333_v22  ;;  %v15417_v22 = vld [vmem:[%s17756_s15 + $0x150] ss:$12 sps:$4 sm:$0xff]  }
 0x84f   :  { %12132 = vmatprep.subr.bf16.mxu1 %v15338_v10  ;;  %v15421_v10 = vld [vmem:[%s17756_s15 + $0x98] ss:$12 sps:$4 sm:$0xff]  }
 0x850   :  { %14510 = vmatpush3.bf16.msra.mxu0 %v15421_v10 }
 0x852   :  { %12133 = vmatpush1.bf16.msra.mxu1 %v15336_v12  ;;  %v15424_v12 = vld [vmem:[%s17756_s15 + $0x16c] ss:$12 sps:$4 sm:$0xff]  }
 0x853   :  { %12134 = vmatprep.subr.bf16.mxu1 %v15341_v13  ;;  %v15425_v13 = vld [vmem:[%s17756_s15 + $0x170] ss:$12 sps:$4 sm:$0xff]  }
 0x854   :  { %14511 = vmatprep.subr.bf16.mxu0 %v15425_v13 }
 0x856   :  { %12135 = vmatpush1.bf16.msra.mxu1 %v15339_v44  ;;  %v15422_v44 = vld [vmem:[%s17756_s15 + $0x168] ss:$12 sps:$4 sm:$0xff]  }
 0x857   :  { %12136 = vmatprep.subr.bf16.mxu1 %v15344_v50  ;;  %v15426_v50 = vld [vmem:[%s17756_s15 + $0xb0] ss:$12 sps:$4 sm:$0xff]  }
 0x858   :  { %14512 = vmatpush3.bf16.msra.mxu0 %v15426_v50 }
 0x85a   :  { %12137 = vmatpush1.bf16.msra.mxu1 %v15342_v15 }
 0x85b   :  { %12138 = vmatprep.subr.bf16.mxu1 %v15347_v31  ;;  %v14193_v31 = vld [vmem:[%s17752_s11] ss:$0 sm:$0xff] }
 0x85e   :  { %12139 = vmatpush1.bf16.msra.mxu1 %v15345_v9 }
 0x85f   :  { %12140 = vmatprep.subr.bf16.mxu1 %v15350_v20 }
 0x862   :  { %12141 = vmatpush1.bf16.msra.mxu1 %v15348_v17 }
 0x863   :  { %12142 = vmatprep.subr.bf16.mxu1 %v15353_v19 }
 0x866   :  { %12143 = vmatpush1.bf16.msra.mxu1 %v15351_v21 }
 0x867   :  { %12144 = vmatprep.subr.bf16.mxu1 %v15356_v43  ;;  %v11915_v43 = vld [vmem:[%s17754_s13] sm:$0x3]  ;;  %s15519_s13 = smov [#allocation6]  }
 0x86a   :  { %12145 = vmatpush1.bf16.msra.mxu1 %v15354_v23  ;;  %v11925_v23 = vrot.slane %v11915_v43, %v15787_v36 }
 0x86b   :  { %12155 = vmatprep.subr.bf16.mxu1 %v15359_v52  ;;  %v11929_v52 = vrot.slane %v11915_v43, %v15773_v42 }
 0x86d   :  { %12147 = vmatmul.mubr.bf16.vlgmr.msra.gmra.mrb[64].mxu1 %v17266_v11  ;;  %v15365_v11 = vld [vmem:[%s17756_s15 + $0x4] ss:$12 sps:$4 sm:$0xff]  }
 0x86e   :  { %12156 = vmatpush1.bf16.msra.mxu1 %v15357_v14  ;;  %12187 = vmatprep.mubr.bf16.mxu1 %v15518_v41  ;;  %v15366_v41 = vld [vmem:[%s17756_s15 + $0x18] ss:$12 sps:$4 sm:$0xff]   ;;  %v11919_v14 = vpop.permute.xlu0 %11918 }
 0x86f   :  { %12157 = vmatprep.subr.bf16.mxu1 %v15362_v28 }
 0x872   :  { %12158 = vmatpush1.bf16.msra.mxu1 %v15360_v54 }
 0x873   :  { %12561 = vmatprep.subr.bf16.mxu1 %v15365_v11  ;;  %v11932_v11 = vmul.f32 %v11925_v23, %v11919_v14 }
 0x875   :  { %14246 = vmatmul.mubr.msk.bf16.vlgmr.msra.gmra.mrb[68].mxu1 %vm11322_vm1, %v17243_v33  ;;  %v15371_v33 = vld [vmem:[%s17756_s15 + $0x34] ss:$12 sps:$4 sm:$0xff]  }
 0x876   :  { %12562 = vmatpush1.bf16.msra.mxu1 %v15363_v39 }
 0x877   :  { %12563 = vmatprep.subr.bf16.mxu1 %v15368_v47 }
 0x87a   :  { %12564 = vmatpush1.bf16.msra.mxu1 %v15366_v41  ;;  %v11933_v41 = vmul.f32 %v11929_v52, %v11919_v14 }
 0x87b   :  { %12565 = vmatprep.subr.bf16.mxu1 %v15371_v33  ;;  %v12196_v33 = vld [vmem:[%s17755_s14] sm:$0x3]  ;;  %s12674_s14 = sshll.u32 %s15519_s13, 4  ;;  %s12675_s14 = int_to_ptr.vmem [resolvable:$true] %s12674_s14 }
 0x87c   :  { %s15489_s23 = scalar_lea.vmem %s12675_s14, 32  ;;  %p15494_p9 = scmp.lt.s32.totalorder %s12675_s14, %s12675_s14 }
 0x87d   :  { %p15490_p8 = scmp.ne.s32.totalorder %s12675_s14, %s15489_s23  ;;  %p15495_p10 = scmp.lt.s32.totalorder %s15489_s23, %s15489_s23 }
 0x87e   :  { %12566 = vmatpush1.bf16.msra.mxu1 %v15369_v16 }
 0x87f   :  { %12567 = vmatprep.subr.bf16.mxu1 %v15374_v32  ;;  %v12201_v32 = vrot.slane %v12196_v33, %v15787_v36  ;;  %p15496_p11 = por %p15495_p10, %p15494_p9 }
 0x881   :  { %p15497_p12 = pnand %p15496_p11, %p15490_p8 }
 0x882   :  { %12568 = vmatpush1.bf16.msra.mxu1 %v15372_v61 }
 0x883   :  { %12569 = vmatprep.subr.bf16.mxu1 %v15377_v40 }
 0x886   :  { %12570 = vmatpush1.bf16.msra.mxu1 %v15375_v1  ;;  %v12205_v1 = vrot.slane %v12196_v33, %v15773_v42 }
 0x887   :  { %12571 = vmatprep.subr.bf16.mxu1 %v15380_v25 }
 0x88a   :  { %12572 = vmatpush1.bf16.msra.mxu1 %v15378_v38 }
 0x88b   :  { %12573 = vmatprep.subr.bf16.mxu1 %v15383_v30 }
 0x88e   :  { %12574 = vmatpush1.bf16.msra.mxu1 %v15381_v45 }
 0x88f   :  { %12575 = vmatprep.subr.bf16.mxu1 %v15386_v49 }
 0x892   :  { %12576 = vmatpush1.bf16.msra.mxu1 %v15384_v59 }
 0x893   :  { %12577 = vmatprep.subr.bf16.mxu1 %v15389_v4 }
 0x896   :  { %12578 = vmatpush1.bf16.msra.mxu1 %v15387_v55 }
 0x897   :  { %12579 = vmatprep.subr.bf16.mxu1 %v15394_v8 }
 0x89a   :  { %12580 = vmatpush1.bf16.msra.mxu1 %v15392_v56 }
 0x89b   :  { %12581 = vmatprep.subr.bf16.mxu1 %v15399_v34 }
 0x89e   :  { %12582 = vmatpush1.bf16.msra.mxu1 %v15397_v62 }
 0x89f   :  { %12583 = vmatprep.subr.bf16.mxu1 %v15404_v2 }
 0x8a2   :  { %12584 = vmatpush1.bf16.msra.mxu1 %v15402_v48 }
 0x8a3   :  { %12585 = vmatprep.subr.bf16.mxu1 %v15409_v46 }
 0x8a6   :  { %12586 = vmatpush1.bf16.msra.mxu1 %v15407_v63 }
 0x8a7   :  { %12587 = vmatprep.subr.bf16.mxu1 %v15414_v24 }
 0x8aa   :  { %12588 = vmatpush1.bf16.msra.mxu1 %v15412_v37 }
 0x8ab   :  { %12589 = vmatprep.subr.bf16.mxu1 %v15419_v6 }
 0x8ae   :  { %12590 = vmatpush1.bf16.msra.mxu1 %v15417_v22 }
 0x8af   :  { %12591 = vmatprep.subr.bf16.mxu1 %v15424_v12 }
 0x8b2   :  { %12592 = vmatpush1.bf16.msra.mxu1 %v15422_v44 }
 0x900   :  { %v14491_v15 = vpop.f32.mrb[60].mxu1 }
 0x901   :  { %v14492_v9 = vpop.f32.mrb[61].mxu1 }
 0x902   :  { %v14493_v20 = vadd.f32 %v14492_v9, %v14491_v15  ;;  %v14494_v17 = vpop.f32.mrb[62].mxu1 }
 0x903   :  { %v14495_v19 = vpop.f32.mrb[63].mxu1 }
 0x904   :  { %v11871_v21 = vadd.f32 %v14493_v20, %v14193_v31 }
 0x906   :  { %11877 = vst.msk [vmem:[#allocation6] sm:$0x3] %vm11876_vm4, %v11871_v21 }
 0x940   :  { %v12148_v28 = vpop.f32.mrb[64].mxu1 }
 0x941   :  { %v12150_v54 = vpop.f32.mrb[65].mxu1  ;;  %v12149_v16 = vadd.f32 %v12148_v28, %v11932_v11 }
 0x942   :  { %v12152_v39 = vpop.f32.mrb[66].mxu1  ;;  %v12151_v61 = vadd.f32 %v12150_v54, %v11933_v41 }
 0x943   :  { %v12153_v47 = vpop.f32.mrb[67].mxu1 }
 0x948   :  { %v12189_v40 = vpop.f32.mrb[68].mxu1 }
 0x949   :  { %v12190_v25 = vadd.f32 %v12189_v40, %v12149_v16  ;;  %v12191_v38 = vpop.f32.mrb[69].mxu1 }
 0x94a   :  { %v12192_v30 = vadd.f32 %v12191_v38, %v12151_v61  ;;  %v12193_v45 = vpop.f32.mrb[70].mxu1 }
 0x94b   :  { %v12208_v49 = vadd.f32 %v12201_v32, %v12190_v25  ;;  %v12194_v59 = vpop.f32.mrb[71].mxu1 }
 0x94c   :  { %v12209_v4 = vadd.f32 %v12205_v1, %v12192_v30 }
 0x94d   :  { %v12212_v60 = vmin.f32 %v12208_v49, 0.0  ;;  %vm12210_vm5 = vcmp.gt.f32.partialorder %v12208_v49, 0.0 }
 0x94e   :  { %v12213_v55 = vmin.f32 %v12209_v4, 0.0  ;;  %vm12211_vm6 = vcmp.gt.f32.partialorder %v12209_v4, 0.0 }
 0x94f   :  { %v12214_v27 = vmul.f32 1.442695, %v12212_v60 }
 0x950   :  { %v12216_v8 = vmul.f32 1.442695, %v12213_v55 }
 0x951   :  { %15463 = vpow2.f32 %v12214_v27 }
 0x952   :  { %15465 = vpow2.f32 %v12216_v8 }
 0x95b   :  { %v15464_v29 = vpop.eup %15463 }
 0x95c   :  { %v15466_v56 = vpop.eup %15465  ;;  %v14247_v53 = vadd.f32 -1.0, %v15464_v29 }
 0x95d   :  { %v14248_v34 = vadd.f32 -1.0, %v15466_v56 }
 0x95e   :  { %v12220_v57 = vsel %vm12210_vm5, %v12208_v49, %v14247_v53 }
 0x95f   :  { %v12221_v62 = vsel %vm12211_vm6, %v12209_v4, %v14248_v34  ;;  %v12222_v2 = vpack.c.bf16 %v12220_v57, %v12220_v57 }
 0x960   :  { %v12223_v51 = vpack.c.bf16 %v12221_v62, %v12221_v62 }
 0x962   :  { %12593 = vmatprep.mubr.bf16.mxu1 %v12223_v51  ;;  %12634 = vmatprep.mubr.bf16.mxu0 %v12223_v51 }
 0x963   :  { %12594 = vmatmul.mubr.bf16.vlgmr.msra.gmra.mrb[72].mxu1 %v12222_v2  ;;  %12635 = vmatmul.mubr.bf16.vlgmr.msra.gmra.mrb[24].mxu0 %v12222_v2 }
 0x964   :  { %15500 = shalt.err (!%p15497_p12)
}
 0x965   :  { %s15501_s25 = scalar_lea.hbm %s17759_s18, 32 }
 0x966   :  { %p15502_p13 = scmp.ne.s32.totalorder %s17759_s18, %s15501_s25  ;;  %p15505_p0 = scmp.lt.u32.totalorder %s15501_s25, %s17759_s18 }
 0x968   :  { %p15507_p1 = pnand %p15505_p0, %p15502_p13 }
 0x96a   :  { %15510 = shalt.err (!%p15507_p1)
}
 0x96b   :  { %12677 = dma.vmem_to_hbm [thread:$0]  %s12675_s14, 32, %s17759_s18, [#allocation5]   ;;  %v12288_v58 = vld [vmem:[%s17757_s16] sm:$0x7]  ;;  %vm12664_vm7 = vcmask 257026  }
 0x96c   :  { %v12293_v48 = vrot.slane %v12288_v58, %v15787_v36  ;;  %v12297_v26 = vrot.slane %v12288_v58, %v15773_v42  ;;  %v12301_v63 = vrot.slane %v12288_v58, %v15895_v18 }
 0xa36   :  { %v12595_v46 = vpop.f32.mrb[72].mxu1  ;;  %v14513_v35 = vpop.f32.mrb[24].mxu0 }
 0xa37   :  { %v12596_v0 = vadd.f32 %v12595_v46, %v12293_v48  ;;  %v12597_v24 = vpop.f32.mrb[73].mxu1  ;;  %v14514_v5 = vpop.f32.mrb[25].mxu0 }
 0xa38   :  { %v12598_v37 = vadd.f32 %v12597_v24, %v12297_v26  ;;  %v14515_v3 = vadd.f32 %v14514_v5, %v14513_v35  ;;  %v12599_v6 = vpop.f32.mrb[74].mxu1  ;;  %v14516_v7 = vpop.f32.mrb[26].mxu0 }
 0xa39   :  { %v12600_v22 = vpop.f32.mrb[75].mxu1  ;;  %v14517_v10 = vpop.f32.mrb[27].mxu0 }
 0xa3a   :  { %v12658_v12 = vcombine.low %v12596_v0, %v12598_v37  ;;  %v12637_v13 = vadd.f32 %v14515_v3, %v12301_v63 }
 0xa3c   :  { %v12659_v44 = vrot.slane %v12658_v12, 6  ;;  %v12660_v36 = vrot.slane %v12637_v13, 6 }
 0xa3e   :  { %12663 = vst [vmem:[%s17758_s17] sm:$0xcc] %v12659_v44  ;;  %12665 = vst.msk [vmem:[%s17758_s17 + $0x8] sm:$0xc] %vm12664_vm7, %v12660_v36 }
 0xa3f   :  { %15513 = dma.done.wait [#allocation5], 32  }
 0xa40   :  { %15514 = vsyncadd [#allocation5], 4294967264 }
 0xa41   :  { %12683 = vsyncpa [#allocation4], 1 }
 0xa42   :  { %12684 = vsyncpa [#allocation5], 1 }

</bundles_post_ra>
